<compile_context>
chip_gen: v5e
topology: v5e:2x2
jax: 0.10.0
libtpu: 0.0.40
codegen_flags: <defaults>
</compile_context>

<pallas_src>
import functools

import jax
import jax.numpy as jnp
from jax.experimental import pallas as pl
from jax.experimental.pallas import tpu as pltpu


VMEM_LIMIT = 32 * 1024 * 1024        # explicit scoped-VMEM limit (v7x-safe)
LN_EPS = 1e-5                         # PyTorch nn.LayerNorm default


# ----------------------------------------------------------------------------
# Tile selection helpers
# ----------------------------------------------------------------------------

def _pick_tile(dim, cap, align):
    """Largest tile <= cap that divides `dim` and respects `align`; else full."""
    if dim <= cap:
        return dim
    t = (cap // align) * align
    while t >= align:
        if dim % t == 0:
            return t
        t -= align
    return dim


# ----------------------------------------------------------------------------
# Fused (LN) -> matmul -> (+bias, +GELU, +residual) kernel
# ----------------------------------------------------------------------------

def _matmul_kernel(*refs, has_ln, has_bias, has_res, act, ln_eps):
    x_ref, w_ref = refs[0], refs[1]
    pos = 2
    if has_ln:
        g_ref, bln_ref = refs[pos], refs[pos + 1]
        pos += 2
    if has_bias:
        bias_ref = refs[pos]
        pos += 1
    if has_res:
        res_ref = refs[pos]
        pos += 1
    o_ref = refs[pos]
    acc_ref = refs[pos + 1]

    kk = pl.program_id(2)

    @pl.when(kk == 0)
    def _init():
        acc_ref[...] = jnp.zeros_like(acc_ref)

    x = x_ref[...].astype(jnp.float32)
    if has_ln:
        mu = jnp.mean(x, axis=-1, keepdims=True)
        var = jnp.mean(jnp.square(x - mu), axis=-1, keepdims=True)
        x = (x - mu) * jax.lax.rsqrt(var + ln_eps) * g_ref[...] + bln_ref[...]

    acc_ref[...] += jnp.dot(
        x.astype(jnp.bfloat16),
        w_ref[...].astype(jnp.bfloat16),
        preferred_element_type=jnp.float32,
    )

    @pl.when(kk == pl.num_programs(2) - 1)
    def _finalize():
        r = acc_ref[...]
        if has_bias:
            r = r + bias_ref[...]
        if act == "gelu":
            # TODO(synk): PyTorch default GELU is the exact erf form; the
            # tanh approximation is used here for Mosaic-safe lowering.
            r = jax.nn.gelu(r, approximate=True)
        if has_res:
            r = r + res_ref[...].astype(jnp.float32)
        o_ref[...] = r.astype(o_ref.dtype)


def pallas_matmul(x, w, b=None, ln=None, act=None, residual=None,
                  out_dtype=jnp.bfloat16, ln_eps=LN_EPS):
    """out = act(LN(x) @ w + b) + residual  (each piece optional).

    x: (M, K), w: (K, N).  Weights/activations fed to the MXU in bf16,
    accumulation in f32.  Tiled over (M, N, K) with a VMEM accumulator.
    """
    M, K = x.shape
    Kw, N = w.shape
    assert K == Kw
    has_ln = ln is not None
    has_bias = b is not None
    has_res = residual is not None

    TM = _pick_tile(M, 256, 8)
    TN = _pick_tile(N, 512, 128)
    TK = K if has_ln else _pick_tile(K, 512, 128)   # LN needs full rows
    grid = (M // TM, N // TN, K // TK)

    in_specs = [
        pl.BlockSpec((TM, TK), lambda i, j, k: (i, k)),
        pl.BlockSpec((TK, TN), lambda i, j, k: (k, j)),
    ]
    args = [x, w.astype(jnp.bfloat16)]
    if has_ln:
        g, be = ln
        in_specs += [pl.BlockSpec((1, K), lambda i, j, k: (0, 0)),
                     pl.BlockSpec((1, K), lambda i, j, k: (0, 0))]
        args += [g.reshape(1, K).astype(jnp.float32),
                 be.reshape(1, K).astype(jnp.float32)]
    if has_bias:
        in_specs += [pl.BlockSpec((1, TN), lambda i, j, k: (0, j))]
        args += [b.reshape(1, N).astype(jnp.float32)]
    if has_res:
        in_specs += [pl.BlockSpec((TM, TN), lambda i, j, k: (i, j))]
        args += [residual]

    kernel = functools.partial(_matmul_kernel, has_ln=has_ln,
                               has_bias=has_bias, has_res=has_res,
                               act=act, ln_eps=ln_eps)
    return pl.pallas_call(
        kernel,
        out_shape=jax.ShapeDtypeStruct((M, N), out_dtype),
        grid=grid,
        in_specs=in_specs,
        out_specs=pl.BlockSpec((TM, TN), lambda i, j, k: (i, j)),
        scratch_shapes=[pltpu.VMEM((TM, TN), jnp.float32)],
        compiler_params=pltpu.CompilerParams(
            dimension_semantics=("parallel", "parallel", "arbitrary"),
            vmem_limit_bytes=VMEM_LIMIT),
    )(*args)


# ----------------------------------------------------------------------------
# Fused attention kernel: QK^T + mask + softmax + PV in one pass
# ----------------------------------------------------------------------------

def _attn_kernel(q_ref, k_ref, v_ref, m_ref, o_ref, *, scale):
    # q/k/v refs: (H, S, hd) bf16 ; m_ref: (1, 1, S) additive mask (f32)
    s = jnp.einsum("hqd,hkd->hqk", q_ref[...], k_ref[...],
                   preferred_element_type=jnp.float32) * scale
    s = s + m_ref[...]                       # broadcast over heads & query rows
    mx = jnp.max(s, axis=-1, keepdims=True)
    e = jnp.exp(s - mx)
    denom = jnp.sum(e, axis=-1, keepdims=True)
    p = e * pl.reciprocal(denom, approx=True)
    ctx = jnp.einsum("hqk,hkd->hqd", p.astype(v_ref.dtype), v_ref[...],
                     preferred_element_type=jnp.float32)
    o_ref[...] = ctx.astype(o_ref.dtype)


def pallas_attention(q, k, v, mask_add, num_heads, scale):
    """q, k, v: (B*H, S, hd) bf16 ; mask_add: (B, 1, S) f32 -> (B*H, S, hd)."""
    BH, S, hd = q.shape
    B = BH // num_heads
    H = num_heads
    kernel = functools.partial(_attn_kernel, scale=scale)
    return pl.pallas_call(
        kernel,
        out_shape=jax.ShapeDtypeStruct((BH, S, hd), jnp.bfloat16),
        grid=(B,),
        in_specs=[
            pl.BlockSpec((H, S, hd), lambda b: (b, 0, 0)),
            pl.BlockSpec((H, S, hd), lambda b: (b, 0, 0)),
            pl.BlockSpec((H, S, hd), lambda b: (b, 0, 0)),
            pl.BlockSpec((1, 1, S), lambda b: (b, 0, 0)),
        ],
        out_specs=pl.BlockSpec((H, S, hd), lambda b: (b, 0, 0)),
        compiler_params=pltpu.CompilerParams(
            dimension_semantics=("parallel",),
            vmem_limit_bytes=VMEM_LIMIT),
    )(q, k, v, mask_add)


# ----------------------------------------------------------------------------
# MultiwayTransformer backbone (forward only)
# ----------------------------------------------------------------------------

def encoder_layer(x, mask_add, lp, mode, layer_idx, cfg):
    """Pre-LN Multiway transformer block (shared attention, modality FFNs)."""
    B, S, D = x.shape
    H = cfg['num_heads']
    hd = D // H
    x2 = x.reshape(B * S, D)

    # Attention: LN1 fused into the (fused) QKV matmul prologue.
    qkv = pallas_matmul(x2, lp['wqkv'], lp['bqkv'],
                        ln=(lp['ln1_g'], lp['ln1_b']))            # (B*S, 3D)
    qkv = qkv.reshape(B, S, 3, H, hd).transpose(2, 0, 3, 1, 4)    # (3,B,H,S,hd)
    q = qkv[0].reshape(B * H, S, hd)
    k = qkv[1].reshape(B * H, S, hd)
    v = qkv[2].reshape(B * H, S, hd)
    ctx = pallas_attention(q, k, v, mask_add, H, hd ** -0.5)      # (B*H,S,hd)
    ctx = ctx.reshape(B, H, S, hd).transpose(0, 2, 1, 3).reshape(B * S, D)
    # Output projection with the residual add fused in the epilogue.
    x = pallas_matmul(ctx, lp['wo'], lp['bo'], residual=x2).reshape(B, S, D)

    # FFN: LN2 fused into w1's prologue, GELU into its epilogue,
    # residual fused into w2's epilogue.
    def run_ffn(tokens, which):
        Bt, St, Dt = tokens.shape
        t2 = tokens.reshape(Bt * St, Dt)
        h = pallas_matmul(t2, lp[f'w1_{which}'], lp[f'b1_{which}'],
                          ln=(lp[f'ln2_{which}_g'], lp[f'ln2_{which}_b']),
                          act='gelu')
        out = pallas_matmul(h, lp[f'w2_{which}'], lp[f'b2_{which}'],
                            residual=t2)
        return out.reshape(Bt, St, Dt)

    if mode == 'vision':
        x = run_ffn(x, 'vision')
    elif mode == 'text':
        x = run_ffn(x, 'text')
    else:  # 'vl'
        if layer_idx in cfg['vlffn_layers']:
            x = run_ffn(x, 'vl')
        else:
            nv = cfg['num_vision_tokens'] + 1
            fv = run_ffn(x[:, :nv], 'vision')
            ft = run_ffn(x[:, nv:], 'text')
            x = jnp.concatenate([fv, ft], axis=1)
    return x


def pre_forward_vision(params, cfg, image):
    B, C, Him, Wim = image.shape
    p = cfg['patch']
    Hp, Wp = Him // p, Wim // p
    # Patchify (NCHW -> (B*num_patches, C*p*p)); matches torch Conv2d weight
    # flattening order (C, ph, pw).
    patches = image.reshape(B, C, Hp, p, Wp, p)
    patches = patches.transpose(0, 2, 4, 1, 3, 5).reshape(B * Hp * Wp, C * p * p)
    x = pallas_matmul(patches, params['patch_w'], params['patch_b'])
    x = x.reshape(B, Hp * Wp, cfg['hidden'])
    cls = jnp.broadcast_to(params['cls_token'], (B, 1, cfg['hidden']))
    x = jnp.concatenate([cls, x], axis=1) + params['pos_vis']
    mask = jnp.ones((B, x.shape[1]), jnp.float32)
    return x.astype(jnp.bfloat16), mask


def pre_forward_text(params, cfg, text_ids, text_atts):
    emb = jnp.take(params['word_emb'], text_ids, axis=0) + params['pos_txt']
    return emb.astype(jnp.bfloat16), text_atts.astype(jnp.float32)


def backbone_forward(params, cfg, image=None, text_ids=None, text_atts=None,
                     mode='vl'):
    if mode == 'vision':
        x, mask = pre_forward_vision(params, cfg, image)
    elif mode == 'text':
        x, mask = pre_forward_text(params, cfg, text_ids, text_atts)
    else:  # 'vl'
        xv, mv = pre_forward_vision(params, cfg, image)
        xt, mt = pre_forward_text(params, cfg, text_ids, text_atts)
        x = jnp.concatenate([xv, xt], axis=1)
        mask = jnp.concatenate([mv, mt], axis=1)

    B, S, _ = x.shape
    mask_add = ((1.0 - mask) * -10000.0).astype(jnp.float32).reshape(B, 1, S)

    for l, lp in enumerate(params['layers']):
        x = encoder_layer(x, mask_add, lp, mode, l, cfg)

    # NOTE: the final backbone LayerNorm is fused into the downstream head
    # matmuls (LN is row-wise, so applying it only to the consumed rows
    # is mathematically identical to normalizing the whole sequence).
    return x


# ----------------------------------------------------------------------------
# BEiT forward (losses)
# ----------------------------------------------------------------------------

def l2_normalize(x, eps=1e-12):
    n = jnp.sqrt(jnp.sum(x * x, axis=-1, keepdims=True))
    return x / jnp.maximum(n, eps)


def cal_itc_loss(itc_logits):
    bsz = itc_logits.shape[0]
    idx = jnp.arange(bsz)
    logp_i2t = jax.nn.log_softmax(itc_logits, axis=1)
    logp_t2i = jax.nn.log_softmax(itc_logits.T, axis=1)
    loss_i2t = -jnp.mean(logp_i2t[idx, idx])
    loss_t2i = -jnp.mean(logp_t2i[idx, idx])
    return (loss_i2t + loss_t2i) / 2.0


def cal_itm_loss(params, cfg, image, text_ids, text_atts, itc_logits):
    bs = text_ids.shape[0]
    itm_labels = jnp.concatenate(
        [jnp.ones(bs, jnp.int32), jnp.zeros(2 * bs, jnp.int32)])

    # TODO(synk): torch.distributed allgather has no Pallas equivalent;
    # single-device world_size==1, so *_all == local tensors.
    weights_i2t = jax.nn.softmax(itc_logits, axis=1) + 1e-5
    weights_t2i = jax.nn.softmax(itc_logits.T, axis=1) + 1e-5
    off_diag = 1.0 - jnp.eye(bs, dtype=jnp.float32)
    weights_i2t = weights_i2t * off_diag
    weights_t2i = weights_t2i * off_diag

    # TODO(synk): torch.multinomial hard-negative sampling replaced by
    # deterministic argmax over the (diag-masked) weights.
    neg_img_idx = jnp.argmax(weights_t2i, axis=1)
    neg_txt_idx = jnp.argmax(weights_i2t, axis=1)

    # Batch the three VL forwards (pos, neg-image, neg-text) into ONE 3B-batch
    # pass so weights are streamed from HBM once instead of three times.
    image_cat = jnp.concatenate([image, image[neg_img_idx], image], axis=0)
    text_ids_cat = jnp.concatenate(
        [text_ids, text_ids, text_ids[neg_txt_idx]], axis=0)
    text_atts_cat = jnp.concatenate(
        [text_atts, text_atts, text_atts[neg_txt_idx]], axis=0)

    cls_pos = cfg['num_vision_tokens'] + 1  # first text token in the VL seq
    h = backbone_forward(params, cfg, image=image_cat, text_ids=text_ids_cat,
                         text_atts=text_atts_cat, mode='vl')
    itm_out = h[:, cls_pos, :]                                   # (3B, D)
    # Final backbone norm fused into the ITM head matmul.
    itm_logits = pallas_matmul(itm_out, params['itm_w'], params['itm_b'],
                               ln=(params['norm_g'], params['norm_b']),
                               out_dtype=jnp.float32)
    logp = jax.nn.log_softmax(itm_logits, axis=-1)
    return -jnp.mean(logp[jnp.arange(3 * bs), itm_labels])


def beit_forward(params, cfg, image, text_ids, text_atts, idx=None):
    temp = jnp.clip(params['itc_temp'], 0.001, 0.5)

    # ---- forward_itc -------------------------------------------------------
    hv = backbone_forward(params, cfg, image=image, mode='vision')
    ht = backbone_forward(params, cfg, text_ids=text_ids,
                          text_atts=text_atts, mode='text')

    # 'fusion' itc heads (no bias); final backbone norm fused into each head.
    v_cls = pallas_matmul(hv[:, 0], params['itc_vision_proj'],
                          ln=(params['norm_g'], params['norm_b']),
                          out_dtype=jnp.float32)
    t_cls = pallas_matmul(ht[:, 0], params['itc_text_proj'],
                          ln=(params['norm_g'], params['norm_b']),
                          out_dtype=jnp.float32)
    v_cls = l2_normalize(v_cls)
    t_cls = l2_normalize(t_cls)
    itc_logits = pallas_matmul(v_cls, t_cls.T, out_dtype=jnp.float32) / temp

    itc_loss = cal_itc_loss(itc_logits)
    itm_loss = cal_itm_loss(params, cfg, image, text_ids, text_atts,
                            jax.lax.stop_gradient(itc_logits))

    # ffn_type == 'vl' -> gate_loss = itc_loss - itc_loss == 0
    # TODO(synk): MoE aux gate loss path (ffn_type == 'moe') not implemented.
    gate_loss = jnp.float32(0.0)
    return itc_loss, itm_loss, gate_loss


# ----------------------------------------------------------------------------
# Deterministic parameter construction (bf16 weights, f32 biases/LN params)
# ----------------------------------------------------------------------------

def init_all_params(cfg, key):
    D, I, P = cfg['hidden'], cfg['inter'], cfg['proj_dim']
    Cpp = cfg['in_chans'] * cfg['patch'] ** 2
    keys = list(jax.random.split(key, 256))
    kit = iter(keys)

    def nrm(shape, scale=0.02, dtype=jnp.bfloat16):
        return (jax.random.normal(next(kit), shape, jnp.float32) * scale
                ).astype(dtype)

    params = {
        'patch_w': nrm((Cpp, D)), 'patch_b': jnp.zeros((D,), jnp.float32),
        'cls_token': nrm((1, 1, D)),
        'pos_vis': nrm((1, cfg['num_vision_tokens'] + 1, D)),
        'word_emb': nrm((cfg['vocab'], D)),
        'pos_txt': nrm((1, cfg['text_len'], D)),
        'norm_g': jnp.ones((D,), jnp.float32),
        'norm_b': jnp.zeros((D,), jnp.float32),
        'itc_vision_proj': nrm((D, P)),
        'itc_text_proj': nrm((D, P)),
        'itc_vl_vision_proj': nrm((D, P)),  # declared in __init__, unused in forward
        'itc_vl_text_proj': nrm((D, P)),    # declared in __init__, unused in forward
        'itm_w': nrm((D, 2)), 'itm_b': jnp.zeros((2,), jnp.float32),
        'itc_temp': jnp.float32(0.07),
        'layers': [],
    }
    for l in range(cfg['num_layers']):
        lp = {
            'ln1_g': jnp.ones((D,), jnp.float32),
            'ln1_b': jnp.zeros((D,), jnp.float32),
            'wqkv': nrm((D, 3 * D)),                 # fused q|k|v projection
            'bqkv': jnp.zeros((3 * D,), jnp.float32),
            'wo': nrm((D, D)), 'bo': jnp.zeros((D,), jnp.float32),
        }
        modes = ['vision', 'text'] + (
            ['vl'] if l in cfg['vlffn_layers'] else [])
        for m in modes:
            lp[f'ln2_{m}_g'] = jnp.ones((D,), jnp.float32)
            lp[f'ln2_{m}_b'] = jnp.zeros((D,), jnp.float32)
            lp[f'w1_{m}'] = nrm((D, I))
            lp[f'b1_{m}'] = jnp.zeros((I,), jnp.float32)
            lp[f'w2_{m}'] = nrm((I, D))
            lp[f'b2_{m}'] = jnp.zeros((D,), jnp.float32)
        params['layers'].append(lp)
    return params


# ----------------------------------------------------------------------------
# Main
# ----------------------------------------------------------------------------

if __name__ == "__main__":
    cfg = {
        'in_chans': 3,
        'image_res': 16,
        'patch': 8,
        'hidden': 64,
        'inter': 128,
        'num_heads': 4,
        'num_layers': 2,
        'vlffn_layers': [1],
        'vocab': 100,
        'text_len': 8,
        'proj_dim': 64,
    }
    cfg['num_vision_tokens'] = (cfg['image_res'] // cfg['patch']) ** 2  # 4

    key = jax.random.PRNGKey(0)
    kp, ki, kt = jax.random.split(key, 3)
    params = init_all_params(cfg, kp)

    B = 2
    image = jax.random.normal(
        ki, (B, cfg['in_chans'], cfg['image_res'], cfg['image_res']),
        jnp.float32)
    text_ids = jax.random.randint(kt, (B, cfg['text_len']), 0, cfg['vocab'],
                                  dtype=jnp.int32)
    text_atts = jnp.ones((B, cfg['text_len']), jnp.float32)
    text_atts = text_atts.at[1, -2:].set(0.0)  # some padded text positions

    fwd = jax.jit(functools.partial(beit_forward, params, cfg))
    itc_loss, itm_loss, gate_loss = fwd(image, text_ids, text_atts)
    jax.block_until_ready((itc_loss, itm_loss, gate_loss))

    assert jnp.isfinite(itc_loss) and jnp.isfinite(itm_loss)
    print("KERNEL_OK")
</pallas_src>

<mosaic_0001>
module attributes {stable_mosaic.version = 11 : i64} {
  func.func @_matmul_kernel(%arg0: i32, %arg1: i32, %arg2: i32, %arg3: memref<16x64xbf16, #tpu.memory_space<vmem>>, %arg4: memref<64x192xbf16, #tpu.memory_space<vmem>>, %arg5: memref<1x64xf32, #tpu.memory_space<vmem>>, %arg6: memref<1x64xf32, #tpu.memory_space<vmem>>, %arg7: memref<1x192xf32, #tpu.memory_space<vmem>>, %arg8: memref<16x192xbf16, #tpu.memory_space<vmem>>, %arg9: memref<16x192xf32, #tpu.memory_space<vmem>>) attributes {dimension_semantics = [#tpu.dimension_semantics<parallel>, #tpu.dimension_semantics<parallel>, #tpu.dimension_semantics<arbitrary>], iteration_bounds = array<i64: 1, 1, 1>, scalar_prefetch = 0 : i64, scratch_operands = 1 : i64, tpu.core_type = #tpu.core_type<tc>, window_params = [{transform_indices = @transform_0, window_bounds = array<i64: 16, 64>}, {transform_indices = @transform_1, window_bounds = array<i64: 64, 192>}, {pipeline_mode = #tpu.pipeline_mode<synchronous>, transform_indices = @transform_2, window_bounds = array<i64: 1, 64>}, {pipeline_mode = #tpu.pipeline_mode<synchronous>, transform_indices = @transform_3, window_bounds = array<i64: 1, 64>}, {transform_indices = @transform_4, window_bounds = array<i64: 1, 192>}, {transform_indices = @transform_5, window_bounds = array<i64: 16, 192>}]} {
    %c0_i32 = arith.constant 0 : i32
    %0 = arith.cmpi eq, %arg2, %c0_i32 : i32
    %1 = arith.extui %0 : i1 to i32
    %c0_i32_0 = arith.constant 0 : i32
    %2 = arith.cmpi ne, %1, %c0_i32_0 : i32
    scf.if %2 {
      %cst_19 = arith.constant 0.000000e+00 : f32
      %38 = vector.broadcast %cst_19 : f32 to vector<16x192xf32>
      %c0_20 = arith.constant 0 : index
      %c0_21 = arith.constant 0 : index
      %39 = vector.load %arg9[%c0_20, %c0_21] : memref<16x192xf32, #tpu.memory_space<vmem>>, vector<16x192xf32>
      tpu.vector_store %arg9[%c0_20, %c0_21], %38 {strides = array<i32>} : memref<16x192xf32, #tpu.memory_space<vmem>>, vector<16x192xf32>,
    } else {
    }
    %c0 = arith.constant 0 : index
    %c0_1 = arith.constant 0 : index
    %3 = vector.load %arg3[%c0, %c0_1] : memref<16x64xbf16, #tpu.memory_space<vmem>>, vector<16x64xbf16>
    %4 = arith.extf %3 : vector<16x64xbf16> to vector<16x64xf32>
    %cst = arith.constant dense<0.000000e+00> : vector<16xf32>
    %5 = vector.multi_reduction <add>, %4, %cst [1] : vector<16x64xf32> to vector<16xf32>
    %6 = vector.shape_cast %5 : vector<16xf32> to vector<16x1xf32>
    %cst_2 = arith.constant 6.400000e+01 : f32
    %7 = vector.broadcast %cst_2 : f32 to vector<16x1xf32>
    %8 = arith.divf %6, %7 : vector<16x1xf32>
    %9 = vector.broadcast %8 : vector<16x1xf32> to vector<16x64xf32>
    %10 = arith.subf %4, %9 : vector<16x64xf32>
    %11 = arith.mulf %10, %10 : vector<16x64xf32>
    %cst_3 = arith.constant dense<0.000000e+00> : vector<16xf32>
    %12 = vector.multi_reduction <add>, %11, %cst_3 [1] : vector<16x64xf32> to vector<16xf32>
    %13 = vector.shape_cast %12 : vector<16xf32> to vector<16x1xf32>
    %cst_4 = arith.constant 6.400000e+01 : f32
    %14 = vector.broadcast %cst_4 : f32 to vector<16x1xf32>
    %15 = arith.divf %13, %14 : vector<16x1xf32>
    %16 = vector.broadcast %8 : vector<16x1xf32> to vector<16x64xf32>
    %17 = arith.subf %4, %16 : vector<16x64xf32>
    %cst_5 = arith.constant 9.99999974E-6 : f32
    %18 = vector.broadcast %cst_5 : f32 to vector<16x1xf32>
    %19 = arith.addf %15, %18 : vector<16x1xf32>
    %20 = math.rsqrt %19 : vector<16x1xf32>
    %21 = vector.broadcast %20 : vector<16x1xf32> to vector<16x64xf32>
    %22 = arith.mulf %17, %21 : vector<16x64xf32>
    %c0_6 = arith.constant 0 : index
    %c0_7 = arith.constant 0 : index
    %23 = vector.load %arg5[%c0_6, %c0_7] : memref<1x64xf32, #tpu.memory_space<vmem>>, vector<1x64xf32>
    %24 = vector.broadcast %23 : vector<1x64xf32> to vector<16x64xf32>
    %25 = arith.mulf %22, %24 : vector<16x64xf32>
    %c0_8 = arith.constant 0 : index
    %c0_9 = arith.constant 0 : index
    %26 = vector.load %arg6[%c0_8, %c0_9] : memref<1x64xf32, #tpu.memory_space<vmem>>, vector<1x64xf32>
    %27 = vector.broadcast %26 : vector<1x64xf32> to vector<16x64xf32>
    %28 = arith.addf %25, %27 : vector<16x64xf32>
    %c0_10 = arith.constant 0 : index
    %c0_11 = arith.constant 0 : index
    %29 = vector.load %arg9[%c0_10, %c0_11] : memref<16x192xf32, #tpu.memory_space<vmem>>, vector<16x192xf32>
    %30 = arith.truncf %28 : vector<16x64xf32> to vector<16x64xbf16>
    %c0_12 = arith.constant 0 : index
    %c0_13 = arith.constant 0 : index
    %31 = vector.load %arg4[%c0_12, %c0_13] : memref<64x192xbf16, #tpu.memory_space<vmem>>, vector<64x192xbf16>
    %cst_14 = arith.constant dense<0.000000e+00> : vector<16x192xf32>
    %32 = tpu.matmul %30, %31, %cst_14 {dimension_numbers = #tpu.dot_dimension_numbers<[1], [0], [0], [1], [0, 0, 1, 1], [], []>} : vector<16x64xbf16>, vector<64x192xbf16>, vector<16x192xf32> -> vector<16x192xf32>
    %33 = arith.addf %29, %32 : vector<16x192xf32>
    %c0_15 = arith.constant 0 : index
    %c0_16 = arith.constant 0 : index
    %34 = vector.load %arg9[%c0_15, %c0_16] : memref<16x192xf32, #tpu.memory_space<vmem>>, vector<16x192xf32>
    tpu.vector_store %arg9[%c0_15, %c0_16], %33 {strides = array<i32>} : memref<16x192xf32, #tpu.memory_space<vmem>>, vector<16x192xf32>,
    %c0_i32_17 = arith.constant 0 : i32
    %35 = arith.cmpi eq, %arg2, %c0_i32_17 : i32
    %36 = arith.extui %35 : i1 to i32
    %c0_i32_18 = arith.constant 0 : i32
    %37 = arith.cmpi ne, %36, %c0_i32_18 : i32
    scf.if %37 {
      %c0_19 = arith.constant 0 : index
      %c0_20 = arith.constant 0 : index
      %38 = vector.load %arg9[%c0_19, %c0_20] : memref<16x192xf32, #tpu.memory_space<vmem>>, vector<16x192xf32>
      %c0_21 = arith.constant 0 : index
      %c0_22 = arith.constant 0 : index
      %39 = vector.load %arg7[%c0_21, %c0_22] : memref<1x192xf32, #tpu.memory_space<vmem>>, vector<1x192xf32>
      %40 = vector.broadcast %39 : vector<1x192xf32> to vector<16x192xf32>
      %41 = arith.addf %38, %40 : vector<16x192xf32>
      %42 = arith.truncf %41 : vector<16x192xf32> to vector<16x192xbf16>
      %c0_23 = arith.constant 0 : index
      %c0_24 = arith.constant 0 : index
      %43 = vector.load %arg8[%c0_23, %c0_24] : memref<16x192xbf16, #tpu.memory_space<vmem>>, vector<16x192xbf16>
      tpu.vector_store %arg8[%c0_23, %c0_24], %42 {strides = array<i32>} : memref<16x192xbf16, #tpu.memory_space<vmem>>, vector<16x192xbf16>,
    } else {
    }
    return
  }
  func.func @transform_0(%arg0: i32, %arg1: i32, %arg2: i32) -> (i32, i32) {
    %c0_i32 = arith.constant 0 : i32
    return %arg0, %arg2 : i32, i32
  }
  func.func @transform_1(%arg0: i32, %arg1: i32, %arg2: i32) -> (i32, i32) {
    %c0_i32 = arith.constant 0 : i32
    return %arg2, %arg1 : i32, i32
  }
  func.func @transform_2(%arg0: i32, %arg1: i32, %arg2: i32) -> (i32, i32) {
    %c0_i32 = arith.constant 0 : i32
    %c0_i32_0 = arith.constant 0 : i32
    %c0_i32_1 = arith.constant 0 : i32
    return %c0_i32, %c0_i32_0 : i32, i32
  }
  func.func @transform_3(%arg0: i32, %arg1: i32, %arg2: i32) -> (i32, i32) {
    %c0_i32 = arith.constant 0 : i32
    %c0_i32_0 = arith.constant 0 : i32
    %c0_i32_1 = arith.constant 0 : i32
    return %c0_i32, %c0_i32_0 : i32, i32
  }
  func.func @transform_4(%arg0: i32, %arg1: i32, %arg2: i32) -> (i32, i32) {
    %c0_i32 = arith.constant 0 : i32
    %c0_i32_0 = arith.constant 0 : i32
    return %c0_i32, %arg1 : i32, i32
  }
  func.func @transform_5(%arg0: i32, %arg1: i32, %arg2: i32) -> (i32, i32) {
    %c0_i32 = arith.constant 0 : i32
    return %arg0, %arg1 : i32, i32
  }
}

module attributes {stable_mosaic.version = 11 : i64} {
  func.func @_attn_kernel(%arg0: i32, %arg1: memref<4x8x16xbf16, #tpu.memory_space<vmem>>, %arg2: memref<4x8x16xbf16, #tpu.memory_space<vmem>>, %arg3: memref<4x8x16xbf16, #tpu.memory_space<vmem>>, %arg4: memref<1x1x8xf32, #tpu.memory_space<vmem>>, %arg5: memref<4x8x16xbf16, #tpu.memory_space<vmem>>) attributes {dimension_semantics = [#tpu.dimension_semantics<parallel>], iteration_bounds = array<i64: 2>, scalar_prefetch = 0 : i64, scratch_operands = 0 : i64, tpu.core_type = #tpu.core_type<tc>, window_params = [{transform_indices = @transform_0, window_bounds = array<i64: 4, 8, 16>}, {transform_indices = @transform_1, window_bounds = array<i64: 4, 8, 16>}, {transform_indices = @transform_2, window_bounds = array<i64: 4, 8, 16>}, {transform_indices = @transform_3, window_bounds = array<i64: 1, 1, 8>}, {transform_indices = @transform_4, window_bounds = array<i64: 4, 8, 16>}]} {
    %c0 = arith.constant 0 : index
    %c0_0 = arith.constant 0 : index
    %c0_1 = arith.constant 0 : index
    %0 = vector.load %arg1[%c0, %c0_0, %c0_1] : memref<4x8x16xbf16, #tpu.memory_space<vmem>>, vector<4x8x16xbf16>
    %c0_2 = arith.constant 0 : index
    %c0_3 = arith.constant 0 : index
    %c0_4 = arith.constant 0 : index
    %1 = vector.load %arg2[%c0_2, %c0_3, %c0_4] : memref<4x8x16xbf16, #tpu.memory_space<vmem>>, vector<4x8x16xbf16>
    "tpu.trace_start"() <{level = 10 : i32, message = "hqd,hkd->hqk"}> : () -> ()
    %cst = arith.constant dense<0.000000e+00> : vector<4x8x8xf32>
    %2 = tpu.matmul %0, %1, %cst {dimension_numbers = #tpu.dot_dimension_numbers<[2], [2], [1], [1], [0, 0, 0, 1, 1, 1], [0], [0]>} : vector<4x8x16xbf16>, vector<4x8x16xbf16>, vector<4x8x8xf32> -> vector<4x8x8xf32>
    "tpu.trace_stop"() : () -> ()
    %cst_5 = arith.constant 2.500000e-01 : f32
    %3 = vector.broadcast %cst_5 : f32 to vector<4x8x8xf32>
    %4 = arith.mulf %2, %3 : vector<4x8x8xf32>
    %c0_6 = arith.constant 0 : index
    %c0_7 = arith.constant 0 : index
    %c0_8 = arith.constant 0 : index
    %5 = vector.load %arg4[%c0_6, %c0_7, %c0_8] : memref<1x1x8xf32, #tpu.memory_space<vmem>>, vector<1x1x8xf32>
    %6 = vector.broadcast %5 : vector<1x1x8xf32> to vector<4x8x8xf32>
    %7 = arith.addf %4, %6 : vector<4x8x8xf32>
    %cst_9 = arith.constant dense<0xFF800000> : vector<4x8xf32>
    %8 = vector.multi_reduction <maximumf>, %7, %cst_9 [2] : vector<4x8x8xf32> to vector<4x8xf32>
    %9 = vector.shape_cast %8 : vector<4x8xf32> to vector<4x8x1xf32>
    %10 = vector.broadcast %9 : vector<4x8x1xf32> to vector<4x8x8xf32>
    %11 = arith.subf %7, %10 : vector<4x8x8xf32>
    %12 = math.exp %11 : vector<4x8x8xf32>
    %cst_10 = arith.constant dense<0.000000e+00> : vector<4x8xf32>
    %13 = vector.multi_reduction <add>, %12, %cst_10 [2] : vector<4x8x8xf32> to vector<4x8xf32>
    %14 = vector.shape_cast %13 : vector<4x8xf32> to vector<4x8x1xf32>
    %15 = tpu.reciprocal %14 {approx = true} : vector<4x8x1xf32> -> vector<4x8x1xf32>
    %16 = vector.broadcast %15 : vector<4x8x1xf32> to vector<4x8x8xf32>
    %17 = arith.mulf %12, %16 : vector<4x8x8xf32>
    %18 = arith.truncf %17 : vector<4x8x8xf32> to vector<4x8x8xbf16>
    %c0_11 = arith.constant 0 : index
    %c0_12 = arith.constant 0 : index
    %c0_13 = arith.constant 0 : index
    %19 = vector.load %arg3[%c0_11, %c0_12, %c0_13] : memref<4x8x16xbf16, #tpu.memory_space<vmem>>, vector<4x8x16xbf16>
    "tpu.trace_start"() <{level = 10 : i32, message = "hqk,hkd->hqd"}> : () -> ()
    %cst_14 = arith.constant dense<0.000000e+00> : vector<4x8x16xf32>
    %20 = tpu.matmul %18, %19, %cst_14 {dimension_numbers = #tpu.dot_dimension_numbers<[2], [1], [1], [2], [0, 0, 0, 1, 1, 2], [0], [0]>} : vector<4x8x8xbf16>, vector<4x8x16xbf16>, vector<4x8x16xf32> -> vector<4x8x16xf32>
    "tpu.trace_stop"() : () -> ()
    %21 = arith.truncf %20 : vector<4x8x16xf32> to vector<4x8x16xbf16>
    %c0_15 = arith.constant 0 : index
    %c0_16 = arith.constant 0 : index
    %c0_17 = arith.constant 0 : index
    %22 = vector.load %arg5[%c0_15, %c0_16, %c0_17] : memref<4x8x16xbf16, #tpu.memory_space<vmem>>, vector<4x8x16xbf16>
    tpu.vector_store %arg5[%c0_15, %c0_16, %c0_17], %21 {strides = array<i32>} : memref<4x8x16xbf16, #tpu.memory_space<vmem>>, vector<4x8x16xbf16>,
    return
  }
  func.func @transform_0(%arg0: i32) -> (i32, i32, i32) {
    %c0_i32 = arith.constant 0 : i32
    %c0_i32_0 = arith.constant 0 : i32
    %c0_i32_1 = arith.constant 0 : i32
    return %arg0, %c0_i32, %c0_i32_0 : i32, i32, i32
  }
  func.func @transform_1(%arg0: i32) -> (i32, i32, i32) {
    %c0_i32 = arith.constant 0 : i32
    %c0_i32_0 = arith.constant 0 : i32
    %c0_i32_1 = arith.constant 0 : i32
    return %arg0, %c0_i32, %c0_i32_0 : i32, i32, i32
  }
  func.func @transform_2(%arg0: i32) -> (i32, i32, i32) {
    %c0_i32 = arith.constant 0 : i32
    %c0_i32_0 = arith.constant 0 : i32
    %c0_i32_1 = arith.constant 0 : i32
    return %arg0, %c0_i32, %c0_i32_0 : i32, i32, i32
  }
  func.func @transform_3(%arg0: i32) -> (i32, i32, i32) {
    %c0_i32 = arith.constant 0 : i32
    %c0_i32_0 = arith.constant 0 : i32
    %c0_i32_1 = arith.constant 0 : i32
    return %arg0, %c0_i32, %c0_i32_0 : i32, i32, i32
  }
  func.func @transform_4(%arg0: i32) -> (i32, i32, i32) {
    %c0_i32 = arith.constant 0 : i32
    %c0_i32_0 = arith.constant 0 : i32
    %c0_i32_1 = arith.constant 0 : i32
    return %arg0, %c0_i32, %c0_i32_0 : i32, i32, i32
  }
}

module attributes {stable_mosaic.version = 11 : i64} {
  func.func @_matmul_kernel(%arg0: i32, %arg1: i32, %arg2: i32, %arg3: memref<16x64xbf16, #tpu.memory_space<vmem>>, %arg4: memref<64x128xbf16, #tpu.memory_space<vmem>>, %arg5: memref<1x64xf32, #tpu.memory_space<vmem>>, %arg6: memref<1x64xf32, #tpu.memory_space<vmem>>, %arg7: memref<1x128xf32, #tpu.memory_space<vmem>>, %arg8: memref<16x128xbf16, #tpu.memory_space<vmem>>, %arg9: memref<16x128xf32, #tpu.memory_space<vmem>>) attributes {dimension_semantics = [#tpu.dimension_semantics<parallel>, #tpu.dimension_semantics<parallel>, #tpu.dimension_semantics<arbitrary>], iteration_bounds = array<i64: 1, 1, 1>, scalar_prefetch = 0 : i64, scratch_operands = 1 : i64, tpu.core_type = #tpu.core_type<tc>, window_params = [{transform_indices = @transform_0, window_bounds = array<i64: 16, 64>}, {transform_indices = @transform_1, window_bounds = array<i64: 64, 128>}, {pipeline_mode = #tpu.pipeline_mode<synchronous>, transform_indices = @transform_2, window_bounds = array<i64: 1, 64>}, {pipeline_mode = #tpu.pipeline_mode<synchronous>, transform_indices = @transform_3, window_bounds = array<i64: 1, 64>}, {transform_indices = @transform_4, window_bounds = array<i64: 1, 128>}, {transform_indices = @transform_5, window_bounds = array<i64: 16, 128>}]} {
    %c0_i32 = arith.constant 0 : i32
    %0 = arith.cmpi eq, %arg2, %c0_i32 : i32
    %1 = arith.extui %0 : i1 to i32
    %c0_i32_0 = arith.constant 0 : i32
    %2 = arith.cmpi ne, %1, %c0_i32_0 : i32
    scf.if %2 {
      %cst_19 = arith.constant 0.000000e+00 : f32
      %38 = vector.broadcast %cst_19 : f32 to vector<16x128xf32>
      %c0_20 = arith.constant 0 : index
      %c0_21 = arith.constant 0 : index
      %39 = vector.load %arg9[%c0_20, %c0_21] : memref<16x128xf32, #tpu.memory_space<vmem>>, vector<16x128xf32>
      tpu.vector_store %arg9[%c0_20, %c0_21], %38 {strides = array<i32>} : memref<16x128xf32, #tpu.memory_space<vmem>>, vector<16x128xf32>,
    } else {
    }
    %c0 = arith.constant 0 : index
    %c0_1 = arith.constant 0 : index
    %3 = vector.load %arg3[%c0, %c0_1] : memref<16x64xbf16, #tpu.memory_space<vmem>>, vector<16x64xbf16>
    %4 = arith.extf %3 : vector<16x64xbf16> to vector<16x64xf32>
    %cst = arith.constant dense<0.000000e+00> : vector<16xf32>
    %5 = vector.multi_reduction <add>, %4, %cst [1] : vector<16x64xf32> to vector<16xf32>
    %6 = vector.shape_cast %5 : vector<16xf32> to vector<16x1xf32>
    %cst_2 = arith.constant 6.400000e+01 : f32
    %7 = vector.broadcast %cst_2 : f32 to vector<16x1xf32>
    %8 = arith.divf %6, %7 : vector<16x1xf32>
    %9 = vector.broadcast %8 : vector<16x1xf32> to vector<16x64xf32>
    %10 = arith.subf %4, %9 : vector<16x64xf32>
    %11 = arith.mulf %10, %10 : vector<16x64xf32>
    %cst_3 = arith.constant dense<0.000000e+00> : vector<16xf32>
    %12 = vector.multi_reduction <add>, %11, %cst_3 [1] : vector<16x64xf32> to vector<16xf32>
    %13 = vector.shape_cast %12 : vector<16xf32> to vector<16x1xf32>
    %cst_4 = arith.constant 6.400000e+01 : f32
    %14 = vector.broadcast %cst_4 : f32 to vector<16x1xf32>
    %15 = arith.divf %13, %14 : vector<16x1xf32>
    %16 = vector.broadcast %8 : vector<16x1xf32> to vector<16x64xf32>
    %17 = arith.subf %4, %16 : vector<16x64xf32>
    %cst_5 = arith.constant 9.99999974E-6 : f32
    %18 = vector.broadcast %cst_5 : f32 to vector<16x1xf32>
    %19 = arith.addf %15, %18 : vector<16x1xf32>
    %20 = math.rsqrt %19 : vector<16x1xf32>
    %21 = vector.broadcast %20 : vector<16x1xf32> to vector<16x64xf32>
    %22 = arith.mulf %17, %21 : vector<16x64xf32>
    %c0_6 = arith.constant 0 : index
    %c0_7 = arith.constant 0 : index
    %23 = vector.load %arg5[%c0_6, %c0_7] : memref<1x64xf32, #tpu.memory_space<vmem>>, vector<1x64xf32>
    %24 = vector.broadcast %23 : vector<1x64xf32> to vector<16x64xf32>
    %25 = arith.mulf %22, %24 : vector<16x64xf32>
    %c0_8 = arith.constant 0 : index
    %c0_9 = arith.constant 0 : index
    %26 = vector.load %arg6[%c0_8, %c0_9] : memref<1x64xf32, #tpu.memory_space<vmem>>, vector<1x64xf32>
    %27 = vector.broadcast %26 : vector<1x64xf32> to vector<16x64xf32>
    %28 = arith.addf %25, %27 : vector<16x64xf32>
    %c0_10 = arith.constant 0 : index
    %c0_11 = arith.constant 0 : index
    %29 = vector.load %arg9[%c0_10, %c0_11] : memref<16x128xf32, #tpu.memory_space<vmem>>, vector<16x128xf32>
    %30 = arith.truncf %28 : vector<16x64xf32> to vector<16x64xbf16>
    %c0_12 = arith.constant 0 : index
    %c0_13 = arith.constant 0 : index
    %31 = vector.load %arg4[%c0_12, %c0_13] : memref<64x128xbf16, #tpu.memory_space<vmem>>, vector<64x128xbf16>
    %cst_14 = arith.constant dense<0.000000e+00> : vector<16x128xf32>
    %32 = tpu.matmul %30, %31, %cst_14 {dimension_numbers = #tpu.dot_dimension_numbers<[1], [0], [0], [1], [0, 0, 1, 1], [], []>} : vector<16x64xbf16>, vector<64x128xbf16>, vector<16x128xf32> -> vector<16x128xf32>
    %33 = arith.addf %29, %32 : vector<16x128xf32>
    %c0_15 = arith.constant 0 : index
    %c0_16 = arith.constant 0 : index
    %34 = vector.load %arg9[%c0_15, %c0_16] : memref<16x128xf32, #tpu.memory_space<vmem>>, vector<16x128xf32>
    tpu.vector_store %arg9[%c0_15, %c0_16], %33 {strides = array<i32>} : memref<16x128xf32, #tpu.memory_space<vmem>>, vector<16x128xf32>,
    %c0_i32_17 = arith.constant 0 : i32
    %35 = arith.cmpi eq, %arg2, %c0_i32_17 : i32
    %36 = arith.extui %35 : i1 to i32
    %c0_i32_18 = arith.constant 0 : i32
    %37 = arith.cmpi ne, %36, %c0_i32_18 : i32
    scf.if %37 {
      %c0_19 = arith.constant 0 : index
      %c0_20 = arith.constant 0 : index
      %38 = vector.load %arg9[%c0_19, %c0_20] : memref<16x128xf32, #tpu.memory_space<vmem>>, vector<16x128xf32>
      %c0_21 = arith.constant 0 : index
      %c0_22 = arith.constant 0 : index
      %39 = vector.load %arg7[%c0_21, %c0_22] : memref<1x128xf32, #tpu.memory_space<vmem>>, vector<1x128xf32>
      %40 = vector.broadcast %39 : vector<1x128xf32> to vector<16x128xf32>
      %41 = arith.addf %38, %40 : vector<16x128xf32>
      %42 = arith.mulf %41, %41 : vector<16x128xf32>
      %43 = arith.mulf %41, %42 : vector<16x128xf32>
      %cst_23 = arith.constant 4.471500e-02 : f32
      %44 = vector.broadcast %cst_23 : f32 to vector<16x128xf32>
      %45 = arith.mulf %44, %43 : vector<16x128xf32>
      %46 = arith.addf %41, %45 : vector<16x128xf32>
      %cst_24 = arith.constant 0.797884583 : f32
      %47 = vector.broadcast %cst_24 : f32 to vector<16x128xf32>
      %48 = arith.mulf %47, %46 : vector<16x128xf32>
      %49 = math.tanh %48 : vector<16x128xf32>
      %cst_25 = arith.constant 1.000000e+00 : f32
      %50 = vector.broadcast %cst_25 : f32 to vector<16x128xf32>
      %51 = arith.addf %50, %49 : vector<16x128xf32>
      %cst_26 = arith.constant 5.000000e-01 : f32
      %52 = vector.broadcast %cst_26 : f32 to vector<16x128xf32>
      %53 = arith.mulf %52, %51 : vector<16x128xf32>
      %54 = arith.mulf %41, %53 : vector<16x128xf32>
      %55 = arith.truncf %54 : vector<16x128xf32> to vector<16x128xbf16>
      %c0_27 = arith.constant 0 : index
      %c0_28 = arith.constant 0 : index
      %56 = vector.load %arg8[%c0_27, %c0_28] : memref<16x128xbf16, #tpu.memory_space<vmem>>, vector<16x128xbf16>
      tpu.vector_store %arg8[%c0_27, %c0_28], %55 {strides = array<i32>} : memref<16x128xbf16, #tpu.memory_space<vmem>>, vector<16x128xbf16>,
    } else {
    }
    return
  }
  func.func @transform_0(%arg0: i32, %arg1: i32, %arg2: i32) -> (i32, i32) {
    %c0_i32 = arith.constant 0 : i32
    return %arg0, %arg2 : i32, i32
  }
  func.func @transform_1(%arg0: i32, %arg1: i32, %arg2: i32) -> (i32, i32) {
    %c0_i32 = arith.constant 0 : i32
    return %arg2, %arg1 : i32, i32
  }
  func.func @transform_2(%arg0: i32, %arg1: i32, %arg2: i32) -> (i32, i32) {
    %c0_i32 = arith.constant 0 : i32
    %c0_i32_0 = arith.constant 0 : i32
    %c0_i32_1 = arith.constant 0 : i32
    return %c0_i32, %c0_i32_0 : i32, i32
  }
  func.func @transform_3(%arg0: i32, %arg1: i32, %arg2: i32) -> (i32, i32) {
    %c0_i32 = arith.constant 0 : i32
    %c0_i32_0 = arith.constant 0 : i32
    %c0_i32_1 = arith.constant 0 : i32
    return %c0_i32, %c0_i32_0 : i32, i32
  }
  func.func @transform_4(%arg0: i32, %arg1: i32, %arg2: i32) -> (i32, i32) {
    %c0_i32 = arith.constant 0 : i32
    %c0_i32_0 = arith.constant 0 : i32
    return %c0_i32, %arg1 : i32, i32
  }
  func.func @transform_5(%arg0: i32, %arg1: i32, %arg2: i32) -> (i32, i32) {
    %c0_i32 = arith.constant 0 : i32
    return %arg0, %arg1 : i32, i32
  }
}

module attributes {stable_mosaic.version = 11 : i64} {
  func.func @_matmul_kernel(%arg0: i32, %arg1: i32, %arg2: i32, %arg3: memref<16x64xbf16, #tpu.memory_space<vmem>>, %arg4: memref<64x64xbf16, #tpu.memory_space<vmem>>, %arg5: memref<1x64xf32, #tpu.memory_space<vmem>>, %arg6: memref<16x64xbf16, #tpu.memory_space<vmem>>, %arg7: memref<16x64xbf16, #tpu.memory_space<vmem>>, %arg8: memref<16x64xf32, #tpu.memory_space<vmem>>) attributes {dimension_semantics = [#tpu.dimension_semantics<parallel>, #tpu.dimension_semantics<parallel>, #tpu.dimension_semantics<arbitrary>], iteration_bounds = array<i64: 1, 1, 1>, scalar_prefetch = 0 : i64, scratch_operands = 1 : i64, tpu.core_type = #tpu.core_type<tc>, window_params = [{transform_indices = @transform_0, window_bounds = array<i64: 16, 64>}, {transform_indices = @transform_1, window_bounds = array<i64: 64, 64>}, {transform_indices = @transform_2, window_bounds = array<i64: 1, 64>}, {transform_indices = @transform_3, window_bounds = array<i64: 16, 64>}, {transform_indices = @transform_4, window_bounds = array<i64: 16, 64>}]} {
    %c0_i32 = arith.constant 0 : i32
    %0 = arith.cmpi eq, %arg2, %c0_i32 : i32
    %1 = arith.extui %0 : i1 to i32
    %c0_i32_0 = arith.constant 0 : i32
    %2 = arith.cmpi ne, %1, %c0_i32_0 : i32
    scf.if %2 {
      %cst_10 = arith.constant 0.000000e+00 : f32
      %14 = vector.broadcast %cst_10 : f32 to vector<16x64xf32>
      %c0_11 = arith.constant 0 : index
      %c0_12 = arith.constant 0 : index
      %15 = vector.load %arg8[%c0_11, %c0_12] : memref<16x64xf32, #tpu.memory_space<vmem>>, vector<16x64xf32>
      tpu.vector_store %arg8[%c0_11, %c0_12], %14 {strides = array<i32>} : memref<16x64xf32, #tpu.memory_space<vmem>>, vector<16x64xf32>,
    } else {
    }
    %c0 = arith.constant 0 : index
    %c0_1 = arith.constant 0 : index
    %3 = vector.load %arg3[%c0, %c0_1] : memref<16x64xbf16, #tpu.memory_space<vmem>>, vector<16x64xbf16>
    %4 = arith.extf %3 : vector<16x64xbf16> to vector<16x64xf32>
    %c0_2 = arith.constant 0 : index
    %c0_3 = arith.constant 0 : index
    %5 = vector.load %arg8[%c0_2, %c0_3] : memref<16x64xf32, #tpu.memory_space<vmem>>, vector<16x64xf32>
    %6 = arith.truncf %4 : vector<16x64xf32> to vector<16x64xbf16>
    %c0_4 = arith.constant 0 : index
    %c0_5 = arith.constant 0 : index
    %7 = vector.load %arg4[%c0_4, %c0_5] : memref<64x64xbf16, #tpu.memory_space<vmem>>, vector<64x64xbf16>
    %cst = arith.constant dense<0.000000e+00> : vector<16x64xf32>
    %8 = tpu.matmul %6, %7, %cst {dimension_numbers = #tpu.dot_dimension_numbers<[1], [0], [0], [1], [0, 0, 1, 1], [], []>} : vector<16x64xbf16>, vector<64x64xbf16>, vector<16x64xf32> -> vector<16x64xf32>
    %9 = arith.addf %5, %8 : vector<16x64xf32>
    %c0_6 = arith.constant 0 : index
    %c0_7 = arith.constant 0 : index
    %10 = vector.load %arg8[%c0_6, %c0_7] : memref<16x64xf32, #tpu.memory_space<vmem>>, vector<16x64xf32>
    tpu.vector_store %arg8[%c0_6, %c0_7], %9 {strides = array<i32>} : memref<16x64xf32, #tpu.memory_space<vmem>>, vector<16x64xf32>,
    %c0_i32_8 = arith.constant 0 : i32
    %11 = arith.cmpi eq, %arg2, %c0_i32_8 : i32
    %12 = arith.extui %11 : i1 to i32
    %c0_i32_9 = arith.constant 0 : i32
    %13 = arith.cmpi ne, %12, %c0_i32_9 : i32
    scf.if %13 {
      %c0_10 = arith.constant 0 : index
      %c0_11 = arith.constant 0 : index
      %14 = vector.load %arg8[%c0_10, %c0_11] : memref<16x64xf32, #tpu.memory_space<vmem>>, vector<16x64xf32>
      %c0_12 = arith.constant 0 : index
      %c0_13 = arith.constant 0 : index
      %15 = vector.load %arg5[%c0_12, %c0_13] : memref<1x64xf32, #tpu.memory_space<vmem>>, vector<1x64xf32>
      %16 = vector.broadcast %15 : vector<1x64xf32> to vector<16x64xf32>
      %17 = arith.addf %14, %16 : vector<16x64xf32>
      %c0_14 = arith.constant 0 : index
      %c0_15 = arith.constant 0 : index
      %18 = vector.load %arg6[%c0_14, %c0_15] : memref<16x64xbf16, #tpu.memory_space<vmem>>, vector<16x64xbf16>
      %19 = arith.extf %18 : vector<16x64xbf16> to vector<16x64xf32>
      %20 = arith.addf %17, %19 : vector<16x64xf32>
      %21 = arith.truncf %20 : vector<16x64xf32> to vector<16x64xbf16>
      %c0_16 = arith.constant 0 : index
      %c0_17 = arith.constant 0 : index
      %22 = vector.load %arg7[%c0_16, %c0_17] : memref<16x64xbf16, #tpu.memory_space<vmem>>, vector<16x64xbf16>
      tpu.vector_store %arg7[%c0_16, %c0_17], %21 {strides = array<i32>} : memref<16x64xbf16, #tpu.memory_space<vmem>>, vector<16x64xbf16>,
    } else {
    }
    return
  }
  func.func @transform_0(%arg0: i32, %arg1: i32, %arg2: i32) -> (i32, i32) {
    %c0_i32 = arith.constant 0 : i32
    return %arg0, %arg2 : i32, i32
  }
  func.func @transform_1(%arg0: i32, %arg1: i32, %arg2: i32) -> (i32, i32) {
    %c0_i32 = arith.constant 0 : i32
    return %arg2, %arg1 : i32, i32
  }
  func.func @transform_2(%arg0: i32, %arg1: i32, %arg2: i32) -> (i32, i32) {
    %c0_i32 = arith.constant 0 : i32
    %c0_i32_0 = arith.constant 0 : i32
    return %c0_i32, %arg1 : i32, i32
  }
  func.func @transform_3(%arg0: i32, %arg1: i32, %arg2: i32) -> (i32, i32) {
    %c0_i32 = arith.constant 0 : i32
    return %arg0, %arg1 : i32, i32
  }
  func.func @transform_4(%arg0: i32, %arg1: i32, %arg2: i32) -> (i32, i32) {
    %c0_i32 = arith.constant 0 : i32
    return %arg0, %arg1 : i32, i32
  }
}

module attributes {stable_mosaic.version = 11 : i64} {
  func.func @_matmul_kernel(%arg0: i32, %arg1: i32, %arg2: i32, %arg3: memref<16x128xbf16, #tpu.memory_space<vmem>>, %arg4: memref<128x64xbf16, #tpu.memory_space<vmem>>, %arg5: memref<1x64xf32, #tpu.memory_space<vmem>>, %arg6: memref<16x64xbf16, #tpu.memory_space<vmem>>, %arg7: memref<16x64xbf16, #tpu.memory_space<vmem>>, %arg8: memref<16x64xf32, #tpu.memory_space<vmem>>) attributes {dimension_semantics = [#tpu.dimension_semantics<parallel>, #tpu.dimension_semantics<parallel>, #tpu.dimension_semantics<arbitrary>], iteration_bounds = array<i64: 1, 1, 1>, scalar_prefetch = 0 : i64, scratch_operands = 1 : i64, tpu.core_type = #tpu.core_type<tc>, window_params = [{transform_indices = @transform_0, window_bounds = array<i64: 16, 128>}, {transform_indices = @transform_1, window_bounds = array<i64: 128, 64>}, {transform_indices = @transform_2, window_bounds = array<i64: 1, 64>}, {transform_indices = @transform_3, window_bounds = array<i64: 16, 64>}, {transform_indices = @transform_4, window_bounds = array<i64: 16, 64>}]} {
    %c0_i32 = arith.constant 0 : i32
    %0 = arith.cmpi eq, %arg2, %c0_i32 : i32
    %1 = arith.extui %0 : i1 to i32
    %c0_i32_0 = arith.constant 0 : i32
    %2 = arith.cmpi ne, %1, %c0_i32_0 : i32
    scf.if %2 {
      %cst_10 = arith.constant 0.000000e+00 : f32
      %14 = vector.broadcast %cst_10 : f32 to vector<16x64xf32>
      %c0_11 = arith.constant 0 : index
      %c0_12 = arith.constant 0 : index
      %15 = vector.load %arg8[%c0_11, %c0_12] : memref<16x64xf32, #tpu.memory_space<vmem>>, vector<16x64xf32>
      tpu.vector_store %arg8[%c0_11, %c0_12], %14 {strides = array<i32>} : memref<16x64xf32, #tpu.memory_space<vmem>>, vector<16x64xf32>,
    } else {
    }
    %c0 = arith.constant 0 : index
    %c0_1 = arith.constant 0 : index
    %3 = vector.load %arg3[%c0, %c0_1] : memref<16x128xbf16, #tpu.memory_space<vmem>>, vector<16x128xbf16>
    %4 = arith.extf %3 : vector<16x128xbf16> to vector<16x128xf32>
    %c0_2 = arith.constant 0 : index
    %c0_3 = arith.constant 0 : index
    %5 = vector.load %arg8[%c0_2, %c0_3] : memref<16x64xf32, #tpu.memory_space<vmem>>, vector<16x64xf32>
    %6 = arith.truncf %4 : vector<16x128xf32> to vector<16x128xbf16>
    %c0_4 = arith.constant 0 : index
    %c0_5 = arith.constant 0 : index
    %7 = vector.load %arg4[%c0_4, %c0_5] : memref<128x64xbf16, #tpu.memory_space<vmem>>, vector<128x64xbf16>
    %cst = arith.constant dense<0.000000e+00> : vector<16x64xf32>
    %8 = tpu.matmul %6, %7, %cst {dimension_numbers = #tpu.dot_dimension_numbers<[1], [0], [0], [1], [0, 0, 1, 1], [], []>} : vector<16x128xbf16>, vector<128x64xbf16>, vector<16x64xf32> -> vector<16x64xf32>
    %9 = arith.addf %5, %8 : vector<16x64xf32>
    %c0_6 = arith.constant 0 : index
    %c0_7 = arith.constant 0 : index
    %10 = vector.load %arg8[%c0_6, %c0_7] : memref<16x64xf32, #tpu.memory_space<vmem>>, vector<16x64xf32>
    tpu.vector_store %arg8[%c0_6, %c0_7], %9 {strides = array<i32>} : memref<16x64xf32, #tpu.memory_space<vmem>>, vector<16x64xf32>,
    %c0_i32_8 = arith.constant 0 : i32
    %11 = arith.cmpi eq, %arg2, %c0_i32_8 : i32
    %12 = arith.extui %11 : i1 to i32
    %c0_i32_9 = arith.constant 0 : i32
    %13 = arith.cmpi ne, %12, %c0_i32_9 : i32
    scf.if %13 {
      %c0_10 = arith.constant 0 : index
      %c0_11 = arith.constant 0 : index
      %14 = vector.load %arg8[%c0_10, %c0_11] : memref<16x64xf32, #tpu.memory_space<vmem>>, vector<16x64xf32>
      %c0_12 = arith.constant 0 : index
      %c0_13 = arith.constant 0 : index
      %15 = vector.load %arg5[%c0_12, %c0_13] : memref<1x64xf32, #tpu.memory_space<vmem>>, vector<1x64xf32>
      %16 = vector.broadcast %15 : vector<1x64xf32> to vector<16x64xf32>
      %17 = arith.addf %14, %16 : vector<16x64xf32>
      %c0_14 = arith.constant 0 : index
      %c0_15 = arith.constant 0 : index
      %18 = vector.load %arg6[%c0_14, %c0_15] : memref<16x64xbf16, #tpu.memory_space<vmem>>, vector<16x64xbf16>
      %19 = arith.extf %18 : vector<16x64xbf16> to vector<16x64xf32>
      %20 = arith.addf %17, %19 : vector<16x64xf32>
      %21 = arith.truncf %20 : vector<16x64xf32> to vector<16x64xbf16>
      %c0_16 = arith.constant 0 : index
      %c0_17 = arith.constant 0 : index
      %22 = vector.load %arg7[%c0_16, %c0_17] : memref<16x64xbf16, #tpu.memory_space<vmem>>, vector<16x64xbf16>
      tpu.vector_store %arg7[%c0_16, %c0_17], %21 {strides = array<i32>} : memref<16x64xbf16, #tpu.memory_space<vmem>>, vector<16x64xbf16>,
    } else {
    }
    return
  }
  func.func @transform_0(%arg0: i32, %arg1: i32, %arg2: i32) -> (i32, i32) {
    %c0_i32 = arith.constant 0 : i32
    return %arg0, %arg2 : i32, i32
  }
  func.func @transform_1(%arg0: i32, %arg1: i32, %arg2: i32) -> (i32, i32) {
    %c0_i32 = arith.constant 0 : i32
    return %arg2, %arg1 : i32, i32
  }
  func.func @transform_2(%arg0: i32, %arg1: i32, %arg2: i32) -> (i32, i32) {
    %c0_i32 = arith.constant 0 : i32
    %c0_i32_0 = arith.constant 0 : i32
    return %c0_i32, %arg1 : i32, i32
  }
  func.func @transform_3(%arg0: i32, %arg1: i32, %arg2: i32) -> (i32, i32) {
    %c0_i32 = arith.constant 0 : i32
    return %arg0, %arg1 : i32, i32
  }
  func.func @transform_4(%arg0: i32, %arg1: i32, %arg2: i32) -> (i32, i32) {
    %c0_i32 = arith.constant 0 : i32
    return %arg0, %arg1 : i32, i32
  }
}

module attributes {stable_mosaic.version = 11 : i64} {
  func.func @_matmul_kernel(%arg0: i32, %arg1: i32, %arg2: i32, %arg3: memref<2x64xbf16, #tpu.memory_space<vmem>>, %arg4: memref<64x64xbf16, #tpu.memory_space<vmem>>, %arg5: memref<1x64xf32, #tpu.memory_space<vmem>>, %arg6: memref<1x64xf32, #tpu.memory_space<vmem>>, %arg7: memref<2x64xf32, #tpu.memory_space<vmem>>, %arg8: memref<2x64xf32, #tpu.memory_space<vmem>>) attributes {dimension_semantics = [#tpu.dimension_semantics<parallel>, #tpu.dimension_semantics<parallel>, #tpu.dimension_semantics<arbitrary>], iteration_bounds = array<i64: 1, 1, 1>, scalar_prefetch = 0 : i64, scratch_operands = 1 : i64, tpu.core_type = #tpu.core_type<tc>, window_params = [{transform_indices = @transform_0, window_bounds = array<i64: 2, 64>}, {transform_indices = @transform_1, window_bounds = array<i64: 64, 64>}, {pipeline_mode = #tpu.pipeline_mode<synchronous>, transform_indices = @transform_2, window_bounds = array<i64: 1, 64>}, {pipeline_mode = #tpu.pipeline_mode<synchronous>, transform_indices = @transform_3, window_bounds = array<i64: 1, 64>}, {transform_indices = @transform_4, window_bounds = array<i64: 2, 64>}]} {
    %c0_i32 = arith.constant 0 : i32
    %0 = arith.cmpi eq, %arg2, %c0_i32 : i32
    %1 = arith.extui %0 : i1 to i32
    %c0_i32_0 = arith.constant 0 : i32
    %2 = arith.cmpi ne, %1, %c0_i32_0 : i32
    scf.if %2 {
      %cst_19 = arith.constant 0.000000e+00 : f32
      %38 = vector.broadcast %cst_19 : f32 to vector<2x64xf32>
      %c0_20 = arith.constant 0 : index
      %c0_21 = arith.constant 0 : index
      %39 = vector.load %arg8[%c0_20, %c0_21] : memref<2x64xf32, #tpu.memory_space<vmem>>, vector<2x64xf32>
      tpu.vector_store %arg8[%c0_20, %c0_21], %38 {strides = array<i32>} : memref<2x64xf32, #tpu.memory_space<vmem>>, vector<2x64xf32>,
    } else {
    }
    %c0 = arith.constant 0 : index
    %c0_1 = arith.constant 0 : index
    %3 = vector.load %arg3[%c0, %c0_1] : memref<2x64xbf16, #tpu.memory_space<vmem>>, vector<2x64xbf16>
    %4 = arith.extf %3 : vector<2x64xbf16> to vector<2x64xf32>
    %cst = arith.constant dense<0.000000e+00> : vector<2xf32>
    %5 = vector.multi_reduction <add>, %4, %cst [1] : vector<2x64xf32> to vector<2xf32>
    %6 = vector.shape_cast %5 : vector<2xf32> to vector<2x1xf32>
    %cst_2 = arith.constant 6.400000e+01 : f32
    %7 = vector.broadcast %cst_2 : f32 to vector<2x1xf32>
    %8 = arith.divf %6, %7 : vector<2x1xf32>
    %9 = vector.broadcast %8 : vector<2x1xf32> to vector<2x64xf32>
    %10 = arith.subf %4, %9 : vector<2x64xf32>
    %11 = arith.mulf %10, %10 : vector<2x64xf32>
    %cst_3 = arith.constant dense<0.000000e+00> : vector<2xf32>
    %12 = vector.multi_reduction <add>, %11, %cst_3 [1] : vector<2x64xf32> to vector<2xf32>
    %13 = vector.shape_cast %12 : vector<2xf32> to vector<2x1xf32>
    %cst_4 = arith.constant 6.400000e+01 : f32
    %14 = vector.broadcast %cst_4 : f32 to vector<2x1xf32>
    %15 = arith.divf %13, %14 : vector<2x1xf32>
    %16 = vector.broadcast %8 : vector<2x1xf32> to vector<2x64xf32>
    %17 = arith.subf %4, %16 : vector<2x64xf32>
    %cst_5 = arith.constant 9.99999974E-6 : f32
    %18 = vector.broadcast %cst_5 : f32 to vector<2x1xf32>
    %19 = arith.addf %15, %18 : vector<2x1xf32>
    %20 = math.rsqrt %19 : vector<2x1xf32>
    %21 = vector.broadcast %20 : vector<2x1xf32> to vector<2x64xf32>
    %22 = arith.mulf %17, %21 : vector<2x64xf32>
    %c0_6 = arith.constant 0 : index
    %c0_7 = arith.constant 0 : index
    %23 = vector.load %arg5[%c0_6, %c0_7] : memref<1x64xf32, #tpu.memory_space<vmem>>, vector<1x64xf32>
    %24 = vector.broadcast %23 : vector<1x64xf32> to vector<2x64xf32>
    %25 = arith.mulf %22, %24 : vector<2x64xf32>
    %c0_8 = arith.constant 0 : index
    %c0_9 = arith.constant 0 : index
    %26 = vector.load %arg6[%c0_8, %c0_9] : memref<1x64xf32, #tpu.memory_space<vmem>>, vector<1x64xf32>
    %27 = vector.broadcast %26 : vector<1x64xf32> to vector<2x64xf32>
    %28 = arith.addf %25, %27 : vector<2x64xf32>
    %c0_10 = arith.constant 0 : index
    %c0_11 = arith.constant 0 : index
    %29 = vector.load %arg8[%c0_10, %c0_11] : memref<2x64xf32, #tpu.memory_space<vmem>>, vector<2x64xf32>
    %30 = arith.truncf %28 : vector<2x64xf32> to vector<2x64xbf16>
    %c0_12 = arith.constant 0 : index
    %c0_13 = arith.constant 0 : index
    %31 = vector.load %arg4[%c0_12, %c0_13] : memref<64x64xbf16, #tpu.memory_space<vmem>>, vector<64x64xbf16>
    %cst_14 = arith.constant dense<0.000000e+00> : vector<2x64xf32>
    %32 = tpu.matmul %30, %31, %cst_14 {dimension_numbers = #tpu.dot_dimension_numbers<[1], [0], [0], [1], [0, 0, 1, 1], [], []>} : vector<2x64xbf16>, vector<64x64xbf16>, vector<2x64xf32> -> vector<2x64xf32>
    %33 = arith.addf %29, %32 : vector<2x64xf32>
    %c0_15 = arith.constant 0 : index
    %c0_16 = arith.constant 0 : index
    %34 = vector.load %arg8[%c0_15, %c0_16] : memref<2x64xf32, #tpu.memory_space<vmem>>, vector<2x64xf32>
    tpu.vector_store %arg8[%c0_15, %c0_16], %33 {strides = array<i32>} : memref<2x64xf32, #tpu.memory_space<vmem>>, vector<2x64xf32>,
    %c0_i32_17 = arith.constant 0 : i32
    %35 = arith.cmpi eq, %arg2, %c0_i32_17 : i32
    %36 = arith.extui %35 : i1 to i32
    %c0_i32_18 = arith.constant 0 : i32
    %37 = arith.cmpi ne, %36, %c0_i32_18 : i32
    scf.if %37 {
      %c0_19 = arith.constant 0 : index
      %c0_20 = arith.constant 0 : index
      %38 = vector.load %arg8[%c0_19, %c0_20] : memref<2x64xf32, #tpu.memory_space<vmem>>, vector<2x64xf32>
      %c0_21 = arith.constant 0 : index
      %c0_22 = arith.constant 0 : index
      %39 = vector.load %arg7[%c0_21, %c0_22] : memref<2x64xf32, #tpu.memory_space<vmem>>, vector<2x64xf32>
      tpu.vector_store %arg7[%c0_21, %c0_22], %38 {strides = array<i32>} : memref<2x64xf32, #tpu.memory_space<vmem>>, vector<2x64xf32>,
    } else {
    }
    return
  }
  func.func @transform_0(%arg0: i32, %arg1: i32, %arg2: i32) -> (i32, i32) {
    %c0_i32 = arith.constant 0 : i32
    return %arg0, %arg2 : i32, i32
  }
  func.func @transform_1(%arg0: i32, %arg1: i32, %arg2: i32) -> (i32, i32) {
    %c0_i32 = arith.constant 0 : i32
    return %arg2, %arg1 : i32, i32
  }
  func.func @transform_2(%arg0: i32, %arg1: i32, %arg2: i32) -> (i32, i32) {
    %c0_i32 = arith.constant 0 : i32
    %c0_i32_0 = arith.constant 0 : i32
    %c0_i32_1 = arith.constant 0 : i32
    return %c0_i32, %c0_i32_0 : i32, i32
  }
  func.func @transform_3(%arg0: i32, %arg1: i32, %arg2: i32) -> (i32, i32) {
    %c0_i32 = arith.constant 0 : i32
    %c0_i32_0 = arith.constant 0 : i32
    %c0_i32_1 = arith.constant 0 : i32
    return %c0_i32, %c0_i32_0 : i32, i32
  }
  func.func @transform_4(%arg0: i32, %arg1: i32, %arg2: i32) -> (i32, i32) {
    %c0_i32 = arith.constant 0 : i32
    return %arg0, %arg1 : i32, i32
  }
}

module attributes {stable_mosaic.version = 11 : i64} {
  func.func @_matmul_kernel(%arg0: i32, %arg1: i32, %arg2: i32, %arg3: memref<8x192xf32, #tpu.memory_space<vmem>>, %arg4: memref<192x64xbf16, #tpu.memory_space<vmem>>, %arg5: memref<1x64xf32, #tpu.memory_space<vmem>>, %arg6: memref<8x64xbf16, #tpu.memory_space<vmem>>, %arg7: memref<8x64xf32, #tpu.memory_space<vmem>>) attributes {dimension_semantics = [#tpu.dimension_semantics<parallel>, #tpu.dimension_semantics<parallel>, #tpu.dimension_semantics<arbitrary>], iteration_bounds = array<i64: 1, 1, 1>, scalar_prefetch = 0 : i64, scratch_operands = 1 : i64, tpu.core_type = #tpu.core_type<tc>, window_params = [{transform_indices = @transform_0, window_bounds = array<i64: 8, 192>}, {transform_indices = @transform_1, window_bounds = array<i64: 192, 64>}, {transform_indices = @transform_2, window_bounds = array<i64: 1, 64>}, {transform_indices = @transform_3, window_bounds = array<i64: 8, 64>}]} {
    %c0_i32 = arith.constant 0 : i32
    %0 = arith.cmpi eq, %arg2, %c0_i32 : i32
    %1 = arith.extui %0 : i1 to i32
    %c0_i32_0 = arith.constant 0 : i32
    %2 = arith.cmpi ne, %1, %c0_i32_0 : i32
    scf.if %2 {
      %cst_10 = arith.constant 0.000000e+00 : f32
      %13 = vector.broadcast %cst_10 : f32 to vector<8x64xf32>
      %c0_11 = arith.constant 0 : index
      %c0_12 = arith.constant 0 : index
      %14 = vector.load %arg7[%c0_11, %c0_12] : memref<8x64xf32, #tpu.memory_space<vmem>>, vector<8x64xf32>
      tpu.vector_store %arg7[%c0_11, %c0_12], %13 {strides = array<i32>} : memref<8x64xf32, #tpu.memory_space<vmem>>, vector<8x64xf32>,
    } else {
    }
    %c0 = arith.constant 0 : index
    %c0_1 = arith.constant 0 : index
    %3 = vector.load %arg3[%c0, %c0_1] : memref<8x192xf32, #tpu.memory_space<vmem>>, vector<8x192xf32>
    %c0_2 = arith.constant 0 : index
    %c0_3 = arith.constant 0 : index
    %4 = vector.load %arg7[%c0_2, %c0_3] : memref<8x64xf32, #tpu.memory_space<vmem>>, vector<8x64xf32>
    %5 = arith.truncf %3 : vector<8x192xf32> to vector<8x192xbf16>
    %c0_4 = arith.constant 0 : index
    %c0_5 = arith.constant 0 : index
    %6 = vector.load %arg4[%c0_4, %c0_5] : memref<192x64xbf16, #tpu.memory_space<vmem>>, vector<192x64xbf16>
    %cst = arith.constant dense<0.000000e+00> : vector<8x64xf32>
    %7 = tpu.matmul %5, %6, %cst {dimension_numbers = #tpu.dot_dimension_numbers<[1], [0], [0], [1], [0, 0, 1, 1], [], []>} : vector<8x192xbf16>, vector<192x64xbf16>, vector<8x64xf32> -> vector<8x64xf32>
    %8 = arith.addf %4, %7 : vector<8x64xf32>
    %c0_6 = arith.constant 0 : index
    %c0_7 = arith.constant 0 : index
    %9 = vector.load %arg7[%c0_6, %c0_7] : memref<8x64xf32, #tpu.memory_space<vmem>>, vector<8x64xf32>
    tpu.vector_store %arg7[%c0_6, %c0_7], %8 {strides = array<i32>} : memref<8x64xf32, #tpu.memory_space<vmem>>, vector<8x64xf32>,
    %c0_i32_8 = arith.constant 0 : i32
    %10 = arith.cmpi eq, %arg2, %c0_i32_8 : i32
    %11 = arith.extui %10 : i1 to i32
    %c0_i32_9 = arith.constant 0 : i32
    %12 = arith.cmpi ne, %11, %c0_i32_9 : i32
    scf.if %12 {
      %c0_10 = arith.constant 0 : index
      %c0_11 = arith.constant 0 : index
      %13 = vector.load %arg7[%c0_10, %c0_11] : memref<8x64xf32, #tpu.memory_space<vmem>>, vector<8x64xf32>
      %c0_12 = arith.constant 0 : index
      %c0_13 = arith.constant 0 : index
      %14 = vector.load %arg5[%c0_12, %c0_13] : memref<1x64xf32, #tpu.memory_space<vmem>>, vector<1x64xf32>
      %15 = vector.broadcast %14 : vector<1x64xf32> to vector<8x64xf32>
      %16 = arith.addf %13, %15 : vector<8x64xf32>
      %17 = arith.truncf %16 : vector<8x64xf32> to vector<8x64xbf16>
      %c0_14 = arith.constant 0 : index
      %c0_15 = arith.constant 0 : index
      %18 = vector.load %arg6[%c0_14, %c0_15] : memref<8x64xbf16, #tpu.memory_space<vmem>>, vector<8x64xbf16>
      tpu.vector_store %arg6[%c0_14, %c0_15], %17 {strides = array<i32>} : memref<8x64xbf16, #tpu.memory_space<vmem>>, vector<8x64xbf16>,
    } else {
    }
    return
  }
  func.func @transform_0(%arg0: i32, %arg1: i32, %arg2: i32) -> (i32, i32) {
    %c0_i32 = arith.constant 0 : i32
    return %arg0, %arg2 : i32, i32
  }
  func.func @transform_1(%arg0: i32, %arg1: i32, %arg2: i32) -> (i32, i32) {
    %c0_i32 = arith.constant 0 : i32
    return %arg2, %arg1 : i32, i32
  }
  func.func @transform_2(%arg0: i32, %arg1: i32, %arg2: i32) -> (i32, i32) {
    %c0_i32 = arith.constant 0 : i32
    %c0_i32_0 = arith.constant 0 : i32
    return %c0_i32, %arg1 : i32, i32
  }
  func.func @transform_3(%arg0: i32, %arg1: i32, %arg2: i32) -> (i32, i32) {
    %c0_i32 = arith.constant 0 : i32
    return %arg0, %arg1 : i32, i32
  }
}

module attributes {stable_mosaic.version = 11 : i64} {
  func.func @_matmul_kernel(%arg0: i32, %arg1: i32, %arg2: i32, %arg3: memref<10x64xbf16, #tpu.memory_space<vmem>>, %arg4: memref<64x192xbf16, #tpu.memory_space<vmem>>, %arg5: memref<1x64xf32, #tpu.memory_space<vmem>>, %arg6: memref<1x64xf32, #tpu.memory_space<vmem>>, %arg7: memref<1x192xf32, #tpu.memory_space<vmem>>, %arg8: memref<10x192xbf16, #tpu.memory_space<vmem>>, %arg9: memref<10x192xf32, #tpu.memory_space<vmem>>) attributes {dimension_semantics = [#tpu.dimension_semantics<parallel>, #tpu.dimension_semantics<parallel>, #tpu.dimension_semantics<arbitrary>], iteration_bounds = array<i64: 1, 1, 1>, scalar_prefetch = 0 : i64, scratch_operands = 1 : i64, tpu.core_type = #tpu.core_type<tc>, window_params = [{transform_indices = @transform_0, window_bounds = array<i64: 10, 64>}, {transform_indices = @transform_1, window_bounds = array<i64: 64, 192>}, {pipeline_mode = #tpu.pipeline_mode<synchronous>, transform_indices = @transform_2, window_bounds = array<i64: 1, 64>}, {pipeline_mode = #tpu.pipeline_mode<synchronous>, transform_indices = @transform_3, window_bounds = array<i64: 1, 64>}, {transform_indices = @transform_4, window_bounds = array<i64: 1, 192>}, {transform_indices = @transform_5, window_bounds = array<i64: 10, 192>}]} {
    %c0_i32 = arith.constant 0 : i32
    %0 = arith.cmpi eq, %arg2, %c0_i32 : i32
    %1 = arith.extui %0 : i1 to i32
    %c0_i32_0 = arith.constant 0 : i32
    %2 = arith.cmpi ne, %1, %c0_i32_0 : i32
    scf.if %2 {
      %cst_19 = arith.constant 0.000000e+00 : f32
      %38 = vector.broadcast %cst_19 : f32 to vector<10x192xf32>
      %c0_20 = arith.constant 0 : index
      %c0_21 = arith.constant 0 : index
      %39 = vector.load %arg9[%c0_20, %c0_21] : memref<10x192xf32, #tpu.memory_space<vmem>>, vector<10x192xf32>
      tpu.vector_store %arg9[%c0_20, %c0_21], %38 {strides = array<i32>} : memref<10x192xf32, #tpu.memory_space<vmem>>, vector<10x192xf32>,
    } else {
    }
    %c0 = arith.constant 0 : index
    %c0_1 = arith.constant 0 : index
    %3 = vector.load %arg3[%c0, %c0_1] : memref<10x64xbf16, #tpu.memory_space<vmem>>, vector<10x64xbf16>
    %4 = arith.extf %3 : vector<10x64xbf16> to vector<10x64xf32>
    %cst = arith.constant dense<0.000000e+00> : vector<10xf32>
    %5 = vector.multi_reduction <add>, %4, %cst [1] : vector<10x64xf32> to vector<10xf32>
    %6 = vector.shape_cast %5 : vector<10xf32> to vector<10x1xf32>
    %cst_2 = arith.constant 6.400000e+01 : f32
    %7 = vector.broadcast %cst_2 : f32 to vector<10x1xf32>
    %8 = arith.divf %6, %7 : vector<10x1xf32>
    %9 = vector.broadcast %8 : vector<10x1xf32> to vector<10x64xf32>
    %10 = arith.subf %4, %9 : vector<10x64xf32>
    %11 = arith.mulf %10, %10 : vector<10x64xf32>
    %cst_3 = arith.constant dense<0.000000e+00> : vector<10xf32>
    %12 = vector.multi_reduction <add>, %11, %cst_3 [1] : vector<10x64xf32> to vector<10xf32>
    %13 = vector.shape_cast %12 : vector<10xf32> to vector<10x1xf32>
    %cst_4 = arith.constant 6.400000e+01 : f32
    %14 = vector.broadcast %cst_4 : f32 to vector<10x1xf32>
    %15 = arith.divf %13, %14 : vector<10x1xf32>
    %16 = vector.broadcast %8 : vector<10x1xf32> to vector<10x64xf32>
    %17 = arith.subf %4, %16 : vector<10x64xf32>
    %cst_5 = arith.constant 9.99999974E-6 : f32
    %18 = vector.broadcast %cst_5 : f32 to vector<10x1xf32>
    %19 = arith.addf %15, %18 : vector<10x1xf32>
    %20 = math.rsqrt %19 : vector<10x1xf32>
    %21 = vector.broadcast %20 : vector<10x1xf32> to vector<10x64xf32>
    %22 = arith.mulf %17, %21 : vector<10x64xf32>
    %c0_6 = arith.constant 0 : index
    %c0_7 = arith.constant 0 : index
    %23 = vector.load %arg5[%c0_6, %c0_7] : memref<1x64xf32, #tpu.memory_space<vmem>>, vector<1x64xf32>
    %24 = vector.broadcast %23 : vector<1x64xf32> to vector<10x64xf32>
    %25 = arith.mulf %22, %24 : vector<10x64xf32>
    %c0_8 = arith.constant 0 : index
    %c0_9 = arith.constant 0 : index
    %26 = vector.load %arg6[%c0_8, %c0_9] : memref<1x64xf32, #tpu.memory_space<vmem>>, vector<1x64xf32>
    %27 = vector.broadcast %26 : vector<1x64xf32> to vector<10x64xf32>
    %28 = arith.addf %25, %27 : vector<10x64xf32>
    %c0_10 = arith.constant 0 : index
    %c0_11 = arith.constant 0 : index
    %29 = vector.load %arg9[%c0_10, %c0_11] : memref<10x192xf32, #tpu.memory_space<vmem>>, vector<10x192xf32>
    %30 = arith.truncf %28 : vector<10x64xf32> to vector<10x64xbf16>
    %c0_12 = arith.constant 0 : index
    %c0_13 = arith.constant 0 : index
    %31 = vector.load %arg4[%c0_12, %c0_13] : memref<64x192xbf16, #tpu.memory_space<vmem>>, vector<64x192xbf16>
    %cst_14 = arith.constant dense<0.000000e+00> : vector<10x192xf32>
    %32 = tpu.matmul %30, %31, %cst_14 {dimension_numbers = #tpu.dot_dimension_numbers<[1], [0], [0], [1], [0, 0, 1, 1], [], []>} : vector<10x64xbf16>, vector<64x192xbf16>, vector<10x192xf32> -> vector<10x192xf32>
    %33 = arith.addf %29, %32 : vector<10x192xf32>
    %c0_15 = arith.constant 0 : index
    %c0_16 = arith.constant 0 : index
    %34 = vector.load %arg9[%c0_15, %c0_16] : memref<10x192xf32, #tpu.memory_space<vmem>>, vector<10x192xf32>
    tpu.vector_store %arg9[%c0_15, %c0_16], %33 {strides = array<i32>} : memref<10x192xf32, #tpu.memory_space<vmem>>, vector<10x192xf32>,
    %c0_i32_17 = arith.constant 0 : i32
    %35 = arith.cmpi eq, %arg2, %c0_i32_17 : i32
    %36 = arith.extui %35 : i1 to i32
    %c0_i32_18 = arith.constant 0 : i32
    %37 = arith.cmpi ne, %36, %c0_i32_18 : i32
    scf.if %37 {
      %c0_19 = arith.constant 0 : index
      %c0_20 = arith.constant 0 : index
      %38 = vector.load %arg9[%c0_19, %c0_20] : memref<10x192xf32, #tpu.memory_space<vmem>>, vector<10x192xf32>
      %c0_21 = arith.constant 0 : index
      %c0_22 = arith.constant 0 : index
      %39 = vector.load %arg7[%c0_21, %c0_22] : memref<1x192xf32, #tpu.memory_space<vmem>>, vector<1x192xf32>
      %40 = vector.broadcast %39 : vector<1x192xf32> to vector<10x192xf32>
      %41 = arith.addf %38, %40 : vector<10x192xf32>
      %42 = arith.truncf %41 : vector<10x192xf32> to vector<10x192xbf16>
      %c0_23 = arith.constant 0 : index
      %c0_24 = arith.constant 0 : index
      %43 = vector.load %arg8[%c0_23, %c0_24] : memref<10x192xbf16, #tpu.memory_space<vmem>>, vector<10x192xbf16>
      tpu.vector_store %arg8[%c0_23, %c0_24], %42 {strides = array<i32>} : memref<10x192xbf16, #tpu.memory_space<vmem>>, vector<10x192xbf16>,
    } else {
    }
    return
  }
  func.func @transform_0(%arg0: i32, %arg1: i32, %arg2: i32) -> (i32, i32) {
    %c0_i32 = arith.constant 0 : i32
    return %arg0, %arg2 : i32, i32
  }
  func.func @transform_1(%arg0: i32, %arg1: i32, %arg2: i32) -> (i32, i32) {
    %c0_i32 = arith.constant 0 : i32
    return %arg2, %arg1 : i32, i32
  }
  func.func @transform_2(%arg0: i32, %arg1: i32, %arg2: i32) -> (i32, i32) {
    %c0_i32 = arith.constant 0 : i32
    %c0_i32_0 = arith.constant 0 : i32
    %c0_i32_1 = arith.constant 0 : i32
    return %c0_i32, %c0_i32_0 : i32, i32
  }
  func.func @transform_3(%arg0: i32, %arg1: i32, %arg2: i32) -> (i32, i32) {
    %c0_i32 = arith.constant 0 : i32
    %c0_i32_0 = arith.constant 0 : i32
    %c0_i32_1 = arith.constant 0 : i32
    return %c0_i32, %c0_i32_0 : i32, i32
  }
  func.func @transform_4(%arg0: i32, %arg1: i32, %arg2: i32) -> (i32, i32) {
    %c0_i32 = arith.constant 0 : i32
    %c0_i32_0 = arith.constant 0 : i32
    return %c0_i32, %arg1 : i32, i32
  }
  func.func @transform_5(%arg0: i32, %arg1: i32, %arg2: i32) -> (i32, i32) {
    %c0_i32 = arith.constant 0 : i32
    return %arg0, %arg1 : i32, i32
  }
}

module attributes {stable_mosaic.version = 11 : i64} {
  func.func @_attn_kernel(%arg0: i32, %arg1: memref<4x5x16xbf16, #tpu.memory_space<vmem>>, %arg2: memref<4x5x16xbf16, #tpu.memory_space<vmem>>, %arg3: memref<4x5x16xbf16, #tpu.memory_space<vmem>>, %arg4: memref<1x1x5xf32, #tpu.memory_space<vmem>>, %arg5: memref<4x5x16xbf16, #tpu.memory_space<vmem>>) attributes {dimension_semantics = [#tpu.dimension_semantics<parallel>], iteration_bounds = array<i64: 2>, scalar_prefetch = 0 : i64, scratch_operands = 0 : i64, tpu.core_type = #tpu.core_type<tc>, window_params = [{transform_indices = @transform_0, window_bounds = array<i64: 4, 5, 16>}, {transform_indices = @transform_1, window_bounds = array<i64: 4, 5, 16>}, {transform_indices = @transform_2, window_bounds = array<i64: 4, 5, 16>}, {transform_indices = @transform_3, window_bounds = array<i64: 1, 1, 5>}, {transform_indices = @transform_4, window_bounds = array<i64: 4, 5, 16>}]} {
    %c0 = arith.constant 0 : index
    %c0_0 = arith.constant 0 : index
    %c0_1 = arith.constant 0 : index
    %0 = vector.load %arg1[%c0, %c0_0, %c0_1] : memref<4x5x16xbf16, #tpu.memory_space<vmem>>, vector<4x5x16xbf16>
    %c0_2 = arith.constant 0 : index
    %c0_3 = arith.constant 0 : index
    %c0_4 = arith.constant 0 : index
    %1 = vector.load %arg2[%c0_2, %c0_3, %c0_4] : memref<4x5x16xbf16, #tpu.memory_space<vmem>>, vector<4x5x16xbf16>
    "tpu.trace_start"() <{level = 10 : i32, message = "hqd,hkd->hqk"}> : () -> ()
    %cst = arith.constant dense<0.000000e+00> : vector<4x5x5xf32>
    %2 = tpu.matmul %0, %1, %cst {dimension_numbers = #tpu.dot_dimension_numbers<[2], [2], [1], [1], [0, 0, 0, 1, 1, 1], [0], [0]>} : vector<4x5x16xbf16>, vector<4x5x16xbf16>, vector<4x5x5xf32> -> vector<4x5x5xf32>
    "tpu.trace_stop"() : () -> ()
    %cst_5 = arith.constant 2.500000e-01 : f32
    %3 = vector.broadcast %cst_5 : f32 to vector<4x5x5xf32>
    %4 = arith.mulf %2, %3 : vector<4x5x5xf32>
    %c0_6 = arith.constant 0 : index
    %c0_7 = arith.constant 0 : index
    %c0_8 = arith.constant 0 : index
    %5 = vector.load %arg4[%c0_6, %c0_7, %c0_8] : memref<1x1x5xf32, #tpu.memory_space<vmem>>, vector<1x1x5xf32>
    %6 = vector.broadcast %5 : vector<1x1x5xf32> to vector<4x5x5xf32>
    %7 = arith.addf %4, %6 : vector<4x5x5xf32>
    %cst_9 = arith.constant dense<0xFF800000> : vector<4x5xf32>
    %8 = vector.multi_reduction <maximumf>, %7, %cst_9 [2] : vector<4x5x5xf32> to vector<4x5xf32>
    %9 = vector.shape_cast %8 : vector<4x5xf32> to vector<4x5x1xf32>
    %10 = vector.broadcast %9 : vector<4x5x1xf32> to vector<4x5x5xf32>
    %11 = arith.subf %7, %10 : vector<4x5x5xf32>
    %12 = math.exp %11 : vector<4x5x5xf32>
    %cst_10 = arith.constant dense<0.000000e+00> : vector<4x5xf32>
    %13 = vector.multi_reduction <add>, %12, %cst_10 [2] : vector<4x5x5xf32> to vector<4x5xf32>
    %14 = vector.shape_cast %13 : vector<4x5xf32> to vector<4x5x1xf32>
    %15 = tpu.reciprocal %14 {approx = true} : vector<4x5x1xf32> -> vector<4x5x1xf32>
    %16 = vector.broadcast %15 : vector<4x5x1xf32> to vector<4x5x5xf32>
    %17 = arith.mulf %12, %16 : vector<4x5x5xf32>
    %18 = arith.truncf %17 : vector<4x5x5xf32> to vector<4x5x5xbf16>
    %c0_11 = arith.constant 0 : index
    %c0_12 = arith.constant 0 : index
    %c0_13 = arith.constant 0 : index
    %19 = vector.load %arg3[%c0_11, %c0_12, %c0_13] : memref<4x5x16xbf16, #tpu.memory_space<vmem>>, vector<4x5x16xbf16>
    "tpu.trace_start"() <{level = 10 : i32, message = "hqk,hkd->hqd"}> : () -> ()
    %cst_14 = arith.constant dense<0.000000e+00> : vector<4x5x16xf32>
    %20 = tpu.matmul %18, %19, %cst_14 {dimension_numbers = #tpu.dot_dimension_numbers<[2], [1], [1], [2], [0, 0, 0, 1, 1, 2], [0], [0]>} : vector<4x5x5xbf16>, vector<4x5x16xbf16>, vector<4x5x16xf32> -> vector<4x5x16xf32>
    "tpu.trace_stop"() : () -> ()
    %21 = arith.truncf %20 : vector<4x5x16xf32> to vector<4x5x16xbf16>
    %c0_15 = arith.constant 0 : index
    %c0_16 = arith.constant 0 : index
    %c0_17 = arith.constant 0 : index
    %22 = vector.load %arg5[%c0_15, %c0_16, %c0_17] : memref<4x5x16xbf16, #tpu.memory_space<vmem>>, vector<4x5x16xbf16>
    tpu.vector_store %arg5[%c0_15, %c0_16, %c0_17], %21 {strides = array<i32>} : memref<4x5x16xbf16, #tpu.memory_space<vmem>>, vector<4x5x16xbf16>,
    return
  }
  func.func @transform_0(%arg0: i32) -> (i32, i32, i32) {
    %c0_i32 = arith.constant 0 : i32
    %c0_i32_0 = arith.constant 0 : i32
    %c0_i32_1 = arith.constant 0 : i32
    return %arg0, %c0_i32, %c0_i32_0 : i32, i32, i32
  }
  func.func @transform_1(%arg0: i32) -> (i32, i32, i32) {
    %c0_i32 = arith.constant 0 : i32
    %c0_i32_0 = arith.constant 0 : i32
    %c0_i32_1 = arith.constant 0 : i32
    return %arg0, %c0_i32, %c0_i32_0 : i32, i32, i32
  }
  func.func @transform_2(%arg0: i32) -> (i32, i32, i32) {
    %c0_i32 = arith.constant 0 : i32
    %c0_i32_0 = arith.constant 0 : i32
    %c0_i32_1 = arith.constant 0 : i32
    return %arg0, %c0_i32, %c0_i32_0 : i32, i32, i32
  }
  func.func @transform_3(%arg0: i32) -> (i32, i32, i32) {
    %c0_i32 = arith.constant 0 : i32
    %c0_i32_0 = arith.constant 0 : i32
    %c0_i32_1 = arith.constant 0 : i32
    return %arg0, %c0_i32, %c0_i32_0 : i32, i32, i32
  }
  func.func @transform_4(%arg0: i32) -> (i32, i32, i32) {
    %c0_i32 = arith.constant 0 : i32
    %c0_i32_0 = arith.constant 0 : i32
    %c0_i32_1 = arith.constant 0 : i32
    return %arg0, %c0_i32, %c0_i32_0 : i32, i32, i32
  }
}

module attributes {stable_mosaic.version = 11 : i64} {
  func.func @_matmul_kernel(%arg0: i32, %arg1: i32, %arg2: i32, %arg3: memref<10x64xbf16, #tpu.memory_space<vmem>>, %arg4: memref<64x128xbf16, #tpu.memory_space<vmem>>, %arg5: memref<1x64xf32, #tpu.memory_space<vmem>>, %arg6: memref<1x64xf32, #tpu.memory_space<vmem>>, %arg7: memref<1x128xf32, #tpu.memory_space<vmem>>, %arg8: memref<10x128xbf16, #tpu.memory_space<vmem>>, %arg9: memref<10x128xf32, #tpu.memory_space<vmem>>) attributes {dimension_semantics = [#tpu.dimension_semantics<parallel>, #tpu.dimension_semantics<parallel>, #tpu.dimension_semantics<arbitrary>], iteration_bounds = array<i64: 1, 1, 1>, scalar_prefetch = 0 : i64, scratch_operands = 1 : i64, tpu.core_type = #tpu.core_type<tc>, window_params = [{transform_indices = @transform_0, window_bounds = array<i64: 10, 64>}, {transform_indices = @transform_1, window_bounds = array<i64: 64, 128>}, {pipeline_mode = #tpu.pipeline_mode<synchronous>, transform_indices = @transform_2, window_bounds = array<i64: 1, 64>}, {pipeline_mode = #tpu.pipeline_mode<synchronous>, transform_indices = @transform_3, window_bounds = array<i64: 1, 64>}, {transform_indices = @transform_4, window_bounds = array<i64: 1, 128>}, {transform_indices = @transform_5, window_bounds = array<i64: 10, 128>}]} {
    %c0_i32 = arith.constant 0 : i32
    %0 = arith.cmpi eq, %arg2, %c0_i32 : i32
    %1 = arith.extui %0 : i1 to i32
    %c0_i32_0 = arith.constant 0 : i32
    %2 = arith.cmpi ne, %1, %c0_i32_0 : i32
    scf.if %2 {
      %cst_19 = arith.constant 0.000000e+00 : f32
      %38 = vector.broadcast %cst_19 : f32 to vector<10x128xf32>
      %c0_20 = arith.constant 0 : index
      %c0_21 = arith.constant 0 : index
      %39 = vector.load %arg9[%c0_20, %c0_21] : memref<10x128xf32, #tpu.memory_space<vmem>>, vector<10x128xf32>
      tpu.vector_store %arg9[%c0_20, %c0_21], %38 {strides = array<i32>} : memref<10x128xf32, #tpu.memory_space<vmem>>, vector<10x128xf32>,
    } else {
    }
    %c0 = arith.constant 0 : index
    %c0_1 = arith.constant 0 : index
    %3 = vector.load %arg3[%c0, %c0_1] : memref<10x64xbf16, #tpu.memory_space<vmem>>, vector<10x64xbf16>
    %4 = arith.extf %3 : vector<10x64xbf16> to vector<10x64xf32>
    %cst = arith.constant dense<0.000000e+00> : vector<10xf32>
    %5 = vector.multi_reduction <add>, %4, %cst [1] : vector<10x64xf32> to vector<10xf32>
    %6 = vector.shape_cast %5 : vector<10xf32> to vector<10x1xf32>
    %cst_2 = arith.constant 6.400000e+01 : f32
    %7 = vector.broadcast %cst_2 : f32 to vector<10x1xf32>
    %8 = arith.divf %6, %7 : vector<10x1xf32>
    %9 = vector.broadcast %8 : vector<10x1xf32> to vector<10x64xf32>
    %10 = arith.subf %4, %9 : vector<10x64xf32>
    %11 = arith.mulf %10, %10 : vector<10x64xf32>
    %cst_3 = arith.constant dense<0.000000e+00> : vector<10xf32>
    %12 = vector.multi_reduction <add>, %11, %cst_3 [1] : vector<10x64xf32> to vector<10xf32>
    %13 = vector.shape_cast %12 : vector<10xf32> to vector<10x1xf32>
    %cst_4 = arith.constant 6.400000e+01 : f32
    %14 = vector.broadcast %cst_4 : f32 to vector<10x1xf32>
    %15 = arith.divf %13, %14 : vector<10x1xf32>
    %16 = vector.broadcast %8 : vector<10x1xf32> to vector<10x64xf32>
    %17 = arith.subf %4, %16 : vector<10x64xf32>
    %cst_5 = arith.constant 9.99999974E-6 : f32
    %18 = vector.broadcast %cst_5 : f32 to vector<10x1xf32>
    %19 = arith.addf %15, %18 : vector<10x1xf32>
    %20 = math.rsqrt %19 : vector<10x1xf32>
    %21 = vector.broadcast %20 : vector<10x1xf32> to vector<10x64xf32>
    %22 = arith.mulf %17, %21 : vector<10x64xf32>
    %c0_6 = arith.constant 0 : index
    %c0_7 = arith.constant 0 : index
    %23 = vector.load %arg5[%c0_6, %c0_7] : memref<1x64xf32, #tpu.memory_space<vmem>>, vector<1x64xf32>
    %24 = vector.broadcast %23 : vector<1x64xf32> to vector<10x64xf32>
    %25 = arith.mulf %22, %24 : vector<10x64xf32>
    %c0_8 = arith.constant 0 : index
    %c0_9 = arith.constant 0 : index
    %26 = vector.load %arg6[%c0_8, %c0_9] : memref<1x64xf32, #tpu.memory_space<vmem>>, vector<1x64xf32>
    %27 = vector.broadcast %26 : vector<1x64xf32> to vector<10x64xf32>
    %28 = arith.addf %25, %27 : vector<10x64xf32>
    %c0_10 = arith.constant 0 : index
    %c0_11 = arith.constant 0 : index
    %29 = vector.load %arg9[%c0_10, %c0_11] : memref<10x128xf32, #tpu.memory_space<vmem>>, vector<10x128xf32>
    %30 = arith.truncf %28 : vector<10x64xf32> to vector<10x64xbf16>
    %c0_12 = arith.constant 0 : index
    %c0_13 = arith.constant 0 : index
    %31 = vector.load %arg4[%c0_12, %c0_13] : memref<64x128xbf16, #tpu.memory_space<vmem>>, vector<64x128xbf16>
    %cst_14 = arith.constant dense<0.000000e+00> : vector<10x128xf32>
    %32 = tpu.matmul %30, %31, %cst_14 {dimension_numbers = #tpu.dot_dimension_numbers<[1], [0], [0], [1], [0, 0, 1, 1], [], []>} : vector<10x64xbf16>, vector<64x128xbf16>, vector<10x128xf32> -> vector<10x128xf32>
    %33 = arith.addf %29, %32 : vector<10x128xf32>
    %c0_15 = arith.constant 0 : index
    %c0_16 = arith.constant 0 : index
    %34 = vector.load %arg9[%c0_15, %c0_16] : memref<10x128xf32, #tpu.memory_space<vmem>>, vector<10x128xf32>
    tpu.vector_store %arg9[%c0_15, %c0_16], %33 {strides = array<i32>} : memref<10x128xf32, #tpu.memory_space<vmem>>, vector<10x128xf32>,
    %c0_i32_17 = arith.constant 0 : i32
    %35 = arith.cmpi eq, %arg2, %c0_i32_17 : i32
    %36 = arith.extui %35 : i1 to i32
    %c0_i32_18 = arith.constant 0 : i32
    %37 = arith.cmpi ne, %36, %c0_i32_18 : i32
    scf.if %37 {
      %c0_19 = arith.constant 0 : index
      %c0_20 = arith.constant 0 : index
      %38 = vector.load %arg9[%c0_19, %c0_20] : memref<10x128xf32, #tpu.memory_space<vmem>>, vector<10x128xf32>
      %c0_21 = arith.constant 0 : index
      %c0_22 = arith.constant 0 : index
      %39 = vector.load %arg7[%c0_21, %c0_22] : memref<1x128xf32, #tpu.memory_space<vmem>>, vector<1x128xf32>
      %40 = vector.broadcast %39 : vector<1x128xf32> to vector<10x128xf32>
      %41 = arith.addf %38, %40 : vector<10x128xf32>
      %42 = arith.mulf %41, %41 : vector<10x128xf32>
      %43 = arith.mulf %41, %42 : vector<10x128xf32>
      %cst_23 = arith.constant 4.471500e-02 : f32
      %44 = vector.broadcast %cst_23 : f32 to vector<10x128xf32>
      %45 = arith.mulf %44, %43 : vector<10x128xf32>
      %46 = arith.addf %41, %45 : vector<10x128xf32>
      %cst_24 = arith.constant 0.797884583 : f32
      %47 = vector.broadcast %cst_24 : f32 to vector<10x128xf32>
      %48 = arith.mulf %47, %46 : vector<10x128xf32>
      %49 = math.tanh %48 : vector<10x128xf32>
      %cst_25 = arith.constant 1.000000e+00 : f32
      %50 = vector.broadcast %cst_25 : f32 to vector<10x128xf32>
      %51 = arith.addf %50, %49 : vector<10x128xf32>
      %cst_26 = arith.constant 5.000000e-01 : f32
      %52 = vector.broadcast %cst_26 : f32 to vector<10x128xf32>
      %53 = arith.mulf %52, %51 : vector<10x128xf32>
      %54 = arith.mulf %41, %53 : vector<10x128xf32>
      %55 = arith.truncf %54 : vector<10x128xf32> to vector<10x128xbf16>
      %c0_27 = arith.constant 0 : index
      %c0_28 = arith.constant 0 : index
      %56 = vector.load %arg8[%c0_27, %c0_28] : memref<10x128xbf16, #tpu.memory_space<vmem>>, vector<10x128xbf16>
      tpu.vector_store %arg8[%c0_27, %c0_28], %55 {strides = array<i32>} : memref<10x128xbf16, #tpu.memory_space<vmem>>, vector<10x128xbf16>,
    } else {
    }
    return
  }
  func.func @transform_0(%arg0: i32, %arg1: i32, %arg2: i32) -> (i32, i32) {
    %c0_i32 = arith.constant 0 : i32
    return %arg0, %arg2 : i32, i32
  }
  func.func @transform_1(%arg0: i32, %arg1: i32, %arg2: i32) -> (i32, i32) {
    %c0_i32 = arith.constant 0 : i32
    return %arg2, %arg1 : i32, i32
  }
  func.func @transform_2(%arg0: i32, %arg1: i32, %arg2: i32) -> (i32, i32) {
    %c0_i32 = arith.constant 0 : i32
    %c0_i32_0 = arith.constant 0 : i32
    %c0_i32_1 = arith.constant 0 : i32
    return %c0_i32, %c0_i32_0 : i32, i32
  }
  func.func @transform_3(%arg0: i32, %arg1: i32, %arg2: i32) -> (i32, i32) {
    %c0_i32 = arith.constant 0 : i32
    %c0_i32_0 = arith.constant 0 : i32
    %c0_i32_1 = arith.constant 0 : i32
    return %c0_i32, %c0_i32_0 : i32, i32
  }
  func.func @transform_4(%arg0: i32, %arg1: i32, %arg2: i32) -> (i32, i32) {
    %c0_i32 = arith.constant 0 : i32
    %c0_i32_0 = arith.constant 0 : i32
    return %c0_i32, %arg1 : i32, i32
  }
  func.func @transform_5(%arg0: i32, %arg1: i32, %arg2: i32) -> (i32, i32) {
    %c0_i32 = arith.constant 0 : i32
    return %arg0, %arg1 : i32, i32
  }
}

module attributes {stable_mosaic.version = 11 : i64} {
  func.func @_matmul_kernel(%arg0: i32, %arg1: i32, %arg2: i32, %arg3: memref<10x64xbf16, #tpu.memory_space<vmem>>, %arg4: memref<64x64xbf16, #tpu.memory_space<vmem>>, %arg5: memref<1x64xf32, #tpu.memory_space<vmem>>, %arg6: memref<10x64xbf16, #tpu.memory_space<vmem>>, %arg7: memref<10x64xbf16, #tpu.memory_space<vmem>>, %arg8: memref<10x64xf32, #tpu.memory_space<vmem>>) attributes {dimension_semantics = [#tpu.dimension_semantics<parallel>, #tpu.dimension_semantics<parallel>, #tpu.dimension_semantics<arbitrary>], iteration_bounds = array<i64: 1, 1, 1>, scalar_prefetch = 0 : i64, scratch_operands = 1 : i64, tpu.core_type = #tpu.core_type<tc>, window_params = [{transform_indices = @transform_0, window_bounds = array<i64: 10, 64>}, {transform_indices = @transform_1, window_bounds = array<i64: 64, 64>}, {transform_indices = @transform_2, window_bounds = array<i64: 1, 64>}, {transform_indices = @transform_3, window_bounds = array<i64: 10, 64>}, {transform_indices = @transform_4, window_bounds = array<i64: 10, 64>}]} {
    %c0_i32 = arith.constant 0 : i32
    %0 = arith.cmpi eq, %arg2, %c0_i32 : i32
    %1 = arith.extui %0 : i1 to i32
    %c0_i32_0 = arith.constant 0 : i32
    %2 = arith.cmpi ne, %1, %c0_i32_0 : i32
    scf.if %2 {
      %cst_10 = arith.constant 0.000000e+00 : f32
      %14 = vector.broadcast %cst_10 : f32 to vector<10x64xf32>
      %c0_11 = arith.constant 0 : index
      %c0_12 = arith.constant 0 : index
      %15 = vector.load %arg8[%c0_11, %c0_12] : memref<10x64xf32, #tpu.memory_space<vmem>>, vector<10x64xf32>
      tpu.vector_store %arg8[%c0_11, %c0_12], %14 {strides = array<i32>} : memref<10x64xf32, #tpu.memory_space<vmem>>, vector<10x64xf32>,
    } else {
    }
    %c0 = arith.constant 0 : index
    %c0_1 = arith.constant 0 : index
    %3 = vector.load %arg3[%c0, %c0_1] : memref<10x64xbf16, #tpu.memory_space<vmem>>, vector<10x64xbf16>
    %4 = arith.extf %3 : vector<10x64xbf16> to vector<10x64xf32>
    %c0_2 = arith.constant 0 : index
    %c0_3 = arith.constant 0 : index
    %5 = vector.load %arg8[%c0_2, %c0_3] : memref<10x64xf32, #tpu.memory_space<vmem>>, vector<10x64xf32>
    %6 = arith.truncf %4 : vector<10x64xf32> to vector<10x64xbf16>
    %c0_4 = arith.constant 0 : index
    %c0_5 = arith.constant 0 : index
    %7 = vector.load %arg4[%c0_4, %c0_5] : memref<64x64xbf16, #tpu.memory_space<vmem>>, vector<64x64xbf16>
    %cst = arith.constant dense<0.000000e+00> : vector<10x64xf32>
    %8 = tpu.matmul %6, %7, %cst {dimension_numbers = #tpu.dot_dimension_numbers<[1], [0], [0], [1], [0, 0, 1, 1], [], []>} : vector<10x64xbf16>, vector<64x64xbf16>, vector<10x64xf32> -> vector<10x64xf32>
    %9 = arith.addf %5, %8 : vector<10x64xf32>
    %c0_6 = arith.constant 0 : index
    %c0_7 = arith.constant 0 : index
    %10 = vector.load %arg8[%c0_6, %c0_7] : memref<10x64xf32, #tpu.memory_space<vmem>>, vector<10x64xf32>
    tpu.vector_store %arg8[%c0_6, %c0_7], %9 {strides = array<i32>} : memref<10x64xf32, #tpu.memory_space<vmem>>, vector<10x64xf32>,
    %c0_i32_8 = arith.constant 0 : i32
    %11 = arith.cmpi eq, %arg2, %c0_i32_8 : i32
    %12 = arith.extui %11 : i1 to i32
    %c0_i32_9 = arith.constant 0 : i32
    %13 = arith.cmpi ne, %12, %c0_i32_9 : i32
    scf.if %13 {
      %c0_10 = arith.constant 0 : index
      %c0_11 = arith.constant 0 : index
      %14 = vector.load %arg8[%c0_10, %c0_11] : memref<10x64xf32, #tpu.memory_space<vmem>>, vector<10x64xf32>
      %c0_12 = arith.constant 0 : index
      %c0_13 = arith.constant 0 : index
      %15 = vector.load %arg5[%c0_12, %c0_13] : memref<1x64xf32, #tpu.memory_space<vmem>>, vector<1x64xf32>
      %16 = vector.broadcast %15 : vector<1x64xf32> to vector<10x64xf32>
      %17 = arith.addf %14, %16 : vector<10x64xf32>
      %c0_14 = arith.constant 0 : index
      %c0_15 = arith.constant 0 : index
      %18 = vector.load %arg6[%c0_14, %c0_15] : memref<10x64xbf16, #tpu.memory_space<vmem>>, vector<10x64xbf16>
      %19 = arith.extf %18 : vector<10x64xbf16> to vector<10x64xf32>
      %20 = arith.addf %17, %19 : vector<10x64xf32>
      %21 = arith.truncf %20 : vector<10x64xf32> to vector<10x64xbf16>
      %c0_16 = arith.constant 0 : index
      %c0_17 = arith.constant 0 : index
      %22 = vector.load %arg7[%c0_16, %c0_17] : memref<10x64xbf16, #tpu.memory_space<vmem>>, vector<10x64xbf16>
      tpu.vector_store %arg7[%c0_16, %c0_17], %21 {strides = array<i32>} : memref<10x64xbf16, #tpu.memory_space<vmem>>, vector<10x64xbf16>,
    } else {
    }
    return
  }
  func.func @transform_0(%arg0: i32, %arg1: i32, %arg2: i32) -> (i32, i32) {
    %c0_i32 = arith.constant 0 : i32
    return %arg0, %arg2 : i32, i32
  }
  func.func @transform_1(%arg0: i32, %arg1: i32, %arg2: i32) -> (i32, i32) {
    %c0_i32 = arith.constant 0 : i32
    return %arg2, %arg1 : i32, i32
  }
  func.func @transform_2(%arg0: i32, %arg1: i32, %arg2: i32) -> (i32, i32) {
    %c0_i32 = arith.constant 0 : i32
    %c0_i32_0 = arith.constant 0 : i32
    return %c0_i32, %arg1 : i32, i32
  }
  func.func @transform_3(%arg0: i32, %arg1: i32, %arg2: i32) -> (i32, i32) {
    %c0_i32 = arith.constant 0 : i32
    return %arg0, %arg1 : i32, i32
  }
  func.func @transform_4(%arg0: i32, %arg1: i32, %arg2: i32) -> (i32, i32) {
    %c0_i32 = arith.constant 0 : i32
    return %arg0, %arg1 : i32, i32
  }
}

module attributes {stable_mosaic.version = 11 : i64} {
  func.func @_matmul_kernel(%arg0: i32, %arg1: i32, %arg2: i32, %arg3: memref<10x128xbf16, #tpu.memory_space<vmem>>, %arg4: memref<128x64xbf16, #tpu.memory_space<vmem>>, %arg5: memref<1x64xf32, #tpu.memory_space<vmem>>, %arg6: memref<10x64xbf16, #tpu.memory_space<vmem>>, %arg7: memref<10x64xbf16, #tpu.memory_space<vmem>>, %arg8: memref<10x64xf32, #tpu.memory_space<vmem>>) attributes {dimension_semantics = [#tpu.dimension_semantics<parallel>, #tpu.dimension_semantics<parallel>, #tpu.dimension_semantics<arbitrary>], iteration_bounds = array<i64: 1, 1, 1>, scalar_prefetch = 0 : i64, scratch_operands = 1 : i64, tpu.core_type = #tpu.core_type<tc>, window_params = [{transform_indices = @transform_0, window_bounds = array<i64: 10, 128>}, {transform_indices = @transform_1, window_bounds = array<i64: 128, 64>}, {transform_indices = @transform_2, window_bounds = array<i64: 1, 64>}, {transform_indices = @transform_3, window_bounds = array<i64: 10, 64>}, {transform_indices = @transform_4, window_bounds = array<i64: 10, 64>}]} {
    %c0_i32 = arith.constant 0 : i32
    %0 = arith.cmpi eq, %arg2, %c0_i32 : i32
    %1 = arith.extui %0 : i1 to i32
    %c0_i32_0 = arith.constant 0 : i32
    %2 = arith.cmpi ne, %1, %c0_i32_0 : i32
    scf.if %2 {
      %cst_10 = arith.constant 0.000000e+00 : f32
      %14 = vector.broadcast %cst_10 : f32 to vector<10x64xf32>
      %c0_11 = arith.constant 0 : index
      %c0_12 = arith.constant 0 : index
      %15 = vector.load %arg8[%c0_11, %c0_12] : memref<10x64xf32, #tpu.memory_space<vmem>>, vector<10x64xf32>
      tpu.vector_store %arg8[%c0_11, %c0_12], %14 {strides = array<i32>} : memref<10x64xf32, #tpu.memory_space<vmem>>, vector<10x64xf32>,
    } else {
    }
    %c0 = arith.constant 0 : index
    %c0_1 = arith.constant 0 : index
    %3 = vector.load %arg3[%c0, %c0_1] : memref<10x128xbf16, #tpu.memory_space<vmem>>, vector<10x128xbf16>
    %4 = arith.extf %3 : vector<10x128xbf16> to vector<10x128xf32>
    %c0_2 = arith.constant 0 : index
    %c0_3 = arith.constant 0 : index
    %5 = vector.load %arg8[%c0_2, %c0_3] : memref<10x64xf32, #tpu.memory_space<vmem>>, vector<10x64xf32>
    %6 = arith.truncf %4 : vector<10x128xf32> to vector<10x128xbf16>
    %c0_4 = arith.constant 0 : index
    %c0_5 = arith.constant 0 : index
    %7 = vector.load %arg4[%c0_4, %c0_5] : memref<128x64xbf16, #tpu.memory_space<vmem>>, vector<128x64xbf16>
    %cst = arith.constant dense<0.000000e+00> : vector<10x64xf32>
    %8 = tpu.matmul %6, %7, %cst {dimension_numbers = #tpu.dot_dimension_numbers<[1], [0], [0], [1], [0, 0, 1, 1], [], []>} : vector<10x128xbf16>, vector<128x64xbf16>, vector<10x64xf32> -> vector<10x64xf32>
    %9 = arith.addf %5, %8 : vector<10x64xf32>
    %c0_6 = arith.constant 0 : index
    %c0_7 = arith.constant 0 : index
    %10 = vector.load %arg8[%c0_6, %c0_7] : memref<10x64xf32, #tpu.memory_space<vmem>>, vector<10x64xf32>
    tpu.vector_store %arg8[%c0_6, %c0_7], %9 {strides = array<i32>} : memref<10x64xf32, #tpu.memory_space<vmem>>, vector<10x64xf32>,
    %c0_i32_8 = arith.constant 0 : i32
    %11 = arith.cmpi eq, %arg2, %c0_i32_8 : i32
    %12 = arith.extui %11 : i1 to i32
    %c0_i32_9 = arith.constant 0 : i32
    %13 = arith.cmpi ne, %12, %c0_i32_9 : i32
    scf.if %13 {
      %c0_10 = arith.constant 0 : index
      %c0_11 = arith.constant 0 : index
      %14 = vector.load %arg8[%c0_10, %c0_11] : memref<10x64xf32, #tpu.memory_space<vmem>>, vector<10x64xf32>
      %c0_12 = arith.constant 0 : index
      %c0_13 = arith.constant 0 : index
      %15 = vector.load %arg5[%c0_12, %c0_13] : memref<1x64xf32, #tpu.memory_space<vmem>>, vector<1x64xf32>
      %16 = vector.broadcast %15 : vector<1x64xf32> to vector<10x64xf32>
      %17 = arith.addf %14, %16 : vector<10x64xf32>
      %c0_14 = arith.constant 0 : index
      %c0_15 = arith.constant 0 : index
      %18 = vector.load %arg6[%c0_14, %c0_15] : memref<10x64xbf16, #tpu.memory_space<vmem>>, vector<10x64xbf16>
      %19 = arith.extf %18 : vector<10x64xbf16> to vector<10x64xf32>
      %20 = arith.addf %17, %19 : vector<10x64xf32>
      %21 = arith.truncf %20 : vector<10x64xf32> to vector<10x64xbf16>
      %c0_16 = arith.constant 0 : index
      %c0_17 = arith.constant 0 : index
      %22 = vector.load %arg7[%c0_16, %c0_17] : memref<10x64xbf16, #tpu.memory_space<vmem>>, vector<10x64xbf16>
      tpu.vector_store %arg7[%c0_16, %c0_17], %21 {strides = array<i32>} : memref<10x64xbf16, #tpu.memory_space<vmem>>, vector<10x64xbf16>,
    } else {
    }
    return
  }
  func.func @transform_0(%arg0: i32, %arg1: i32, %arg2: i32) -> (i32, i32) {
    %c0_i32 = arith.constant 0 : i32
    return %arg0, %arg2 : i32, i32
  }
  func.func @transform_1(%arg0: i32, %arg1: i32, %arg2: i32) -> (i32, i32) {
    %c0_i32 = arith.constant 0 : i32
    return %arg2, %arg1 : i32, i32
  }
  func.func @transform_2(%arg0: i32, %arg1: i32, %arg2: i32) -> (i32, i32) {
    %c0_i32 = arith.constant 0 : i32
    %c0_i32_0 = arith.constant 0 : i32
    return %c0_i32, %arg1 : i32, i32
  }
  func.func @transform_3(%arg0: i32, %arg1: i32, %arg2: i32) -> (i32, i32) {
    %c0_i32 = arith.constant 0 : i32
    return %arg0, %arg1 : i32, i32
  }
  func.func @transform_4(%arg0: i32, %arg1: i32, %arg2: i32) -> (i32, i32) {
    %c0_i32 = arith.constant 0 : i32
    return %arg0, %arg1 : i32, i32
  }
}

module attributes {stable_mosaic.version = 11 : i64} {
  func.func @_matmul_kernel(%arg0: i32, %arg1: i32, %arg2: i32, %arg3: memref<2x64xf32, #tpu.memory_space<vmem>>, %arg4: memref<64x2xbf16, #tpu.memory_space<vmem>>, %arg5: memref<2x2xf32, #tpu.memory_space<vmem>>, %arg6: memref<2x2xf32, #tpu.memory_space<vmem>>) attributes {dimension_semantics = [#tpu.dimension_semantics<parallel>, #tpu.dimension_semantics<parallel>, #tpu.dimension_semantics<arbitrary>], iteration_bounds = array<i64: 1, 1, 1>, scalar_prefetch = 0 : i64, scratch_operands = 1 : i64, tpu.core_type = #tpu.core_type<tc>, window_params = [{transform_indices = @transform_0, window_bounds = array<i64: 2, 64>}, {transform_indices = @transform_1, window_bounds = array<i64: 64, 2>}, {transform_indices = @transform_2, window_bounds = array<i64: 2, 2>}]} {
    %c0_i32 = arith.constant 0 : i32
    %0 = arith.cmpi eq, %arg2, %c0_i32 : i32
    %1 = arith.extui %0 : i1 to i32
    %c0_i32_0 = arith.constant 0 : i32
    %2 = arith.cmpi ne, %1, %c0_i32_0 : i32
    scf.if %2 {
      %cst_10 = arith.constant 0.000000e+00 : f32
      %13 = vector.broadcast %cst_10 : f32 to vector<2x2xf32>
      %c0_11 = arith.constant 0 : index
      %c0_12 = arith.constant 0 : index
      %14 = vector.load %arg6[%c0_11, %c0_12] : memref<2x2xf32, #tpu.memory_space<vmem>>, vector<2x2xf32>
      tpu.vector_store %arg6[%c0_11, %c0_12], %13 {strides = array<i32>} : memref<2x2xf32, #tpu.memory_space<vmem>>, vector<2x2xf32>,
    } else {
    }
    %c0 = arith.constant 0 : index
    %c0_1 = arith.constant 0 : index
    %3 = vector.load %arg3[%c0, %c0_1] : memref<2x64xf32, #tpu.memory_space<vmem>>, vector<2x64xf32>
    %c0_2 = arith.constant 0 : index
    %c0_3 = arith.constant 0 : index
    %4 = vector.load %arg6[%c0_2, %c0_3] : memref<2x2xf32, #tpu.memory_space<vmem>>, vector<2x2xf32>
    %5 = arith.truncf %3 : vector<2x64xf32> to vector<2x64xbf16>
    %c0_4 = arith.constant 0 : index
    %c0_5 = arith.constant 0 : index
    %6 = vector.load %arg4[%c0_4, %c0_5] : memref<64x2xbf16, #tpu.memory_space<vmem>>, vector<64x2xbf16>
    %cst = arith.constant dense<0.000000e+00> : vector<2x2xf32>
    %7 = tpu.matmul %5, %6, %cst {dimension_numbers = #tpu.dot_dimension_numbers<[1], [0], [0], [1], [0, 0, 1, 1], [], []>} : vector<2x64xbf16>, vector<64x2xbf16>, vector<2x2xf32> -> vector<2x2xf32>
    %8 = arith.addf %4, %7 : vector<2x2xf32>
    %c0_6 = arith.constant 0 : index
    %c0_7 = arith.constant 0 : index
    %9 = vector.load %arg6[%c0_6, %c0_7] : memref<2x2xf32, #tpu.memory_space<vmem>>, vector<2x2xf32>
    tpu.vector_store %arg6[%c0_6, %c0_7], %8 {strides = array<i32>} : memref<2x2xf32, #tpu.memory_space<vmem>>, vector<2x2xf32>,
    %c0_i32_8 = arith.constant 0 : i32
    %10 = arith.cmpi eq, %arg2, %c0_i32_8 : i32
    %11 = arith.extui %10 : i1 to i32
    %c0_i32_9 = arith.constant 0 : i32
    %12 = arith.cmpi ne, %11, %c0_i32_9 : i32
    scf.if %12 {
      %c0_10 = arith.constant 0 : index
      %c0_11 = arith.constant 0 : index
      %13 = vector.load %arg6[%c0_10, %c0_11] : memref<2x2xf32, #tpu.memory_space<vmem>>, vector<2x2xf32>
      %c0_12 = arith.constant 0 : index
      %c0_13 = arith.constant 0 : index
      %14 = vector.load %arg5[%c0_12, %c0_13] : memref<2x2xf32, #tpu.memory_space<vmem>>, vector<2x2xf32>
      tpu.vector_store %arg5[%c0_12, %c0_13], %13 {strides = array<i32>} : memref<2x2xf32, #tpu.memory_space<vmem>>, vector<2x2xf32>,
    } else {
    }
    return
  }
  func.func @transform_0(%arg0: i32, %arg1: i32, %arg2: i32) -> (i32, i32) {
    %c0_i32 = arith.constant 0 : i32
    return %arg0, %arg2 : i32, i32
  }
  func.func @transform_1(%arg0: i32, %arg1: i32, %arg2: i32) -> (i32, i32) {
    %c0_i32 = arith.constant 0 : i32
    return %arg2, %arg1 : i32, i32
  }
  func.func @transform_2(%arg0: i32, %arg1: i32, %arg2: i32) -> (i32, i32) {
    %c0_i32 = arith.constant 0 : i32
    return %arg0, %arg1 : i32, i32
  }
}

module attributes {stable_mosaic.version = 11 : i64} {
  func.func @_matmul_kernel(%arg0: i32, %arg1: i32, %arg2: i32, %arg3: memref<24x192xf32, #tpu.memory_space<vmem>>, %arg4: memref<192x64xbf16, #tpu.memory_space<vmem>>, %arg5: memref<1x64xf32, #tpu.memory_space<vmem>>, %arg6: memref<24x64xbf16, #tpu.memory_space<vmem>>, %arg7: memref<24x64xf32, #tpu.memory_space<vmem>>) attributes {dimension_semantics = [#tpu.dimension_semantics<parallel>, #tpu.dimension_semantics<parallel>, #tpu.dimension_semantics<arbitrary>], iteration_bounds = array<i64: 1, 1, 1>, scalar_prefetch = 0 : i64, scratch_operands = 1 : i64, tpu.core_type = #tpu.core_type<tc>, window_params = [{transform_indices = @transform_0, window_bounds = array<i64: 24, 192>}, {transform_indices = @transform_1, window_bounds = array<i64: 192, 64>}, {transform_indices = @transform_2, window_bounds = array<i64: 1, 64>}, {transform_indices = @transform_3, window_bounds = array<i64: 24, 64>}]} {
    %c0_i32 = arith.constant 0 : i32
    %0 = arith.cmpi eq, %arg2, %c0_i32 : i32
    %1 = arith.extui %0 : i1 to i32
    %c0_i32_0 = arith.constant 0 : i32
    %2 = arith.cmpi ne, %1, %c0_i32_0 : i32
    scf.if %2 {
      %cst_10 = arith.constant 0.000000e+00 : f32
      %13 = vector.broadcast %cst_10 : f32 to vector<24x64xf32>
      %c0_11 = arith.constant 0 : index
      %c0_12 = arith.constant 0 : index
      %14 = vector.load %arg7[%c0_11, %c0_12] : memref<24x64xf32, #tpu.memory_space<vmem>>, vector<24x64xf32>
      tpu.vector_store %arg7[%c0_11, %c0_12], %13 {strides = array<i32>} : memref<24x64xf32, #tpu.memory_space<vmem>>, vector<24x64xf32>,
    } else {
    }
    %c0 = arith.constant 0 : index
    %c0_1 = arith.constant 0 : index
    %3 = vector.load %arg3[%c0, %c0_1] : memref<24x192xf32, #tpu.memory_space<vmem>>, vector<24x192xf32>
    %c0_2 = arith.constant 0 : index
    %c0_3 = arith.constant 0 : index
    %4 = vector.load %arg7[%c0_2, %c0_3] : memref<24x64xf32, #tpu.memory_space<vmem>>, vector<24x64xf32>
    %5 = arith.truncf %3 : vector<24x192xf32> to vector<24x192xbf16>
    %c0_4 = arith.constant 0 : index
    %c0_5 = arith.constant 0 : index
    %6 = vector.load %arg4[%c0_4, %c0_5] : memref<192x64xbf16, #tpu.memory_space<vmem>>, vector<192x64xbf16>
    %cst = arith.constant dense<0.000000e+00> : vector<24x64xf32>
    %7 = tpu.matmul %5, %6, %cst {dimension_numbers = #tpu.dot_dimension_numbers<[1], [0], [0], [1], [0, 0, 1, 1], [], []>} : vector<24x192xbf16>, vector<192x64xbf16>, vector<24x64xf32> -> vector<24x64xf32>
    %8 = arith.addf %4, %7 : vector<24x64xf32>
    %c0_6 = arith.constant 0 : index
    %c0_7 = arith.constant 0 : index
    %9 = vector.load %arg7[%c0_6, %c0_7] : memref<24x64xf32, #tpu.memory_space<vmem>>, vector<24x64xf32>
    tpu.vector_store %arg7[%c0_6, %c0_7], %8 {strides = array<i32>} : memref<24x64xf32, #tpu.memory_space<vmem>>, vector<24x64xf32>,
    %c0_i32_8 = arith.constant 0 : i32
    %10 = arith.cmpi eq, %arg2, %c0_i32_8 : i32
    %11 = arith.extui %10 : i1 to i32
    %c0_i32_9 = arith.constant 0 : i32
    %12 = arith.cmpi ne, %11, %c0_i32_9 : i32
    scf.if %12 {
      %c0_10 = arith.constant 0 : index
      %c0_11 = arith.constant 0 : index
      %13 = vector.load %arg7[%c0_10, %c0_11] : memref<24x64xf32, #tpu.memory_space<vmem>>, vector<24x64xf32>
      %c0_12 = arith.constant 0 : index
      %c0_13 = arith.constant 0 : index
      %14 = vector.load %arg5[%c0_12, %c0_13] : memref<1x64xf32, #tpu.memory_space<vmem>>, vector<1x64xf32>
      %15 = vector.broadcast %14 : vector<1x64xf32> to vector<24x64xf32>
      %16 = arith.addf %13, %15 : vector<24x64xf32>
      %17 = arith.truncf %16 : vector<24x64xf32> to vector<24x64xbf16>
      %c0_14 = arith.constant 0 : index
      %c0_15 = arith.constant 0 : index
      %18 = vector.load %arg6[%c0_14, %c0_15] : memref<24x64xbf16, #tpu.memory_space<vmem>>, vector<24x64xbf16>
      tpu.vector_store %arg6[%c0_14, %c0_15], %17 {strides = array<i32>} : memref<24x64xbf16, #tpu.memory_space<vmem>>, vector<24x64xbf16>,
    } else {
    }
    return
  }
  func.func @transform_0(%arg0: i32, %arg1: i32, %arg2: i32) -> (i32, i32) {
    %c0_i32 = arith.constant 0 : i32
    return %arg0, %arg2 : i32, i32
  }
  func.func @transform_1(%arg0: i32, %arg1: i32, %arg2: i32) -> (i32, i32) {
    %c0_i32 = arith.constant 0 : i32
    return %arg2, %arg1 : i32, i32
  }
  func.func @transform_2(%arg0: i32, %arg1: i32, %arg2: i32) -> (i32, i32) {
    %c0_i32 = arith.constant 0 : i32
    %c0_i32_0 = arith.constant 0 : i32
    return %c0_i32, %arg1 : i32, i32
  }
  func.func @transform_3(%arg0: i32, %arg1: i32, %arg2: i32) -> (i32, i32) {
    %c0_i32 = arith.constant 0 : i32
    return %arg0, %arg1 : i32, i32
  }
}

module attributes {stable_mosaic.version = 11 : i64} {
  func.func @_matmul_kernel(%arg0: i32, %arg1: i32, %arg2: i32, %arg3: memref<78x64xbf16, #tpu.memory_space<vmem>>, %arg4: memref<64x192xbf16, #tpu.memory_space<vmem>>, %arg5: memref<1x64xf32, #tpu.memory_space<vmem>>, %arg6: memref<1x64xf32, #tpu.memory_space<vmem>>, %arg7: memref<1x192xf32, #tpu.memory_space<vmem>>, %arg8: memref<78x192xbf16, #tpu.memory_space<vmem>>, %arg9: memref<78x192xf32, #tpu.memory_space<vmem>>) attributes {dimension_semantics = [#tpu.dimension_semantics<parallel>, #tpu.dimension_semantics<parallel>, #tpu.dimension_semantics<arbitrary>], iteration_bounds = array<i64: 1, 1, 1>, scalar_prefetch = 0 : i64, scratch_operands = 1 : i64, tpu.core_type = #tpu.core_type<tc>, window_params = [{transform_indices = @transform_0, window_bounds = array<i64: 78, 64>}, {transform_indices = @transform_1, window_bounds = array<i64: 64, 192>}, {pipeline_mode = #tpu.pipeline_mode<synchronous>, transform_indices = @transform_2, window_bounds = array<i64: 1, 64>}, {pipeline_mode = #tpu.pipeline_mode<synchronous>, transform_indices = @transform_3, window_bounds = array<i64: 1, 64>}, {transform_indices = @transform_4, window_bounds = array<i64: 1, 192>}, {transform_indices = @transform_5, window_bounds = array<i64: 78, 192>}]} {
    %c0_i32 = arith.constant 0 : i32
    %0 = arith.cmpi eq, %arg2, %c0_i32 : i32
    %1 = arith.extui %0 : i1 to i32
    %c0_i32_0 = arith.constant 0 : i32
    %2 = arith.cmpi ne, %1, %c0_i32_0 : i32
    scf.if %2 {
      %cst_19 = arith.constant 0.000000e+00 : f32
      %38 = vector.broadcast %cst_19 : f32 to vector<78x192xf32>
      %c0_20 = arith.constant 0 : index
      %c0_21 = arith.constant 0 : index
      %39 = vector.load %arg9[%c0_20, %c0_21] : memref<78x192xf32, #tpu.memory_space<vmem>>, vector<78x192xf32>
      tpu.vector_store %arg9[%c0_20, %c0_21], %38 {strides = array<i32>} : memref<78x192xf32, #tpu.memory_space<vmem>>, vector<78x192xf32>,
    } else {
    }
    %c0 = arith.constant 0 : index
    %c0_1 = arith.constant 0 : index
    %3 = vector.load %arg3[%c0, %c0_1] : memref<78x64xbf16, #tpu.memory_space<vmem>>, vector<78x64xbf16>
    %4 = arith.extf %3 : vector<78x64xbf16> to vector<78x64xf32>
    %cst = arith.constant dense<0.000000e+00> : vector<78xf32>
    %5 = vector.multi_reduction <add>, %4, %cst [1] : vector<78x64xf32> to vector<78xf32>
    %6 = vector.shape_cast %5 : vector<78xf32> to vector<78x1xf32>
    %cst_2 = arith.constant 6.400000e+01 : f32
    %7 = vector.broadcast %cst_2 : f32 to vector<78x1xf32>
    %8 = arith.divf %6, %7 : vector<78x1xf32>
    %9 = vector.broadcast %8 : vector<78x1xf32> to vector<78x64xf32>
    %10 = arith.subf %4, %9 : vector<78x64xf32>
    %11 = arith.mulf %10, %10 : vector<78x64xf32>
    %cst_3 = arith.constant dense<0.000000e+00> : vector<78xf32>
    %12 = vector.multi_reduction <add>, %11, %cst_3 [1] : vector<78x64xf32> to vector<78xf32>
    %13 = vector.shape_cast %12 : vector<78xf32> to vector<78x1xf32>
    %cst_4 = arith.constant 6.400000e+01 : f32
    %14 = vector.broadcast %cst_4 : f32 to vector<78x1xf32>
    %15 = arith.divf %13, %14 : vector<78x1xf32>
    %16 = vector.broadcast %8 : vector<78x1xf32> to vector<78x64xf32>
    %17 = arith.subf %4, %16 : vector<78x64xf32>
    %cst_5 = arith.constant 9.99999974E-6 : f32
    %18 = vector.broadcast %cst_5 : f32 to vector<78x1xf32>
    %19 = arith.addf %15, %18 : vector<78x1xf32>
    %20 = math.rsqrt %19 : vector<78x1xf32>
    %21 = vector.broadcast %20 : vector<78x1xf32> to vector<78x64xf32>
    %22 = arith.mulf %17, %21 : vector<78x64xf32>
    %c0_6 = arith.constant 0 : index
    %c0_7 = arith.constant 0 : index
    %23 = vector.load %arg5[%c0_6, %c0_7] : memref<1x64xf32, #tpu.memory_space<vmem>>, vector<1x64xf32>
    %24 = vector.broadcast %23 : vector<1x64xf32> to vector<78x64xf32>
    %25 = arith.mulf %22, %24 : vector<78x64xf32>
    %c0_8 = arith.constant 0 : index
    %c0_9 = arith.constant 0 : index
    %26 = vector.load %arg6[%c0_8, %c0_9] : memref<1x64xf32, #tpu.memory_space<vmem>>, vector<1x64xf32>
    %27 = vector.broadcast %26 : vector<1x64xf32> to vector<78x64xf32>
    %28 = arith.addf %25, %27 : vector<78x64xf32>
    %c0_10 = arith.constant 0 : index
    %c0_11 = arith.constant 0 : index
    %29 = vector.load %arg9[%c0_10, %c0_11] : memref<78x192xf32, #tpu.memory_space<vmem>>, vector<78x192xf32>
    %30 = arith.truncf %28 : vector<78x64xf32> to vector<78x64xbf16>
    %c0_12 = arith.constant 0 : index
    %c0_13 = arith.constant 0 : index
    %31 = vector.load %arg4[%c0_12, %c0_13] : memref<64x192xbf16, #tpu.memory_space<vmem>>, vector<64x192xbf16>
    %cst_14 = arith.constant dense<0.000000e+00> : vector<78x192xf32>
    %32 = tpu.matmul %30, %31, %cst_14 {dimension_numbers = #tpu.dot_dimension_numbers<[1], [0], [0], [1], [0, 0, 1, 1], [], []>} : vector<78x64xbf16>, vector<64x192xbf16>, vector<78x192xf32> -> vector<78x192xf32>
    %33 = arith.addf %29, %32 : vector<78x192xf32>
    %c0_15 = arith.constant 0 : index
    %c0_16 = arith.constant 0 : index
    %34 = vector.load %arg9[%c0_15, %c0_16] : memref<78x192xf32, #tpu.memory_space<vmem>>, vector<78x192xf32>
    tpu.vector_store %arg9[%c0_15, %c0_16], %33 {strides = array<i32>} : memref<78x192xf32, #tpu.memory_space<vmem>>, vector<78x192xf32>,
    %c0_i32_17 = arith.constant 0 : i32
    %35 = arith.cmpi eq, %arg2, %c0_i32_17 : i32
    %36 = arith.extui %35 : i1 to i32
    %c0_i32_18 = arith.constant 0 : i32
    %37 = arith.cmpi ne, %36, %c0_i32_18 : i32
    scf.if %37 {
      %c0_19 = arith.constant 0 : index
      %c0_20 = arith.constant 0 : index
      %38 = vector.load %arg9[%c0_19, %c0_20] : memref<78x192xf32, #tpu.memory_space<vmem>>, vector<78x192xf32>
      %c0_21 = arith.constant 0 : index
      %c0_22 = arith.constant 0 : index
      %39 = vector.load %arg7[%c0_21, %c0_22] : memref<1x192xf32, #tpu.memory_space<vmem>>, vector<1x192xf32>
      %40 = vector.broadcast %39 : vector<1x192xf32> to vector<78x192xf32>
      %41 = arith.addf %38, %40 : vector<78x192xf32>
      %42 = arith.truncf %41 : vector<78x192xf32> to vector<78x192xbf16>
      %c0_23 = arith.constant 0 : index
      %c0_24 = arith.constant 0 : index
      %43 = vector.load %arg8[%c0_23, %c0_24] : memref<78x192xbf16, #tpu.memory_space<vmem>>, vector<78x192xbf16>
      tpu.vector_store %arg8[%c0_23, %c0_24], %42 {strides = array<i32>} : memref<78x192xbf16, #tpu.memory_space<vmem>>, vector<78x192xbf16>,
    } else {
    }
    return
  }
  func.func @transform_0(%arg0: i32, %arg1: i32, %arg2: i32) -> (i32, i32) {
    %c0_i32 = arith.constant 0 : i32
    return %arg0, %arg2 : i32, i32
  }
  func.func @transform_1(%arg0: i32, %arg1: i32, %arg2: i32) -> (i32, i32) {
    %c0_i32 = arith.constant 0 : i32
    return %arg2, %arg1 : i32, i32
  }
  func.func @transform_2(%arg0: i32, %arg1: i32, %arg2: i32) -> (i32, i32) {
    %c0_i32 = arith.constant 0 : i32
    %c0_i32_0 = arith.constant 0 : i32
    %c0_i32_1 = arith.constant 0 : i32
    return %c0_i32, %c0_i32_0 : i32, i32
  }
  func.func @transform_3(%arg0: i32, %arg1: i32, %arg2: i32) -> (i32, i32) {
    %c0_i32 = arith.constant 0 : i32
    %c0_i32_0 = arith.constant 0 : i32
    %c0_i32_1 = arith.constant 0 : i32
    return %c0_i32, %c0_i32_0 : i32, i32
  }
  func.func @transform_4(%arg0: i32, %arg1: i32, %arg2: i32) -> (i32, i32) {
    %c0_i32 = arith.constant 0 : i32
    %c0_i32_0 = arith.constant 0 : i32
    return %c0_i32, %arg1 : i32, i32
  }
  func.func @transform_5(%arg0: i32, %arg1: i32, %arg2: i32) -> (i32, i32) {
    %c0_i32 = arith.constant 0 : i32
    return %arg0, %arg1 : i32, i32
  }
}

module attributes {stable_mosaic.version = 11 : i64} {
  func.func @_attn_kernel(%arg0: i32, %arg1: memref<4x13x16xbf16, #tpu.memory_space<vmem>>, %arg2: memref<4x13x16xbf16, #tpu.memory_space<vmem>>, %arg3: memref<4x13x16xbf16, #tpu.memory_space<vmem>>, %arg4: memref<1x1x13xf32, #tpu.memory_space<vmem>>, %arg5: memref<4x13x16xbf16, #tpu.memory_space<vmem>>) attributes {dimension_semantics = [#tpu.dimension_semantics<parallel>], iteration_bounds = array<i64: 6>, scalar_prefetch = 0 : i64, scratch_operands = 0 : i64, tpu.core_type = #tpu.core_type<tc>, window_params = [{transform_indices = @transform_0, window_bounds = array<i64: 4, 13, 16>}, {transform_indices = @transform_1, window_bounds = array<i64: 4, 13, 16>}, {transform_indices = @transform_2, window_bounds = array<i64: 4, 13, 16>}, {transform_indices = @transform_3, window_bounds = array<i64: 1, 1, 13>}, {transform_indices = @transform_4, window_bounds = array<i64: 4, 13, 16>}]} {
    %c0 = arith.constant 0 : index
    %c0_0 = arith.constant 0 : index
    %c0_1 = arith.constant 0 : index
    %0 = vector.load %arg1[%c0, %c0_0, %c0_1] : memref<4x13x16xbf16, #tpu.memory_space<vmem>>, vector<4x13x16xbf16>
    %c0_2 = arith.constant 0 : index
    %c0_3 = arith.constant 0 : index
    %c0_4 = arith.constant 0 : index
    %1 = vector.load %arg2[%c0_2, %c0_3, %c0_4] : memref<4x13x16xbf16, #tpu.memory_space<vmem>>, vector<4x13x16xbf16>
    "tpu.trace_start"() <{level = 10 : i32, message = "hqd,hkd->hqk"}> : () -> ()
    %cst = arith.constant dense<0.000000e+00> : vector<4x13x13xf32>
    %2 = tpu.matmul %0, %1, %cst {dimension_numbers = #tpu.dot_dimension_numbers<[2], [2], [1], [1], [0, 0, 0, 1, 1, 1], [0], [0]>} : vector<4x13x16xbf16>, vector<4x13x16xbf16>, vector<4x13x13xf32> -> vector<4x13x13xf32>
    "tpu.trace_stop"() : () -> ()
    %cst_5 = arith.constant 2.500000e-01 : f32
    %3 = vector.broadcast %cst_5 : f32 to vector<4x13x13xf32>
    %4 = arith.mulf %2, %3 : vector<4x13x13xf32>
    %c0_6 = arith.constant 0 : index
    %c0_7 = arith.constant 0 : index
    %c0_8 = arith.constant 0 : index
    %5 = vector.load %arg4[%c0_6, %c0_7, %c0_8] : memref<1x1x13xf32, #tpu.memory_space<vmem>>, vector<1x1x13xf32>
    %6 = vector.broadcast %5 : vector<1x1x13xf32> to vector<4x13x13xf32>
    %7 = arith.addf %4, %6 : vector<4x13x13xf32>
    %cst_9 = arith.constant dense<0xFF800000> : vector<4x13xf32>
    %8 = vector.multi_reduction <maximumf>, %7, %cst_9 [2] : vector<4x13x13xf32> to vector<4x13xf32>
    %9 = vector.shape_cast %8 : vector<4x13xf32> to vector<4x13x1xf32>
    %10 = vector.broadcast %9 : vector<4x13x1xf32> to vector<4x13x13xf32>
    %11 = arith.subf %7, %10 : vector<4x13x13xf32>
    %12 = math.exp %11 : vector<4x13x13xf32>
    %cst_10 = arith.constant dense<0.000000e+00> : vector<4x13xf32>
    %13 = vector.multi_reduction <add>, %12, %cst_10 [2] : vector<4x13x13xf32> to vector<4x13xf32>
    %14 = vector.shape_cast %13 : vector<4x13xf32> to vector<4x13x1xf32>
    %15 = tpu.reciprocal %14 {approx = true} : vector<4x13x1xf32> -> vector<4x13x1xf32>
    %16 = vector.broadcast %15 : vector<4x13x1xf32> to vector<4x13x13xf32>
    %17 = arith.mulf %12, %16 : vector<4x13x13xf32>
    %18 = arith.truncf %17 : vector<4x13x13xf32> to vector<4x13x13xbf16>
    %c0_11 = arith.constant 0 : index
    %c0_12 = arith.constant 0 : index
    %c0_13 = arith.constant 0 : index
    %19 = vector.load %arg3[%c0_11, %c0_12, %c0_13] : memref<4x13x16xbf16, #tpu.memory_space<vmem>>, vector<4x13x16xbf16>
    "tpu.trace_start"() <{level = 10 : i32, message = "hqk,hkd->hqd"}> : () -> ()
    %cst_14 = arith.constant dense<0.000000e+00> : vector<4x13x16xf32>
    %20 = tpu.matmul %18, %19, %cst_14 {dimension_numbers = #tpu.dot_dimension_numbers<[2], [1], [1], [2], [0, 0, 0, 1, 1, 2], [0], [0]>} : vector<4x13x13xbf16>, vector<4x13x16xbf16>, vector<4x13x16xf32> -> vector<4x13x16xf32>
    "tpu.trace_stop"() : () -> ()
    %21 = arith.truncf %20 : vector<4x13x16xf32> to vector<4x13x16xbf16>
    %c0_15 = arith.constant 0 : index
    %c0_16 = arith.constant 0 : index
    %c0_17 = arith.constant 0 : index
    %22 = vector.load %arg5[%c0_15, %c0_16, %c0_17] : memref<4x13x16xbf16, #tpu.memory_space<vmem>>, vector<4x13x16xbf16>
    tpu.vector_store %arg5[%c0_15, %c0_16, %c0_17], %21 {strides = array<i32>} : memref<4x13x16xbf16, #tpu.memory_space<vmem>>, vector<4x13x16xbf16>,
    return
  }
  func.func @transform_0(%arg0: i32) -> (i32, i32, i32) {
    %c0_i32 = arith.constant 0 : i32
    %c0_i32_0 = arith.constant 0 : i32
    %c0_i32_1 = arith.constant 0 : i32
    return %arg0, %c0_i32, %c0_i32_0 : i32, i32, i32
  }
  func.func @transform_1(%arg0: i32) -> (i32, i32, i32) {
    %c0_i32 = arith.constant 0 : i32
    %c0_i32_0 = arith.constant 0 : i32
    %c0_i32_1 = arith.constant 0 : i32
    return %arg0, %c0_i32, %c0_i32_0 : i32, i32, i32
  }
  func.func @transform_2(%arg0: i32) -> (i32, i32, i32) {
    %c0_i32 = arith.constant 0 : i32
    %c0_i32_0 = arith.constant 0 : i32
    %c0_i32_1 = arith.constant 0 : i32
    return %arg0, %c0_i32, %c0_i32_0 : i32, i32, i32
  }
  func.func @transform_3(%arg0: i32) -> (i32, i32, i32) {
    %c0_i32 = arith.constant 0 : i32
    %c0_i32_0 = arith.constant 0 : i32
    %c0_i32_1 = arith.constant 0 : i32
    return %arg0, %c0_i32, %c0_i32_0 : i32, i32, i32
  }
  func.func @transform_4(%arg0: i32) -> (i32, i32, i32) {
    %c0_i32 = arith.constant 0 : i32
    %c0_i32_0 = arith.constant 0 : i32
    %c0_i32_1 = arith.constant 0 : i32
    return %arg0, %c0_i32, %c0_i32_0 : i32, i32, i32
  }
}

module attributes {stable_mosaic.version = 11 : i64} {
  func.func @_matmul_kernel(%arg0: i32, %arg1: i32, %arg2: i32, %arg3: memref<78x64xbf16, #tpu.memory_space<vmem>>, %arg4: memref<64x64xbf16, #tpu.memory_space<vmem>>, %arg5: memref<1x64xf32, #tpu.memory_space<vmem>>, %arg6: memref<78x64xbf16, #tpu.memory_space<vmem>>, %arg7: memref<78x64xbf16, #tpu.memory_space<vmem>>, %arg8: memref<78x64xf32, #tpu.memory_space<vmem>>) attributes {dimension_semantics = [#tpu.dimension_semantics<parallel>, #tpu.dimension_semantics<parallel>, #tpu.dimension_semantics<arbitrary>], iteration_bounds = array<i64: 1, 1, 1>, scalar_prefetch = 0 : i64, scratch_operands = 1 : i64, tpu.core_type = #tpu.core_type<tc>, window_params = [{transform_indices = @transform_0, window_bounds = array<i64: 78, 64>}, {transform_indices = @transform_1, window_bounds = array<i64: 64, 64>}, {transform_indices = @transform_2, window_bounds = array<i64: 1, 64>}, {transform_indices = @transform_3, window_bounds = array<i64: 78, 64>}, {transform_indices = @transform_4, window_bounds = array<i64: 78, 64>}]} {
    %c0_i32 = arith.constant 0 : i32
    %0 = arith.cmpi eq, %arg2, %c0_i32 : i32
    %1 = arith.extui %0 : i1 to i32
    %c0_i32_0 = arith.constant 0 : i32
    %2 = arith.cmpi ne, %1, %c0_i32_0 : i32
    scf.if %2 {
      %cst_10 = arith.constant 0.000000e+00 : f32
      %14 = vector.broadcast %cst_10 : f32 to vector<78x64xf32>
      %c0_11 = arith.constant 0 : index
      %c0_12 = arith.constant 0 : index
      %15 = vector.load %arg8[%c0_11, %c0_12] : memref<78x64xf32, #tpu.memory_space<vmem>>, vector<78x64xf32>
      tpu.vector_store %arg8[%c0_11, %c0_12], %14 {strides = array<i32>} : memref<78x64xf32, #tpu.memory_space<vmem>>, vector<78x64xf32>,
    } else {
    }
    %c0 = arith.constant 0 : index
    %c0_1 = arith.constant 0 : index
    %3 = vector.load %arg3[%c0, %c0_1] : memref<78x64xbf16, #tpu.memory_space<vmem>>, vector<78x64xbf16>
    %4 = arith.extf %3 : vector<78x64xbf16> to vector<78x64xf32>
    %c0_2 = arith.constant 0 : index
    %c0_3 = arith.constant 0 : index
    %5 = vector.load %arg8[%c0_2, %c0_3] : memref<78x64xf32, #tpu.memory_space<vmem>>, vector<78x64xf32>
    %6 = arith.truncf %4 : vector<78x64xf32> to vector<78x64xbf16>
    %c0_4 = arith.constant 0 : index
    %c0_5 = arith.constant 0 : index
    %7 = vector.load %arg4[%c0_4, %c0_5] : memref<64x64xbf16, #tpu.memory_space<vmem>>, vector<64x64xbf16>
    %cst = arith.constant dense<0.000000e+00> : vector<78x64xf32>
    %8 = tpu.matmul %6, %7, %cst {dimension_numbers = #tpu.dot_dimension_numbers<[1], [0], [0], [1], [0, 0, 1, 1], [], []>} : vector<78x64xbf16>, vector<64x64xbf16>, vector<78x64xf32> -> vector<78x64xf32>
    %9 = arith.addf %5, %8 : vector<78x64xf32>
    %c0_6 = arith.constant 0 : index
    %c0_7 = arith.constant 0 : index
    %10 = vector.load %arg8[%c0_6, %c0_7] : memref<78x64xf32, #tpu.memory_space<vmem>>, vector<78x64xf32>
    tpu.vector_store %arg8[%c0_6, %c0_7], %9 {strides = array<i32>} : memref<78x64xf32, #tpu.memory_space<vmem>>, vector<78x64xf32>,
    %c0_i32_8 = arith.constant 0 : i32
    %11 = arith.cmpi eq, %arg2, %c0_i32_8 : i32
    %12 = arith.extui %11 : i1 to i32
    %c0_i32_9 = arith.constant 0 : i32
    %13 = arith.cmpi ne, %12, %c0_i32_9 : i32
    scf.if %13 {
      %c0_10 = arith.constant 0 : index
      %c0_11 = arith.constant 0 : index
      %14 = vector.load %arg8[%c0_10, %c0_11] : memref<78x64xf32, #tpu.memory_space<vmem>>, vector<78x64xf32>
      %c0_12 = arith.constant 0 : index
      %c0_13 = arith.constant 0 : index
      %15 = vector.load %arg5[%c0_12, %c0_13] : memref<1x64xf32, #tpu.memory_space<vmem>>, vector<1x64xf32>
      %16 = vector.broadcast %15 : vector<1x64xf32> to vector<78x64xf32>
      %17 = arith.addf %14, %16 : vector<78x64xf32>
      %c0_14 = arith.constant 0 : index
      %c0_15 = arith.constant 0 : index
      %18 = vector.load %arg6[%c0_14, %c0_15] : memref<78x64xbf16, #tpu.memory_space<vmem>>, vector<78x64xbf16>
      %19 = arith.extf %18 : vector<78x64xbf16> to vector<78x64xf32>
      %20 = arith.addf %17, %19 : vector<78x64xf32>
      %21 = arith.truncf %20 : vector<78x64xf32> to vector<78x64xbf16>
      %c0_16 = arith.constant 0 : index
      %c0_17 = arith.constant 0 : index
      %22 = vector.load %arg7[%c0_16, %c0_17] : memref<78x64xbf16, #tpu.memory_space<vmem>>, vector<78x64xbf16>
      tpu.vector_store %arg7[%c0_16, %c0_17], %21 {strides = array<i32>} : memref<78x64xbf16, #tpu.memory_space<vmem>>, vector<78x64xbf16>,
    } else {
    }
    return
  }
  func.func @transform_0(%arg0: i32, %arg1: i32, %arg2: i32) -> (i32, i32) {
    %c0_i32 = arith.constant 0 : i32
    return %arg0, %arg2 : i32, i32
  }
  func.func @transform_1(%arg0: i32, %arg1: i32, %arg2: i32) -> (i32, i32) {
    %c0_i32 = arith.constant 0 : i32
    return %arg2, %arg1 : i32, i32
  }
  func.func @transform_2(%arg0: i32, %arg1: i32, %arg2: i32) -> (i32, i32) {
    %c0_i32 = arith.constant 0 : i32
    %c0_i32_0 = arith.constant 0 : i32
    return %c0_i32, %arg1 : i32, i32
  }
  func.func @transform_3(%arg0: i32, %arg1: i32, %arg2: i32) -> (i32, i32) {
    %c0_i32 = arith.constant 0 : i32
    return %arg0, %arg1 : i32, i32
  }
  func.func @transform_4(%arg0: i32, %arg1: i32, %arg2: i32) -> (i32, i32) {
    %c0_i32 = arith.constant 0 : i32
    return %arg0, %arg1 : i32, i32
  }
}

module attributes {stable_mosaic.version = 11 : i64} {
  func.func @_matmul_kernel(%arg0: i32, %arg1: i32, %arg2: i32, %arg3: memref<30x64xbf16, #tpu.memory_space<vmem>>, %arg4: memref<64x128xbf16, #tpu.memory_space<vmem>>, %arg5: memref<1x64xf32, #tpu.memory_space<vmem>>, %arg6: memref<1x64xf32, #tpu.memory_space<vmem>>, %arg7: memref<1x128xf32, #tpu.memory_space<vmem>>, %arg8: memref<30x128xbf16, #tpu.memory_space<vmem>>, %arg9: memref<30x128xf32, #tpu.memory_space<vmem>>) attributes {dimension_semantics = [#tpu.dimension_semantics<parallel>, #tpu.dimension_semantics<parallel>, #tpu.dimension_semantics<arbitrary>], iteration_bounds = array<i64: 1, 1, 1>, scalar_prefetch = 0 : i64, scratch_operands = 1 : i64, tpu.core_type = #tpu.core_type<tc>, window_params = [{transform_indices = @transform_0, window_bounds = array<i64: 30, 64>}, {transform_indices = @transform_1, window_bounds = array<i64: 64, 128>}, {pipeline_mode = #tpu.pipeline_mode<synchronous>, transform_indices = @transform_2, window_bounds = array<i64: 1, 64>}, {pipeline_mode = #tpu.pipeline_mode<synchronous>, transform_indices = @transform_3, window_bounds = array<i64: 1, 64>}, {transform_indices = @transform_4, window_bounds = array<i64: 1, 128>}, {transform_indices = @transform_5, window_bounds = array<i64: 30, 128>}]} {
    %c0_i32 = arith.constant 0 : i32
    %0 = arith.cmpi eq, %arg2, %c0_i32 : i32
    %1 = arith.extui %0 : i1 to i32
    %c0_i32_0 = arith.constant 0 : i32
    %2 = arith.cmpi ne, %1, %c0_i32_0 : i32
    scf.if %2 {
      %cst_19 = arith.constant 0.000000e+00 : f32
      %38 = vector.broadcast %cst_19 : f32 to vector<30x128xf32>
      %c0_20 = arith.constant 0 : index
      %c0_21 = arith.constant 0 : index
      %39 = vector.load %arg9[%c0_20, %c0_21] : memref<30x128xf32, #tpu.memory_space<vmem>>, vector<30x128xf32>
      tpu.vector_store %arg9[%c0_20, %c0_21], %38 {strides = array<i32>} : memref<30x128xf32, #tpu.memory_space<vmem>>, vector<30x128xf32>,
    } else {
    }
    %c0 = arith.constant 0 : index
    %c0_1 = arith.constant 0 : index
    %3 = vector.load %arg3[%c0, %c0_1] : memref<30x64xbf16, #tpu.memory_space<vmem>>, vector<30x64xbf16>
    %4 = arith.extf %3 : vector<30x64xbf16> to vector<30x64xf32>
    %cst = arith.constant dense<0.000000e+00> : vector<30xf32>
    %5 = vector.multi_reduction <add>, %4, %cst [1] : vector<30x64xf32> to vector<30xf32>
    %6 = vector.shape_cast %5 : vector<30xf32> to vector<30x1xf32>
    %cst_2 = arith.constant 6.400000e+01 : f32
    %7 = vector.broadcast %cst_2 : f32 to vector<30x1xf32>
    %8 = arith.divf %6, %7 : vector<30x1xf32>
    %9 = vector.broadcast %8 : vector<30x1xf32> to vector<30x64xf32>
    %10 = arith.subf %4, %9 : vector<30x64xf32>
    %11 = arith.mulf %10, %10 : vector<30x64xf32>
    %cst_3 = arith.constant dense<0.000000e+00> : vector<30xf32>
    %12 = vector.multi_reduction <add>, %11, %cst_3 [1] : vector<30x64xf32> to vector<30xf32>
    %13 = vector.shape_cast %12 : vector<30xf32> to vector<30x1xf32>
    %cst_4 = arith.constant 6.400000e+01 : f32
    %14 = vector.broadcast %cst_4 : f32 to vector<30x1xf32>
    %15 = arith.divf %13, %14 : vector<30x1xf32>
    %16 = vector.broadcast %8 : vector<30x1xf32> to vector<30x64xf32>
    %17 = arith.subf %4, %16 : vector<30x64xf32>
    %cst_5 = arith.constant 9.99999974E-6 : f32
    %18 = vector.broadcast %cst_5 : f32 to vector<30x1xf32>
    %19 = arith.addf %15, %18 : vector<30x1xf32>
    %20 = math.rsqrt %19 : vector<30x1xf32>
    %21 = vector.broadcast %20 : vector<30x1xf32> to vector<30x64xf32>
    %22 = arith.mulf %17, %21 : vector<30x64xf32>
    %c0_6 = arith.constant 0 : index
    %c0_7 = arith.constant 0 : index
    %23 = vector.load %arg5[%c0_6, %c0_7] : memref<1x64xf32, #tpu.memory_space<vmem>>, vector<1x64xf32>
    %24 = vector.broadcast %23 : vector<1x64xf32> to vector<30x64xf32>
    %25 = arith.mulf %22, %24 : vector<30x64xf32>
    %c0_8 = arith.constant 0 : index
    %c0_9 = arith.constant 0 : index
    %26 = vector.load %arg6[%c0_8, %c0_9] : memref<1x64xf32, #tpu.memory_space<vmem>>, vector<1x64xf32>
    %27 = vector.broadcast %26 : vector<1x64xf32> to vector<30x64xf32>
    %28 = arith.addf %25, %27 : vector<30x64xf32>
    %c0_10 = arith.constant 0 : index
    %c0_11 = arith.constant 0 : index
    %29 = vector.load %arg9[%c0_10, %c0_11] : memref<30x128xf32, #tpu.memory_space<vmem>>, vector<30x128xf32>
    %30 = arith.truncf %28 : vector<30x64xf32> to vector<30x64xbf16>
    %c0_12 = arith.constant 0 : index
    %c0_13 = arith.constant 0 : index
    %31 = vector.load %arg4[%c0_12, %c0_13] : memref<64x128xbf16, #tpu.memory_space<vmem>>, vector<64x128xbf16>
    %cst_14 = arith.constant dense<0.000000e+00> : vector<30x128xf32>
    %32 = tpu.matmul %30, %31, %cst_14 {dimension_numbers = #tpu.dot_dimension_numbers<[1], [0], [0], [1], [0, 0, 1, 1], [], []>} : vector<30x64xbf16>, vector<64x128xbf16>, vector<30x128xf32> -> vector<30x128xf32>
    %33 = arith.addf %29, %32 : vector<30x128xf32>
    %c0_15 = arith.constant 0 : index
    %c0_16 = arith.constant 0 : index
    %34 = vector.load %arg9[%c0_15, %c0_16] : memref<30x128xf32, #tpu.memory_space<vmem>>, vector<30x128xf32>
    tpu.vector_store %arg9[%c0_15, %c0_16], %33 {strides = array<i32>} : memref<30x128xf32, #tpu.memory_space<vmem>>, vector<30x128xf32>,
    %c0_i32_17 = arith.constant 0 : i32
    %35 = arith.cmpi eq, %arg2, %c0_i32_17 : i32
    %36 = arith.extui %35 : i1 to i32
    %c0_i32_18 = arith.constant 0 : i32
    %37 = arith.cmpi ne, %36, %c0_i32_18 : i32
    scf.if %37 {
      %c0_19 = arith.constant 0 : index
      %c0_20 = arith.constant 0 : index
      %38 = vector.load %arg9[%c0_19, %c0_20] : memref<30x128xf32, #tpu.memory_space<vmem>>, vector<30x128xf32>
      %c0_21 = arith.constant 0 : index
      %c0_22 = arith.constant 0 : index
      %39 = vector.load %arg7[%c0_21, %c0_22] : memref<1x128xf32, #tpu.memory_space<vmem>>, vector<1x128xf32>
      %40 = vector.broadcast %39 : vector<1x128xf32> to vector<30x128xf32>
      %41 = arith.addf %38, %40 : vector<30x128xf32>
      %42 = arith.mulf %41, %41 : vector<30x128xf32>
      %43 = arith.mulf %41, %42 : vector<30x128xf32>
      %cst_23 = arith.constant 4.471500e-02 : f32
      %44 = vector.broadcast %cst_23 : f32 to vector<30x128xf32>
      %45 = arith.mulf %44, %43 : vector<30x128xf32>
      %46 = arith.addf %41, %45 : vector<30x128xf32>
      %cst_24 = arith.constant 0.797884583 : f32
      %47 = vector.broadcast %cst_24 : f32 to vector<30x128xf32>
      %48 = arith.mulf %47, %46 : vector<30x128xf32>
      %49 = math.tanh %48 : vector<30x128xf32>
      %cst_25 = arith.constant 1.000000e+00 : f32
      %50 = vector.broadcast %cst_25 : f32 to vector<30x128xf32>
      %51 = arith.addf %50, %49 : vector<30x128xf32>
      %cst_26 = arith.constant 5.000000e-01 : f32
      %52 = vector.broadcast %cst_26 : f32 to vector<30x128xf32>
      %53 = arith.mulf %52, %51 : vector<30x128xf32>
      %54 = arith.mulf %41, %53 : vector<30x128xf32>
      %55 = arith.truncf %54 : vector<30x128xf32> to vector<30x128xbf16>
      %c0_27 = arith.constant 0 : index
      %c0_28 = arith.constant 0 : index
      %56 = vector.load %arg8[%c0_27, %c0_28] : memref<30x128xbf16, #tpu.memory_space<vmem>>, vector<30x128xbf16>
      tpu.vector_store %arg8[%c0_27, %c0_28], %55 {strides = array<i32>} : memref<30x128xbf16, #tpu.memory_space<vmem>>, vector<30x128xbf16>,
    } else {
    }
    return
  }
  func.func @transform_0(%arg0: i32, %arg1: i32, %arg2: i32) -> (i32, i32) {
    %c0_i32 = arith.constant 0 : i32
    return %arg0, %arg2 : i32, i32
  }
  func.func @transform_1(%arg0: i32, %arg1: i32, %arg2: i32) -> (i32, i32) {
    %c0_i32 = arith.constant 0 : i32
    return %arg2, %arg1 : i32, i32
  }
  func.func @transform_2(%arg0: i32, %arg1: i32, %arg2: i32) -> (i32, i32) {
    %c0_i32 = arith.constant 0 : i32
    %c0_i32_0 = arith.constant 0 : i32
    %c0_i32_1 = arith.constant 0 : i32
    return %c0_i32, %c0_i32_0 : i32, i32
  }
  func.func @transform_3(%arg0: i32, %arg1: i32, %arg2: i32) -> (i32, i32) {
    %c0_i32 = arith.constant 0 : i32
    %c0_i32_0 = arith.constant 0 : i32
    %c0_i32_1 = arith.constant 0 : i32
    return %c0_i32, %c0_i32_0 : i32, i32
  }
  func.func @transform_4(%arg0: i32, %arg1: i32, %arg2: i32) -> (i32, i32) {
    %c0_i32 = arith.constant 0 : i32
    %c0_i32_0 = arith.constant 0 : i32
    return %c0_i32, %arg1 : i32, i32
  }
  func.func @transform_5(%arg0: i32, %arg1: i32, %arg2: i32) -> (i32, i32) {
    %c0_i32 = arith.constant 0 : i32
    return %arg0, %arg1 : i32, i32
  }
}

module attributes {stable_mosaic.version = 11 : i64} {
  func.func @_matmul_kernel(%arg0: i32, %arg1: i32, %arg2: i32, %arg3: memref<30x128xbf16, #tpu.memory_space<vmem>>, %arg4: memref<128x64xbf16, #tpu.memory_space<vmem>>, %arg5: memref<1x64xf32, #tpu.memory_space<vmem>>, %arg6: memref<30x64xbf16, #tpu.memory_space<vmem>>, %arg7: memref<30x64xbf16, #tpu.memory_space<vmem>>, %arg8: memref<30x64xf32, #tpu.memory_space<vmem>>) attributes {dimension_semantics = [#tpu.dimension_semantics<parallel>, #tpu.dimension_semantics<parallel>, #tpu.dimension_semantics<arbitrary>], iteration_bounds = array<i64: 1, 1, 1>, scalar_prefetch = 0 : i64, scratch_operands = 1 : i64, tpu.core_type = #tpu.core_type<tc>, window_params = [{transform_indices = @transform_0, window_bounds = array<i64: 30, 128>}, {transform_indices = @transform_1, window_bounds = array<i64: 128, 64>}, {transform_indices = @transform_2, window_bounds = array<i64: 1, 64>}, {transform_indices = @transform_3, window_bounds = array<i64: 30, 64>}, {transform_indices = @transform_4, window_bounds = array<i64: 30, 64>}]} {
    %c0_i32 = arith.constant 0 : i32
    %0 = arith.cmpi eq, %arg2, %c0_i32 : i32
    %1 = arith.extui %0 : i1 to i32
    %c0_i32_0 = arith.constant 0 : i32
    %2 = arith.cmpi ne, %1, %c0_i32_0 : i32
    scf.if %2 {
      %cst_10 = arith.constant 0.000000e+00 : f32
      %14 = vector.broadcast %cst_10 : f32 to vector<30x64xf32>
      %c0_11 = arith.constant 0 : index
      %c0_12 = arith.constant 0 : index
      %15 = vector.load %arg8[%c0_11, %c0_12] : memref<30x64xf32, #tpu.memory_space<vmem>>, vector<30x64xf32>
      tpu.vector_store %arg8[%c0_11, %c0_12], %14 {strides = array<i32>} : memref<30x64xf32, #tpu.memory_space<vmem>>, vector<30x64xf32>,
    } else {
    }
    %c0 = arith.constant 0 : index
    %c0_1 = arith.constant 0 : index
    %3 = vector.load %arg3[%c0, %c0_1] : memref<30x128xbf16, #tpu.memory_space<vmem>>, vector<30x128xbf16>
    %4 = arith.extf %3 : vector<30x128xbf16> to vector<30x128xf32>
    %c0_2 = arith.constant 0 : index
    %c0_3 = arith.constant 0 : index
    %5 = vector.load %arg8[%c0_2, %c0_3] : memref<30x64xf32, #tpu.memory_space<vmem>>, vector<30x64xf32>
    %6 = arith.truncf %4 : vector<30x128xf32> to vector<30x128xbf16>
    %c0_4 = arith.constant 0 : index
    %c0_5 = arith.constant 0 : index
    %7 = vector.load %arg4[%c0_4, %c0_5] : memref<128x64xbf16, #tpu.memory_space<vmem>>, vector<128x64xbf16>
    %cst = arith.constant dense<0.000000e+00> : vector<30x64xf32>
    %8 = tpu.matmul %6, %7, %cst {dimension_numbers = #tpu.dot_dimension_numbers<[1], [0], [0], [1], [0, 0, 1, 1], [], []>} : vector<30x128xbf16>, vector<128x64xbf16>, vector<30x64xf32> -> vector<30x64xf32>
    %9 = arith.addf %5, %8 : vector<30x64xf32>
    %c0_6 = arith.constant 0 : index
    %c0_7 = arith.constant 0 : index
    %10 = vector.load %arg8[%c0_6, %c0_7] : memref<30x64xf32, #tpu.memory_space<vmem>>, vector<30x64xf32>
    tpu.vector_store %arg8[%c0_6, %c0_7], %9 {strides = array<i32>} : memref<30x64xf32, #tpu.memory_space<vmem>>, vector<30x64xf32>,
    %c0_i32_8 = arith.constant 0 : i32
    %11 = arith.cmpi eq, %arg2, %c0_i32_8 : i32
    %12 = arith.extui %11 : i1 to i32
    %c0_i32_9 = arith.constant 0 : i32
    %13 = arith.cmpi ne, %12, %c0_i32_9 : i32
    scf.if %13 {
      %c0_10 = arith.constant 0 : index
      %c0_11 = arith.constant 0 : index
      %14 = vector.load %arg8[%c0_10, %c0_11] : memref<30x64xf32, #tpu.memory_space<vmem>>, vector<30x64xf32>
      %c0_12 = arith.constant 0 : index
      %c0_13 = arith.constant 0 : index
      %15 = vector.load %arg5[%c0_12, %c0_13] : memref<1x64xf32, #tpu.memory_space<vmem>>, vector<1x64xf32>
      %16 = vector.broadcast %15 : vector<1x64xf32> to vector<30x64xf32>
      %17 = arith.addf %14, %16 : vector<30x64xf32>
      %c0_14 = arith.constant 0 : index
      %c0_15 = arith.constant 0 : index
      %18 = vector.load %arg6[%c0_14, %c0_15] : memref<30x64xbf16, #tpu.memory_space<vmem>>, vector<30x64xbf16>
      %19 = arith.extf %18 : vector<30x64xbf16> to vector<30x64xf32>
      %20 = arith.addf %17, %19 : vector<30x64xf32>
      %21 = arith.truncf %20 : vector<30x64xf32> to vector<30x64xbf16>
      %c0_16 = arith.constant 0 : index
      %c0_17 = arith.constant 0 : index
      %22 = vector.load %arg7[%c0_16, %c0_17] : memref<30x64xbf16, #tpu.memory_space<vmem>>, vector<30x64xbf16>
      tpu.vector_store %arg7[%c0_16, %c0_17], %21 {strides = array<i32>} : memref<30x64xbf16, #tpu.memory_space<vmem>>, vector<30x64xbf16>,
    } else {
    }
    return
  }
  func.func @transform_0(%arg0: i32, %arg1: i32, %arg2: i32) -> (i32, i32) {
    %c0_i32 = arith.constant 0 : i32
    return %arg0, %arg2 : i32, i32
  }
  func.func @transform_1(%arg0: i32, %arg1: i32, %arg2: i32) -> (i32, i32) {
    %c0_i32 = arith.constant 0 : i32
    return %arg2, %arg1 : i32, i32
  }
  func.func @transform_2(%arg0: i32, %arg1: i32, %arg2: i32) -> (i32, i32) {
    %c0_i32 = arith.constant 0 : i32
    %c0_i32_0 = arith.constant 0 : i32
    return %c0_i32, %arg1 : i32, i32
  }
  func.func @transform_3(%arg0: i32, %arg1: i32, %arg2: i32) -> (i32, i32) {
    %c0_i32 = arith.constant 0 : i32
    return %arg0, %arg1 : i32, i32
  }
  func.func @transform_4(%arg0: i32, %arg1: i32, %arg2: i32) -> (i32, i32) {
    %c0_i32 = arith.constant 0 : i32
    return %arg0, %arg1 : i32, i32
  }
}

module attributes {stable_mosaic.version = 11 : i64} {
  func.func @_matmul_kernel(%arg0: i32, %arg1: i32, %arg2: i32, %arg3: memref<48x64xbf16, #tpu.memory_space<vmem>>, %arg4: memref<64x128xbf16, #tpu.memory_space<vmem>>, %arg5: memref<1x64xf32, #tpu.memory_space<vmem>>, %arg6: memref<1x64xf32, #tpu.memory_space<vmem>>, %arg7: memref<1x128xf32, #tpu.memory_space<vmem>>, %arg8: memref<48x128xbf16, #tpu.memory_space<vmem>>, %arg9: memref<48x128xf32, #tpu.memory_space<vmem>>) attributes {dimension_semantics = [#tpu.dimension_semantics<parallel>, #tpu.dimension_semantics<parallel>, #tpu.dimension_semantics<arbitrary>], iteration_bounds = array<i64: 1, 1, 1>, scalar_prefetch = 0 : i64, scratch_operands = 1 : i64, tpu.core_type = #tpu.core_type<tc>, window_params = [{transform_indices = @transform_0, window_bounds = array<i64: 48, 64>}, {transform_indices = @transform_1, window_bounds = array<i64: 64, 128>}, {pipeline_mode = #tpu.pipeline_mode<synchronous>, transform_indices = @transform_2, window_bounds = array<i64: 1, 64>}, {pipeline_mode = #tpu.pipeline_mode<synchronous>, transform_indices = @transform_3, window_bounds = array<i64: 1, 64>}, {transform_indices = @transform_4, window_bounds = array<i64: 1, 128>}, {transform_indices = @transform_5, window_bounds = array<i64: 48, 128>}]} {
    %c0_i32 = arith.constant 0 : i32
    %0 = arith.cmpi eq, %arg2, %c0_i32 : i32
    %1 = arith.extui %0 : i1 to i32
    %c0_i32_0 = arith.constant 0 : i32
    %2 = arith.cmpi ne, %1, %c0_i32_0 : i32
    scf.if %2 {
      %cst_19 = arith.constant 0.000000e+00 : f32
      %38 = vector.broadcast %cst_19 : f32 to vector<48x128xf32>
      %c0_20 = arith.constant 0 : index
      %c0_21 = arith.constant 0 : index
      %39 = vector.load %arg9[%c0_20, %c0_21] : memref<48x128xf32, #tpu.memory_space<vmem>>, vector<48x128xf32>
      tpu.vector_store %arg9[%c0_20, %c0_21], %38 {strides = array<i32>} : memref<48x128xf32, #tpu.memory_space<vmem>>, vector<48x128xf32>,
    } else {
    }
    %c0 = arith.constant 0 : index
    %c0_1 = arith.constant 0 : index
    %3 = vector.load %arg3[%c0, %c0_1] : memref<48x64xbf16, #tpu.memory_space<vmem>>, vector<48x64xbf16>
    %4 = arith.extf %3 : vector<48x64xbf16> to vector<48x64xf32>
    %cst = arith.constant dense<0.000000e+00> : vector<48xf32>
    %5 = vector.multi_reduction <add>, %4, %cst [1] : vector<48x64xf32> to vector<48xf32>
    %6 = vector.shape_cast %5 : vector<48xf32> to vector<48x1xf32>
    %cst_2 = arith.constant 6.400000e+01 : f32
    %7 = vector.broadcast %cst_2 : f32 to vector<48x1xf32>
    %8 = arith.divf %6, %7 : vector<48x1xf32>
    %9 = vector.broadcast %8 : vector<48x1xf32> to vector<48x64xf32>
    %10 = arith.subf %4, %9 : vector<48x64xf32>
    %11 = arith.mulf %10, %10 : vector<48x64xf32>
    %cst_3 = arith.constant dense<0.000000e+00> : vector<48xf32>
    %12 = vector.multi_reduction <add>, %11, %cst_3 [1] : vector<48x64xf32> to vector<48xf32>
    %13 = vector.shape_cast %12 : vector<48xf32> to vector<48x1xf32>
    %cst_4 = arith.constant 6.400000e+01 : f32
    %14 = vector.broadcast %cst_4 : f32 to vector<48x1xf32>
    %15 = arith.divf %13, %14 : vector<48x1xf32>
    %16 = vector.broadcast %8 : vector<48x1xf32> to vector<48x64xf32>
    %17 = arith.subf %4, %16 : vector<48x64xf32>
    %cst_5 = arith.constant 9.99999974E-6 : f32
    %18 = vector.broadcast %cst_5 : f32 to vector<48x1xf32>
    %19 = arith.addf %15, %18 : vector<48x1xf32>
    %20 = math.rsqrt %19 : vector<48x1xf32>
    %21 = vector.broadcast %20 : vector<48x1xf32> to vector<48x64xf32>
    %22 = arith.mulf %17, %21 : vector<48x64xf32>
    %c0_6 = arith.constant 0 : index
    %c0_7 = arith.constant 0 : index
    %23 = vector.load %arg5[%c0_6, %c0_7] : memref<1x64xf32, #tpu.memory_space<vmem>>, vector<1x64xf32>
    %24 = vector.broadcast %23 : vector<1x64xf32> to vector<48x64xf32>
    %25 = arith.mulf %22, %24 : vector<48x64xf32>
    %c0_8 = arith.constant 0 : index
    %c0_9 = arith.constant 0 : index
    %26 = vector.load %arg6[%c0_8, %c0_9] : memref<1x64xf32, #tpu.memory_space<vmem>>, vector<1x64xf32>
    %27 = vector.broadcast %26 : vector<1x64xf32> to vector<48x64xf32>
    %28 = arith.addf %25, %27 : vector<48x64xf32>
    %c0_10 = arith.constant 0 : index
    %c0_11 = arith.constant 0 : index
    %29 = vector.load %arg9[%c0_10, %c0_11] : memref<48x128xf32, #tpu.memory_space<vmem>>, vector<48x128xf32>
    %30 = arith.truncf %28 : vector<48x64xf32> to vector<48x64xbf16>
    %c0_12 = arith.constant 0 : index
    %c0_13 = arith.constant 0 : index
    %31 = vector.load %arg4[%c0_12, %c0_13] : memref<64x128xbf16, #tpu.memory_space<vmem>>, vector<64x128xbf16>
    %cst_14 = arith.constant dense<0.000000e+00> : vector<48x128xf32>
    %32 = tpu.matmul %30, %31, %cst_14 {dimension_numbers = #tpu.dot_dimension_numbers<[1], [0], [0], [1], [0, 0, 1, 1], [], []>} : vector<48x64xbf16>, vector<64x128xbf16>, vector<48x128xf32> -> vector<48x128xf32>
    %33 = arith.addf %29, %32 : vector<48x128xf32>
    %c0_15 = arith.constant 0 : index
    %c0_16 = arith.constant 0 : index
    %34 = vector.load %arg9[%c0_15, %c0_16] : memref<48x128xf32, #tpu.memory_space<vmem>>, vector<48x128xf32>
    tpu.vector_store %arg9[%c0_15, %c0_16], %33 {strides = array<i32>} : memref<48x128xf32, #tpu.memory_space<vmem>>, vector<48x128xf32>,
    %c0_i32_17 = arith.constant 0 : i32
    %35 = arith.cmpi eq, %arg2, %c0_i32_17 : i32
    %36 = arith.extui %35 : i1 to i32
    %c0_i32_18 = arith.constant 0 : i32
    %37 = arith.cmpi ne, %36, %c0_i32_18 : i32
    scf.if %37 {
      %c0_19 = arith.constant 0 : index
      %c0_20 = arith.constant 0 : index
      %38 = vector.load %arg9[%c0_19, %c0_20] : memref<48x128xf32, #tpu.memory_space<vmem>>, vector<48x128xf32>
      %c0_21 = arith.constant 0 : index
      %c0_22 = arith.constant 0 : index
      %39 = vector.load %arg7[%c0_21, %c0_22] : memref<1x128xf32, #tpu.memory_space<vmem>>, vector<1x128xf32>
      %40 = vector.broadcast %39 : vector<1x128xf32> to vector<48x128xf32>
      %41 = arith.addf %38, %40 : vector<48x128xf32>
      %42 = arith.mulf %41, %41 : vector<48x128xf32>
      %43 = arith.mulf %41, %42 : vector<48x128xf32>
      %cst_23 = arith.constant 4.471500e-02 : f32
      %44 = vector.broadcast %cst_23 : f32 to vector<48x128xf32>
      %45 = arith.mulf %44, %43 : vector<48x128xf32>
      %46 = arith.addf %41, %45 : vector<48x128xf32>
      %cst_24 = arith.constant 0.797884583 : f32
      %47 = vector.broadcast %cst_24 : f32 to vector<48x128xf32>
      %48 = arith.mulf %47, %46 : vector<48x128xf32>
      %49 = math.tanh %48 : vector<48x128xf32>
      %cst_25 = arith.constant 1.000000e+00 : f32
      %50 = vector.broadcast %cst_25 : f32 to vector<48x128xf32>
      %51 = arith.addf %50, %49 : vector<48x128xf32>
      %cst_26 = arith.constant 5.000000e-01 : f32
      %52 = vector.broadcast %cst_26 : f32 to vector<48x128xf32>
      %53 = arith.mulf %52, %51 : vector<48x128xf32>
      %54 = arith.mulf %41, %53 : vector<48x128xf32>
      %55 = arith.truncf %54 : vector<48x128xf32> to vector<48x128xbf16>
      %c0_27 = arith.constant 0 : index
      %c0_28 = arith.constant 0 : index
      %56 = vector.load %arg8[%c0_27, %c0_28] : memref<48x128xbf16, #tpu.memory_space<vmem>>, vector<48x128xbf16>
      tpu.vector_store %arg8[%c0_27, %c0_28], %55 {strides = array<i32>} : memref<48x128xbf16, #tpu.memory_space<vmem>>, vector<48x128xbf16>,
    } else {
    }
    return
  }
  func.func @transform_0(%arg0: i32, %arg1: i32, %arg2: i32) -> (i32, i32) {
    %c0_i32 = arith.constant 0 : i32
    return %arg0, %arg2 : i32, i32
  }
  func.func @transform_1(%arg0: i32, %arg1: i32, %arg2: i32) -> (i32, i32) {
    %c0_i32 = arith.constant 0 : i32
    return %arg2, %arg1 : i32, i32
  }
  func.func @transform_2(%arg0: i32, %arg1: i32, %arg2: i32) -> (i32, i32) {
    %c0_i32 = arith.constant 0 : i32
    %c0_i32_0 = arith.constant 0 : i32
    %c0_i32_1 = arith.constant 0 : i32
    return %c0_i32, %c0_i32_0 : i32, i32
  }
  func.func @transform_3(%arg0: i32, %arg1: i32, %arg2: i32) -> (i32, i32) {
    %c0_i32 = arith.constant 0 : i32
    %c0_i32_0 = arith.constant 0 : i32
    %c0_i32_1 = arith.constant 0 : i32
    return %c0_i32, %c0_i32_0 : i32, i32
  }
  func.func @transform_4(%arg0: i32, %arg1: i32, %arg2: i32) -> (i32, i32) {
    %c0_i32 = arith.constant 0 : i32
    %c0_i32_0 = arith.constant 0 : i32
    return %c0_i32, %arg1 : i32, i32
  }
  func.func @transform_5(%arg0: i32, %arg1: i32, %arg2: i32) -> (i32, i32) {
    %c0_i32 = arith.constant 0 : i32
    return %arg0, %arg1 : i32, i32
  }
}

module attributes {stable_mosaic.version = 11 : i64} {
  func.func @_matmul_kernel(%arg0: i32, %arg1: i32, %arg2: i32, %arg3: memref<48x128xbf16, #tpu.memory_space<vmem>>, %arg4: memref<128x64xbf16, #tpu.memory_space<vmem>>, %arg5: memref<1x64xf32, #tpu.memory_space<vmem>>, %arg6: memref<48x64xbf16, #tpu.memory_space<vmem>>, %arg7: memref<48x64xbf16, #tpu.memory_space<vmem>>, %arg8: memref<48x64xf32, #tpu.memory_space<vmem>>) attributes {dimension_semantics = [#tpu.dimension_semantics<parallel>, #tpu.dimension_semantics<parallel>, #tpu.dimension_semantics<arbitrary>], iteration_bounds = array<i64: 1, 1, 1>, scalar_prefetch = 0 : i64, scratch_operands = 1 : i64, tpu.core_type = #tpu.core_type<tc>, window_params = [{transform_indices = @transform_0, window_bounds = array<i64: 48, 128>}, {transform_indices = @transform_1, window_bounds = array<i64: 128, 64>}, {transform_indices = @transform_2, window_bounds = array<i64: 1, 64>}, {transform_indices = @transform_3, window_bounds = array<i64: 48, 64>}, {transform_indices = @transform_4, window_bounds = array<i64: 48, 64>}]} {
    %c0_i32 = arith.constant 0 : i32
    %0 = arith.cmpi eq, %arg2, %c0_i32 : i32
    %1 = arith.extui %0 : i1 to i32
    %c0_i32_0 = arith.constant 0 : i32
    %2 = arith.cmpi ne, %1, %c0_i32_0 : i32
    scf.if %2 {
      %cst_10 = arith.constant 0.000000e+00 : f32
      %14 = vector.broadcast %cst_10 : f32 to vector<48x64xf32>
      %c0_11 = arith.constant 0 : index
      %c0_12 = arith.constant 0 : index
      %15 = vector.load %arg8[%c0_11, %c0_12] : memref<48x64xf32, #tpu.memory_space<vmem>>, vector<48x64xf32>
      tpu.vector_store %arg8[%c0_11, %c0_12], %14 {strides = array<i32>} : memref<48x64xf32, #tpu.memory_space<vmem>>, vector<48x64xf32>,
    } else {
    }
    %c0 = arith.constant 0 : index
    %c0_1 = arith.constant 0 : index
    %3 = vector.load %arg3[%c0, %c0_1] : memref<48x128xbf16, #tpu.memory_space<vmem>>, vector<48x128xbf16>
    %4 = arith.extf %3 : vector<48x128xbf16> to vector<48x128xf32>
    %c0_2 = arith.constant 0 : index
    %c0_3 = arith.constant 0 : index
    %5 = vector.load %arg8[%c0_2, %c0_3] : memref<48x64xf32, #tpu.memory_space<vmem>>, vector<48x64xf32>
    %6 = arith.truncf %4 : vector<48x128xf32> to vector<48x128xbf16>
    %c0_4 = arith.constant 0 : index
    %c0_5 = arith.constant 0 : index
    %7 = vector.load %arg4[%c0_4, %c0_5] : memref<128x64xbf16, #tpu.memory_space<vmem>>, vector<128x64xbf16>
    %cst = arith.constant dense<0.000000e+00> : vector<48x64xf32>
    %8 = tpu.matmul %6, %7, %cst {dimension_numbers = #tpu.dot_dimension_numbers<[1], [0], [0], [1], [0, 0, 1, 1], [], []>} : vector<48x128xbf16>, vector<128x64xbf16>, vector<48x64xf32> -> vector<48x64xf32>
    %9 = arith.addf %5, %8 : vector<48x64xf32>
    %c0_6 = arith.constant 0 : index
    %c0_7 = arith.constant 0 : index
    %10 = vector.load %arg8[%c0_6, %c0_7] : memref<48x64xf32, #tpu.memory_space<vmem>>, vector<48x64xf32>
    tpu.vector_store %arg8[%c0_6, %c0_7], %9 {strides = array<i32>} : memref<48x64xf32, #tpu.memory_space<vmem>>, vector<48x64xf32>,
    %c0_i32_8 = arith.constant 0 : i32
    %11 = arith.cmpi eq, %arg2, %c0_i32_8 : i32
    %12 = arith.extui %11 : i1 to i32
    %c0_i32_9 = arith.constant 0 : i32
    %13 = arith.cmpi ne, %12, %c0_i32_9 : i32
    scf.if %13 {
      %c0_10 = arith.constant 0 : index
      %c0_11 = arith.constant 0 : index
      %14 = vector.load %arg8[%c0_10, %c0_11] : memref<48x64xf32, #tpu.memory_space<vmem>>, vector<48x64xf32>
      %c0_12 = arith.constant 0 : index
      %c0_13 = arith.constant 0 : index
      %15 = vector.load %arg5[%c0_12, %c0_13] : memref<1x64xf32, #tpu.memory_space<vmem>>, vector<1x64xf32>
      %16 = vector.broadcast %15 : vector<1x64xf32> to vector<48x64xf32>
      %17 = arith.addf %14, %16 : vector<48x64xf32>
      %c0_14 = arith.constant 0 : index
      %c0_15 = arith.constant 0 : index
      %18 = vector.load %arg6[%c0_14, %c0_15] : memref<48x64xbf16, #tpu.memory_space<vmem>>, vector<48x64xbf16>
      %19 = arith.extf %18 : vector<48x64xbf16> to vector<48x64xf32>
      %20 = arith.addf %17, %19 : vector<48x64xf32>
      %21 = arith.truncf %20 : vector<48x64xf32> to vector<48x64xbf16>
      %c0_16 = arith.constant 0 : index
      %c0_17 = arith.constant 0 : index
      %22 = vector.load %arg7[%c0_16, %c0_17] : memref<48x64xbf16, #tpu.memory_space<vmem>>, vector<48x64xbf16>
      tpu.vector_store %arg7[%c0_16, %c0_17], %21 {strides = array<i32>} : memref<48x64xbf16, #tpu.memory_space<vmem>>, vector<48x64xbf16>,
    } else {
    }
    return
  }
  func.func @transform_0(%arg0: i32, %arg1: i32, %arg2: i32) -> (i32, i32) {
    %c0_i32 = arith.constant 0 : i32
    return %arg0, %arg2 : i32, i32
  }
  func.func @transform_1(%arg0: i32, %arg1: i32, %arg2: i32) -> (i32, i32) {
    %c0_i32 = arith.constant 0 : i32
    return %arg2, %arg1 : i32, i32
  }
  func.func @transform_2(%arg0: i32, %arg1: i32, %arg2: i32) -> (i32, i32) {
    %c0_i32 = arith.constant 0 : i32
    %c0_i32_0 = arith.constant 0 : i32
    return %c0_i32, %arg1 : i32, i32
  }
  func.func @transform_3(%arg0: i32, %arg1: i32, %arg2: i32) -> (i32, i32) {
    %c0_i32 = arith.constant 0 : i32
    return %arg0, %arg1 : i32, i32
  }
  func.func @transform_4(%arg0: i32, %arg1: i32, %arg2: i32) -> (i32, i32) {
    %c0_i32 = arith.constant 0 : i32
    return %arg0, %arg1 : i32, i32
  }
}

module attributes {stable_mosaic.version = 11 : i64} {
  func.func @_matmul_kernel(%arg0: i32, %arg1: i32, %arg2: i32, %arg3: memref<78x64xbf16, #tpu.memory_space<vmem>>, %arg4: memref<64x128xbf16, #tpu.memory_space<vmem>>, %arg5: memref<1x64xf32, #tpu.memory_space<vmem>>, %arg6: memref<1x64xf32, #tpu.memory_space<vmem>>, %arg7: memref<1x128xf32, #tpu.memory_space<vmem>>, %arg8: memref<78x128xbf16, #tpu.memory_space<vmem>>, %arg9: memref<78x128xf32, #tpu.memory_space<vmem>>) attributes {dimension_semantics = [#tpu.dimension_semantics<parallel>, #tpu.dimension_semantics<parallel>, #tpu.dimension_semantics<arbitrary>], iteration_bounds = array<i64: 1, 1, 1>, scalar_prefetch = 0 : i64, scratch_operands = 1 : i64, tpu.core_type = #tpu.core_type<tc>, window_params = [{transform_indices = @transform_0, window_bounds = array<i64: 78, 64>}, {transform_indices = @transform_1, window_bounds = array<i64: 64, 128>}, {pipeline_mode = #tpu.pipeline_mode<synchronous>, transform_indices = @transform_2, window_bounds = array<i64: 1, 64>}, {pipeline_mode = #tpu.pipeline_mode<synchronous>, transform_indices = @transform_3, window_bounds = array<i64: 1, 64>}, {transform_indices = @transform_4, window_bounds = array<i64: 1, 128>}, {transform_indices = @transform_5, window_bounds = array<i64: 78, 128>}]} {
    %c0_i32 = arith.constant 0 : i32
    %0 = arith.cmpi eq, %arg2, %c0_i32 : i32
    %1 = arith.extui %0 : i1 to i32
    %c0_i32_0 = arith.constant 0 : i32
    %2 = arith.cmpi ne, %1, %c0_i32_0 : i32
    scf.if %2 {
      %cst_19 = arith.constant 0.000000e+00 : f32
      %38 = vector.broadcast %cst_19 : f32 to vector<78x128xf32>
      %c0_20 = arith.constant 0 : index
      %c0_21 = arith.constant 0 : index
      %39 = vector.load %arg9[%c0_20, %c0_21] : memref<78x128xf32, #tpu.memory_space<vmem>>, vector<78x128xf32>
      tpu.vector_store %arg9[%c0_20, %c0_21], %38 {strides = array<i32>} : memref<78x128xf32, #tpu.memory_space<vmem>>, vector<78x128xf32>,
    } else {
    }
    %c0 = arith.constant 0 : index
    %c0_1 = arith.constant 0 : index
    %3 = vector.load %arg3[%c0, %c0_1] : memref<78x64xbf16, #tpu.memory_space<vmem>>, vector<78x64xbf16>
    %4 = arith.extf %3 : vector<78x64xbf16> to vector<78x64xf32>
    %cst = arith.constant dense<0.000000e+00> : vector<78xf32>
    %5 = vector.multi_reduction <add>, %4, %cst [1] : vector<78x64xf32> to vector<78xf32>
    %6 = vector.shape_cast %5 : vector<78xf32> to vector<78x1xf32>
    %cst_2 = arith.constant 6.400000e+01 : f32
    %7 = vector.broadcast %cst_2 : f32 to vector<78x1xf32>
    %8 = arith.divf %6, %7 : vector<78x1xf32>
    %9 = vector.broadcast %8 : vector<78x1xf32> to vector<78x64xf32>
    %10 = arith.subf %4, %9 : vector<78x64xf32>
    %11 = arith.mulf %10, %10 : vector<78x64xf32>
    %cst_3 = arith.constant dense<0.000000e+00> : vector<78xf32>
    %12 = vector.multi_reduction <add>, %11, %cst_3 [1] : vector<78x64xf32> to vector<78xf32>
    %13 = vector.shape_cast %12 : vector<78xf32> to vector<78x1xf32>
    %cst_4 = arith.constant 6.400000e+01 : f32
    %14 = vector.broadcast %cst_4 : f32 to vector<78x1xf32>
    %15 = arith.divf %13, %14 : vector<78x1xf32>
    %16 = vector.broadcast %8 : vector<78x1xf32> to vector<78x64xf32>
    %17 = arith.subf %4, %16 : vector<78x64xf32>
    %cst_5 = arith.constant 9.99999974E-6 : f32
    %18 = vector.broadcast %cst_5 : f32 to vector<78x1xf32>
    %19 = arith.addf %15, %18 : vector<78x1xf32>
    %20 = math.rsqrt %19 : vector<78x1xf32>
    %21 = vector.broadcast %20 : vector<78x1xf32> to vector<78x64xf32>
    %22 = arith.mulf %17, %21 : vector<78x64xf32>
    %c0_6 = arith.constant 0 : index
    %c0_7 = arith.constant 0 : index
    %23 = vector.load %arg5[%c0_6, %c0_7] : memref<1x64xf32, #tpu.memory_space<vmem>>, vector<1x64xf32>
    %24 = vector.broadcast %23 : vector<1x64xf32> to vector<78x64xf32>
    %25 = arith.mulf %22, %24 : vector<78x64xf32>
    %c0_8 = arith.constant 0 : index
    %c0_9 = arith.constant 0 : index
    %26 = vector.load %arg6[%c0_8, %c0_9] : memref<1x64xf32, #tpu.memory_space<vmem>>, vector<1x64xf32>
    %27 = vector.broadcast %26 : vector<1x64xf32> to vector<78x64xf32>
    %28 = arith.addf %25, %27 : vector<78x64xf32>
    %c0_10 = arith.constant 0 : index
    %c0_11 = arith.constant 0 : index
    %29 = vector.load %arg9[%c0_10, %c0_11] : memref<78x128xf32, #tpu.memory_space<vmem>>, vector<78x128xf32>
    %30 = arith.truncf %28 : vector<78x64xf32> to vector<78x64xbf16>
    %c0_12 = arith.constant 0 : index
    %c0_13 = arith.constant 0 : index
    %31 = vector.load %arg4[%c0_12, %c0_13] : memref<64x128xbf16, #tpu.memory_space<vmem>>, vector<64x128xbf16>
    %cst_14 = arith.constant dense<0.000000e+00> : vector<78x128xf32>
    %32 = tpu.matmul %30, %31, %cst_14 {dimension_numbers = #tpu.dot_dimension_numbers<[1], [0], [0], [1], [0, 0, 1, 1], [], []>} : vector<78x64xbf16>, vector<64x128xbf16>, vector<78x128xf32> -> vector<78x128xf32>
    %33 = arith.addf %29, %32 : vector<78x128xf32>
    %c0_15 = arith.constant 0 : index
    %c0_16 = arith.constant 0 : index
    %34 = vector.load %arg9[%c0_15, %c0_16] : memref<78x128xf32, #tpu.memory_space<vmem>>, vector<78x128xf32>
    tpu.vector_store %arg9[%c0_15, %c0_16], %33 {strides = array<i32>} : memref<78x128xf32, #tpu.memory_space<vmem>>, vector<78x128xf32>,
    %c0_i32_17 = arith.constant 0 : i32
    %35 = arith.cmpi eq, %arg2, %c0_i32_17 : i32
    %36 = arith.extui %35 : i1 to i32
    %c0_i32_18 = arith.constant 0 : i32
    %37 = arith.cmpi ne, %36, %c0_i32_18 : i32
    scf.if %37 {
      %c0_19 = arith.constant 0 : index
      %c0_20 = arith.constant 0 : index
      %38 = vector.load %arg9[%c0_19, %c0_20] : memref<78x128xf32, #tpu.memory_space<vmem>>, vector<78x128xf32>
      %c0_21 = arith.constant 0 : index
      %c0_22 = arith.constant 0 : index
      %39 = vector.load %arg7[%c0_21, %c0_22] : memref<1x128xf32, #tpu.memory_space<vmem>>, vector<1x128xf32>
      %40 = vector.broadcast %39 : vector<1x128xf32> to vector<78x128xf32>
      %41 = arith.addf %38, %40 : vector<78x128xf32>
      %42 = arith.mulf %41, %41 : vector<78x128xf32>
      %43 = arith.mulf %41, %42 : vector<78x128xf32>
      %cst_23 = arith.constant 4.471500e-02 : f32
      %44 = vector.broadcast %cst_23 : f32 to vector<78x128xf32>
      %45 = arith.mulf %44, %43 : vector<78x128xf32>
      %46 = arith.addf %41, %45 : vector<78x128xf32>
      %cst_24 = arith.constant 0.797884583 : f32
      %47 = vector.broadcast %cst_24 : f32 to vector<78x128xf32>
      %48 = arith.mulf %47, %46 : vector<78x128xf32>
      %49 = math.tanh %48 : vector<78x128xf32>
      %cst_25 = arith.constant 1.000000e+00 : f32
      %50 = vector.broadcast %cst_25 : f32 to vector<78x128xf32>
      %51 = arith.addf %50, %49 : vector<78x128xf32>
      %cst_26 = arith.constant 5.000000e-01 : f32
      %52 = vector.broadcast %cst_26 : f32 to vector<78x128xf32>
      %53 = arith.mulf %52, %51 : vector<78x128xf32>
      %54 = arith.mulf %41, %53 : vector<78x128xf32>
      %55 = arith.truncf %54 : vector<78x128xf32> to vector<78x128xbf16>
      %c0_27 = arith.constant 0 : index
      %c0_28 = arith.constant 0 : index
      %56 = vector.load %arg8[%c0_27, %c0_28] : memref<78x128xbf16, #tpu.memory_space<vmem>>, vector<78x128xbf16>
      tpu.vector_store %arg8[%c0_27, %c0_28], %55 {strides = array<i32>} : memref<78x128xbf16, #tpu.memory_space<vmem>>, vector<78x128xbf16>,
    } else {
    }
    return
  }
  func.func @transform_0(%arg0: i32, %arg1: i32, %arg2: i32) -> (i32, i32) {
    %c0_i32 = arith.constant 0 : i32
    return %arg0, %arg2 : i32, i32
  }
  func.func @transform_1(%arg0: i32, %arg1: i32, %arg2: i32) -> (i32, i32) {
    %c0_i32 = arith.constant 0 : i32
    return %arg2, %arg1 : i32, i32
  }
  func.func @transform_2(%arg0: i32, %arg1: i32, %arg2: i32) -> (i32, i32) {
    %c0_i32 = arith.constant 0 : i32
    %c0_i32_0 = arith.constant 0 : i32
    %c0_i32_1 = arith.constant 0 : i32
    return %c0_i32, %c0_i32_0 : i32, i32
  }
  func.func @transform_3(%arg0: i32, %arg1: i32, %arg2: i32) -> (i32, i32) {
    %c0_i32 = arith.constant 0 : i32
    %c0_i32_0 = arith.constant 0 : i32
    %c0_i32_1 = arith.constant 0 : i32
    return %c0_i32, %c0_i32_0 : i32, i32
  }
  func.func @transform_4(%arg0: i32, %arg1: i32, %arg2: i32) -> (i32, i32) {
    %c0_i32 = arith.constant 0 : i32
    %c0_i32_0 = arith.constant 0 : i32
    return %c0_i32, %arg1 : i32, i32
  }
  func.func @transform_5(%arg0: i32, %arg1: i32, %arg2: i32) -> (i32, i32) {
    %c0_i32 = arith.constant 0 : i32
    return %arg0, %arg1 : i32, i32
  }
}

module attributes {stable_mosaic.version = 11 : i64} {
  func.func @_matmul_kernel(%arg0: i32, %arg1: i32, %arg2: i32, %arg3: memref<78x128xbf16, #tpu.memory_space<vmem>>, %arg4: memref<128x64xbf16, #tpu.memory_space<vmem>>, %arg5: memref<1x64xf32, #tpu.memory_space<vmem>>, %arg6: memref<78x64xbf16, #tpu.memory_space<vmem>>, %arg7: memref<78x64xbf16, #tpu.memory_space<vmem>>, %arg8: memref<78x64xf32, #tpu.memory_space<vmem>>) attributes {dimension_semantics = [#tpu.dimension_semantics<parallel>, #tpu.dimension_semantics<parallel>, #tpu.dimension_semantics<arbitrary>], iteration_bounds = array<i64: 1, 1, 1>, scalar_prefetch = 0 : i64, scratch_operands = 1 : i64, tpu.core_type = #tpu.core_type<tc>, window_params = [{transform_indices = @transform_0, window_bounds = array<i64: 78, 128>}, {transform_indices = @transform_1, window_bounds = array<i64: 128, 64>}, {transform_indices = @transform_2, window_bounds = array<i64: 1, 64>}, {transform_indices = @transform_3, window_bounds = array<i64: 78, 64>}, {transform_indices = @transform_4, window_bounds = array<i64: 78, 64>}]} {
    %c0_i32 = arith.constant 0 : i32
    %0 = arith.cmpi eq, %arg2, %c0_i32 : i32
    %1 = arith.extui %0 : i1 to i32
    %c0_i32_0 = arith.constant 0 : i32
    %2 = arith.cmpi ne, %1, %c0_i32_0 : i32
    scf.if %2 {
      %cst_10 = arith.constant 0.000000e+00 : f32
      %14 = vector.broadcast %cst_10 : f32 to vector<78x64xf32>
      %c0_11 = arith.constant 0 : index
      %c0_12 = arith.constant 0 : index
      %15 = vector.load %arg8[%c0_11, %c0_12] : memref<78x64xf32, #tpu.memory_space<vmem>>, vector<78x64xf32>
      tpu.vector_store %arg8[%c0_11, %c0_12], %14 {strides = array<i32>} : memref<78x64xf32, #tpu.memory_space<vmem>>, vector<78x64xf32>,
    } else {
    }
    %c0 = arith.constant 0 : index
    %c0_1 = arith.constant 0 : index
    %3 = vector.load %arg3[%c0, %c0_1] : memref<78x128xbf16, #tpu.memory_space<vmem>>, vector<78x128xbf16>
    %4 = arith.extf %3 : vector<78x128xbf16> to vector<78x128xf32>
    %c0_2 = arith.constant 0 : index
    %c0_3 = arith.constant 0 : index
    %5 = vector.load %arg8[%c0_2, %c0_3] : memref<78x64xf32, #tpu.memory_space<vmem>>, vector<78x64xf32>
    %6 = arith.truncf %4 : vector<78x128xf32> to vector<78x128xbf16>
    %c0_4 = arith.constant 0 : index
    %c0_5 = arith.constant 0 : index
    %7 = vector.load %arg4[%c0_4, %c0_5] : memref<128x64xbf16, #tpu.memory_space<vmem>>, vector<128x64xbf16>
    %cst = arith.constant dense<0.000000e+00> : vector<78x64xf32>
    %8 = tpu.matmul %6, %7, %cst {dimension_numbers = #tpu.dot_dimension_numbers<[1], [0], [0], [1], [0, 0, 1, 1], [], []>} : vector<78x128xbf16>, vector<128x64xbf16>, vector<78x64xf32> -> vector<78x64xf32>
    %9 = arith.addf %5, %8 : vector<78x64xf32>
    %c0_6 = arith.constant 0 : index
    %c0_7 = arith.constant 0 : index
    %10 = vector.load %arg8[%c0_6, %c0_7] : memref<78x64xf32, #tpu.memory_space<vmem>>, vector<78x64xf32>
    tpu.vector_store %arg8[%c0_6, %c0_7], %9 {strides = array<i32>} : memref<78x64xf32, #tpu.memory_space<vmem>>, vector<78x64xf32>,
    %c0_i32_8 = arith.constant 0 : i32
    %11 = arith.cmpi eq, %arg2, %c0_i32_8 : i32
    %12 = arith.extui %11 : i1 to i32
    %c0_i32_9 = arith.constant 0 : i32
    %13 = arith.cmpi ne, %12, %c0_i32_9 : i32
    scf.if %13 {
      %c0_10 = arith.constant 0 : index
      %c0_11 = arith.constant 0 : index
      %14 = vector.load %arg8[%c0_10, %c0_11] : memref<78x64xf32, #tpu.memory_space<vmem>>, vector<78x64xf32>
      %c0_12 = arith.constant 0 : index
      %c0_13 = arith.constant 0 : index
      %15 = vector.load %arg5[%c0_12, %c0_13] : memref<1x64xf32, #tpu.memory_space<vmem>>, vector<1x64xf32>
      %16 = vector.broadcast %15 : vector<1x64xf32> to vector<78x64xf32>
      %17 = arith.addf %14, %16 : vector<78x64xf32>
      %c0_14 = arith.constant 0 : index
      %c0_15 = arith.constant 0 : index
      %18 = vector.load %arg6[%c0_14, %c0_15] : memref<78x64xbf16, #tpu.memory_space<vmem>>, vector<78x64xbf16>
      %19 = arith.extf %18 : vector<78x64xbf16> to vector<78x64xf32>
      %20 = arith.addf %17, %19 : vector<78x64xf32>
      %21 = arith.truncf %20 : vector<78x64xf32> to vector<78x64xbf16>
      %c0_16 = arith.constant 0 : index
      %c0_17 = arith.constant 0 : index
      %22 = vector.load %arg7[%c0_16, %c0_17] : memref<78x64xbf16, #tpu.memory_space<vmem>>, vector<78x64xbf16>
      tpu.vector_store %arg7[%c0_16, %c0_17], %21 {strides = array<i32>} : memref<78x64xbf16, #tpu.memory_space<vmem>>, vector<78x64xbf16>,
    } else {
    }
    return
  }
  func.func @transform_0(%arg0: i32, %arg1: i32, %arg2: i32) -> (i32, i32) {
    %c0_i32 = arith.constant 0 : i32
    return %arg0, %arg2 : i32, i32
  }
  func.func @transform_1(%arg0: i32, %arg1: i32, %arg2: i32) -> (i32, i32) {
    %c0_i32 = arith.constant 0 : i32
    return %arg2, %arg1 : i32, i32
  }
  func.func @transform_2(%arg0: i32, %arg1: i32, %arg2: i32) -> (i32, i32) {
    %c0_i32 = arith.constant 0 : i32
    %c0_i32_0 = arith.constant 0 : i32
    return %c0_i32, %arg1 : i32, i32
  }
  func.func @transform_3(%arg0: i32, %arg1: i32, %arg2: i32) -> (i32, i32) {
    %c0_i32 = arith.constant 0 : i32
    return %arg0, %arg1 : i32, i32
  }
  func.func @transform_4(%arg0: i32, %arg1: i32, %arg2: i32) -> (i32, i32) {
    %c0_i32 = arith.constant 0 : i32
    return %arg0, %arg1 : i32, i32
  }
}

module attributes {stable_mosaic.version = 11 : i64} {
  func.func @_matmul_kernel(%arg0: i32, %arg1: i32, %arg2: i32, %arg3: memref<6x64xbf16, #tpu.memory_space<vmem>>, %arg4: memref<64x2xbf16, #tpu.memory_space<vmem>>, %arg5: memref<1x64xf32, #tpu.memory_space<vmem>>, %arg6: memref<1x64xf32, #tpu.memory_space<vmem>>, %arg7: memref<1x2xf32, #tpu.memory_space<vmem>>, %arg8: memref<6x2xf32, #tpu.memory_space<vmem>>, %arg9: memref<6x2xf32, #tpu.memory_space<vmem>>) attributes {dimension_semantics = [#tpu.dimension_semantics<parallel>, #tpu.dimension_semantics<parallel>, #tpu.dimension_semantics<arbitrary>], iteration_bounds = array<i64: 1, 1, 1>, scalar_prefetch = 0 : i64, scratch_operands = 1 : i64, tpu.core_type = #tpu.core_type<tc>, window_params = [{transform_indices = @transform_0, window_bounds = array<i64: 6, 64>}, {transform_indices = @transform_1, window_bounds = array<i64: 64, 2>}, {pipeline_mode = #tpu.pipeline_mode<synchronous>, transform_indices = @transform_2, window_bounds = array<i64: 1, 64>}, {pipeline_mode = #tpu.pipeline_mode<synchronous>, transform_indices = @transform_3, window_bounds = array<i64: 1, 64>}, {transform_indices = @transform_4, window_bounds = array<i64: 1, 2>}, {transform_indices = @transform_5, window_bounds = array<i64: 6, 2>}]} {
    %c0_i32 = arith.constant 0 : i32
    %0 = arith.cmpi eq, %arg2, %c0_i32 : i32
    %1 = arith.extui %0 : i1 to i32
    %c0_i32_0 = arith.constant 0 : i32
    %2 = arith.cmpi ne, %1, %c0_i32_0 : i32
    scf.if %2 {
      %cst_19 = arith.constant 0.000000e+00 : f32
      %38 = vector.broadcast %cst_19 : f32 to vector<6x2xf32>
      %c0_20 = arith.constant 0 : index
      %c0_21 = arith.constant 0 : index
      %39 = vector.load %arg9[%c0_20, %c0_21] : memref<6x2xf32, #tpu.memory_space<vmem>>, vector<6x2xf32>
      tpu.vector_store %arg9[%c0_20, %c0_21], %38 {strides = array<i32>} : memref<6x2xf32, #tpu.memory_space<vmem>>, vector<6x2xf32>,
    } else {
    }
    %c0 = arith.constant 0 : index
    %c0_1 = arith.constant 0 : index
    %3 = vector.load %arg3[%c0, %c0_1] : memref<6x64xbf16, #tpu.memory_space<vmem>>, vector<6x64xbf16>
    %4 = arith.extf %3 : vector<6x64xbf16> to vector<6x64xf32>
    %cst = arith.constant dense<0.000000e+00> : vector<6xf32>
    %5 = vector.multi_reduction <add>, %4, %cst [1] : vector<6x64xf32> to vector<6xf32>
    %6 = vector.shape_cast %5 : vector<6xf32> to vector<6x1xf32>
    %cst_2 = arith.constant 6.400000e+01 : f32
    %7 = vector.broadcast %cst_2 : f32 to vector<6x1xf32>
    %8 = arith.divf %6, %7 : vector<6x1xf32>
    %9 = vector.broadcast %8 : vector<6x1xf32> to vector<6x64xf32>
    %10 = arith.subf %4, %9 : vector<6x64xf32>
    %11 = arith.mulf %10, %10 : vector<6x64xf32>
    %cst_3 = arith.constant dense<0.000000e+00> : vector<6xf32>
    %12 = vector.multi_reduction <add>, %11, %cst_3 [1] : vector<6x64xf32> to vector<6xf32>
    %13 = vector.shape_cast %12 : vector<6xf32> to vector<6x1xf32>
    %cst_4 = arith.constant 6.400000e+01 : f32
    %14 = vector.broadcast %cst_4 : f32 to vector<6x1xf32>
    %15 = arith.divf %13, %14 : vector<6x1xf32>
    %16 = vector.broadcast %8 : vector<6x1xf32> to vector<6x64xf32>
    %17 = arith.subf %4, %16 : vector<6x64xf32>
    %cst_5 = arith.constant 9.99999974E-6 : f32
    %18 = vector.broadcast %cst_5 : f32 to vector<6x1xf32>
    %19 = arith.addf %15, %18 : vector<6x1xf32>
    %20 = math.rsqrt %19 : vector<6x1xf32>
    %21 = vector.broadcast %20 : vector<6x1xf32> to vector<6x64xf32>
    %22 = arith.mulf %17, %21 : vector<6x64xf32>
    %c0_6 = arith.constant 0 : index
    %c0_7 = arith.constant 0 : index
    %23 = vector.load %arg5[%c0_6, %c0_7] : memref<1x64xf32, #tpu.memory_space<vmem>>, vector<1x64xf32>
    %24 = vector.broadcast %23 : vector<1x64xf32> to vector<6x64xf32>
    %25 = arith.mulf %22, %24 : vector<6x64xf32>
    %c0_8 = arith.constant 0 : index
    %c0_9 = arith.constant 0 : index
    %26 = vector.load %arg6[%c0_8, %c0_9] : memref<1x64xf32, #tpu.memory_space<vmem>>, vector<1x64xf32>
    %27 = vector.broadcast %26 : vector<1x64xf32> to vector<6x64xf32>
    %28 = arith.addf %25, %27 : vector<6x64xf32>
    %c0_10 = arith.constant 0 : index
    %c0_11 = arith.constant 0 : index
    %29 = vector.load %arg9[%c0_10, %c0_11] : memref<6x2xf32, #tpu.memory_space<vmem>>, vector<6x2xf32>
    %30 = arith.truncf %28 : vector<6x64xf32> to vector<6x64xbf16>
    %c0_12 = arith.constant 0 : index
    %c0_13 = arith.constant 0 : index
    %31 = vector.load %arg4[%c0_12, %c0_13] : memref<64x2xbf16, #tpu.memory_space<vmem>>, vector<64x2xbf16>
    %cst_14 = arith.constant dense<0.000000e+00> : vector<6x2xf32>
    %32 = tpu.matmul %30, %31, %cst_14 {dimension_numbers = #tpu.dot_dimension_numbers<[1], [0], [0], [1], [0, 0, 1, 1], [], []>} : vector<6x64xbf16>, vector<64x2xbf16>, vector<6x2xf32> -> vector<6x2xf32>
    %33 = arith.addf %29, %32 : vector<6x2xf32>
    %c0_15 = arith.constant 0 : index
    %c0_16 = arith.constant 0 : index
    %34 = vector.load %arg9[%c0_15, %c0_16] : memref<6x2xf32, #tpu.memory_space<vmem>>, vector<6x2xf32>
    tpu.vector_store %arg9[%c0_15, %c0_16], %33 {strides = array<i32>} : memref<6x2xf32, #tpu.memory_space<vmem>>, vector<6x2xf32>,
    %c0_i32_17 = arith.constant 0 : i32
    %35 = arith.cmpi eq, %arg2, %c0_i32_17 : i32
    %36 = arith.extui %35 : i1 to i32
    %c0_i32_18 = arith.constant 0 : i32
    %37 = arith.cmpi ne, %36, %c0_i32_18 : i32
    scf.if %37 {
      %c0_19 = arith.constant 0 : index
      %c0_20 = arith.constant 0 : index
      %38 = vector.load %arg9[%c0_19, %c0_20] : memref<6x2xf32, #tpu.memory_space<vmem>>, vector<6x2xf32>
      %c0_21 = arith.constant 0 : index
      %c0_22 = arith.constant 0 : index
      %39 = vector.load %arg7[%c0_21, %c0_22] : memref<1x2xf32, #tpu.memory_space<vmem>>, vector<1x2xf32>
      %40 = vector.broadcast %39 : vector<1x2xf32> to vector<6x2xf32>
      %41 = arith.addf %38, %40 : vector<6x2xf32>
      %c0_23 = arith.constant 0 : index
      %c0_24 = arith.constant 0 : index
      %42 = vector.load %arg8[%c0_23, %c0_24] : memref<6x2xf32, #tpu.memory_space<vmem>>, vector<6x2xf32>
      tpu.vector_store %arg8[%c0_23, %c0_24], %41 {strides = array<i32>} : memref<6x2xf32, #tpu.memory_space<vmem>>, vector<6x2xf32>,
    } else {
    }
    return
  }
  func.func @transform_0(%arg0: i32, %arg1: i32, %arg2: i32) -> (i32, i32) {
    %c0_i32 = arith.constant 0 : i32
    return %arg0, %arg2 : i32, i32
  }
  func.func @transform_1(%arg0: i32, %arg1: i32, %arg2: i32) -> (i32, i32) {
    %c0_i32 = arith.constant 0 : i32
    return %arg2, %arg1 : i32, i32
  }
  func.func @transform_2(%arg0: i32, %arg1: i32, %arg2: i32) -> (i32, i32) {
    %c0_i32 = arith.constant 0 : i32
    %c0_i32_0 = arith.constant 0 : i32
    %c0_i32_1 = arith.constant 0 : i32
    return %c0_i32, %c0_i32_0 : i32, i32
  }
  func.func @transform_3(%arg0: i32, %arg1: i32, %arg2: i32) -> (i32, i32) {
    %c0_i32 = arith.constant 0 : i32
    %c0_i32_0 = arith.constant 0 : i32
    %c0_i32_1 = arith.constant 0 : i32
    return %c0_i32, %c0_i32_0 : i32, i32
  }
  func.func @transform_4(%arg0: i32, %arg1: i32, %arg2: i32) -> (i32, i32) {
    %c0_i32 = arith.constant 0 : i32
    %c0_i32_0 = arith.constant 0 : i32
    return %c0_i32, %arg1 : i32, i32
  }
  func.func @transform_5(%arg0: i32, %arg1: i32, %arg2: i32) -> (i32, i32) {
    %c0_i32 = arith.constant 0 : i32
    return %arg0, %arg1 : i32, i32
  }
}

</mosaic_0001>

<bundles_post_ra>
// kernel: beit_forward.49
= control target key start
LH: loop header
LB: loop body
LE: loop exit
PB: predicated region body
PF: predicated region fallthrough
CT: control target
= control target key end

     0   :  { %vm26_vm0 = vcmask 523264   ;;  %v274_v5 = vmov 64.0   ;;  %v275_v50 = vmov 0.0   ;;  %vm209_vm8 = vcmask 1043456   ;;  %s392_s0 = inlined_call_operand.vmem [shape: bf16[16,64], index: 0, kind: input, shape index: {}]   ;;  %s393_s2 = inlined_call_operand.vmem [shape: f32[1,64], index: 2, kind: input, shape index: {}]   ;;  %s394_s3 = inlined_call_operand.vmem [shape: f32[1,64], index: 3, kind: input, shape index: {}]   ;;  %s395_s1 = inlined_call_operand.vmem [shape: bf16[64,192], index: 1, kind: input, shape index: {}]   ;;  %s396_s4 = inlined_call_operand.vmem [shape: f32[1,192], index: 4, kind: input, shape index: {}]   ;;  %s397_s5 = inlined_call_operand.vmem [shape: bf16[16,192], index: 5, kind: output, shape index: {}]  }
   0x1   :  { %v261_v0 = vld [vmem:[%s392_s0] sm:$0xff]   ;;  %268 = vrcp.f32 %v274_v5  ;;  %v244_v22 = vld [vmem:[%s395_s1 + $0x30] sm:$0xf]  ;;  %v259_v23 = vld [vmem:[%s395_s1 + $0x34] sm:$0xf0]  ;;  %27 = vst.msk [vmem:[#allocation2 + $0x8] sm:$0xff] %vm26_vm0, %v275_v50 }
   0x2   :  { %v262_v1 = vunpack.c.l.bf16 %v261_v0  ;;  %v263_v3 = vunpack.c.h.bf16 %v261_v0  ;;  %v258_v24 = vld [vmem:[%s395_s1 + $0x34] sm:$0xf]  ;;  %v245_v25 = vor.u32 %v259_v23, %v244_v22  ;;  %v246_v26 = vld [vmem:[%s395_s1 + $0x38] sm:$0xf0]  ;;  %v236_v28 = vld [vmem:[%s395_s1 + $0x20] sm:$0xf] }
   0x3   :  { %v249_v27 = vor.u32 %v258_v24, %v246_v26  ;;  %v257_v29 = vld [vmem:[%s395_s1 + $0x24] sm:$0xf0]  ;;  %v256_v30 = vld [vmem:[%s395_s1 + $0x24] sm:$0xf]  ;;  %v238_v32 = vld [vmem:[%s395_s1 + $0x28] sm:$0xf0] }
   0x4   :  { %v35_v2 = vsel %vm26_vm0, %v262_v1, 0.0  ;;  %v38_v4 = vsel %vm26_vm0, %v263_v3, 0.0  ;;  %158 = vmatpush.bf16.msra.mxu0 %v245_v25  ;;  %v237_v31 = vor.u32 %v257_v29, %v236_v28  ;;  %v241_v33 = vor.u32 %v256_v30, %v238_v32  ;;  %v228_v34 = vld [vmem:[%s395_s1 + $0x10] sm:$0xf]  ;;  %v255_v35 = vld [vmem:[%s395_s1 + $0x14] sm:$0xf0] }
   0x5   :  { %36 = vadd.xlane.f32.xlu0 %v35_v2  ;;  %172 = vmatpush.bf16.msra.mxu1 %v249_v27  ;;  %v254_v36 = vld [vmem:[%s395_s1 + $0x14] sm:$0xf]  ;;  %v229_v37 = vor.u32 %v255_v35, %v228_v34  ;;  %v230_v38 = vld [vmem:[%s395_s1 + $0x18] sm:$0xf0]  ;;  %v220_v40 = vld [vmem:[%s395_s1] sm:$0xf] }
   0x6   :  { %v233_v39 = vor.u32 %v254_v36, %v230_v38  ;;  %v253_v41 = vld [vmem:[%s395_s1 + $0x4] sm:$0xf0]  ;;  %v252_v42 = vld [vmem:[%s395_s1 + $0x4] sm:$0xf]  ;;  %v222_v45 = vld [vmem:[%s395_s1 + $0x8] sm:$0xf0] }
   0x7   :  { %v269_v6 = vpop.eup %268  ;;  %v221_v44 = vor.u32 %v253_v41, %v220_v40  ;;  %v225_v47 = vor.u32 %v252_v42, %v222_v45  ;;  %29 = vst.msk [vmem:[#allocation2 + $0x18] sm:$0xff] %vm26_vm0, %v275_v50  ;;  %v266_v2 = vld [vmem:[%s393_s2] ss:$0 sm:$0xff]  ;;  %vm210_vm9 = vcmask 523268  }
   0x8   :  { %v42_v7 = vmul.f32 64.0, %v269_v6  ;;  %vm46_vm1 = vweird.f32 %v269_v6  ;;  %159 = vmatpush.bf16.msra.mxu0 %v237_v31  ;;  %vm211_vm10 = vmor %vm210_vm9, %vm209_vm8 }
   0x9   :  { %173 = vmatpush.bf16.msra.mxu1 %v241_v33 }
   0xa   :  { %v43_v8 = vsub.f32 1.0, %v42_v7  ;;  %v267_v7 = vld [vmem:[%s394_s3] ss:$0 sm:$0xff] }
   0xc   :  { %v44_v9 = vmul.f32 %v269_v6, %v43_v8  ;;  %160 = vmatpush.bf16.msra.mxu0 %v229_v37 }
   0xd   :  { %39 = vadd.xlane.f32.xlu0 %v38_v4  ;;  %174 = vmatpush.bf16.msra.mxu1 %v233_v39 }
   0xe   :  { %v45_v10 = vadd.f32 %v269_v6, %v44_v9 }
  0x10   :  { %v47_v11 = vsel %vm46_vm1, %v269_v6, %v45_v10  ;;  %161 = vmatpush.bf16.msra.mxu0 %v221_v44 }
  0x11   :  { %175 = vmatpush.bf16.msra.mxu1 %v225_v47 }
  0x78   :  { %v37_v12 = vpop.xlane.xlu0 %36 }
  0x79   :  { %v48_v13 = vmul.f32 %v47_v11, %v37_v12  ;;  %v99_v12 = vld [vmem:[#allocation2 + $0x8] sm:$0xff] }
  0x7b   :  { %v311_v14 = vsub.f32 %v262_v1, %v48_v13 }
  0x7d   :  { %v52_v15 = vmul.f32 %v311_v14, %v311_v14 }
  0x7f   :  { %v54_v16 = vsel %vm26_vm0, %v52_v15, 0.0 }
  0x80   :  { %55 = vadd.xlane.f32.xlu1 %v54_v16  ;;  %v40_v17 = vpop.xlane.xlu0 %39  ;;  %v197_v16 = vld [vmem:[%s396_s4] sm:$0x3] }
  0x81   :  { %v49_v18 = vmul.f32 %v47_v11, %v40_v17  ;;  %v101_v17 = vld [vmem:[#allocation2 + $0x18] sm:$0xff] }
  0x83   :  { %v316_v19 = vsub.f32 %v263_v3, %v49_v18  ;;  %v199_v18 = vperm.slane %v197_v16, 0 }
  0x85   :  { %v53_v20 = vmul.f32 %v316_v19, %v316_v19 }
  0x87   :  { %v57_v21 = vsel %vm26_vm0, %v53_v20, 0.0 }
  0x88   :  { %58 = vadd.xlane.f32.xlu1 %v57_v21 }
  0xf3   :  { %v56_v43 = vpop.xlane.xlu1 %55 }
  0xf4   :  { %v60_v46 = vmul.f32 %v56_v43, %v47_v11 }
  0xf6   :  { %v62_v48 = vadd.f32 1e-05, %v60_v46 }
  0xf8   :  { %270 = vrsqrt.f32 %v62_v48  ;;  %vm70_vm3 = vweird.f32 %v62_v48 }
  0xfb   :  { %v59_v49 = vpop.xlane.xlu1 %58 }
  0xfc   :  { %v61_v51 = vmul.f32 %v59_v49, %v47_v11 }
  0xfe   :  { %v271_v52 = vpop.eup %270  ;;  %v63_v53 = vadd.f32 1e-05, %v61_v51 }
  0xff   :  { %v65_v54 = vmul.f32 %v271_v52, %v62_v48  ;;  %vm71_vm2 = vweird.f32 %v271_v52 }
 0x100   :  { %272 = vrsqrt.f32 %v63_v53  ;;  %vm72_vm4 = vmor %vm70_vm3, %vm71_vm2  ;;  %vm80_vm6 = vweird.f32 %v63_v53 }
 0x101   :  { %v66_v55 = vmul.f32 %v271_v52, %v65_v54 }
 0x103   :  { %v67_v56 = vmul.f32 0.5, %v66_v55 }
 0x105   :  { %v68_v57 = vsub.f32 1.5, %v67_v56 }
 0x106   :  { %v273_v58 = vpop.eup %272 }
 0x107   :  { %v69_v59 = vmul.f32 %v271_v52, %v68_v57  ;;  %v75_v60 = vmul.f32 %v273_v58, %v63_v53  ;;  %vm81_vm5 = vweird.f32 %v273_v58 }
 0x108   :  { %vm82_vm7 = vmor %vm80_vm6, %vm81_vm5 }
 0x109   :  { %v76_v61 = vmul.f32 %v273_v58, %v75_v60  ;;  %v73_v62 = vsel %vm72_vm4, %v271_v52, %v69_v59 }
 0x10a   :  { %v84_v1 = vmul.f32 %v73_v62, %v311_v14 }
 0x10b   :  { %v77_v63 = vmul.f32 0.5, %v76_v61 }
 0x10c   :  { %v90_v6 = vmul.f32 %v266_v2, %v84_v1 }
 0x10d   :  { %v78_v0 = vsub.f32 1.5, %v77_v63 }
 0x10e   :  { %v96_v9 = vadd.f32 %v267_v7, %v90_v6 }
 0x10f   :  { %v79_v3 = vmul.f32 %v273_v58, %v78_v0 }
 0x111   :  { %v83_v4 = vsel %vm82_vm7, %v273_v58, %v79_v3 }
 0x112   :  { %v85_v5 = vmul.f32 %v83_v4, %v316_v19  ;;  %v200_v19 = vperm.slane %v197_v16, 1 }
 0x114   :  { %v91_v8 = vmul.f32 %v266_v2, %v85_v5 }
 0x116   :  { %v97_v10 = vadd.f32 %v267_v7, %v91_v8 }
 0x118   :  { %v102_v11 = vpack.c.bf16 %v97_v10, %v96_v9 }
 0x11a   :  { %250 = vmatmul.msk.bf16.vlgmr.msra.gmra.mxu0 %vm26_vm0, %v102_v11  ;;  %251 = vmatmul.msk.bf16.vlgmr.msra.gmra.mxu1 %vm26_vm0, %v102_v11 }
 0x197   :  { %v163_v13 = vpop.f32.mrf.mxu0  ;;  %v177_v14 = vpop.f32.mrf.mxu1 }
 0x198   :  { %v183_v15 = vadd.f32 %v177_v14, %v99_v12  ;;  %v203_v24 = vadd.f32 %v199_v18, %v163_v13 }
 0x19a   :  { %187 = vst.msk [vmem:[#allocation2 + $0x8] sm:$0xff] %vm26_vm0, %v183_v15 }
 0x19f   :  { %v165_v20 = vpop.f32.mrf.mxu0  ;;  %v179_v21 = vpop.f32.mrf.mxu1 }
 0x1a0   :  { %v185_v22 = vadd.f32 %v179_v21, %v101_v17  ;;  %v205_v28 = vadd.f32 %v199_v18, %v165_v20 }
 0x1a1   :  { %v194_v23 = vld [vmem:[#allocation2 + $0x8] sm:$0xff] }
 0x1a2   :  { %v204_v25 = vadd.f32 %v200_v19, %v194_v23  ;;  %189 = vst.msk [vmem:[#allocation2 + $0x18] sm:$0xff] %vm26_vm0, %v185_v22 }
 0x1a4   :  { %v207_v26 = vpack.c.bf16 %v204_v25, %v203_v24 }
 0x1a6   :  { %212 = vst.msk [vmem:[%s397_s5] sm:$0xff] %vm211_vm10, %v207_v26 }
 0x1a9   :  { %v196_v27 = vld [vmem:[#allocation2 + $0x18] sm:$0xff] }
 0x1aa   :  { %v206_v29 = vadd.f32 %v200_v19, %v196_v27 }
 0x1ac   :  { %v208_v30 = vpack.c.bf16 %v206_v29, %v205_v28 }
 0x1ae   :  { %213 = vst.msk [vmem:[%s397_s5 + $0x8] sm:$0xff] %vm211_vm10, %v208_v30 }

// kernel: beit_forward.51
= control target key start
LH: loop header
LB: loop body
LE: loop exit
PB: predicated region body
PF: predicated region fallthrough
CT: control target
= control target key end

     0   :  { %vm22_vm0 = vcmask 523264   ;;  %v146_v1 = vmov 0.0   ;;  %vm107_vm1 = vcmask 519168   ;;  %s204_s1 = inlined_call_operand.vmem [shape: bf16[64,64], index: 1, kind: input, shape index: {}]   ;;  %s205_s2 = inlined_call_operand.vmem [shape: f32[1,64], index: 2, kind: input, shape index: {}]   ;;  %s206_s0 = inlined_call_operand.vmem [shape: bf16[16,64], index: 0, kind: input, shape index: {}]   ;;  %s207_s3 = inlined_call_operand.vmem [shape: bf16[16,64], index: 3, kind: input, shape index: {}]   ;;  %s208_s4 = inlined_call_operand.vmem [shape: bf16[16,64], index: 4, kind: output, shape index: {}]  }
   0x1   :  { %v139_v0 = vld [vmem:[%s204_s1 + $0x18] sm:$0xff]  ;;  %23 = vst.msk [vmem:[#allocation2] sm:$0xff] %vm22_vm0, %v146_v1  ;;  %v138_v2 = vld [vmem:[%s204_s1 + $0x10] sm:$0xff]  ;;  %v137_v3 = vld [vmem:[%s204_s1 + $0x8] sm:$0xff] }
   0x2   :  { %24 = vst.msk [vmem:[#allocation2 + $0x8] sm:$0xff] %vm22_vm0, %v146_v1  ;;  %74 = vmatpush.bf16.msra.mxu0 %v139_v0  ;;  %v136_v4 = vld [vmem:[%s204_s1] sm:$0xff] }
   0x3   :  { %v135_v5 = vld [vmem:[%s206_s0] sm:$0xff] }
   0x4   :  { %v141_v9 = vld [vmem:[%s207_s3] sm:$0xff]  }
   0x5   :  { %v145_v11 = vld [vmem:[%s205_s2] ss:$0 sm:$0xff]  ;;  %v142_v13 = vunpack.c.l.bf16 %v141_v9  ;;  %v143_v19 = vunpack.c.h.bf16 %v141_v9 }
   0x6   :  { %75 = vmatpush.bf16.msra.mxu0 %v138_v2 }
   0x8   :  { %v27_v6 = vld [vmem:[#allocation2] sm:$0xff] }
   0x9   :  { %v28_v10 = vld [vmem:[#allocation2 + $0x8] sm:$0xff] }
   0xa   :  { %76 = vmatpush.bf16.msra.mxu0 %v137_v3 }
   0xe   :  { %77 = vmatpush.bf16.msra.mxu0 %v136_v4 }
  0x11   :  { %134 = vmatmul.msk.bf16.vlgmr.msra.gmra.mxu0 %vm22_vm0, %v135_v5 }
  0x8e   :  { %v79_v7 = vpop.f32.mrf.mxu0 }
  0x8f   :  { %v84_v8 = vadd.f32 %v79_v7, %v27_v6 }
  0x91   :  { %86 = vst.msk [vmem:[#allocation2] sm:$0xff] %vm22_vm0, %v84_v8 }
  0x96   :  { %v81_v12 = vpop.f32.mrf.mxu0 }
  0x97   :  { %v85_v14 = vadd.f32 %v81_v12, %v28_v10 }
  0x98   :  { %v91_v15 = vld [vmem:[#allocation2] sm:$0xff] }
  0x99   :  { %v97_v16 = vadd.f32 %v145_v11, %v91_v15  ;;  %87 = vst.msk [vmem:[#allocation2 + $0x8] sm:$0xff] %vm22_vm0, %v85_v14 }
  0x9b   :  { %v103_v17 = vadd.f32 %v142_v13, %v97_v16 }
  0x9d   :  { %v105_v18 = vpack.c.bf16 %v103_v17, %v103_v17 }
  0x9f   :  { %108 = vst.msk [vmem:[%s208_s4] sm:$0xf] %vm107_vm1, %v105_v18 }
  0xa0   :  { %v92_v20 = vld [vmem:[#allocation2 + $0x8] sm:$0xff] }
  0xa1   :  { %v98_v21 = vadd.f32 %v145_v11, %v92_v20 }
  0xa3   :  { %v104_v22 = vadd.f32 %v143_v19, %v98_v21 }
  0xa5   :  { %v106_v23 = vpack.c.bf16 %v104_v22, %v104_v22 }
  0xa7   :  { %109 = vst.msk [vmem:[%s208_s4 + $0x4] sm:$0xf] %vm107_vm1, %v106_v23 }

// kernel: beit_forward.52
= control target key start
LH: loop header
LB: loop body
LE: loop exit
PB: predicated region body
PF: predicated region fallthrough
CT: control target
= control target key end

     0   :  { %vm31_vm0 = vcmask 523264   ;;  %v232_v5 = vmov 64.0   ;;  %s295_s0 = inlined_call_operand.vmem [shape: bf16[16,64], index: 0, kind: input, shape index: {}]   ;;  %s296_s2 = inlined_call_operand.vmem [shape: f32[1,64], index: 2, kind: input, shape index: {}]   ;;  %s297_s3 = inlined_call_operand.vmem [shape: f32[1,64], index: 3, kind: input, shape index: {}]   ;;  %s298_s4 = inlined_call_operand.vmem [shape: f32[1,128], index: 4, kind: input, shape index: {}]   ;;  %s299_s1 = inlined_call_operand.vmem [shape: bf16[64,128], index: 1, kind: input, shape index: {}]   ;;  %s300_s5 = inlined_call_operand.vmem [shape: bf16[16,128], index: 5, kind: output, shape index: {}]  }
   0x1   :  { %v210_v0 = vld [vmem:[%s295_s0] sm:$0xff]   ;;  %222 = vrcp.f32 %v232_v5  ;;  %v208_v22 = vld [vmem:[%s299_s1 + $0x18] sm:$0xff]  ;;  %v207_v23 = vld [vmem:[%s299_s1 + $0x10] sm:$0xff] }
   0x2   :  { %v211_v1 = vunpack.c.l.bf16 %v210_v0  ;;  %v212_v3 = vunpack.c.h.bf16 %v210_v0  ;;  %137 = vmatpush.bf16.msra.mxu0 %v208_v22  ;;  %v206_v24 = vld [vmem:[%s299_s1 + $0x8] sm:$0xff]  ;;  %v205_v26 = vld [vmem:[%s299_s1] sm:$0xff] }
   0x3   :  { %v219_v45 = vld [vmem:[%s296_s2] ss:$0 sm:$0xff] }
   0x4   :  { %v32_v2 = vsel %vm31_vm0, %v211_v1, 0.0  ;;  %v35_v4 = vsel %vm31_vm0, %v212_v3, 0.0  ;;  %v220_v50 = vld [vmem:[%s297_s3] ss:$0 sm:$0xff] }
   0x5   :  { %33 = vadd.xlane.f32.xlu0 %v32_v2  ;;  %v221_v55 = vld [vmem:[%s298_s4] ss:$0 sm:$0xff] }
   0x6   :  { %138 = vmatpush.bf16.msra.mxu0 %v207_v23 }
   0x7   :  { %v223_v6 = vpop.eup %222 }
   0x8   :  { %v39_v7 = vmul.f32 64.0, %v223_v6  ;;  %vm43_vm1 = vweird.f32 %v223_v6 }
   0xa   :  { %v40_v8 = vsub.f32 1.0, %v39_v7  ;;  %139 = vmatpush.bf16.msra.mxu0 %v206_v24 }
   0xc   :  { %v41_v9 = vmul.f32 %v223_v6, %v40_v8 }
   0xd   :  { %36 = vadd.xlane.f32.xlu0 %v35_v4 }
   0xe   :  { %v42_v10 = vadd.f32 %v223_v6, %v41_v9  ;;  %140 = vmatpush.bf16.msra.mxu0 %v205_v26 }
  0x10   :  { %v44_v11 = vsel %vm43_vm1, %v223_v6, %v42_v10 }
  0x78   :  { %v34_v12 = vpop.xlane.xlu0 %33 }
  0x79   :  { %v45_v13 = vmul.f32 %v44_v11, %v34_v12 }
  0x7b   :  { %v47_v14 = vsub.f32 %v211_v1, %v45_v13 }
  0x7d   :  { %v49_v15 = vmul.f32 %v47_v14, %v47_v14 }
  0x7f   :  { %v51_v16 = vsel %vm31_vm0, %v49_v15, 0.0 }
  0x80   :  { %52 = vadd.xlane.f32.xlu1 %v51_v16  ;;  %v37_v17 = vpop.xlane.xlu0 %36 }
  0x81   :  { %v46_v18 = vmul.f32 %v44_v11, %v37_v17 }
  0x83   :  { %v48_v19 = vsub.f32 %v212_v3, %v46_v18 }
  0x85   :  { %v50_v20 = vmul.f32 %v48_v19, %v48_v19 }
  0x87   :  { %v54_v21 = vsel %vm31_vm0, %v50_v20, 0.0 }
  0x88   :  { %55 = vadd.xlane.f32.xlu1 %v54_v21 }
  0xf3   :  { %v53_v25 = vpop.xlane.xlu1 %52 }
  0xf4   :  { %v57_v27 = vmul.f32 %v53_v25, %v44_v11 }
  0xf6   :  { %v59_v28 = vadd.f32 1e-05, %v57_v27 }
  0xf8   :  { %224 = vrsqrt.f32 %v59_v28  ;;  %vm67_vm3 = vweird.f32 %v59_v28 }
  0xfb   :  { %v56_v29 = vpop.xlane.xlu1 %55 }
  0xfc   :  { %v58_v30 = vmul.f32 %v56_v29, %v44_v11 }
  0xfe   :  { %v225_v31 = vpop.eup %224  ;;  %v60_v32 = vadd.f32 1e-05, %v58_v30 }
  0xff   :  { %v62_v33 = vmul.f32 %v225_v31, %v59_v28  ;;  %vm68_vm2 = vweird.f32 %v225_v31 }
 0x100   :  { %226 = vrsqrt.f32 %v60_v32  ;;  %vm69_vm4 = vmor %vm67_vm3, %vm68_vm2  ;;  %vm77_vm6 = vweird.f32 %v60_v32 }
 0x101   :  { %v63_v34 = vmul.f32 %v225_v31, %v62_v33 }
 0x103   :  { %v64_v35 = vmul.f32 0.5, %v63_v34 }
 0x105   :  { %v65_v36 = vsub.f32 1.5, %v64_v35 }
 0x106   :  { %v227_v37 = vpop.eup %226 }
 0x107   :  { %v66_v38 = vmul.f32 %v225_v31, %v65_v36  ;;  %v72_v39 = vmul.f32 %v227_v37, %v60_v32  ;;  %vm78_vm5 = vweird.f32 %v227_v37 }
 0x108   :  { %vm79_vm7 = vmor %vm77_vm6, %vm78_vm5 }
 0x109   :  { %v73_v40 = vmul.f32 %v227_v37, %v72_v39  ;;  %v70_v41 = vsel %vm69_vm4, %v225_v31, %v66_v38 }
 0x10a   :  { %v81_v44 = vmul.f32 %v70_v41, %v47_v14 }
 0x10b   :  { %v74_v42 = vmul.f32 0.5, %v73_v40 }
 0x10c   :  { %v87_v49 = vmul.f32 %v219_v45, %v81_v44 }
 0x10d   :  { %v75_v43 = vsub.f32 1.5, %v74_v42 }
 0x10e   :  { %v93_v52 = vadd.f32 %v220_v50, %v87_v49 }
 0x10f   :  { %v76_v46 = vmul.f32 %v227_v37, %v75_v43 }
 0x111   :  { %v80_v47 = vsel %vm79_vm7, %v227_v37, %v76_v46 }
 0x112   :  { %v82_v48 = vmul.f32 %v80_v47, %v48_v19 }
 0x114   :  { %v88_v51 = vmul.f32 %v219_v45, %v82_v48 }
 0x116   :  { %v94_v53 = vadd.f32 %v220_v50, %v88_v51 }
 0x118   :  { %v97_v54 = vpack.c.bf16 %v94_v53, %v93_v52 }
 0x11a   :  { %204 = vmatmul.msk.bf16.vlgmr.msra.gmra.mxu0 %vm31_vm0, %v97_v54 }
 0x197   :  { %v142_v56 = vpop.f32.mrf.mxu0 }
 0x198   :  { %v160_v57 = vadd.f32 %v221_v55, %v142_v56 }
 0x19a   :  { %v162_v58 = vmul.f32 %v160_v57, %v160_v57 }
 0x19c   :  { %v164_v59 = vmul.f32 %v162_v58, %v160_v57 }
 0x19e   :  { %v166_v60 = vmul.f32 0.044715, %v164_v59 }
 0x19f   :  { %v144_v61 = vpop.f32.mrf.mxu0 }
 0x1a0   :  { %v168_v62 = vadd.f32 %v166_v60, %v160_v57  ;;  %v161_v63 = vadd.f32 %v221_v55, %v144_v61 }
 0x1a2   :  { %v170_v0 = vmul.f32 0.7978846, %v168_v62  ;;  %v163_v1 = vmul.f32 %v161_v63, %v161_v63 }
 0x1a4   :  { %v165_v2 = vmul.f32 %v163_v1, %v161_v63  ;;  %228 = vtanh.f32 %v170_v0 }
 0x1a6   :  { %v167_v3 = vmul.f32 0.044715, %v165_v2 }
 0x1a8   :  { %v169_v4 = vadd.f32 %v167_v3, %v161_v63 }
 0x1aa   :  { %v171_v5 = vmul.f32 0.7978846, %v169_v4  ;;  %v229_v6 = vpop.eup %228 }
 0x1ab   :  { %v174_v7 = vadd.f32 1.0, %v229_v6 }
 0x1ac   :  { %230 = vtanh.f32 %v171_v5 }
 0x1ad   :  { %v176_v9 = vmul.f32 0.5, %v174_v7 }
 0x1af   :  { %v178_v12 = vmul.f32 %v176_v9, %v160_v57 }
 0x1b2   :  { %v231_v8 = vpop.eup %230 }
 0x1b3   :  { %v175_v10 = vadd.f32 1.0, %v231_v8 }
 0x1b5   :  { %v177_v11 = vmul.f32 0.5, %v175_v10 }
 0x1b7   :  { %v179_v13 = vmul.f32 %v177_v11, %v161_v63 }
 0x1b9   :  { %v216_v14 = vpack.c.bf16 %v179_v13, %v178_v12 }
 0x1bb   :  { %217 = vst [vmem:[%s300_s5] sm:$0xff] %v216_v14  }

// kernel: beit_forward.50
= control target key start
LH: loop header
LB: loop body
LE: loop exit
PB: predicated region body
PF: predicated region fallthrough
CT: control target
= control target key end

     0   :  { %s666_s15 = smov 0   ;;  %s718_s0 = inlined_call_operand.vmem [shape: bf16[8,8,16], index: 0, kind: input, shape index: {}]   ;;  %s719_s1 = inlined_call_operand.vmem [shape: bf16[8,8,16], index: 1, kind: input, shape index: {}]   ;;  %s720_s2 = inlined_call_operand.vmem [shape: bf16[8,8,16], index: 2, kind: input, shape index: {}]   ;;  %s721_s3 = inlined_call_operand.vmem [shape: f32[2,1,8], index: 3, kind: input, shape index: {}]   ;;  %s722_s4 = inlined_call_operand.vmem [shape: bf16[8,8,16], index: 4, kind: output, shape index: {}]  }
   0x1 LB: > { %s585_s16 = sadd.s32 4294967295, %s639_s15   ;;  %p589_p0 = scmp.ge.s32.totalorder %s639_s15, 1  ;;  %s639_s15 = sphi %s666_s15, %s14_s15  }
   0x2   : > { %p193_p1 = scmp.lt.s32.totalorder %s639_s15, 3 }
   0x4   : > { %p194_p2 = pnand %p589_p0, %p193_p1 }
   0x5   : > { %s590_s17 = sshll.u32 (!%p194_p2), %s585_s16, 2  ;;  %p250_p4 = scmp.lt.s32.totalorder (!%p194_p2), %s585_s16, 1 }
   0x6   : > { %197 = sbr.rel (%p194_p2) target bundleno = 563 (0x233), region = 36  ;;  %p233_p3 = scmp.lt.s32.totalorder (!%p194_p2), %s590_s17, 7 }
   0xb   : > { %s724_s17 = smov (!%p233_p3, %s590_s17), 7  ;;  %vm268_vm0 = vcmask 130048   ;;  %s726_s16 = smov (!%p250_p4, %s585_s16), 1  ;;  %vm357_vm1 = vcmask 64512   ;;  %vm413_vm2 = vcmask 1043456   ;;  %vm491_vm3 = vcmask 125952  }
   0xc   : > { %s674_s18 = sshll.u32 %s724_s17, 2  ;;  %s252_s27 = scalar_lea.vmem %s721_s3, %s726_s16 }
   0xd   : > { %s242_s21 = scalar_lea.vmem %s719_s1, %s674_s18  ;;  %s236_s24 = scalar_lea.vmem %s718_s0, %s674_s18  ;;  %v616_v12 = vld [vmem:[%s252_s27] ss:$0 sm:$0xff] }
   0xe   : > { %v264_v0 = vld [vmem:[%s242_s21] sm:$0xf]  ;;  %v266_v1 = vld [vmem:[%s242_s21 + $0x8] sm:$0xf]  ;;  %v267_v2 = vld [vmem:[%s242_s21 + $0xc] sm:$0xf]  ;;  %s248_s30 = scalar_lea.vmem %s720_s2, %s674_s18  ;;  %s257_s7 = scalar_lea.vmem %s722_s4, %s674_s18 }
   0xf   : > { %v273_v3 = vsel %vm268_vm0, %v264_v0, 0  ;;  %v311_v4 = vsel %vm268_vm0, %v266_v1, 0  ;;  %v330_v5 = vsel %vm268_vm0, %v267_v2, 0  ;;  %v265_v6 = vld [vmem:[%s242_s21 + $0x4] sm:$0xf] }
  0x10   : > { %282 = vmatpush.bf16.xpose.msra.mxu0 %v273_v3  ;;  %320 = vmatpush.bf16.xpose.msra.mxu2 %v311_v4  ;;  %v292_v7 = vsel %vm268_vm0, %v265_v6, 0  ;;  %v260_v8 = vld [vmem:[%s236_s24] sm:$0xf]  ;;  %v262_v9 = vld [vmem:[%s236_s24 + $0x8] sm:$0xf] }
  0x11   : > { %339 = vmatpush.bf16.xpose.msra.mxu3 %v330_v5  ;;  %301 = vmatpush.bf16.xpose.msra.mxu1 %v292_v7  ;;  %v263_v10 = vld [vmem:[%s236_s24 + $0xc] sm:$0xf]  ;;  %v261_v11 = vld [vmem:[%s236_s24 + $0x4] sm:$0xf]  ;;  %v406_v53 = vld [vmem:[%s248_s30] sm:$0xf] }
  0x12   : > { %v415_v54 = vsel %vm413_vm2, %v406_v53, 0  ;;  %v408_v55 = vld [vmem:[%s248_s30 + $0x8] sm:$0xf]  ;;  %v407_v57 = vld [vmem:[%s248_s30 + $0x4] sm:$0xf] }
  0x13   : > { %v453_v56 = vsel %vm413_vm2, %v408_v55, 0  ;;  %v434_v58 = vsel %vm413_vm2, %v407_v57, 0  ;;  %v409_v59 = vld [vmem:[%s248_s30 + $0xc] sm:$0xf] }
  0x14   : > { %v472_v60 = vsel %vm413_vm2, %v409_v59, 0 }
  0x17   : > { %598 = vmatmul.msk.bf16.vlgmr.msra.gmra.mxu0 %vm268_vm0, %v260_v8  ;;  %600 = vmatmul.msk.bf16.vlgmr.msra.gmra.mxu2 %vm268_vm0, %v262_v9 }
  0x18   : > { %601 = vmatmul.msk.bf16.vlgmr.msra.gmra.mxu3 %vm268_vm0, %v263_v10  ;;  %599 = vmatmul.msk.bf16.vlgmr.msra.gmra.mxu1 %vm268_vm0, %v261_v11 }
  0x19   : > { %424 = vmatpush.bf16.msrb.mxu0 %v415_v54  ;;  %462 = vmatpush.bf16.msrb.mxu2 %v453_v56 }
  0x1a   : > { %443 = vmatpush.bf16.msrb.mxu1 %v434_v58  ;;  %481 = vmatpush.bf16.msrb.mxu3 %v472_v60 }
  0x94   : > { %v284_v13 = vpop.f32.mrf.mxu0 }
  0x95   : > { %v345_v14 = vmul.f32 0.25, %v284_v13  ;;  %v303_v15 = vpop.f32.mrf.mxu1 }
  0x96   : > { %v346_v17 = vmul.f32 0.25, %v303_v15 }
  0x97   : > { %v353_v16 = vadd.f32 %v616_v12, %v345_v14 }
  0x98   : > { %v354_v22 = vadd.f32 %v616_v12, %v346_v17 }
  0x99   : > { %v358_v18 = vsel %vm357_vm1, %v353_v16, -inf }
  0x9a   : > { %v322_v19 = vpop.f32.mrf.mxu2  ;;  %359 = vmax.xlane.f32.xlu1 %v358_v18  ;;  %v361_v28 = vsel %vm357_vm1, %v354_v22, -inf }
  0x9b   : > { %v347_v20 = vmul.f32 0.25, %v322_v19  ;;  %v341_v21 = vpop.f32.mrf.mxu3 }
  0x9c   : > { %v286_v23 = vpop.f32.mrf.mxu0  ;;  %v348_v24 = vmul.f32 0.25, %v341_v21 }
  0x9d   : > { %v355_v25 = vadd.f32 %v616_v12, %v347_v20  ;;  %v305_v26 = vpop.f32.mrf.mxu1 }
  0x9e   : > { %v356_v29 = vadd.f32 %v616_v12, %v348_v24 }
  0x9f   : > { %v364_v27 = vsel %vm357_vm1, %v355_v25, -inf }
  0xa0   : > { %365 = vmax.xlane.f32.xlu0 %v364_v27  ;;  %v367_v32 = vsel %vm357_vm1, %v356_v29, -inf }
  0xa2   : > { %v324_v30 = vpop.f32.mrf.mxu2  ;;  %362 = vmax.xlane.f32.xlu1 %v361_v28 }
  0xa3   : > { %v343_v31 = vpop.f32.mrf.mxu3 }
  0xa8   : > { %368 = vmax.xlane.f32.xlu0 %v367_v32 }
 0x10d   : > { %v360_v33 = vpop.xlane.xlu1 %359 }
 0x10e   : > { %v370_v34 = vsub.f32 %v353_v16, %v360_v33 }
 0x110   : > { %v374_v35 = vmul.f32 1.442695, %v370_v34 }
 0x112   : > { %617 = vpow2.f32 %v374_v35 }
 0x113   : > { %v366_v36 = vpop.xlane.xlu0 %365 }
 0x114   : > { %v372_v37 = vsub.f32 %v355_v25, %v366_v36 }
 0x115   : > { %v363_v38 = vpop.xlane.xlu1 %362 }
 0x116   : > { %v378_v39 = vmul.f32 1.442695, %v372_v37  ;;  %v371_v40 = vsub.f32 %v354_v22, %v363_v38 }
 0x118   : > { %v618_v41 = vpop.eup %617  ;;  %619 = vpow2.f32 %v378_v39  ;;  %v376_v42 = vmul.f32 1.442695, %v371_v40 }
 0x119   : > { %v382_v43 = vsel %vm357_vm1, %v618_v41, 0.0 }
 0x11a   : > { %621 = vpow2.f32 %v376_v42  ;;  %383 = vadd.xlane.f32.xlu0 %v382_v43 }
 0x11b   : > { %v369_v44 = vpop.xlane.xlu0 %368 }
 0x11c   : > { %v373_v45 = vsub.f32 %v356_v29, %v369_v44 }
 0x11e   : > { %v620_v46 = vpop.eup %619  ;;  %v380_v47 = vmul.f32 1.442695, %v373_v45 }
 0x11f   : > { %v388_v48 = vsel %vm357_vm1, %v620_v46, 0.0 }
 0x120   : > { %v622_v49 = vpop.eup %621  ;;  %623 = vpow2.f32 %v380_v47  ;;  %389 = vadd.xlane.f32.xlu2 %v388_v48 }
 0x121   : > { %v385_v50 = vsel %vm357_vm1, %v622_v49, 0.0 }
 0x122   : > { %386 = vadd.xlane.f32.xlu1 %v385_v50 }
 0x126   : > { %v624_v51 = vpop.eup %623 }
 0x127   : > { %v391_v52 = vsel %vm357_vm1, %v624_v51, 0.0 }
 0x128   : > { %392 = vadd.xlane.f32.xlu2 %v391_v52 }
 0x18d   : > { %v384_v61 = vpop.xlane.xlu0 %383 }
 0x18e   : > { %625 = vrcp.f32 %v384_v61 }
 0x193   : > { %v390_v62 = vpop.xlane.xlu2 %389 }
 0x194   : > { %v626_v63 = vpop.eup %625  ;;  %627 = vrcp.f32 %v390_v62 }
 0x195   : > { %v398_v0 = vmul.f32 %v626_v63, %v618_v41  ;;  %v387_v1 = vpop.xlane.xlu1 %386 }
 0x196   : > { %629 = vrcp.f32 %v387_v1 }
 0x197   : > { %v402_v2 = vpack.c.bf16 %v398_v0, %v398_v0 }
 0x199   : > { %602 = vmatmul.msk.bf16.vlgmr.msrb.gmra.mxu0 %vm357_vm1, %v402_v2 }
 0x19a   : > { %v628_v3 = vpop.eup %627 }
 0x19b   : > { %v400_v4 = vmul.f32 %v628_v3, %v620_v46  ;;  %v393_v5 = vpop.xlane.xlu2 %392 }
 0x19c   : > { %v630_v6 = vpop.eup %629  ;;  %631 = vrcp.f32 %v393_v5 }
 0x19d   : > { %v399_v7 = vmul.f32 %v630_v6, %v622_v49  ;;  %v404_v8 = vpack.c.bf16 %v400_v4, %v400_v4 }
 0x19f   : > { %v403_v9 = vpack.c.bf16 %v399_v7, %v399_v7  ;;  %604 = vmatmul.msk.bf16.vlgmr.msrb.gmra.mxu2 %vm357_vm1, %v404_v8 }
 0x1a1   : > { %603 = vmatmul.msk.bf16.vlgmr.msrb.gmra.mxu1 %vm357_vm1, %v403_v9 }
 0x1a2   : > { %v632_v10 = vpop.eup %631 }
 0x1a3   : > { %v401_v11 = vmul.f32 %v632_v10, %v624_v51 }
 0x1a5   : > { %v405_v12 = vpack.c.bf16 %v401_v11, %v401_v11 }
 0x1a7   : > { %605 = vmatmul.msk.bf16.vlgmr.msrb.gmra.mxu3 %vm357_vm1, %v405_v12 }
 0x216   : > { %v426_v13 = vpop.f32.mrf.mxu0 }
 0x217   : > { %v487_v14 = vpack.c.bf16 %v426_v13, %v426_v13 }
 0x219   : > { %492 = vst.msk [vmem:[%s257_s7] sm:$0xf] %vm491_vm3, %v487_v14 }
 0x21e   : > { %v428_v15 = vpop.f32.mrf.mxu0  ;;  %v445_v16 = vpop.f32.mrf.mxu1 }
 0x21f   : > { %v488_v17 = vpack.c.bf16 %v445_v16, %v445_v16 }
 0x221   : > { %493 = vst.msk [vmem:[%s257_s7 + $0x4] sm:$0xf] %vm491_vm3, %v488_v17 }
 0x222   : > { %v464_v18 = vpop.f32.mrf.mxu2 }
 0x223   : > { %v489_v19 = vpack.c.bf16 %v464_v18, %v464_v18 }
 0x225   : > { %494 = vst.msk [vmem:[%s257_s7 + $0x8] sm:$0xf] %vm491_vm3, %v489_v19 }
 0x226   : > { %v447_v20 = vpop.f32.mrf.mxu1 }
 0x22a   : > { %v466_v21 = vpop.f32.mrf.mxu2  ;;  %v483_v22 = vpop.f32.mrf.mxu3 }
 0x22b   : > { %v490_v23 = vpack.c.bf16 %v483_v22, %v483_v22 }
 0x22d   : > { %495 = vst.msk [vmem:[%s257_s7 + $0xc] sm:$0xf] %vm491_vm3, %v490_v23 }
 0x232   : > { %v485_v24 = vpop.f32.mrf.mxu3 }
 0x233 PF: > { %s14_s15 = sadd.s32 1, %s639_s15  }
 0x234   : > { %p11_p5 = scmp.ge.s32.totalorder %s14_s15, 4  }
 0x236   :  { %13 = sbr.rel (!%p11_p5) target bundleno = 1 (0x1), region = 75 }

// kernel: beit_forward.53
= control target key start
LH: loop header
LB: loop body
LE: loop exit
PB: predicated region body
PF: predicated region fallthrough
CT: control target
= control target key end

     0   :  { %vm21_vm0 = vcmask 523264   ;;  %v194_v2 = vmov 0.0   ;;  %vm136_vm1 = vcmask 519168   ;;  %s263_s1 = inlined_call_operand.vmem [shape: bf16[128,64], index: 1, kind: input, shape index: {}]   ;;  %s264_s2 = inlined_call_operand.vmem [shape: f32[1,64], index: 2, kind: input, shape index: {}]   ;;  %s265_s0 = inlined_call_operand.vmem [shape: bf16[16,128], index: 0, kind: input, shape index: {}]   ;;  %s266_s3 = inlined_call_operand.vmem [shape: bf16[16,64], index: 3, kind: input, shape index: {}]   ;;  %s267_s4 = inlined_call_operand.vmem [shape: bf16[16,64], index: 4, kind: output, shape index: {}]  }
   0x1   :  { %v187_v0 = vld [vmem:[%s263_s1 + $0x38] sm:$0xff]  ;;  %v186_v1 = vld [vmem:[%s263_s1 + $0x30] sm:$0xff]  ;;  %22 = vst.msk [vmem:[#allocation2] sm:$0xff] %vm21_vm0, %v194_v2  ;;  %v185_v3 = vld [vmem:[%s263_s1 + $0x28] sm:$0xff] }
   0x2   :  { %98 = vmatpush.bf16.msra.mxu0 %v187_v0  ;;  %23 = vst.msk [vmem:[#allocation2 + $0x8] sm:$0xff] %vm21_vm0, %v194_v2  ;;  %v184_v4 = vld [vmem:[%s263_s1 + $0x20] sm:$0xff]  ;;  %v183_v5 = vld [vmem:[%s263_s1 + $0x18] sm:$0xff]  ;;  %v182_v6 = vld [vmem:[%s263_s1 + $0x10] sm:$0xff] }
   0x3   :  { %v181_v7 = vld [vmem:[%s263_s1 + $0x8] sm:$0xff]  ;;  %v180_v8 = vld [vmem:[%s263_s1] sm:$0xff] }
   0x4   :  { %v179_v9 = vld [vmem:[%s265_s0] sm:$0xff] }
   0x5   :  { %v189_v13 = vld [vmem:[%s266_s3] sm:$0xff]  }
   0x6   :  { %99 = vmatpush.bf16.msra.mxu0 %v186_v1  ;;  %v193_v15 = vld [vmem:[%s264_s2] ss:$0 sm:$0xff]  ;;  %v190_v17 = vunpack.c.l.bf16 %v189_v13  ;;  %v191_v23 = vunpack.c.h.bf16 %v189_v13 }
   0x8   :  { %v26_v10 = vld [vmem:[#allocation2] sm:$0xff] }
   0x9   :  { %v27_v14 = vld [vmem:[#allocation2 + $0x8] sm:$0xff] }
   0xa   :  { %100 = vmatpush.bf16.msra.mxu0 %v185_v3 }
   0xe   :  { %101 = vmatpush.bf16.msra.mxu0 %v184_v4 }
  0x12   :  { %102 = vmatpush.bf16.msra.mxu0 %v183_v5 }
  0x16   :  { %103 = vmatpush.bf16.msra.mxu0 %v182_v6 }
  0x1a   :  { %104 = vmatpush.bf16.msra.mxu0 %v181_v7 }
  0x1e   :  { %105 = vmatpush.bf16.msra.mxu0 %v180_v8 }
  0x21   :  { %106 = vmatmul.bf16.vlgmr.msra.gmra.mxu0 %v179_v9 }
  0x9e   :  { %v107_v11 = vpop.f32.mrf.mxu0 }
  0x9f   :  { %v112_v12 = vadd.f32 %v107_v11, %v26_v10 }
  0xa1   :  { %115 = vst.msk [vmem:[#allocation2] sm:$0xff] %vm21_vm0, %v112_v12 }
  0xa6   :  { %v109_v16 = vpop.f32.mrf.mxu0 }
  0xa7   :  { %v113_v18 = vadd.f32 %v109_v16, %v27_v14 }
  0xa8   :  { %v120_v19 = vld [vmem:[#allocation2] sm:$0xff] }
  0xa9   :  { %v126_v20 = vadd.f32 %v193_v15, %v120_v19  ;;  %116 = vst.msk [vmem:[#allocation2 + $0x8] sm:$0xff] %vm21_vm0, %v113_v18 }
  0xab   :  { %v132_v21 = vadd.f32 %v190_v17, %v126_v20 }
  0xad   :  { %v134_v22 = vpack.c.bf16 %v132_v21, %v132_v21 }
  0xaf   :  { %137 = vst.msk [vmem:[%s267_s4] sm:$0xf] %vm136_vm1, %v134_v22 }
  0xb0   :  { %v121_v24 = vld [vmem:[#allocation2 + $0x8] sm:$0xff] }
  0xb1   :  { %v127_v25 = vadd.f32 %v193_v15, %v121_v24 }
  0xb3   :  { %v133_v26 = vadd.f32 %v191_v23, %v127_v25 }
  0xb5   :  { %v135_v27 = vpack.c.bf16 %v133_v26, %v133_v26 }
  0xb7   :  { %138 = vst.msk [vmem:[%s267_s4 + $0x4] sm:$0xf] %vm136_vm1, %v135_v27 }

// kernel: beit_forward.60
= control target key start
LH: loop header
LB: loop body
LE: loop exit
PB: predicated region body
PF: predicated region fallthrough
CT: control target
= control target key end

     0   :  { %vm22_vm0 = vcmask 517120   ;;  %v157_v3 = vmov 64.0   ;;  %v158_v20 = vmov 0.0   ;;  %vm100_vm5 = vcmask 523264   ;;  %s213_s0 = inlined_call_operand.vmem [shape: bf16[2,64], index: 0, kind: input, shape index: {}]   ;;  %s214_s2 = inlined_call_operand.vmem [shape: f32[1,64], index: 2, kind: input, shape index: {}]   ;;  %s215_s3 = inlined_call_operand.vmem [shape: f32[1,64], index: 3, kind: input, shape index: {}]   ;;  %s216_s1 = inlined_call_operand.vmem [shape: bf16[64,64], index: 1, kind: input, shape index: {}]   ;;  %s217_s4 = inlined_call_operand.vmem [shape: f32[2,64], index: 4, kind: output, shape index: {}]  }
   0x1   :  { %v24_v0 = vld [vmem:[%s213_s0] sm:$0x1]  ;;  %153 = vrcp.f32 %v157_v3  ;;  %v148_v15 = vld [vmem:[%s216_s1 + $0x18] sm:$0xff]  ;;  %v147_v16 = vld [vmem:[%s216_s1 + $0x10] sm:$0xff]  ;;  %23 = vst.msk [vmem:[#allocation2] sm:$0x3] %vm22_vm0, %v158_v20 }
   0x2   :  { %v25_v1 = vunpack.c.l.bf16 %v24_v0  ;;  %108 = vmatpush.bf16.msra.mxu0 %v148_v15  ;;  %v146_v17 = vld [vmem:[%s216_s1 + $0x8] sm:$0xff]  ;;  %v145_v18 = vld [vmem:[%s216_s1] sm:$0xff] }
   0x3   :  { %v151_v29 = vld [vmem:[%s214_s2] ss:$0 sm:$0xff] }
   0x4   :  { %v27_v2 = vsel %vm22_vm0, %v25_v1, 0.0  ;;  %v152_v32 = vld [vmem:[%s215_s3] ss:$0 sm:$0xff] }
   0x5   :  { %28 = vadd.xlane.f32.xlu0 %v27_v2 }
   0x6   :  { %109 = vmatpush.bf16.msra.mxu0 %v147_v16 }
   0x7   :  { %v154_v4 = vpop.eup %153 }
   0x8   :  { %v31_v5 = vmul.f32 64.0, %v154_v4  ;;  %vm35_vm1 = vweird.f32 %v154_v4  ;;  %v66_v36 = vld [vmem:[#allocation2] sm:$0x3] }
   0xa   :  { %v32_v6 = vsub.f32 1.0, %v31_v5  ;;  %110 = vmatpush.bf16.msra.mxu0 %v146_v17 }
   0xc   :  { %v33_v7 = vmul.f32 %v154_v4, %v32_v6 }
   0xe   :  { %v34_v8 = vadd.f32 %v154_v4, %v33_v7  ;;  %111 = vmatpush.bf16.msra.mxu0 %v145_v18 }
  0x10   :  { %v36_v9 = vsel %vm35_vm1, %v154_v4, %v34_v8 }
  0x78   :  { %v29_v10 = vpop.xlane.xlu0 %28 }
  0x79   :  { %v37_v11 = vmul.f32 %v36_v9, %v29_v10 }
  0x7b   :  { %v38_v12 = vsub.f32 %v25_v1, %v37_v11 }
  0x7d   :  { %v39_v13 = vmul.f32 %v38_v12, %v38_v12 }
  0x7f   :  { %v40_v14 = vsel %vm22_vm0, %v39_v13, 0.0 }
  0x80   :  { %41 = vadd.xlane.f32.xlu0 %v40_v14 }
  0xf3   :  { %v42_v19 = vpop.xlane.xlu0 %41 }
  0xf4   :  { %v43_v21 = vmul.f32 %v42_v19, %v36_v9 }
  0xf6   :  { %v44_v22 = vadd.f32 1e-05, %v43_v21 }
  0xf8   :  { %155 = vrsqrt.f32 %v44_v22  ;;  %vm51_vm3 = vweird.f32 %v44_v22 }
  0xfe   :  { %v156_v23 = vpop.eup %155 }
  0xff   :  { %v46_v24 = vmul.f32 %v156_v23, %v44_v22  ;;  %vm52_vm2 = vweird.f32 %v156_v23 }
 0x100   :  { %vm53_vm4 = vmor %vm51_vm3, %vm52_vm2 }
 0x101   :  { %v47_v25 = vmul.f32 %v156_v23, %v46_v24 }
 0x103   :  { %v48_v26 = vmul.f32 0.5, %v47_v25 }
 0x105   :  { %v49_v27 = vsub.f32 1.5, %v48_v26 }
 0x107   :  { %v50_v28 = vmul.f32 %v156_v23, %v49_v27 }
 0x109   :  { %v54_v30 = vsel %vm53_vm4, %v156_v23, %v50_v28 }
 0x10a   :  { %v55_v31 = vmul.f32 %v54_v30, %v38_v12 }
 0x10c   :  { %v60_v33 = vmul.f32 %v151_v29, %v55_v31 }
 0x10e   :  { %v65_v34 = vadd.f32 %v152_v32, %v60_v33 }
 0x110   :  { %v67_v35 = vpack.c.bf16 %v65_v34, %v65_v34 }
 0x112   :  { %144 = vmatmul.msk.bf16.vlgmr.msra.gmra.mxu0 %vm100_vm5, %v67_v35 }
 0x18f   :  { %v113_v37 = vpop.f32.mrf.mxu0 }
 0x190   :  { %v117_v38 = vadd.f32 %v113_v37, %v66_v36 }
 0x192   :  { %118 = vst.msk [vmem:[#allocation2] sm:$0x3] %vm22_vm0, %v117_v38 }
 0x197   :  { %v115_v39 = vpop.f32.mrf.mxu0 }
 0x199   :  { %v122_v40 = vld [vmem:[#allocation2] sm:$0x3] }
 0x19a   :  { %123 = vst.msk [vmem:[%s217_s4] sm:$0x3] %vm22_vm0, %v122_v40 }

// kernel: beit_forward.38
= control target key start
LH: loop header
LB: loop body
LE: loop exit
PB: predicated region body
PF: predicated region fallthrough
CT: control target
= control target key end

     0   :  { %vm19_vm0 = vcmask 523264   ;;  %v233_v1 = vmov 0.0   ;;  %vm164_vm1 = vcmask 519168   ;;  %s305_s1 = inlined_call_operand.vmem [shape: bf16[192,64], index: 1, kind: input, shape index: {}]   ;;  %s306_s0 = inlined_call_operand.vmem [shape: f32[8,192], index: 0, kind: input, shape index: {}]   ;;  %s307_s2 = inlined_call_operand.vmem [shape: f32[1,64], index: 2, kind: input, shape index: {}]   ;;  %s308_s3 = inlined_call_operand.vmem [shape: bf16[8,64], index: 3, kind: output, shape index: {}]  }
   0x1   :  { %v226_v0 = vld [vmem:[%s305_s1 + $0x38] sm:$0xff]  ;;  %20 = vst.msk [vmem:[#allocation2] sm:$0xff] %vm19_vm0, %v233_v1  ;;  %v225_v3 = vld [vmem:[%s305_s1 + $0x30] sm:$0xff]  ;;  %v224_v5 = vld [vmem:[%s305_s1 + $0x28] sm:$0xff] }
   0x2   :  { %v230_v2 = vld [vmem:[%s305_s1 + $0x58] sm:$0xff]  ;;  %126 = vmatpush.bf16.msra.mxu0 %v226_v0  ;;  %v229_v4 = vld [vmem:[%s305_s1 + $0x50] sm:$0xff]  ;;  %v228_v6 = vld [vmem:[%s305_s1 + $0x48] sm:$0xff] }
   0x3   :  { %143 = vmatpush.bf16.msra.mxu1 %v230_v2  ;;  %v223_v7 = vld [vmem:[%s305_s1 + $0x20] sm:$0xff]  ;;  %v22_v9 = vld [vmem:[%s306_s0 + $0x8] sm:$0xff]  ;;  %v222_v10 = vld [vmem:[%s305_s1 + $0x18] sm:$0xff] }
   0x4   :  { %v227_v8 = vld [vmem:[%s305_s1 + $0x40] sm:$0xff]  ;;  %v25_v11 = vpack.c.bf16 %v22_v9, %v22_v9  ;;  %v221_v12 = vld [vmem:[%s305_s1 + $0x10] sm:$0xff]  ;;  %v220_v13 = vld [vmem:[%s305_s1 + $0x8] sm:$0xff] }
   0x5   :  { %v219_v14 = vld [vmem:[%s305_s1] sm:$0xff] }
   0x6   :  { %127 = vmatpush.bf16.msra.mxu0 %v225_v3  ;;  %v21_v15 = vld [vmem:[%s306_s0] sm:$0xff] }
   0x7   :  { %144 = vmatpush.bf16.msra.mxu1 %v229_v4  ;;  %v24_v16 = vpack.c.bf16 %v21_v15, %v21_v15  ;;  %v232_v24 = vld [vmem:[%s307_s2] ss:$0 sm:$0xff] }
   0x8   :  { %v23_v19 = vld [vmem:[#allocation2] sm:$0xff] }
   0xa   :  { %128 = vmatpush.bf16.msra.mxu0 %v224_v5 }
   0xb   :  { %145 = vmatpush.bf16.msra.mxu1 %v228_v6 }
   0xe   :  { %129 = vmatpush.bf16.msra.mxu0 %v223_v7 }
   0xf   :  { %146 = vmatpush.bf16.msra.mxu1 %v227_v8 }
  0x12   :  { %130 = vmatpush.bf16.msra.mxu0 %v222_v10  ;;  %218 = vmatmul.msk.bf16.vlgmr.msra.gmra.mxu1 %vm19_vm0, %v25_v11 }
  0x16   :  { %131 = vmatpush.bf16.msra.mxu0 %v221_v12 }
  0x1a   :  { %132 = vmatpush.bf16.msra.mxu0 %v220_v13 }
  0x1e   :  { %133 = vmatpush.bf16.msra.mxu0 %v219_v14 }
  0x21   :  { %134 = vmatmul.bf16.vlgmr.msra.gmra.mxu0 %v24_v16 }
  0x8f   :  { %v148_v17 = vpop.f32.mrf.mxu1 }
  0x97   :  { %v150_v18 = vpop.f32.mrf.mxu1 }
  0x9e   :  { %v135_v20 = vpop.f32.mrf.mxu0 }
  0x9f   :  { %v149_v21 = vadd.f32 %v148_v17, %v135_v20 }
  0xa1   :  { %v152_v22 = vadd.f32 %v149_v21, %v23_v19 }
  0xa3   :  { %153 = vst.msk [vmem:[#allocation2] sm:$0xff] %vm19_vm0, %v152_v22 }
  0xa6   :  { %v137_v23 = vpop.f32.mrf.mxu0 }
  0xaa   :  { %v157_v25 = vld [vmem:[#allocation2] sm:$0xff] }
  0xab   :  { %v162_v26 = vadd.f32 %v232_v24, %v157_v25 }
  0xad   :  { %v163_v27 = vpack.c.bf16 %v162_v26, %v162_v26 }
  0xaf   :  { %165 = vst.msk [vmem:[%s308_s3] sm:$0xf] %vm164_vm1, %v163_v27 }

// kernel: beit_forward.39
= control target key start
LH: loop header
LB: loop body
LE: loop exit
PB: predicated region body
PF: predicated region fallthrough
CT: control target
= control target key end

     0   :  { %vm29_vm0 = vcmask 517120   ;;  %vm26_vm1 = vcmask 523264   ;;  %v275_v1 = vmov 0.0   ;;  %v276_v7 = vmov 64.0   ;;  %s396_s0 = inlined_call_operand.vmem [shape: bf16[10,64], index: 0, kind: input, shape index: {}]   ;;  %s397_s2 = inlined_call_operand.vmem [shape: f32[1,64], index: 2, kind: input, shape index: {}]   ;;  %s398_s3 = inlined_call_operand.vmem [shape: f32[1,64], index: 3, kind: input, shape index: {}]   ;;  %s399_s1 = inlined_call_operand.vmem [shape: bf16[64,192], index: 1, kind: input, shape index: {}]   ;;  %s400_s4 = inlined_call_operand.vmem [shape: f32[1,192], index: 4, kind: input, shape index: {}]   ;;  %s401_s5 = inlined_call_operand.vmem [shape: bf16[10,192], index: 5, kind: output, shape index: {}]  }
   0x1   :  { %v31_v0 = vld [vmem:[%s396_s0] sm:$0xf]  ;;  %30 = vst.msk [vmem:[#allocation2 + $0x18] sm:$0x3] %vm29_vm0, %v275_v1  ;;  %v32_v3 = vld [vmem:[%s396_s0 + $0x4] sm:$0x1]  ;;  %269 = vrcp.f32 %v276_v7 }
   0x2   :  { %v33_v2 = vunpack.c.l.bf16 %v31_v0  ;;  %27 = vst.msk [vmem:[#allocation2 + $0x8] sm:$0xff] %vm26_vm1, %v275_v1  ;;  %v34_v5 = vunpack.c.l.bf16 %v32_v3  ;;  %v249_v24 = vld [vmem:[%s399_s1 + $0x30] sm:$0xf]  ;;  %v264_v25 = vld [vmem:[%s399_s1 + $0x34] sm:$0xf0]  ;;  %vm211_vm9 = vcmask 1043456  }
   0x3   :  { %28 = vst [vmem:[#allocation2 + $0x10] sm:$0x3] %v275_v1  ;;  %v263_v26 = vld [vmem:[%s399_s1 + $0x34] sm:$0xf]  ;;  %v250_v27 = vor.u32 %v264_v25, %v249_v24  ;;  %v251_v28 = vld [vmem:[%s399_s1 + $0x38] sm:$0xf0] }
   0x4   :  { %v36_v4 = vsel %vm26_vm1, %v33_v2, 0.0  ;;  %v40_v6 = vsel %vm29_vm0, %v34_v5, 0.0  ;;  %v254_v29 = vor.u32 %v263_v26, %v251_v28  ;;  %v241_v30 = vld [vmem:[%s399_s1 + $0x20] sm:$0xf]  ;;  %v262_v31 = vld [vmem:[%s399_s1 + $0x24] sm:$0xf0] }
   0x5   :  { %37 = vadd.xlane.f32.xlu0 %v36_v4  ;;  %160 = vmatpush.bf16.msra.mxu0 %v250_v27  ;;  %v261_v32 = vld [vmem:[%s399_s1 + $0x24] sm:$0xf]  ;;  %v242_v33 = vor.u32 %v262_v31, %v241_v30  ;;  %v243_v34 = vld [vmem:[%s399_s1 + $0x28] sm:$0xf0]  ;;  %v233_v36 = vld [vmem:[%s399_s1 + $0x10] sm:$0xf] }
   0x6   :  { %174 = vmatpush.bf16.msra.mxu1 %v254_v29  ;;  %v246_v35 = vor.u32 %v261_v32, %v243_v34  ;;  %v260_v37 = vld [vmem:[%s399_s1 + $0x14] sm:$0xf0]  ;;  %v259_v38 = vld [vmem:[%s399_s1 + $0x14] sm:$0xf]  ;;  %v235_v40 = vld [vmem:[%s399_s1 + $0x18] sm:$0xf0] }
   0x7   :  { %v270_v8 = vpop.eup %269  ;;  %v234_v39 = vor.u32 %v260_v37, %v233_v36  ;;  %v238_v41 = vor.u32 %v259_v38, %v235_v40  ;;  %v225_v42 = vld [vmem:[%s399_s1] sm:$0xf]  ;;  %v258_v43 = vld [vmem:[%s399_s1 + $0x4] sm:$0xf0]  ;;  %v257_v44 = vld [vmem:[%s399_s1 + $0x4] sm:$0xf] }
   0x8   :  { %v44_v9 = vmul.f32 64.0, %v270_v8  ;;  %vm48_vm2 = vweird.f32 %v270_v8  ;;  %v226_v46 = vor.u32 %v258_v43, %v225_v42  ;;  %v227_v47 = vld [vmem:[%s399_s1 + $0x8] sm:$0xf0]  ;;  %v267_v3 = vld [vmem:[%s397_s2] ss:$0 sm:$0xff]  ;;  %vm212_vm10 = vcmask 523268  }
   0x9   :  { %161 = vmatpush.bf16.msra.mxu0 %v242_v33  ;;  %v230_v49 = vor.u32 %v257_v44, %v227_v47  ;;  %vm213_vm11 = vmor %vm212_vm10, %vm211_vm9  ;;  %vm215_vm12 = vcmask 1040384   ;;  %vm216_vm13 = vcmask 520196  }
   0xa   :  { %v45_v10 = vsub.f32 1.0, %v44_v9  ;;  %175 = vmatpush.bf16.msra.mxu1 %v246_v35  ;;  %vm217_vm14 = vmor %vm216_vm13, %vm215_vm12 }
   0xc   :  { %v46_v11 = vmul.f32 %v270_v8, %v45_v10 }
   0xd   :  { %41 = vadd.xlane.f32.xlu0 %v40_v6  ;;  %162 = vmatpush.bf16.msra.mxu0 %v234_v39 }
   0xe   :  { %v47_v12 = vadd.f32 %v270_v8, %v46_v11  ;;  %176 = vmatpush.bf16.msra.mxu1 %v238_v41 }
  0x10   :  { %v49_v13 = vsel %vm48_vm2, %v270_v8, %v47_v12  ;;  %v268_v8 = vld [vmem:[%s398_s3] ss:$0 sm:$0xff] }
  0x11   :  { %163 = vmatpush.bf16.msra.mxu0 %v226_v46 }
  0x12   :  { %177 = vmatpush.bf16.msra.mxu1 %v230_v49 }
  0x78   :  { %v38_v14 = vpop.xlane.xlu0 %37 }
  0x79   :  { %v50_v15 = vmul.f32 %v49_v13, %v38_v14 }
  0x7b   :  { %v317_v16 = vsub.f32 %v33_v2, %v50_v15 }
  0x7d   :  { %v54_v17 = vmul.f32 %v317_v16, %v317_v16 }
  0x7f   :  { %v56_v18 = vsel %vm26_vm1, %v54_v17, 0.0  ;;  %v199_v17 = vld [vmem:[%s400_s4] sm:$0x3] }
  0x80   :  { %57 = vadd.xlane.f32.xlu1 %v56_v18  ;;  %v42_v19 = vpop.xlane.xlu0 %41  ;;  %v102_v18 = vld [vmem:[#allocation2 + $0x10] sm:$0x3] }
  0x81   :  { %v51_v20 = vmul.f32 %v49_v13, %v42_v19  ;;  %v103_v19 = vld [vmem:[#allocation2 + $0x18] sm:$0x3] }
  0x83   :  { %v322_v21 = vsub.f32 %v34_v5, %v51_v20  ;;  %v201_v20 = vperm.slane %v199_v17, 0 }
  0x85   :  { %v55_v22 = vmul.f32 %v322_v21, %v322_v21 }
  0x87   :  { %v59_v23 = vsel %vm29_vm0, %v55_v22, 0.0 }
  0x88   :  { %60 = vadd.xlane.f32.xlu1 %v59_v23 }
  0xf3   :  { %v58_v45 = vpop.xlane.xlu1 %57 }
  0xf4   :  { %v62_v48 = vmul.f32 %v58_v45, %v49_v13 }
  0xf6   :  { %v64_v50 = vadd.f32 1e-05, %v62_v48 }
  0xf8   :  { %271 = vrsqrt.f32 %v64_v50  ;;  %vm72_vm4 = vweird.f32 %v64_v50 }
  0xfb   :  { %v61_v51 = vpop.xlane.xlu1 %60 }
  0xfc   :  { %v63_v52 = vmul.f32 %v61_v51, %v49_v13  ;;  %v101_v13 = vld [vmem:[#allocation2 + $0x8] sm:$0xff] }
  0xfe   :  { %v272_v53 = vpop.eup %271  ;;  %v65_v54 = vadd.f32 1e-05, %v63_v52 }
  0xff   :  { %v67_v55 = vmul.f32 %v272_v53, %v64_v50  ;;  %vm73_vm3 = vweird.f32 %v272_v53 }
 0x100   :  { %273 = vrsqrt.f32 %v65_v54  ;;  %vm74_vm5 = vmor %vm72_vm4, %vm73_vm3  ;;  %vm82_vm7 = vweird.f32 %v65_v54 }
 0x101   :  { %v68_v56 = vmul.f32 %v272_v53, %v67_v55 }
 0x103   :  { %v69_v57 = vmul.f32 0.5, %v68_v56 }
 0x105   :  { %v70_v58 = vsub.f32 1.5, %v69_v57 }
 0x106   :  { %v274_v59 = vpop.eup %273 }
 0x107   :  { %v71_v60 = vmul.f32 %v272_v53, %v70_v58  ;;  %v77_v61 = vmul.f32 %v274_v59, %v65_v54  ;;  %vm83_vm6 = vweird.f32 %v274_v59 }
 0x108   :  { %vm84_vm8 = vmor %vm82_vm7, %vm83_vm6 }
 0x109   :  { %v78_v62 = vmul.f32 %v274_v59, %v77_v61  ;;  %v75_v63 = vsel %vm74_vm5, %v272_v53, %v71_v60 }
 0x10a   :  { %v86_v2 = vmul.f32 %v75_v63, %v317_v16 }
 0x10b   :  { %v79_v0 = vmul.f32 0.5, %v78_v62 }
 0x10c   :  { %v92_v7 = vmul.f32 %v267_v3, %v86_v2 }
 0x10d   :  { %v80_v1 = vsub.f32 1.5, %v79_v0 }
 0x10e   :  { %v98_v10 = vadd.f32 %v268_v8, %v92_v7 }
 0x10f   :  { %v81_v4 = vmul.f32 %v274_v59, %v80_v1 }
 0x111   :  { %v85_v5 = vsel %vm84_vm8, %v274_v59, %v81_v4 }
 0x112   :  { %v87_v6 = vmul.f32 %v85_v5, %v322_v21  ;;  %v202_v21 = vperm.slane %v199_v17, 1 }
 0x114   :  { %v93_v9 = vmul.f32 %v267_v3, %v87_v6 }
 0x116   :  { %v99_v11 = vadd.f32 %v268_v8, %v93_v9 }
 0x118   :  { %v104_v12 = vpack.c.bf16 %v99_v11, %v98_v10 }
 0x11a   :  { %255 = vmatmul.msk.bf16.vlgmr.msra.gmra.mxu0 %vm26_vm1, %v104_v12  ;;  %256 = vmatmul.msk.bf16.vlgmr.msra.gmra.mxu1 %vm26_vm1, %v104_v12 }
 0x197   :  { %v165_v14 = vpop.f32.mrf.mxu0  ;;  %v179_v15 = vpop.f32.mrf.mxu1 }
 0x198   :  { %v185_v16 = vadd.f32 %v179_v15, %v101_v13  ;;  %v205_v27 = vadd.f32 %v201_v20, %v165_v14 }
 0x19a   :  { %189 = vst.msk [vmem:[#allocation2 + $0x8] sm:$0xff] %vm26_vm1, %v185_v16 }
 0x19f   :  { %v167_v22 = vpop.f32.mrf.mxu0  ;;  %v181_v23 = vpop.f32.mrf.mxu1 }
 0x1a0   :  { %v186_v24 = vadd.f32 %v167_v22, %v102_v18  ;;  %v187_v25 = vadd.f32 %v181_v23, %v103_v19 }
 0x1a1   :  { %v196_v26 = vld [vmem:[#allocation2 + $0x8] sm:$0xff] }
 0x1a2   :  { %190 = vst [vmem:[#allocation2 + $0x10] sm:$0x3] %v186_v24  ;;  %v206_v28 = vadd.f32 %v202_v21, %v196_v26 }
 0x1a3   :  { %191 = vst.msk [vmem:[#allocation2 + $0x18] sm:$0x3] %vm29_vm0, %v187_v25 }
 0x1a4   :  { %v209_v29 = vpack.c.bf16 %v206_v28, %v205_v27 }
 0x1a6   :  { %214 = vst.msk [vmem:[%s401_s5] sm:$0xff] %vm213_vm11, %v209_v29 }
 0x1a9   :  { %v197_v30 = vld [vmem:[#allocation2 + $0x10] sm:$0x3] }
 0x1aa   :  { %v207_v31 = vadd.f32 %v201_v20, %v197_v30  ;;  %v198_v32 = vld [vmem:[#allocation2 + $0x18] sm:$0x3] }
 0x1ab   :  { %v208_v33 = vadd.f32 %v202_v21, %v198_v32 }
 0x1ad   :  { %v210_v34 = vpack.c.bf16 %v208_v33, %v207_v31 }
 0x1af   :  { %218 = vst.msk [vmem:[%s401_s5 + $0x8] sm:$0x11] %vm217_vm14, %v210_v34 }

// kernel: beit_forward.40
= control target key start
LH: loop header
LB: loop body
LE: loop exit
PB: predicated region body
PF: predicated region fallthrough
CT: control target
= control target key end

     0   :  { %s682_s15 = smov 0   ;;  %s752_s0 = inlined_call_operand.vmem [shape: bf16[8,5,16], index: 0, kind: input, shape index: {}]   ;;  %s753_s1 = inlined_call_operand.vmem [shape: bf16[8,5,16], index: 1, kind: input, shape index: {}]   ;;  %s754_s2 = inlined_call_operand.vmem [shape: bf16[8,5,16], index: 2, kind: input, shape index: {}]   ;;  %s755_s3 = inlined_call_operand.vmem [shape: f32[2,1,5], index: 3, kind: input, shape index: {}]   ;;  %s756_s4 = inlined_call_operand.vmem [shape: bf16[8,5,16], index: 4, kind: output, shape index: {}]  }
   0x1 LB: > { %s599_s16 = sadd.s32 4294967295, %s654_s15   ;;  %p603_p0 = scmp.ge.s32.totalorder %s654_s15, 1  ;;  %s654_s15 = sphi %s682_s15, %s14_s15  }
   0x2   : > { %p193_p1 = scmp.lt.s32.totalorder %s654_s15, 3 }
   0x4   : > { %p194_p2 = pnand %p603_p0, %p193_p1 }
   0x5   : > { %s604_s17 = sshll.u32 (!%p194_p2), %s599_s16, 2  ;;  %p250_p4 = scmp.lt.s32.totalorder (!%p194_p2), %s599_s16, 1 }
   0x6   : > { %197 = sbr.rel (%p194_p2) target bundleno = 563 (0x233), region = 36  ;;  %p233_p3 = scmp.lt.s32.totalorder (!%p194_p2), %s604_s17, 7 }
   0xb   : > { %s760_s17 = smov (!%p233_p3, %s604_s17), 7  ;;  %vm268_vm0 = vcmask 130048   ;;  %s762_s16 = smov (!%p250_p4, %s599_s16), 1  ;;  %vm357_vm1 = vcmask 36864   ;;  %vm414_vm2 = vcmask 1041408   ;;  %vm415_vm3 = vcmask 1042432  }
   0xc   : > { %s690_s18 = sshll.u32 %s760_s17, 2  ;;  %s252_s27 = scalar_lea.vmem %s755_s3, %s762_s16  ;;  %v656_v34 = vmov 65535   ;;  %vm410_vm4 = vcmask 39936   ;;  %vm495_vm5 = vcmask 124928   ;;  %vm496_vm6 = vsmask.f32 2304 }
   0xd   : > { %s242_s21 = scalar_lea.vmem %s753_s1, %s690_s18  ;;  %s236_s24 = scalar_lea.vmem %s752_s0, %s690_s18  ;;  %v631_v12 = vld [vmem:[%s252_s27] ss:$0 sm:$0xff]  ;;  %v416_v35 = vsel %vm414_vm2, 4294967295, %v656_v34  ;;  %vm737_vm7 = vmand %vm495_vm5, %vm496_vm6 }
   0xe   : > { %v264_v0 = vld [vmem:[%s242_s21] sm:$0x7]  ;;  %v266_v1 = vld [vmem:[%s242_s21 + $0x8] sm:$0x7]  ;;  %v265_v2 = vld [vmem:[%s242_s21 + $0x4] sm:$0x7]  ;;  %s719_s30 = scalar_lea.vmem %s754_s2, %s690_s18  ;;  %s257_s7 = scalar_lea.vmem %s756_s4, %s690_s18 }
   0xf   : > { %v273_v3 = vsel %vm268_vm0, %v264_v0, 0  ;;  %v311_v4 = vsel %vm268_vm0, %v266_v1, 0  ;;  %v292_v5 = vsel %vm268_vm0, %v265_v2, 0  ;;  %v267_v6 = vld [vmem:[%s242_s21 + $0xc] sm:$0x7]  ;;  %v417_v36 = vsel %vm415_vm3, %v416_v35, 0 }
  0x10   : > { %282 = vmatpush.bf16.xpose.msra.mxu0 %v273_v3  ;;  %320 = vmatpush.bf16.xpose.msra.mxu2 %v311_v4  ;;  %v330_v7 = vsel %vm268_vm0, %v267_v6, 0  ;;  %v260_v8 = vld [vmem:[%s236_s24] sm:$0x7]  ;;  %v262_v9 = vld [vmem:[%s236_s24 + $0x8] sm:$0x7] }
  0x11   : > { %301 = vmatpush.bf16.xpose.msra.mxu1 %v292_v5  ;;  %339 = vmatpush.bf16.xpose.msra.mxu3 %v330_v7  ;;  %v261_v10 = vld [vmem:[%s236_s24 + $0x4] sm:$0x7]  ;;  %v263_v11 = vld [vmem:[%s236_s24 + $0xc] sm:$0x7]  ;;  %v406_v33 = vld [vmem:[%s719_s30] sm:$0x7] }
  0x12   : > { %v419_v37 = vand.u32 %v417_v36, %v406_v33  ;;  %v407_v58 = vld [vmem:[%s719_s30 + $0x4] sm:$0x7]  ;;  %v408_v60 = vld [vmem:[%s719_s30 + $0x8] sm:$0x7]  ;;  %v409_v62 = vld [vmem:[%s719_s30 + $0xc] sm:$0x7] }
  0x13   : > { %v438_v59 = vand.u32 %v417_v36, %v407_v58  ;;  %v457_v61 = vand.u32 %v417_v36, %v408_v60  ;;  %v476_v63 = vand.u32 %v417_v36, %v409_v62  ;;  %v507_v35 = vld [vmem:[%s257_s7 + $0xc] sm:$0x7] }
  0x17   : > { %612 = vmatmul.msk.bf16.vlgmr.msra.gmra.mxu0 %vm268_vm0, %v260_v8  ;;  %614 = vmatmul.msk.bf16.vlgmr.msra.gmra.mxu2 %vm268_vm0, %v262_v9 }
  0x18   : > { %613 = vmatmul.msk.bf16.vlgmr.msra.gmra.mxu1 %vm268_vm0, %v261_v10  ;;  %615 = vmatmul.msk.bf16.vlgmr.msra.gmra.mxu3 %vm268_vm0, %v263_v11 }
  0x19   : > { %428 = vmatpush.bf16.msrb.mxu0 %v419_v37  ;;  %447 = vmatpush.bf16.msrb.mxu1 %v438_v59 }
  0x1a   : > { %466 = vmatpush.bf16.msrb.mxu2 %v457_v61  ;;  %485 = vmatpush.bf16.msrb.mxu3 %v476_v63 }
  0x94   : > { %v284_v13 = vpop.f32.mrf.mxu0 }
  0x95   : > { %v345_v14 = vmul.f32 0.25, %v284_v13  ;;  %v303_v15 = vpop.f32.mrf.mxu1 }
  0x96   : > { %v346_v16 = vmul.f32 0.25, %v303_v15 }
  0x97   : > { %v353_v17 = vadd.f32 %v631_v12, %v345_v14 }
  0x98   : > { %v354_v22 = vadd.f32 %v631_v12, %v346_v16 }
  0x99   : > { %v358_v18 = vsel %vm357_vm1, %v353_v17, -inf }
  0x9a   : > { %v322_v19 = vpop.f32.mrf.mxu2  ;;  %359 = vmax.xlane.f32.xlu0 %v358_v18  ;;  %v361_v28 = vsel %vm357_vm1, %v354_v22, -inf  ;;  %v498_v18 = vld [vmem:[%s257_s7] sm:$0x7] }
  0x9b   : > { %v347_v20 = vmul.f32 0.25, %v322_v19  ;;  %v341_v21 = vpop.f32.mrf.mxu3 }
  0x9c   : > { %v286_v23 = vpop.f32.mrf.mxu0  ;;  %v348_v25 = vmul.f32 0.25, %v341_v21 }
  0x9d   : > { %v305_v24 = vpop.f32.mrf.mxu1  ;;  %v355_v26 = vadd.f32 %v631_v12, %v347_v20 }
  0x9e   : > { %v356_v29 = vadd.f32 %v631_v12, %v348_v25  ;;  %v501_v24 = vld [vmem:[%s257_s7 + $0x4] sm:$0x7] }
  0x9f   : > { %v364_v27 = vsel %vm357_vm1, %v355_v26, -inf }
  0xa0   : > { %365 = vmax.xlane.f32.xlu1 %v364_v27  ;;  %v367_v32 = vsel %vm357_vm1, %v356_v29, -inf }
  0xa2   : > { %v324_v30 = vpop.f32.mrf.mxu2  ;;  %362 = vmax.xlane.f32.xlu0 %v361_v28 }
  0xa3   : > { %v343_v31 = vpop.f32.mrf.mxu3 }
  0xa8   : > { %368 = vmax.xlane.f32.xlu1 %v367_v32 }
 0x10d   : > { %v360_v38 = vpop.xlane.xlu0 %359 }
 0x10e   : > { %v370_v39 = vsub.f32 %v353_v17, %v360_v38 }
 0x110   : > { %v374_v40 = vmul.f32 1.442695, %v370_v39 }
 0x112   : > { %632 = vpow2.f32 %v374_v40 }
 0x113   : > { %v366_v41 = vpop.xlane.xlu1 %365 }
 0x114   : > { %v372_v42 = vsub.f32 %v355_v26, %v366_v41 }
 0x115   : > { %v363_v43 = vpop.xlane.xlu0 %362 }
 0x116   : > { %v378_v44 = vmul.f32 1.442695, %v372_v42  ;;  %v371_v45 = vsub.f32 %v354_v22, %v363_v43 }
 0x118   : > { %v633_v46 = vpop.eup %632  ;;  %634 = vpow2.f32 %v378_v44  ;;  %v376_v47 = vmul.f32 1.442695, %v371_v45 }
 0x119   : > { %v382_v48 = vsel %vm357_vm1, %v633_v46, 0.0 }
 0x11a   : > { %636 = vpow2.f32 %v376_v47  ;;  %383 = vadd.xlane.f32.xlu2 %v382_v48 }
 0x11b   : > { %v369_v49 = vpop.xlane.xlu1 %368 }
 0x11c   : > { %v373_v50 = vsub.f32 %v356_v29, %v369_v49  ;;  %v504_v29 = vld [vmem:[%s257_s7 + $0x8] sm:$0x7] }
 0x11e   : > { %v635_v51 = vpop.eup %634  ;;  %v380_v52 = vmul.f32 1.442695, %v373_v50 }
 0x11f   : > { %v388_v53 = vsel %vm357_vm1, %v635_v51, 0.0 }
 0x120   : > { %v637_v54 = vpop.eup %636  ;;  %638 = vpow2.f32 %v380_v52  ;;  %389 = vadd.xlane.f32.xlu0 %v388_v53 }
 0x121   : > { %v385_v55 = vsel %vm357_vm1, %v637_v54, 0.0 }
 0x122   : > { %386 = vadd.xlane.f32.xlu2 %v385_v55 }
 0x126   : > { %v639_v56 = vpop.eup %638 }
 0x127   : > { %v391_v57 = vsel %vm357_vm1, %v639_v56, 0.0 }
 0x128   : > { %392 = vadd.xlane.f32.xlu1 %v391_v57 }
 0x18d   : > { %v384_v0 = vpop.xlane.xlu2 %383 }
 0x18e   : > { %640 = vrcp.f32 %v384_v0 }
 0x193   : > { %v390_v1 = vpop.xlane.xlu0 %389 }
 0x194   : > { %v641_v2 = vpop.eup %640  ;;  %642 = vrcp.f32 %v390_v1 }
 0x195   : > { %v398_v3 = vmul.f32 %v641_v2, %v633_v46  ;;  %v387_v4 = vpop.xlane.xlu2 %386 }
 0x196   : > { %644 = vrcp.f32 %v387_v4 }
 0x197   : > { %v402_v5 = vpack.c.bf16 %v398_v3, %v398_v3 }
 0x199   : > { %616 = vmatmul.msk.bf16.vlgmr.msrb.gmra.mxu0 %vm410_vm4, %v402_v5 }
 0x19a   : > { %v643_v6 = vpop.eup %642 }
 0x19b   : > { %v400_v7 = vmul.f32 %v643_v6, %v635_v51  ;;  %v393_v8 = vpop.xlane.xlu1 %392 }
 0x19c   : > { %v645_v9 = vpop.eup %644  ;;  %646 = vrcp.f32 %v393_v8 }
 0x19d   : > { %v404_v10 = vpack.c.bf16 %v400_v7, %v400_v7  ;;  %v399_v11 = vmul.f32 %v645_v9, %v637_v54 }
 0x19f   : > { %v403_v12 = vpack.c.bf16 %v399_v11, %v399_v11  ;;  %618 = vmatmul.msk.bf16.vlgmr.msrb.gmra.mxu2 %vm410_vm4, %v404_v10 }
 0x1a1   : > { %617 = vmatmul.msk.bf16.vlgmr.msrb.gmra.mxu1 %vm410_vm4, %v403_v12 }
 0x1a2   : > { %v647_v13 = vpop.eup %646 }
 0x1a3   : > { %v401_v14 = vmul.f32 %v647_v13, %v639_v56 }
 0x1a5   : > { %v405_v15 = vpack.c.bf16 %v401_v14, %v401_v14 }
 0x1a7   : > { %619 = vmatmul.msk.bf16.vlgmr.msrb.gmra.mxu3 %vm410_vm4, %v405_v15 }
 0x216   : > { %v430_v16 = vpop.f32.mrf.mxu0 }
 0x217   : > { %v491_v19 = vpack.c.bf16 %v430_v16, %v430_v16 }
 0x219   : > { %v499_v20 = vsel %vm737_vm7, %v491_v19, %v498_v18 }
 0x21a   : > { %500 = vst [vmem:[%s257_s7] sm:$0x7] %v499_v20 }
 0x21e   : > { %v432_v21 = vpop.f32.mrf.mxu0  ;;  %v449_v22 = vpop.f32.mrf.mxu1 }
 0x21f   : > { %v492_v23 = vpack.c.bf16 %v449_v22, %v449_v22 }
 0x221   : > { %v502_v25 = vsel %vm737_vm7, %v492_v23, %v501_v24 }
 0x222   : > { %v468_v26 = vpop.f32.mrf.mxu2  ;;  %503 = vst [vmem:[%s257_s7 + $0x4] sm:$0x7] %v502_v25 }
 0x223   : > { %v493_v28 = vpack.c.bf16 %v468_v26, %v468_v26 }
 0x225   : > { %v505_v32 = vsel %vm737_vm7, %v493_v28, %v504_v29 }
 0x226   : > { %v451_v27 = vpop.f32.mrf.mxu1  ;;  %506 = vst [vmem:[%s257_s7 + $0x8] sm:$0x7] %v505_v32 }
 0x22a   : > { %v470_v30 = vpop.f32.mrf.mxu2  ;;  %v487_v31 = vpop.f32.mrf.mxu3 }
 0x22b   : > { %v494_v33 = vpack.c.bf16 %v487_v31, %v487_v31 }
 0x22d   : > { %v508_v36 = vsel %vm737_vm7, %v494_v33, %v507_v35 }
 0x22e   : > { %509 = vst [vmem:[%s257_s7 + $0xc] sm:$0x7] %v508_v36 }
 0x232   : > { %v489_v34 = vpop.f32.mrf.mxu3 }
 0x233 PF: > { %s14_s15 = sadd.s32 1, %s654_s15  }
 0x234   : > { %p11_p5 = scmp.ge.s32.totalorder %s14_s15, 4  }
 0x236   :  { %13 = sbr.rel (!%p11_p5) target bundleno = 1 (0x1), region = 75 }

// kernel: beit_forward.41
= control target key start
LH: loop header
LB: loop body
LE: loop exit
PB: predicated region body
PF: predicated region fallthrough
CT: control target
= control target key end

     0   :  { %vm22_vm0 = vcmask 523264   ;;  %vm24_vm1 = vcmask 517120   ;;  %v145_v1 = vmov 0.0   ;;  %vm109_vm2 = vcmask 519168   ;;  %s209_s1 = inlined_call_operand.vmem [shape: bf16[64,64], index: 1, kind: input, shape index: {}]   ;;  %s210_s2 = inlined_call_operand.vmem [shape: f32[1,64], index: 2, kind: input, shape index: {}]   ;;  %s211_s0 = inlined_call_operand.vmem [shape: bf16[10,64], index: 0, kind: input, shape index: {}]   ;;  %s212_s3 = inlined_call_operand.vmem [shape: bf16[10,64], index: 3, kind: input, shape index: {}]   ;;  %s213_s4 = inlined_call_operand.vmem [shape: bf16[10,64], index: 4, kind: output, shape index: {}]  }
   0x1   :  { %v142_v0 = vld [vmem:[%s209_s1 + $0x18] sm:$0xff]  ;;  %23 = vst.msk [vmem:[#allocation2] sm:$0xff] %vm22_vm0, %v145_v1  ;;  %v141_v2 = vld [vmem:[%s209_s1 + $0x10] sm:$0xff]  ;;  %v140_v3 = vld [vmem:[%s209_s1 + $0x8] sm:$0xff]  ;;  %vm111_vm3 = vcmask 516096  }
   0x2   :  { %25 = vst.msk [vmem:[#allocation2 + $0x8] sm:$0x3] %vm24_vm1, %v145_v1  ;;  %75 = vmatpush.bf16.msra.mxu0 %v142_v0  ;;  %v139_v4 = vld [vmem:[%s209_s1] sm:$0xff] }
   0x3   :  { %v119_v5 = vld [vmem:[%s211_s0] sm:$0xf]  ;;  %v138_v6 = vld [vmem:[%s211_s0] sm:$0x10] }
   0x4   :  { %v120_v7 = vor.u32 %v138_v6, %v119_v5  ;;  %v101_v11 = vld [vmem:[%s212_s3] sm:$0xf]  ;;  %v102_v20 = vld [vmem:[%s212_s3 + $0x4] sm:$0x1] }
   0x5   :  { %v144_v13 = vld [vmem:[%s210_s2] ss:$0 sm:$0xff]  ;;  %v103_v15 = vunpack.c.l.bf16 %v101_v11  ;;  %v104_v22 = vunpack.c.l.bf16 %v102_v20 }
   0x6   :  { %76 = vmatpush.bf16.msra.mxu0 %v141_v2 }
   0x8   :  { %v28_v8 = vld [vmem:[#allocation2] sm:$0xff] }
   0x9   :  { %v29_v12 = vld [vmem:[#allocation2 + $0x8] sm:$0x3] }
   0xa   :  { %77 = vmatpush.bf16.msra.mxu0 %v140_v3 }
   0xe   :  { %78 = vmatpush.bf16.msra.mxu0 %v139_v4 }
  0x11   :  { %137 = vmatmul.msk.bf16.vlgmr.msra.gmra.mxu0 %vm22_vm0, %v120_v7 }
  0x8e   :  { %v80_v9 = vpop.f32.mrf.mxu0 }
  0x8f   :  { %v85_v10 = vadd.f32 %v80_v9, %v28_v8 }
  0x91   :  { %87 = vst.msk [vmem:[#allocation2] sm:$0xff] %vm22_vm0, %v85_v10 }
  0x96   :  { %v82_v14 = vpop.f32.mrf.mxu0 }
  0x97   :  { %v86_v16 = vadd.f32 %v82_v14, %v29_v12 }
  0x98   :  { %v93_v17 = vld [vmem:[#allocation2] sm:$0xff] }
  0x99   :  { %v99_v18 = vadd.f32 %v144_v13, %v93_v17  ;;  %89 = vst.msk [vmem:[#allocation2 + $0x8] sm:$0x3] %vm24_vm1, %v86_v16 }
  0x9b   :  { %v105_v19 = vadd.f32 %v103_v15, %v99_v18 }
  0x9d   :  { %v107_v21 = vpack.c.bf16 %v105_v19, %v105_v19 }
  0x9f   :  { %110 = vst.msk [vmem:[%s213_s4] sm:$0xf] %vm109_vm2, %v107_v21 }
  0xa0   :  { %v94_v23 = vld [vmem:[#allocation2 + $0x8] sm:$0x3] }
  0xa1   :  { %v100_v24 = vadd.f32 %v144_v13, %v94_v23 }
  0xa3   :  { %v106_v25 = vadd.f32 %v104_v22, %v100_v24 }
  0xa5   :  { %v108_v26 = vpack.c.bf16 %v106_v25, %v106_v25 }
  0xa7   :  { %112 = vst.msk [vmem:[%s213_s4 + $0x4] sm:$0x1] %vm111_vm3, %v108_v26 }

// kernel: beit_forward.42
= control target key start
LH: loop header
LB: loop body
LE: loop exit
PB: predicated region body
PF: predicated region fallthrough
CT: control target
= control target key end

     0   :  { %vm31_vm0 = vcmask 523264   ;;  %vm35_vm1 = vcmask 517120   ;;  %v225_v6 = vmov 64.0   ;;  %v226_v31 = vmov 0.0   ;;  %s295_s0 = inlined_call_operand.vmem [shape: bf16[10,64], index: 0, kind: input, shape index: {}]   ;;  %s296_s2 = inlined_call_operand.vmem [shape: f32[1,64], index: 2, kind: input, shape index: {}]   ;;  %s297_s3 = inlined_call_operand.vmem [shape: f32[1,64], index: 3, kind: input, shape index: {}]   ;;  %s298_s4 = inlined_call_operand.vmem [shape: f32[1,128], index: 4, kind: input, shape index: {}]   ;;  %s299_s1 = inlined_call_operand.vmem [shape: bf16[64,128], index: 1, kind: input, shape index: {}]   ;;  %s300_s5 = inlined_call_operand.vmem [shape: bf16[10,128], index: 5, kind: output, shape index: {}]  }
   0x1   :  { %v27_v0 = vld [vmem:[%s295_s0] sm:$0xf]  ;;  %v28_v2 = vld [vmem:[%s295_s0 + $0x4] sm:$0x1]  ;;  %215 = vrcp.f32 %v225_v6  ;;  %v209_v23 = vld [vmem:[%s299_s1 + $0x18] sm:$0xff] }
   0x2   :  { %v29_v1 = vunpack.c.l.bf16 %v27_v0  ;;  %v30_v4 = vunpack.c.l.bf16 %v28_v2  ;;  %138 = vmatpush.bf16.msra.mxu0 %v209_v23  ;;  %v208_v24 = vld [vmem:[%s299_s1 + $0x10] sm:$0xff]  ;;  %v207_v25 = vld [vmem:[%s299_s1 + $0x8] sm:$0xff]  ;;  %v206_v27 = vld [vmem:[%s299_s1] sm:$0xff]  ;;  %26 = vst [vmem:[#allocation2 + $0x8] sm:$0x3] %v226_v31 }
   0x3   :  { %v212_v47 = vld [vmem:[%s296_s2] ss:$0 sm:$0xff] }
   0x4   :  { %v32_v3 = vsel %vm31_vm0, %v29_v1, 0.0  ;;  %v36_v5 = vsel %vm35_vm1, %v30_v4, 0.0  ;;  %v213_v52 = vld [vmem:[%s297_s3] ss:$0 sm:$0xff] }
   0x5   :  { %33 = vadd.xlane.f32.xlu0 %v32_v3  ;;  %v214_v57 = vld [vmem:[%s298_s4] ss:$0 sm:$0xff] }
   0x6   :  { %139 = vmatpush.bf16.msra.mxu0 %v208_v24 }
   0x7   :  { %v216_v7 = vpop.eup %215 }
   0x8   :  { %v40_v8 = vmul.f32 64.0, %v216_v7  ;;  %vm44_vm2 = vweird.f32 %v216_v7 }
   0x9   :  { %v97_v61 = vld [vmem:[#allocation2 + $0x8] sm:$0x3] }
   0xa   :  { %v41_v9 = vsub.f32 1.0, %v40_v8  ;;  %140 = vmatpush.bf16.msra.mxu0 %v207_v25 }
   0xc   :  { %v42_v10 = vmul.f32 %v216_v7, %v41_v9 }
   0xd   :  { %37 = vadd.xlane.f32.xlu0 %v36_v5 }
   0xe   :  { %v43_v11 = vadd.f32 %v216_v7, %v42_v10  ;;  %141 = vmatpush.bf16.msra.mxu0 %v206_v27 }
  0x10   :  { %v45_v12 = vsel %vm44_vm2, %v216_v7, %v43_v11 }
  0x78   :  { %v34_v13 = vpop.xlane.xlu0 %33 }
  0x79   :  { %v46_v14 = vmul.f32 %v45_v12, %v34_v13 }
  0x7b   :  { %v48_v15 = vsub.f32 %v29_v1, %v46_v14 }
  0x7d   :  { %v50_v16 = vmul.f32 %v48_v15, %v48_v15 }
  0x7f   :  { %v52_v17 = vsel %vm31_vm0, %v50_v16, 0.0 }
  0x80   :  { %53 = vadd.xlane.f32.xlu1 %v52_v17  ;;  %v38_v18 = vpop.xlane.xlu0 %37 }
  0x81   :  { %v47_v19 = vmul.f32 %v45_v12, %v38_v18 }
  0x83   :  { %v49_v20 = vsub.f32 %v30_v4, %v47_v19 }
  0x85   :  { %v51_v21 = vmul.f32 %v49_v20, %v49_v20 }
  0x87   :  { %v55_v22 = vsel %vm35_vm1, %v51_v21, 0.0 }
  0x88   :  { %56 = vadd.xlane.f32.xlu1 %v55_v22 }
  0xf3   :  { %v54_v26 = vpop.xlane.xlu1 %53 }
  0xf4   :  { %v58_v28 = vmul.f32 %v54_v26, %v45_v12 }
  0xf6   :  { %v60_v29 = vadd.f32 1e-05, %v58_v28 }
  0xf8   :  { %217 = vrsqrt.f32 %v60_v29  ;;  %vm68_vm4 = vweird.f32 %v60_v29 }
  0xfb   :  { %v57_v30 = vpop.xlane.xlu1 %56 }
  0xfc   :  { %v59_v32 = vmul.f32 %v57_v30, %v45_v12 }
  0xfe   :  { %v218_v33 = vpop.eup %217  ;;  %v61_v34 = vadd.f32 1e-05, %v59_v32 }
  0xff   :  { %v63_v35 = vmul.f32 %v218_v33, %v60_v29  ;;  %vm69_vm3 = vweird.f32 %v218_v33 }
 0x100   :  { %219 = vrsqrt.f32 %v61_v34  ;;  %vm70_vm5 = vmor %vm68_vm4, %vm69_vm3  ;;  %vm78_vm7 = vweird.f32 %v61_v34 }
 0x101   :  { %v64_v36 = vmul.f32 %v218_v33, %v63_v35 }
 0x103   :  { %v65_v37 = vmul.f32 0.5, %v64_v36 }
 0x105   :  { %v66_v38 = vsub.f32 1.5, %v65_v37 }
 0x106   :  { %v220_v39 = vpop.eup %219 }
 0x107   :  { %v67_v40 = vmul.f32 %v218_v33, %v66_v38  ;;  %v73_v41 = vmul.f32 %v220_v39, %v61_v34  ;;  %vm79_vm6 = vweird.f32 %v220_v39 }
 0x108   :  { %vm80_vm8 = vmor %vm78_vm7, %vm79_vm6 }
 0x109   :  { %v74_v42 = vmul.f32 %v220_v39, %v73_v41  ;;  %v71_v43 = vsel %vm70_vm5, %v218_v33, %v67_v40 }
 0x10a   :  { %v82_v46 = vmul.f32 %v71_v43, %v48_v15 }
 0x10b   :  { %v75_v44 = vmul.f32 0.5, %v74_v42 }
 0x10c   :  { %v88_v51 = vmul.f32 %v212_v47, %v82_v46 }
 0x10d   :  { %v76_v45 = vsub.f32 1.5, %v75_v44 }
 0x10e   :  { %v94_v54 = vadd.f32 %v213_v52, %v88_v51 }
 0x10f   :  { %v77_v48 = vmul.f32 %v220_v39, %v76_v45 }
 0x111   :  { %v81_v49 = vsel %vm80_vm8, %v220_v39, %v77_v48 }
 0x112   :  { %v83_v50 = vmul.f32 %v81_v49, %v49_v20 }
 0x114   :  { %v89_v53 = vmul.f32 %v212_v47, %v83_v50 }
 0x116   :  { %v95_v55 = vadd.f32 %v213_v52, %v89_v53 }
 0x118   :  { %v98_v56 = vpack.c.bf16 %v95_v55, %v94_v54 }
 0x11a   :  { %205 = vmatmul.msk.bf16.vlgmr.msra.gmra.mxu0 %vm31_vm0, %v98_v56 }
 0x197   :  { %v143_v58 = vpop.f32.mrf.mxu0 }
 0x198   :  { %v161_v59 = vadd.f32 %v214_v57, %v143_v58 }
 0x19a   :  { %v163_v60 = vmul.f32 %v161_v59, %v161_v59 }
 0x19c   :  { %v165_v62 = vmul.f32 %v163_v60, %v161_v59 }
 0x19e   :  { %v167_v0 = vmul.f32 0.044715, %v165_v62 }
 0x19f   :  { %v145_v63 = vpop.f32.mrf.mxu0 }
 0x1a0   :  { %v149_v1 = vadd.f32 %v145_v63, %v97_v61  ;;  %v169_v2 = vadd.f32 %v167_v0, %v161_v59 }
 0x1a2   :  { %151 = vst [vmem:[#allocation2 + $0x8] sm:$0x3] %v149_v1  ;;  %v171_v3 = vmul.f32 0.7978846, %v169_v2 }
 0x1a4   :  { %221 = vtanh.f32 %v171_v3 }
 0x1a9   :  { %v156_v4 = vld [vmem:[#allocation2 + $0x8] sm:$0x3] }
 0x1aa   :  { %v162_v5 = vadd.f32 %v214_v57, %v156_v4  ;;  %v222_v6 = vpop.eup %221 }
 0x1ab   :  { %v175_v8 = vadd.f32 1.0, %v222_v6 }
 0x1ac   :  { %v164_v7 = vmul.f32 %v162_v5, %v162_v5 }
 0x1ad   :  { %v177_v10 = vmul.f32 0.5, %v175_v8 }
 0x1ae   :  { %v166_v9 = vmul.f32 %v164_v7, %v162_v5 }
 0x1af   :  { %v179_v12 = vmul.f32 %v177_v10, %v161_v59 }
 0x1b0   :  { %v168_v11 = vmul.f32 0.044715, %v166_v9 }
 0x1b1   :  { %v181_v14 = vpack.c.bf16 %v179_v12, %v179_v12 }
 0x1b2   :  { %v170_v13 = vadd.f32 %v168_v11, %v162_v5 }
 0x1b3   :  { %183 = vst [vmem:[%s300_s5] sm:$0xf] %v181_v14 }
 0x1b4   :  { %v172_v15 = vmul.f32 0.7978846, %v170_v13 }
 0x1b6   :  { %223 = vtanh.f32 %v172_v15 }
 0x1bc   :  { %v224_v16 = vpop.eup %223 }
 0x1bd   :  { %v176_v17 = vadd.f32 1.0, %v224_v16 }
 0x1bf   :  { %v178_v18 = vmul.f32 0.5, %v176_v17 }
 0x1c1   :  { %v180_v19 = vmul.f32 %v178_v18, %v162_v5 }
 0x1c3   :  { %v182_v20 = vpack.c.bf16 %v180_v19, %v180_v19 }
 0x1c5   :  { %184 = vst [vmem:[%s300_s5 + $0x4] sm:$0x1] %v182_v20 }

// kernel: beit_forward.43
= control target key start
LH: loop header
LB: loop body
LE: loop exit
PB: predicated region body
PF: predicated region fallthrough
CT: control target
= control target key end

     0   :  { %vm21_vm0 = vcmask 523264   ;;  %v193_v2 = vmov 0.0   ;;  %vm23_vm1 = vcmask 517120   ;;  %vm138_vm2 = vcmask 519168   ;;  %s266_s1 = inlined_call_operand.vmem [shape: bf16[128,64], index: 1, kind: input, shape index: {}]   ;;  %s267_s2 = inlined_call_operand.vmem [shape: f32[1,64], index: 2, kind: input, shape index: {}]   ;;  %s268_s0 = inlined_call_operand.vmem [shape: bf16[10,128], index: 0, kind: input, shape index: {}]   ;;  %s269_s3 = inlined_call_operand.vmem [shape: bf16[10,64], index: 3, kind: input, shape index: {}]   ;;  %s270_s4 = inlined_call_operand.vmem [shape: bf16[10,64], index: 4, kind: output, shape index: {}]  }
   0x1   :  { %v190_v0 = vld [vmem:[%s266_s1 + $0x38] sm:$0xff]  ;;  %v189_v1 = vld [vmem:[%s266_s1 + $0x30] sm:$0xff]  ;;  %22 = vst.msk [vmem:[#allocation2] sm:$0xff] %vm21_vm0, %v193_v2  ;;  %v188_v3 = vld [vmem:[%s266_s1 + $0x28] sm:$0xff]  ;;  %vm140_vm3 = vcmask 516096  }
   0x2   :  { %99 = vmatpush.bf16.msra.mxu0 %v190_v0  ;;  %v187_v4 = vld [vmem:[%s266_s1 + $0x20] sm:$0xff]  ;;  %v186_v5 = vld [vmem:[%s266_s1 + $0x18] sm:$0xff]  ;;  %v185_v6 = vld [vmem:[%s266_s1 + $0x10] sm:$0xff]  ;;  %24 = vst.msk [vmem:[#allocation2 + $0x8] sm:$0x3] %vm23_vm1, %v193_v2 }
   0x3   :  { %v184_v7 = vld [vmem:[%s266_s1 + $0x8] sm:$0xff]  ;;  %v183_v8 = vld [vmem:[%s266_s1] sm:$0xff] }
   0x4   :  { %v148_v9 = vld [vmem:[%s268_s0] sm:$0xf]  ;;  %v182_v10 = vld [vmem:[%s268_s0] sm:$0x10] }
   0x5   :  { %v149_v11 = vor.u32 %v182_v10, %v148_v9  ;;  %v130_v15 = vld [vmem:[%s269_s3] sm:$0xf]  ;;  %v131_v24 = vld [vmem:[%s269_s3 + $0x4] sm:$0x1] }
   0x6   :  { %100 = vmatpush.bf16.msra.mxu0 %v189_v1  ;;  %v192_v17 = vld [vmem:[%s267_s2] ss:$0 sm:$0xff]  ;;  %v132_v19 = vunpack.c.l.bf16 %v130_v15  ;;  %v133_v26 = vunpack.c.l.bf16 %v131_v24 }
   0x8   :  { %v27_v12 = vld [vmem:[#allocation2] sm:$0xff] }
   0x9   :  { %v28_v16 = vld [vmem:[#allocation2 + $0x8] sm:$0x3] }
   0xa   :  { %101 = vmatpush.bf16.msra.mxu0 %v188_v3 }
   0xe   :  { %102 = vmatpush.bf16.msra.mxu0 %v187_v4 }
  0x12   :  { %103 = vmatpush.bf16.msra.mxu0 %v186_v5 }
  0x16   :  { %104 = vmatpush.bf16.msra.mxu0 %v185_v6 }
  0x1a   :  { %105 = vmatpush.bf16.msra.mxu0 %v184_v7 }
  0x1e   :  { %106 = vmatpush.bf16.msra.mxu0 %v183_v8 }
  0x21   :  { %107 = vmatmul.bf16.vlgmr.msra.gmra.mxu0 %v149_v11 }
  0x9e   :  { %v108_v13 = vpop.f32.mrf.mxu0 }
  0x9f   :  { %v113_v14 = vadd.f32 %v108_v13, %v27_v12 }
  0xa1   :  { %116 = vst.msk [vmem:[#allocation2] sm:$0xff] %vm21_vm0, %v113_v14 }
  0xa6   :  { %v110_v18 = vpop.f32.mrf.mxu0 }
  0xa7   :  { %v114_v20 = vadd.f32 %v110_v18, %v28_v16 }
  0xa8   :  { %v122_v21 = vld [vmem:[#allocation2] sm:$0xff] }
  0xa9   :  { %v128_v22 = vadd.f32 %v192_v17, %v122_v21  ;;  %118 = vst.msk [vmem:[#allocation2 + $0x8] sm:$0x3] %vm23_vm1, %v114_v20 }
  0xab   :  { %v134_v23 = vadd.f32 %v132_v19, %v128_v22 }
  0xad   :  { %v136_v25 = vpack.c.bf16 %v134_v23, %v134_v23 }
  0xaf   :  { %139 = vst.msk [vmem:[%s270_s4] sm:$0xf] %vm138_vm2, %v136_v25 }
  0xb0   :  { %v123_v27 = vld [vmem:[#allocation2 + $0x8] sm:$0x3] }
  0xb1   :  { %v129_v28 = vadd.f32 %v192_v17, %v123_v27 }
  0xb3   :  { %v135_v29 = vadd.f32 %v133_v26, %v129_v28 }
  0xb5   :  { %v137_v30 = vpack.c.bf16 %v135_v29, %v135_v29 }
  0xb7   :  { %141 = vst.msk [vmem:[%s270_s4 + $0x4] sm:$0x1] %vm140_vm3, %v137_v30 }

// kernel: beit_forward.61
= control target key start
LH: loop header
LB: loop body
LE: loop exit
PB: predicated region body
PF: predicated region fallthrough
CT: control target
= control target key end

     0   :  { %vm16_vm0 = vcmask 9216   ;;  %v104_v1 = vmov 0.0   ;;  %vm53_vm1 = vcmask 523264   ;;  %s141_s1 = inlined_call_operand.vmem [shape: bf16[64,2], index: 1, kind: input, shape index: {}]   ;;  %s142_s0 = inlined_call_operand.vmem [shape: f32[2,64], index: 0, kind: input, shape index: {}]   ;;  %s143_s2 = inlined_call_operand.vmem [shape: f32[2,2], index: 2, kind: output, shape index: {}]  }
   0x1   :  { %v102_v0 = vld [vmem:[%s141_s1 + $0x18] sm:$0xff]  ;;  %17 = vst.msk [vmem:[#allocation2] sm:$0x3] %vm16_vm0, %v104_v1  ;;  %v101_v2 = vld [vmem:[%s141_s1 + $0x10] sm:$0xff]  ;;  %v100_v3 = vld [vmem:[%s141_s1 + $0x8] sm:$0xff] }
   0x2   :  { %61 = vmatpush.bf16.msra.mxu0 %v102_v0  ;;  %v99_v4 = vld [vmem:[%s141_s1] sm:$0xff] }
   0x3   :  { %v18_v5 = vld [vmem:[%s142_s0] sm:$0x3] }
   0x4   :  { %v20_v6 = vpack.c.bf16 %v18_v5, %v18_v5 }
   0x6   :  { %62 = vmatpush.bf16.msra.mxu0 %v101_v2 }
   0x8   :  { %v19_v7 = vld [vmem:[#allocation2] sm:$0x3] }
   0xa   :  { %63 = vmatpush.bf16.msra.mxu0 %v100_v3 }
   0xe   :  { %64 = vmatpush.bf16.msra.mxu0 %v99_v4 }
  0x11   :  { %98 = vmatmul.msk.bf16.vlgmr.msra.gmra.mxu0 %vm53_vm1, %v20_v6 }
  0x8e   :  { %v66_v8 = vpop.f32.mrf.mxu0 }
  0x8f   :  { %v70_v9 = vadd.f32 %v66_v8, %v19_v7 }
  0x91   :  { %72 = vst.msk [vmem:[#allocation2] sm:$0x3] %vm16_vm0, %v70_v9 }
  0x96   :  { %v68_v10 = vpop.f32.mrf.mxu0 }
  0x98   :  { %v76_v11 = vld [vmem:[#allocation2] sm:$0x3] }
  0x99   :  { %77 = vst.msk [vmem:[%s143_s2] sm:$0x3] %vm16_vm0, %v76_v11 }

// kernel: beit_forward.62
= control target key start
LH: loop header
LB: loop body
LE: loop exit
PB: predicated region body
PF: predicated region fallthrough
CT: control target
= control target key end

     0   :  { %vm19_vm0 = vcmask 523264   ;;  %v277_v22 = vmov 0.0   ;;  %vm197_vm1 = vcmask 519168   ;;  %s372_s1 = inlined_call_operand.vmem [shape: bf16[192,64], index: 1, kind: input, shape index: {}]   ;;  %s373_s0 = inlined_call_operand.vmem [shape: f32[24,192], index: 0, kind: input, shape index: {}]   ;;  %s374_s2 = inlined_call_operand.vmem [shape: f32[1,64], index: 2, kind: input, shape index: {}]   ;;  %s375_s3 = inlined_call_operand.vmem [shape: bf16[24,64], index: 3, kind: output, shape index: {}]  }
   0x1   :  { %v262_v0 = vld [vmem:[%s372_s1 + $0x38] sm:$0xff]  ;;  %v261_v2 = vld [vmem:[%s372_s1 + $0x30] sm:$0xff]  ;;  %v260_v4 = vld [vmem:[%s372_s1 + $0x28] sm:$0xff]  ;;  %20 = vst.msk [vmem:[#allocation2] sm:$0xff] %vm19_vm0, %v277_v22 }
   0x2   :  { %v266_v1 = vld [vmem:[%s372_s1 + $0x58] sm:$0xff]  ;;  %139 = vmatpush.bf16.msra.mxu0 %v262_v0  ;;  %267 = vmatpush.bf16.msra.mxu2 %v262_v0  ;;  %v265_v3 = vld [vmem:[%s372_s1 + $0x50] sm:$0xff]  ;;  %v264_v5 = vld [vmem:[%s372_s1 + $0x48] sm:$0xff]  ;;  %21 = vst.msk [vmem:[#allocation2 + $0x8] sm:$0xff] %vm19_vm0, %v277_v22 }
   0x3   :  { %161 = vmatpush.bf16.msra.mxu1 %v266_v1  ;;  %v259_v6 = vld [vmem:[%s372_s1 + $0x20] sm:$0xff]  ;;  %v24_v8 = vld [vmem:[%s373_s0 + $0x8] sm:$0xff]  ;;  %v26_v9 = vld [vmem:[%s373_s0 + $0x18] sm:$0xff]  ;;  %22 = vst.msk [vmem:[#allocation2 + $0x10] sm:$0xff] %vm19_vm0, %v277_v22 }
   0x4   :  { %v263_v7 = vld [vmem:[%s372_s1 + $0x40] sm:$0xff]  ;;  %v33_v10 = vpack.c.bf16 %v26_v9, %v24_v8  ;;  %v258_v11 = vld [vmem:[%s372_s1 + $0x18] sm:$0xff]  ;;  %v257_v12 = vld [vmem:[%s372_s1 + $0x10] sm:$0xff] }
   0x5   :  { %v256_v13 = vld [vmem:[%s372_s1 + $0x8] sm:$0xff]  ;;  %v255_v14 = vld [vmem:[%s372_s1] sm:$0xff]  ;;  %v25_v16 = vld [vmem:[%s373_s0 + $0x10] sm:$0xff] }
   0x6   :  { %140 = vmatpush.bf16.msra.mxu0 %v261_v2  ;;  %268 = vmatpush.bf16.msra.mxu2 %v261_v2  ;;  %v23_v15 = vld [vmem:[%s373_s0] sm:$0xff]  ;;  %v28_v18 = vld [vmem:[%s373_s0 + $0x28] sm:$0xff] }
   0x7   :  { %162 = vmatpush.bf16.msra.mxu1 %v265_v3  ;;  %v27_v17 = vld [vmem:[%s373_s0 + $0x20] sm:$0xff]  ;;  %v32_v19 = vpack.c.bf16 %v25_v16, %v23_v15  ;;  %v35_v21 = vpack.c.bf16 %v28_v18, %v28_v18 }
   0x8   :  { %v34_v20 = vpack.c.bf16 %v27_v17, %v27_v17  ;;  %v29_v25 = vld [vmem:[#allocation2] sm:$0xff] }
   0x9   :  { %v30_v33 = vld [vmem:[#allocation2 + $0x8] sm:$0xff]  ;;  %v276_v35 = vld [vmem:[%s374_s2] ss:$0 sm:$0xff] }
   0xa   :  { %141 = vmatpush.bf16.msra.mxu0 %v260_v4  ;;  %269 = vmatpush.bf16.msra.mxu2 %v260_v4  ;;  %v31_v30 = vld [vmem:[#allocation2 + $0x10] sm:$0xff] }
   0xb   :  { %163 = vmatpush.bf16.msra.mxu1 %v264_v5 }
   0xe   :  { %142 = vmatpush.bf16.msra.mxu0 %v259_v6  ;;  %270 = vmatpush.bf16.msra.mxu2 %v259_v6 }
   0xf   :  { %164 = vmatpush.bf16.msra.mxu1 %v263_v7 }
  0x12   :  { %253 = vmatmul.msk.bf16.vlgmr.msra.gmra.mxu1 %vm19_vm0, %v33_v10  ;;  %143 = vmatpush.bf16.msra.mxu0 %v258_v11 }
  0x13   :  { %271 = vmatpush.bf16.msra.mxu2 %v258_v11 }
  0x16   :  { %144 = vmatpush.bf16.msra.mxu0 %v257_v12 }
  0x17   :  { %272 = vmatpush.bf16.msra.mxu2 %v257_v12 }
  0x1a   :  { %145 = vmatpush.bf16.msra.mxu0 %v256_v13 }
  0x1b   :  { %273 = vmatpush.bf16.msra.mxu2 %v256_v13 }
  0x1e   :  { %146 = vmatpush.bf16.msra.mxu0 %v255_v14 }
  0x1f   :  { %274 = vmatpush.bf16.msra.mxu2 %v255_v14 }
  0x21   :  { %147 = vmatmul.bf16.vlgmr.msra.gmra.mxu0 %v32_v19 }
  0x22   :  { %152 = vmatmul.bf16.vlgmr.msra.gmra.mxu2 %v34_v20  ;;  %254 = vmatmul.msk.bf16.gmra.mxu1 %vm19_vm0, %v35_v21 }
  0x8f   :  { %v166_v23 = vpop.f32.mrf.mxu1 }
  0x97   :  { %v168_v24 = vpop.f32.mrf.mxu1 }
  0x9e   :  { %v148_v26 = vpop.f32.mrf.mxu0 }
  0x9f   :  { %v167_v27 = vadd.f32 %v166_v23, %v148_v26  ;;  %v171_v28 = vpop.f32.mrf.mxu1 }
  0xa1   :  { %v175_v29 = vadd.f32 %v167_v27, %v29_v25 }
  0xa3   :  { %178 = vst.msk [vmem:[#allocation2] sm:$0xff] %vm19_vm0, %v175_v29 }
  0xa5   :  { %v153_v31 = vpop.f32.mrf.mxu2 }
  0xa6   :  { %v172_v32 = vadd.f32 %v171_v28, %v153_v31  ;;  %v150_v34 = vpop.f32.mrf.mxu0 }
  0xa7   :  { %v169_v36 = vadd.f32 %v168_v24, %v150_v34  ;;  %v173_v37 = vpop.f32.mrf.mxu1 }
  0xa8   :  { %v177_v38 = vadd.f32 %v172_v32, %v31_v30 }
  0xa9   :  { %v176_v39 = vadd.f32 %v169_v36, %v30_v33 }
  0xaa   :  { %v184_v40 = vld [vmem:[#allocation2] sm:$0xff]  ;;  %180 = vst.msk [vmem:[#allocation2 + $0x10] sm:$0xff] %vm19_vm0, %v177_v38 }
  0xab   :  { %v191_v41 = vadd.f32 %v276_v35, %v184_v40  ;;  %179 = vst.msk [vmem:[#allocation2 + $0x8] sm:$0xff] %vm19_vm0, %v176_v39 }
  0xad   :  { %v194_v42 = vpack.c.bf16 %v191_v41, %v191_v41  ;;  %v155_v43 = vpop.f32.mrf.mxu2 }
  0xaf   :  { %198 = vst.msk [vmem:[%s375_s3] sm:$0xf] %vm197_vm1, %v194_v42 }
  0xb1   :  { %v186_v44 = vld [vmem:[#allocation2 + $0x10] sm:$0xff] }
  0xb2   :  { %v193_v45 = vadd.f32 %v276_v35, %v186_v44  ;;  %v185_v46 = vld [vmem:[#allocation2 + $0x8] sm:$0xff] }
  0xb3   :  { %v192_v47 = vadd.f32 %v276_v35, %v185_v46 }
  0xb4   :  { %v196_v48 = vpack.c.bf16 %v193_v45, %v193_v45 }
  0xb5   :  { %v195_v49 = vpack.c.bf16 %v192_v47, %v192_v47 }
  0xb6   :  { %200 = vst.msk [vmem:[%s375_s3 + $0x8] sm:$0xf] %vm197_vm1, %v196_v48 }
  0xb7   :  { %199 = vst.msk [vmem:[%s375_s3 + $0x4] sm:$0xf] %vm197_vm1, %v195_v49 }

// kernel: beit_forward.63
= control target key start
LH: loop header
LB: loop body
LE: loop exit
PB: predicated region body
PF: predicated region fallthrough
CT: control target
= control target key end

     0   :  { %vm45_vm0 = vcmask 521216   ;;  %vm26_vm1 = vcmask 523264   ;;  %v702_v3 = vmov 0.0   ;;  %v703_v27 = vmov 64.0   ;;  %s1175_s0 = inlined_call_operand.vmem [shape: bf16[78,64], index: 0, kind: input, shape index: {}]   ;;  %s1176_s2 = inlined_call_operand.vmem [shape: f32[1,64], index: 2, kind: input, shape index: {}]   ;;  %s1177_s3 = inlined_call_operand.vmem [shape: f32[1,64], index: 3, kind: input, shape index: {}]   ;;  %s1178_s1 = inlined_call_operand.vmem [shape: bf16[64,192], index: 1, kind: input, shape index: {}]   ;;  %s1179_s4 = inlined_call_operand.vmem [shape: f32[1,192], index: 4, kind: input, shape index: {}]   ;;  %s1180_s5 = inlined_call_operand.vmem [shape: bf16[78,192], index: 5, kind: output, shape index: {}]  }
   0x1   :  { %v737_v0 = vld [vmem:[%s1175_s0 + $0x18] sm:$0xff]   ;;  %v742_v1 = vld [vmem:[%s1175_s0 + $0x8] sm:$0xff]   ;;  %v747_v2 = vld [vmem:[%s1175_s0] sm:$0xff]   ;;  %46 = vst.msk [vmem:[#allocation2 + $0x98] sm:$0x3f] %vm45_vm0, %v702_v3  ;;  %680 = vrcp.f32 %v703_v27 }
   0x2   :  { %v663_v4 = vunpack.c.l.bf16 %v737_v0  ;;  %v655_v5 = vunpack.c.l.bf16 %v742_v1  ;;  %v651_v6 = vunpack.c.l.bf16 %v747_v2  ;;  %27 = vst.msk [vmem:[#allocation2 + $0x8] sm:$0xff] %vm26_vm1, %v702_v3  ;;  %v664_v10 = vunpack.c.h.bf16 %v737_v0  ;;  %v776_v16 = vld [vmem:[%s1175_s0 + $0x10] sm:$0xff]   ;;  %v781_v17 = vld [vmem:[%s1175_s0 + $0x24] sm:$0x7]  ;;  %v786_v18 = vld [vmem:[%s1175_s0 + $0x20] sm:$0xf] }
   0x3   :  { %29 = vst.msk [vmem:[#allocation2 + $0x18] sm:$0xff] %vm26_vm1, %v702_v3  ;;  %v656_v11 = vunpack.c.h.bf16 %v742_v1  ;;  %v652_v12 = vunpack.c.h.bf16 %v747_v2  ;;  %v659_v19 = vunpack.c.l.bf16 %v776_v16  ;;  %v66_v20 = vunpack.c.l.bf16 %v781_v17  ;;  %v646_v27 = vld [vmem:[%s1178_s1 + $0x24] sm:$0xf0] }
   0x4   :  { %v86_v7 = vsel %vm26_vm1, %v663_v4, 0.0  ;;  %v74_v8 = vsel %vm26_vm1, %v655_v5, 0.0  ;;  %v68_v9 = vsel %vm26_vm1, %v651_v6, 0.0  ;;  %31 = vst.msk [vmem:[#allocation2 + $0x28] sm:$0xff] %vm26_vm1, %v702_v3  ;;  %v89_v13 = vsel %vm26_vm1, %v664_v10, 0.0 }
   0x5   :  { %87 = vadd.xlane.f32.xlu1 %v86_v7  ;;  %75 = vadd.xlane.f32.xlu2 %v74_v8  ;;  %33 = vst.msk [vmem:[#allocation2 + $0x38] sm:$0xff] %vm26_vm1, %v702_v3  ;;  %v77_v14 = vsel %vm26_vm1, %v656_v11, 0.0  ;;  %v71_v15 = vsel %vm26_vm1, %v652_v12, 0.0  ;;  %v65_v21 = vunpack.c.l.bf16 %v786_v18  ;;  %v80_v22 = vsel %vm26_vm1, %v659_v19, 0.0 }
   0x6   :  { %69 = vadd.xlane.f32.xlu0 %v68_v9  ;;  %35 = vst.msk [vmem:[#allocation2 + $0x48] sm:$0xff] %vm26_vm1, %v702_v3  ;;  %v96_v23 = vsel %vm45_vm0, %v66_v20, 0.0  ;;  %v660_v25 = vunpack.c.h.bf16 %v776_v16  ;;  %v647_v16 = vld [vmem:[%s1178_s1 + $0x34] sm:$0xf] }
   0x7   :  { %37 = vst.msk [vmem:[#allocation2 + $0x58] sm:$0xff] %vm26_vm1, %v702_v3  ;;  %v92_v24 = vsel %vm26_vm1, %v65_v21, 0.0  ;;  %v681_v28 = vpop.eup %680 }
   0x8   :  { %39 = vst.msk [vmem:[#allocation2 + $0x68] sm:$0xff] %vm26_vm1, %v702_v3  ;;  %v83_v26 = vsel %vm26_vm1, %v660_v25, 0.0  ;;  %v100_v29 = vmul.f32 64.0, %v681_v28  ;;  %vm104_vm2 = vweird.f32 %v681_v28 }
   0x9   :  { %41 = vst.msk [vmem:[#allocation2 + $0x78] sm:$0xff] %vm26_vm1, %v702_v3 }
   0xa   :  { %43 = vst.msk [vmem:[#allocation2 + $0x88] sm:$0xff] %vm26_vm1, %v702_v3  ;;  %v101_v30 = vsub.f32 1.0, %v100_v29 }
   0xb   :  { %44 = vst [vmem:[#allocation2 + $0x90] sm:$0x3f] %v702_v3 }
   0xc   :  { %v102_v31 = vmul.f32 %v681_v28, %v101_v30  ;;  %v619_v30 = vld [vmem:[%s1178_s1 + $0x28] sm:$0xf0] }
   0xd   :  { %90 = vadd.xlane.f32.xlu1 %v89_v13  ;;  %78 = vadd.xlane.f32.xlu2 %v77_v14 }
   0xe   :  { %72 = vadd.xlane.f32.xlu0 %v71_v15  ;;  %v103_v32 = vadd.f32 %v681_v28, %v102_v31 }
  0x10   :  { %v800_v33 = vsel %vm104_vm2, %v681_v28, %v103_v32  ;;  %v645_v28 = vld [vmem:[%s1178_s1 + $0x24] sm:$0xf] }
  0x11   :  { %v622_v32 = vor.u32 %v645_v28, %v619_v30 }
  0x15   :  { %81 = vadd.xlane.f32.xlu2 %v80_v22  ;;  %97 = vadd.xlane.f32.xlu1 %v96_v23  ;;  %v648_v22 = vld [vmem:[%s1178_s1 + $0x34] sm:$0xf0] }
  0x16   :  { %93 = vadd.xlane.f32.xlu0 %v92_v24  ;;  %v627_v24 = vld [vmem:[%s1178_s1 + $0x38] sm:$0xf0] }
  0x1e   :  { %84 = vadd.xlane.f32.xlu0 %v83_v26  ;;  %v617_v26 = vld [vmem:[%s1178_s1 + $0x20] sm:$0xf] }
  0x1f   :  { %v618_v29 = vor.u32 %v646_v27, %v617_v26 }
  0x78   :  { %v88_v34 = vpop.xlane.xlu1 %87  ;;  %v76_v35 = vpop.xlane.xlu2 %75 }
  0x79   :  { %v112_v36 = vmul.f32 %v800_v33, %v88_v34  ;;  %v70_v37 = vpop.xlane.xlu0 %69  ;;  %v108_v50 = vmul.f32 %v800_v33, %v76_v35 }
  0x7a   :  { %v106_v38 = vmul.f32 %v800_v33, %v70_v37  ;;  %v609_v37 = vld [vmem:[%s1178_s1 + $0x10] sm:$0xf] }
  0x7b   :  { %v804_v39 = vsub.f32 %v663_v4, %v112_v36  ;;  %v830_v57 = vsub.f32 %v655_v5, %v108_v50 }
  0x7c   :  { %v806_v40 = vsub.f32 %v651_v6, %v106_v38  ;;  %v644_v38 = vld [vmem:[%s1178_s1 + $0x14] sm:$0xf0] }
  0x7d   :  { %v132_v41 = vmul.f32 %v804_v39, %v804_v39  ;;  %v128_v4 = vmul.f32 %v830_v57, %v830_v57 }
  0x7e   :  { %v126_v42 = vmul.f32 %v806_v40, %v806_v40 }
  0x7f   :  { %v154_v43 = vsel %vm26_vm1, %v132_v41, 0.0  ;;  %v142_v9 = vsel %vm26_vm1, %v128_v4, 0.0  ;;  %v643_v41 = vld [vmem:[%s1178_s1 + $0x14] sm:$0xf] }
  0x80   :  { %v91_v44 = vpop.xlane.xlu1 %90  ;;  %v79_v45 = vpop.xlane.xlu2 %78  ;;  %155 = vadd.xlane.f32.xlu0 %v154_v43  ;;  %v136_v46 = vsel %vm26_vm1, %v126_v42, 0.0  ;;  %v610_v43 = vor.u32 %v644_v38, %v609_v37 }
  0x81   :  { %v113_v47 = vmul.f32 %v800_v33, %v91_v44  ;;  %v109_v48 = vmul.f32 %v800_v33, %v79_v45  ;;  %137 = vadd.xlane.f32.xlu1 %v136_v46  ;;  %v73_v49 = vpop.xlane.xlu0 %72  ;;  %v611_v44 = vld [vmem:[%s1178_s1 + $0x18] sm:$0xf0] }
  0x82   :  { %v107_v51 = vmul.f32 %v800_v33, %v73_v49  ;;  %v614_v46 = vor.u32 %v643_v41, %v611_v44  ;;  %v641_v49 = vld [vmem:[%s1178_s1 + $0x4] sm:$0xf] }
  0x83   :  { %v818_v52 = vsub.f32 %v664_v10, %v113_v47  ;;  %v820_v53 = vsub.f32 %v656_v11, %v109_v48  ;;  %v601_v47 = vld [vmem:[%s1178_s1] sm:$0xf]  ;;  %v642_v48 = vld [vmem:[%s1178_s1 + $0x4] sm:$0xf0] }
  0x84   :  { %v822_v54 = vsub.f32 %v652_v12, %v107_v51  ;;  %v602_v50 = vor.u32 %v642_v48, %v601_v47  ;;  %v603_v51 = vld [vmem:[%s1178_s1 + $0x8] sm:$0xf0] }
  0x85   :  { %v129_v55 = vmul.f32 %v820_v53, %v820_v53  ;;  %v133_v56 = vmul.f32 %v818_v52, %v818_v52 }
  0x86   :  { %v127_v58 = vmul.f32 %v822_v54, %v822_v54 }
  0x87   :  { %v145_v59 = vsel %vm26_vm1, %v129_v55, 0.0  ;;  %v157_v60 = vsel %vm26_vm1, %v133_v56, 0.0  ;;  %v606_v56 = vor.u32 %v641_v49, %v603_v51 }
  0x88   :  { %v82_v61 = vpop.xlane.xlu2 %81  ;;  %146 = vadd.xlane.f32.xlu0 %v145_v59  ;;  %v139_v62 = vsel %vm26_vm1, %v127_v58, 0.0  ;;  %v98_v63 = vpop.xlane.xlu1 %97 }
  0x89   :  { %v110_v0 = vmul.f32 %v800_v33, %v82_v61  ;;  %158 = vadd.xlane.f32.xlu1 %v157_v60  ;;  %140 = vadd.xlane.f32.xlu2 %v139_v62  ;;  %v94_v2 = vpop.xlane.xlu0 %93  ;;  %v115_v3 = vmul.f32 %v800_v33, %v98_v63 }
  0x8a   :  { %v114_v1 = vmul.f32 %v800_v33, %v94_v2 }
  0x8b   :  { %v842_v5 = vsub.f32 %v659_v19, %v110_v0  ;;  %v850_v8 = vsub.f32 %v66_v20, %v115_v3 }
  0x8c   :  { %v844_v6 = vsub.f32 %v65_v21, %v114_v1  ;;  %v625_v21 = vld [vmem:[%s1178_s1 + $0x30] sm:$0xf] }
  0x8d   :  { %v130_v7 = vmul.f32 %v842_v5, %v842_v5  ;;  %v135_v15 = vmul.f32 %v850_v8, %v850_v8  ;;  %v626_v23 = vor.u32 %v648_v22, %v625_v21 }
  0x8e   :  { %v134_v10 = vmul.f32 %v844_v6, %v844_v6 }
  0x8f   :  { %v148_v11 = vsel %vm26_vm1, %v130_v7, 0.0  ;;  %v163_v18 = vsel %vm45_vm0, %v135_v15, 0.0  ;;  %416 = vmatpush.bf16.msra.mxu0 %v626_v23  ;;  %668 = vmatpush.bf16.msra.mxu2 %v626_v23 }
  0x90   :  { %149 = vadd.xlane.f32.xlu0 %v148_v11  ;;  %v160_v12 = vsel %vm26_vm1, %v134_v10, 0.0 }
  0x91   :  { %143 = vadd.xlane.f32.xlu2 %v142_v9  ;;  %161 = vadd.xlane.f32.xlu1 %v160_v12  ;;  %v85_v13 = vpop.xlane.xlu0 %84 }
  0x92   :  { %v111_v14 = vmul.f32 %v800_v33, %v85_v13 }
  0x93   :  { %417 = vmatpush.bf16.msra.mxu0 %v618_v29  ;;  %669 = vmatpush.bf16.msra.mxu2 %v618_v29 }
  0x94   :  { %v862_v17 = vsub.f32 %v660_v25, %v111_v14  ;;  %v630_v25 = vor.u32 %v647_v16, %v627_v24 }
  0x96   :  { %v131_v19 = vmul.f32 %v862_v17, %v862_v17  ;;  %450 = vmatpush.bf16.msra.mxu1 %v630_v25  ;;  %672 = vmatpush.bf16.msra.mxu3 %v630_v25 }
  0x97   :  { %418 = vmatpush.bf16.msra.mxu0 %v610_v43  ;;  %670 = vmatpush.bf16.msra.mxu2 %v610_v43 }
  0x98   :  { %v151_v20 = vsel %vm26_vm1, %v131_v19, 0.0 }
  0x99   :  { %164 = vadd.xlane.f32.xlu2 %v163_v18  ;;  %152 = vadd.xlane.f32.xlu1 %v151_v20 }
  0x9a   :  { %451 = vmatpush.bf16.msra.mxu1 %v622_v32  ;;  %673 = vmatpush.bf16.msra.mxu3 %v622_v32 }
  0x9b   :  { %419 = vmatpush.bf16.msra.mxu0 %v602_v50  ;;  %671 = vmatpush.bf16.msra.mxu2 %v602_v50 }
  0x9e   :  { %452 = vmatpush.bf16.msra.mxu1 %v614_v46  ;;  %674 = vmatpush.bf16.msra.mxu3 %v614_v46 }
  0xa2   :  { %453 = vmatpush.bf16.msra.mxu1 %v606_v56  ;;  %675 = vmatpush.bf16.msra.mxu3 %v606_v56 }
  0xf3   :  { %v156_v31 = vpop.xlane.xlu0 %155 }
  0xf4   :  { %v138_v34 = vpop.xlane.xlu1 %137  ;;  %v172_v35 = vmul.f32 %v156_v31, %v800_v33 }
  0xf5   :  { %v166_v36 = vmul.f32 %v138_v34, %v800_v33 }
  0xf6   :  { %v903_v42 = vadd.f32 1e-05, %v172_v35 }
  0xf7   :  { %v908_v45 = vadd.f32 1e-05, %v166_v36 }
  0xf8   :  { %682 = vrsqrt.f32 %v903_v42  ;;  %vm252_vm3 = vweird.f32 %v903_v42 }
  0xf9   :  { %684 = vrsqrt.f32 %v908_v45  ;;  %vm192_vm6 = vweird.f32 %v908_v45 }
  0xfb   :  { %v147_v55 = vpop.xlane.xlu0 %146 }
  0xfc   :  { %v159_v58 = vpop.xlane.xlu1 %158  ;;  %v141_v59 = vpop.xlane.xlu2 %140  ;;  %v169_v60 = vmul.f32 %v147_v55, %v800_v33 }
  0xfd   :  { %v173_v61 = vmul.f32 %v159_v58, %v800_v33  ;;  %v167_v62 = vmul.f32 %v141_v59, %v800_v33 }
  0xfe   :  { %v683_v63 = vpop.eup %682  ;;  %v927_v0 = vadd.f32 1e-05, %v169_v60 }
  0xff   :  { %v685_v2 = vpop.eup %684  ;;  %v247_v1 = vmul.f32 %v683_v63, %v903_v42  ;;  %v183_v3 = vadd.f32 1e-05, %v173_v61  ;;  %v930_v4 = vadd.f32 1e-05, %v167_v62  ;;  %vm253_vm4 = vweird.f32 %v683_v63  ;;  %v980_v61 = vld [vmem:[%s1176_s2] ss:$0 sm:$0xff] }
 0x100   :  { %v187_v7 = vmul.f32 %v685_v2, %v908_v45  ;;  %686 = vrsqrt.f32 %v927_v0  ;;  %vm193_vm5 = vweird.f32 %v685_v2  ;;  %vm953_vm7 = vmor %vm252_vm3, %vm253_vm4  ;;  %vm222_vm15 = vweird.f32 %v927_v0 }
 0x101   :  { %v248_v9 = vmul.f32 %v683_v63, %v247_v1  ;;  %688 = vrsqrt.f32 %v183_v3  ;;  %vm957_vm8 = vmor %vm192_vm6, %vm193_vm5  ;;  %vm262_vm9 = vweird.f32 %v183_v3  ;;  %vm202_vm13 = vweird.f32 %v930_v4 }
 0x102   :  { %v188_v10 = vmul.f32 %v685_v2, %v187_v7  ;;  %690 = vrsqrt.f32 %v930_v4 }
 0x103   :  { %v249_v11 = vmul.f32 0.5, %v248_v9  ;;  %v150_v20 = vpop.xlane.xlu0 %149 }
 0x104   :  { %v189_v12 = vmul.f32 0.5, %v188_v10  ;;  %v144_v13 = vpop.xlane.xlu2 %143  ;;  %v162_v14 = vpop.xlane.xlu1 %161  ;;  %v170_v28 = vmul.f32 %v150_v20, %v800_v33 }
 0x105   :  { %v250_v15 = vsub.f32 1.5, %v249_v11  ;;  %v168_v18 = vmul.f32 %v144_v13, %v800_v33  ;;  %v174_v19 = vmul.f32 %v162_v14, %v800_v33  ;;  %v1000_v11 = vld [vmem:[%s1177_s3] ss:$0 sm:$0xff] }
 0x106   :  { %v937_v21 = vpop.eup %686  ;;  %v190_v22 = vsub.f32 1.5, %v189_v12  ;;  %v962_v41 = vadd.f32 1e-05, %v170_v28 }
 0x107   :  { %v689_v16 = vpop.eup %688  ;;  %v217_v23 = vmul.f32 %v937_v21, %v927_v0  ;;  %v942_v24 = vadd.f32 1e-05, %v168_v18  ;;  %v944_v27 = vadd.f32 1e-05, %v174_v19  ;;  %v251_v30 = vmul.f32 %v683_v63, %v250_v15 }
 0x108   :  { %v691_v25 = vpop.eup %690  ;;  %v257_v26 = vmul.f32 %v689_v16, %v183_v3  ;;  %v191_v29 = vmul.f32 %v685_v2, %v190_v22  ;;  %vm263_vm10 = vweird.f32 %v689_v16  ;;  %vm223_vm2 = vweird.f32 %v937_v21 }
 0x109   :  { %v197_v31 = vmul.f32 %v691_v25, %v930_v4  ;;  %v218_v34 = vmul.f32 %v937_v21, %v217_v23  ;;  %692 = vrsqrt.f32 %v942_v24  ;;  %v255_v45 = vsel %vm953_vm7, %v683_v63, %v251_v30  ;;  %vm264_vm12 = vmor %vm262_vm9, %vm263_vm10 }
 0x10a   :  { %v258_v32 = vmul.f32 %v689_v16, %v257_v26  ;;  %694 = vrsqrt.f32 %v944_v27  ;;  %v195_v42 = vsel %vm957_vm8, %v685_v2, %v191_v29  ;;  %vm203_vm11 = vweird.f32 %v691_v25  ;;  %vm1016_vm7 = vmor %vm222_vm15, %vm223_vm2 }
 0x10b   :  { %v198_v36 = vmul.f32 %v691_v25, %v197_v31  ;;  %v219_v49 = vmul.f32 0.5, %v218_v34  ;;  %v286_v58 = vmul.f32 %v195_v42, %v806_v40  ;;  %v292_v59 = vmul.f32 %v255_v45, %v804_v39  ;;  %vm204_vm14 = vmor %vm202_vm13, %vm203_vm11  ;;  %v339_v34 = vld [vmem:[#allocation2 + $0x78] sm:$0xff] }
 0x10c   :  { %v259_v38 = vmul.f32 0.5, %v258_v32  ;;  %v165_v43 = vpop.xlane.xlu2 %164  ;;  %v153_v44 = vpop.xlane.xlu1 %152  ;;  %696 = vrsqrt.f32 %v962_v41  ;;  %vm212_vm3 = vweird.f32 %v942_v24  ;;  %vm272_vm5 = vweird.f32 %v944_v27 }
 0x10d   :  { %v199_v46 = vmul.f32 0.5, %v198_v36  ;;  %v175_v47 = vmul.f32 %v165_v43, %v800_v33  ;;  %v171_v50 = vmul.f32 %v153_v44, %v800_v33  ;;  %v220_v2 = vsub.f32 1.5, %v219_v49 }
 0x10e   :  { %v260_v48 = vsub.f32 1.5, %v259_v38  ;;  %v300_v10 = vmul.f32 %v980_v61, %v286_v58  ;;  %v306_v12 = vmul.f32 %v980_v61, %v292_v59  ;;  %vm232_vm15 = vweird.f32 %v962_v41 }
 0x10f   :  { %v200_v51 = vsub.f32 1.5, %v199_v46  ;;  %v970_v55 = vadd.f32 1e-05, %v175_v47  ;;  %v972_v56 = vpop.eup %692  ;;  %v986_v63 = vadd.f32 1e-05, %v171_v50  ;;  %v221_v18 = vmul.f32 %v937_v21, %v220_v2 }
 0x110   :  { %v261_v60 = vmul.f32 %v689_v16, %v260_v48  ;;  %v207_v62 = vmul.f32 %v972_v56, %v942_v24  ;;  %v695_v40 = vpop.eup %694  ;;  %vm213_vm4 = vweird.f32 %v972_v56  ;;  %v314_v23 = vadd.f32 %v1000_v11, %v300_v10 }
 0x111   :  { %v201_v33 = vmul.f32 %v691_v25, %v200_v51  ;;  %698 = vrsqrt.f32 %v970_v55  ;;  %v267_v4 = vmul.f32 %v695_v40, %v944_v27  ;;  %vm273_vm6 = vweird.f32 %v695_v40  ;;  %vm1029_vm8 = vmor %vm212_vm3, %vm213_vm4 }
 0x112   :  { %v265_v39 = vsel %vm264_vm12, %v689_v16, %v261_v60  ;;  %v208_v7 = vmul.f32 %v972_v56, %v207_v62  ;;  %700 = vrsqrt.f32 %v986_v63  ;;  %v1005_v14 = vpop.eup %696  ;;  %v320_v26 = vadd.f32 %v1000_v11, %v306_v12  ;;  %vm1038_vm9 = vmor %vm272_vm5, %vm273_vm6  ;;  %v327_v16 = vld [vmem:[#allocation2 + $0x18] sm:$0xff] }
 0x113   :  { %v293_v1 = vmul.f32 %v265_v39, %v818_v52  ;;  %v205_v3 = vsel %vm204_vm14, %v691_v25, %v201_v33  ;;  %v268_v52 = vmul.f32 %v695_v40, %v267_v4  ;;  %v227_v31 = vmul.f32 %v1005_v14, %v962_v41 }
 0x114   :  { %v287_v9 = vmul.f32 %v205_v3, %v822_v54  ;;  %v209_v13 = vmul.f32 0.5, %v208_v7  ;;  %v225_v27 = vsel %vm1016_vm7, %v937_v21, %v221_v18  ;;  %vm282_vm10 = vweird.f32 %v970_v55 }
 0x115   :  { %v307_v15 = vmul.f32 %v980_v61, %v293_v1  ;;  %v269_v20 = vmul.f32 0.5, %v268_v52  ;;  %v228_v45 = vmul.f32 %v1005_v14, %v227_v31  ;;  %v289_v50 = vmul.f32 %v225_v27, %v820_v53 }
 0x116   :  { %v301_v54 = vmul.f32 %v980_v61, %v287_v9  ;;  %v210_v19 = vsub.f32 1.5, %v209_v13  ;;  %vm242_vm13 = vweird.f32 %v986_v63  ;;  %vm233_vm2 = vweird.f32 %v1005_v14 }
 0x117   :  { %v699_v22 = vpop.eup %698  ;;  %v321_v28 = vadd.f32 %v1000_v11, %v307_v15  ;;  %v270_v30 = vsub.f32 1.5, %v269_v20  ;;  %vm234_vm4 = vmor %vm232_vm15, %vm233_vm2  ;;  %vm579_vm5 = vcmask 1043456   ;;  %vm580_vm6 = vcmask 523268  }
 0x118   :  { %v315_v25 = vadd.f32 %v1000_v11, %v301_v54  ;;  %v211_v29 = vmul.f32 %v972_v56, %v210_v19  ;;  %v277_v32 = vmul.f32 %v699_v22, %v970_v55  ;;  %v701_v37 = vpop.eup %700  ;;  %vm283_vm11 = vweird.f32 %v699_v22  ;;  %vm1098_vm7 = vmor %vm580_vm6, %vm579_vm5 }
 0x119   :  { %v347_v36 = vpack.c.bf16 %v321_v28, %v320_v26  ;;  %v271_v38 = vmul.f32 %v695_v40, %v270_v30  ;;  %v237_v44 = vmul.f32 %v701_v37, %v986_v63  ;;  %vm284_vm12 = vmor %vm282_vm10, %vm283_vm11  ;;  %vm243_vm14 = vweird.f32 %v701_v37 }
 0x11a   :  { %v344_v35 = vpack.c.bf16 %v315_v25, %v314_v23  ;;  %v215_v24 = vsel %vm1029_vm8, %v972_v56, %v211_v29  ;;  %v278_v43 = vmul.f32 %v699_v22, %v277_v32  ;;  %v229_v56 = vmul.f32 0.5, %v228_v45  ;;  %vm244_vm3 = vmor %vm242_vm13, %vm243_vm14 }
 0x11b   :  { %634 = vmatmul.msk.bf16.vlgmr.msra.gmra.mxu2 %vm26_vm1, %v347_v36  ;;  %v275_v42 = vsel %vm1038_vm9, %v695_v40, %v271_v38  ;;  %639 = vmatmul.msk.bf16.vlgmr.msra.gmra.mxu3 %vm26_vm1, %v347_v36  ;;  %v288_v47 = vmul.f32 %v215_v24, %v830_v57  ;;  %v238_v48 = vmul.f32 %v701_v37, %v237_v44  ;;  %v329_v24 = vld [vmem:[#allocation2 + $0x28] sm:$0xff]  ;;  %vm592_vm8 = vcmask 522244  }
 0x11c   :  { %631 = vmatmul.msk.bf16.vlgmr.msra.gmra.mxu0 %vm26_vm1, %v344_v35  ;;  %v279_v46 = vmul.f32 0.5, %v278_v43  ;;  %636 = vmatmul.msk.bf16.vlgmr.msra.gmra.mxu1 %vm26_vm1, %v344_v35  ;;  %v294_v21 = vmul.f32 %v275_v42, %v844_v6  ;;  %v303_v57 = vmul.f32 %v980_v61, %v289_v50  ;;  %v230_v55 = vsub.f32 1.5, %v229_v56 }
 0x11d   :  { %v239_v51 = vmul.f32 0.5, %v238_v48  ;;  %v302_v59 = vmul.f32 %v980_v61, %v288_v47 }
 0x11e   :  { %v280_v49 = vsub.f32 1.5, %v279_v46  ;;  %v308_v40 = vmul.f32 %v980_v61, %v294_v21  ;;  %v231_v3 = vmul.f32 %v1005_v14, %v230_v55  ;;  %v341_v21 = vld [vmem:[#allocation2 + $0x88] sm:$0xff] }
 0x11f   :  { %v240_v33 = vsub.f32 1.5, %v239_v51  ;;  %v316_v53 = vadd.f32 %v1000_v11, %v302_v59  ;;  %v331_v59 = vld [vmem:[#allocation2 + $0x38] sm:$0xff] }
 0x120   :  { %v281_v58 = vmul.f32 %v699_v22, %v280_v49  ;;  %v322_v2 = vadd.f32 %v1000_v11, %v308_v40  ;;  %v235_v41 = vsel %vm234_vm4, %v1005_v14, %v231_v3  ;;  %v325_v14 = vld [vmem:[#allocation2 + $0x8] sm:$0xff]  ;;  %v343_v3 = vld [vmem:[#allocation2 + $0x98] sm:$0x3f] }
 0x121   :  { %v241_v39 = vmul.f32 %v701_v37, %v240_v33  ;;  %v290_v10 = vmul.f32 %v235_v41, %v842_v5  ;;  %v543_v5 = vld [vmem:[%s1179_s4] sm:$0x3] }
 0x122   :  { %v285_v60 = vsel %vm284_vm12, %v699_v22, %v281_v58  ;;  %v1092_v23 = vperm.slane %v543_v5, 1 }
 0x123   :  { %v295_v62 = vmul.f32 %v285_v60, %v850_v8  ;;  %v317_v8 = vadd.f32 %v1000_v11, %v303_v57  ;;  %v245_v4 = vsel %vm244_vm3, %v701_v37, %v241_v39  ;;  %v304_v13 = vmul.f32 %v980_v61, %v290_v10 }
 0x124   :  { %v291_v9 = vmul.f32 %v245_v4, %v862_v17  ;;  %v337_v17 = vld [vmem:[#allocation2 + $0x68] sm:$0xff] }
 0x125   :  { %v309_v6 = vmul.f32 %v980_v61, %v295_v62  ;;  %v345_v63 = vpack.c.bf16 %v317_v8, %v316_v53  ;;  %v318_v54 = vadd.f32 %v1000_v11, %v304_v13 }
 0x126   :  { %v305_v12 = vmul.f32 %v980_v61, %v291_v9  ;;  %v333_v9 = vld [vmem:[#allocation2 + $0x48] sm:$0xff] }
 0x127   :  { %v323_v1 = vadd.f32 %v1000_v11, %v309_v6 }
 0x128   :  { %v319_v52 = vadd.f32 %v1000_v11, %v305_v12  ;;  %v1090_v11 = vperm.slane %v543_v5, 0 }
 0x129   :  { %v348_v7 = vpack.c.bf16 %v323_v1, %v322_v2  ;;  %v342_v1 = vld [vmem:[#allocation2 + $0x90] sm:$0x3f] }
 0x12a   :  { %v346_v15 = vpack.c.bf16 %v319_v52, %v318_v54 }
 0x12b   :  { %635 = vmatmul.msk.bf16.gmra.mxu2 %vm26_vm1, %v348_v7  ;;  %640 = vmatmul.msk.bf16.gmra.mxu3 %vm26_vm1, %v348_v7 }
 0x12c   :  { %632 = vmatmul.msk.bf16.gmra.mxu0 %vm26_vm1, %v345_v63  ;;  %637 = vmatmul.msk.bf16.gmra.mxu1 %vm26_vm1, %v345_v63 }
 0x13c   :  { %633 = vmatmul.msk.bf16.gmra.mxu0 %vm26_vm1, %v346_v15  ;;  %638 = vmatmul.msk.bf16.gmra.mxu1 %vm26_vm1, %v346_v15 }
 0x199   :  { %v421_v18 = vpop.f32.mrf.mxu0  ;;  %v455_v19 = vpop.f32.mrf.mxu1 }
 0x19a   :  { %v481_v20 = vadd.f32 %v455_v19, %v325_v14  ;;  %v549_v30 = vadd.f32 %v1090_v11, %v421_v18 }
 0x19c   :  { %501 = vst.msk [vmem:[#allocation2 + $0x8] sm:$0xff] %vm26_vm1, %v481_v20 }
 0x19e   :  { %v436_v61 = vpop.f32.mrf.mxu2  ;;  %v470_v22 = vpop.f32.mrf.mxu3 }
 0x19f   :  { %v493_v25 = vadd.f32 %v470_v22, %v337_v17  ;;  %v561_v42 = vadd.f32 %v1090_v11, %v436_v61  ;;  %v335_v61 = vld [vmem:[#allocation2 + $0x58] sm:$0xff] }
 0x1a1   :  { %v423_v26 = vpop.f32.mrf.mxu0  ;;  %v457_v28 = vpop.f32.mrf.mxu1  ;;  %513 = vst.msk [vmem:[#allocation2 + $0x68] sm:$0xff] %vm26_vm1, %v493_v25 }
 0x1a2   :  { %v483_v29 = vadd.f32 %v457_v28, %v327_v16  ;;  %v551_v49 = vadd.f32 %v1090_v11, %v423_v26 }
 0x1a3   :  { %v524_v0 = vld [vmem:[#allocation2 + $0x8] sm:$0xff] }
 0x1a4   :  { %v550_v31 = vadd.f32 %v1092_v23, %v524_v0  ;;  %503 = vst.msk [vmem:[#allocation2 + $0x18] sm:$0xff] %vm26_vm1, %v483_v29 }
 0x1a6   :  { %v569_v35 = vpack.c.bf16 %v550_v31, %v549_v30  ;;  %v438_v36 = vpop.f32.mrf.mxu2  ;;  %v472_v37 = vpop.f32.mrf.mxu3 }
 0x1a7   :  { %v495_v38 = vadd.f32 %v472_v37, %v339_v34  ;;  %v563_v40 = vadd.f32 %v1090_v11, %v438_v36 }
 0x1a8   :  { %582 = vst.msk [vmem:[%s1180_s5] sm:$0xff] %vm1098_vm7, %v569_v35  ;;  %v536_v44 = vld [vmem:[#allocation2 + $0x68] sm:$0xff] }
 0x1a9   :  { %v426_v43 = vpop.f32.mrf.mxu0  ;;  %v460_v27 = vpop.f32.mrf.mxu1  ;;  %v562_v45 = vadd.f32 %v1092_v23, %v536_v44  ;;  %515 = vst.msk [vmem:[#allocation2 + $0x78] sm:$0xff] %vm26_vm1, %v495_v38 }
 0x1aa   :  { %v485_v46 = vadd.f32 %v460_v27, %v329_v24  ;;  %v553_v8 = vadd.f32 %v1090_v11, %v426_v43 }
 0x1ab   :  { %v526_v47 = vld [vmem:[#allocation2 + $0x18] sm:$0xff]  ;;  %v575_v48 = vpack.c.bf16 %v562_v45, %v561_v42 }
 0x1ac   :  { %v552_v50 = vadd.f32 %v1092_v23, %v526_v47  ;;  %505 = vst.msk [vmem:[#allocation2 + $0x28] sm:$0xff] %vm26_vm1, %v485_v46 }
 0x1ad   :  { %588 = vst.msk [vmem:[%s1180_s5 + $0x30] sm:$0xff] %vm1098_vm7, %v575_v48 }
 0x1ae   :  { %v570_v51 = vpack.c.bf16 %v552_v50, %v551_v49  ;;  %v441_v56 = vpop.f32.mrf.mxu2  ;;  %v475_v58 = vpop.f32.mrf.mxu3 }
 0x1af   :  { %v497_v60 = vadd.f32 %v475_v58, %v341_v21  ;;  %v565_v54 = vadd.f32 %v1090_v11, %v441_v56 }
 0x1b0   :  { %583 = vst.msk [vmem:[%s1180_s5 + $0x8] sm:$0xff] %vm1098_vm7, %v570_v51  ;;  %v538_v62 = vld [vmem:[#allocation2 + $0x78] sm:$0xff] }
 0x1b1   :  { %v428_v33 = vpop.f32.mrf.mxu0  ;;  %v462_v57 = vpop.f32.mrf.mxu1  ;;  %v564_v55 = vadd.f32 %v1092_v23, %v538_v62  ;;  %517 = vst.msk [vmem:[#allocation2 + $0x88] sm:$0xff] %vm26_vm1, %v497_v60 }
 0x1b2   :  { %v487_v53 = vadd.f32 %v462_v57, %v331_v59  ;;  %v555_v20 = vadd.f32 %v1090_v11, %v428_v33 }
 0x1b3   :  { %v528_v6 = vld [vmem:[#allocation2 + $0x28] sm:$0xff]  ;;  %v576_v39 = vpack.c.bf16 %v564_v55, %v563_v40 }
 0x1b4   :  { %v554_v2 = vadd.f32 %v1092_v23, %v528_v6  ;;  %507 = vst.msk [vmem:[#allocation2 + $0x38] sm:$0xff] %vm26_vm1, %v487_v53 }
 0x1b5   :  { %589 = vst.msk [vmem:[%s1180_s5 + $0x38] sm:$0xff] %vm1098_vm7, %v576_v39 }
 0x1b6   :  { %v571_v63 = vpack.c.bf16 %v554_v2, %v553_v8  ;;  %v443_v7 = vpop.f32.mrf.mxu2  ;;  %v477_v41 = vpop.f32.mrf.mxu3 }
 0x1b7   :  { %v498_v4 = vadd.f32 %v443_v7, %v342_v1  ;;  %v499_v10 = vadd.f32 %v477_v41, %v343_v3 }
 0x1b8   :  { %584 = vst.msk [vmem:[%s1180_s5 + $0x10] sm:$0xff] %vm1098_vm7, %v571_v63  ;;  %v540_v13 = vld [vmem:[#allocation2 + $0x88] sm:$0xff] }
 0x1b9   :  { %v431_v12 = vpop.f32.mrf.mxu0  ;;  %518 = vst [vmem:[#allocation2 + $0x90] sm:$0x3f] %v498_v4  ;;  %v465_v52 = vpop.f32.mrf.mxu1  ;;  %v566_v15 = vadd.f32 %v1092_v23, %v540_v13 }
 0x1ba   :  { %519 = vst.msk [vmem:[#allocation2 + $0x98] sm:$0x3f] %vm45_vm0, %v499_v10  ;;  %v489_v14 = vadd.f32 %v465_v52, %v333_v9  ;;  %vm591_vm0 = vcmask 1042432   ;;  %v557_v34 = vadd.f32 %v1090_v11, %v431_v12 }
 0x1bb   :  { %v530_v18 = vld [vmem:[#allocation2 + $0x38] sm:$0xff]  ;;  %v577_v19 = vpack.c.bf16 %v566_v15, %v565_v54  ;;  %vm593_vm9 = vmor %vm592_vm8, %vm591_vm0 }
 0x1bc   :  { %v556_v5 = vadd.f32 %v1092_v23, %v530_v18  ;;  %509 = vst.msk [vmem:[#allocation2 + $0x48] sm:$0xff] %vm26_vm1, %v489_v14 }
 0x1bd   :  { %590 = vst.msk [vmem:[%s1180_s5 + $0x40] sm:$0xff] %vm1098_vm7, %v577_v19 }
 0x1be   :  { %v572_v17 = vpack.c.bf16 %v556_v5, %v555_v20 }
 0x1c0   :  { %585 = vst.msk [vmem:[%s1180_s5 + $0x18] sm:$0xff] %vm1098_vm7, %v572_v17  ;;  %v541_v22 = vld [vmem:[#allocation2 + $0x90] sm:$0x3f] }
 0x1c1   :  { %v433_v16 = vpop.f32.mrf.mxu0  ;;  %v567_v25 = vadd.f32 %v1090_v11, %v541_v22  ;;  %v542_v26 = vld [vmem:[#allocation2 + $0x98] sm:$0x3f]  ;;  %v467_v28 = vpop.f32.mrf.mxu1 }
 0x1c2   :  { %v568_v29 = vadd.f32 %v1092_v23, %v542_v26  ;;  %v491_v0 = vadd.f32 %v467_v28, %v335_v61  ;;  %v559_v24 = vadd.f32 %v1090_v11, %v433_v16 }
 0x1c3   :  { %v532_v30 = vld [vmem:[#allocation2 + $0x48] sm:$0xff] }
 0x1c4   :  { %v578_v31 = vpack.c.bf16 %v568_v29, %v567_v25  ;;  %v558_v35 = vadd.f32 %v1092_v23, %v532_v30  ;;  %511 = vst.msk [vmem:[#allocation2 + $0x58] sm:$0xff] %vm26_vm1, %v491_v0 }
 0x1c6   :  { %594 = vst.msk [vmem:[%s1180_s5 + $0x48] sm:$0x77] %vm593_vm9, %v578_v31  ;;  %v573_v36 = vpack.c.bf16 %v558_v35, %v557_v34 }
 0x1c8   :  { %586 = vst.msk [vmem:[%s1180_s5 + $0x20] sm:$0xff] %vm1098_vm7, %v573_v36 }
 0x1cb   :  { %v534_v37 = vld [vmem:[#allocation2 + $0x58] sm:$0xff] }
 0x1cc   :  { %v560_v38 = vadd.f32 %v1092_v23, %v534_v37 }
 0x1ce   :  { %v574_v43 = vpack.c.bf16 %v560_v38, %v559_v24 }
 0x1d0   :  { %587 = vst.msk [vmem:[%s1180_s5 + $0x28] sm:$0xff] %vm1098_vm7, %v574_v43 }

// kernel: beit_forward.64
= control target key start
LH: loop header
LB: loop body
LE: loop exit
PB: predicated region body
PF: predicated region fallthrough
CT: control target
= control target key end

     0   :  { %s944_s15 = smov 0   ;;  %s1071_s0 = inlined_call_operand.vmem [shape: bf16[24,13,16], index: 0, kind: input, shape index: {}]   ;;  %s1072_s1 = inlined_call_operand.vmem [shape: bf16[24,13,16], index: 1, kind: input, shape index: {}]   ;;  %s1073_s2 = inlined_call_operand.vmem [shape: bf16[24,13,16], index: 2, kind: input, shape index: {}]   ;;  %s1074_s3 = inlined_call_operand.vmem [shape: f32[6,1,13], index: 3, kind: input, shape index: {}]   ;;  %s1075_s4 = inlined_call_operand.vmem [shape: bf16[24,13,16], index: 4, kind: output, shape index: {}]  }
   0x1 LB: > { %s950_s16 = sadd.s32 4294967295, %s916_s15   ;;  %p781_p0 = scmp.ge.s32.totalorder %s916_s15, 1  ;;  %s916_s15 = sphi %s944_s15, %s14_s15  }
   0x2   : > { %p196_p1 = scmp.lt.s32.totalorder %s916_s15, 7 }
   0x4   : > { %p197_p2 = pnand %p781_p0, %p196_p1 }
   0x5   : > { %s782_s17 = sshll.u32 (!%p197_p2), %s950_s16, 2  ;;  %p260_p4 = scmp.lt.s32.totalorder (!%p197_p2), %s950_s16, 5 }
   0x6   : > { %200 = sbr.rel (%p197_p2) target bundleno = 578 (0x242), region = 36  ;;  %p240_p3 = scmp.lt.s32.totalorder (!%p197_p2), %s782_s17, 23 }
   0xb   : > { %s1079_s17 = smov (!%p240_p3, %s782_s17), 23  ;;  %vm297_vm0 = vcmask 130048   ;;  %s1081_s16 = smov (!%p260_p4, %s950_s16), 5  ;;  %vm428_vm1 = vcmask 105472   ;;  %vm432_vm2 = vcmask 102400   ;;  %vm547_vm3 = vcmask 1045504  }
   0xc   : > { %s955_s18 = sshll.u32 %s1079_s17, 3  ;;  %s262_s27 = scalar_lea.vmem %s1074_s3, %s1081_s16  ;;  %vm548_vm4 = vcmask 1046528   ;;  %vm666_vm5 = vcmask 125952   ;;  %vm668_vm6 = vcmask 124928   ;;  %vm669_vm7 = vsmask.f32 2304 }
   0xd   : > { %s251_s21 = scalar_lea.vmem %s1072_s1, %s955_s18  ;;  %s244_s24 = scalar_lea.vmem %s1071_s0, %s955_s18  ;;  %v877_v28 = vld [vmem:[%s262_s27] ss:$0 sm:$0xff]  ;;  %vm1042_vm8 = vmand %vm668_vm6, %vm669_vm7 }
   0xe   : > { %v800_v0 = vld [vmem:[%s251_s21] sm:$0xf]  ;;  %v860_v1 = vld [vmem:[%s251_s21] sm:$0x70]  ;;  %v818_v2 = vld [vmem:[%s251_s21 + $0x10] sm:$0xf]  ;;  %s258_s30 = scalar_lea.vmem %s1073_s2, %s955_s18  ;;  %s1038_s7 = scalar_lea.vmem %s1075_s4, %s955_s18 }
   0xf   : > { %v801_v3 = vor.u32 %v860_v1, %v800_v0  ;;  %v862_v4 = vld [vmem:[%s251_s21 + $0x10] sm:$0x70]  ;;  %v827_v5 = vld [vmem:[%s251_s21 + $0x18] sm:$0xf]  ;;  %v863_v6 = vld [vmem:[%s251_s21 + $0x18] sm:$0x70] }
  0x10   : > { %v819_v7 = vor.u32 %v862_v4, %v818_v2  ;;  %v828_v8 = vor.u32 %v863_v6, %v827_v5  ;;  %v809_v9 = vld [vmem:[%s251_s21 + $0x8] sm:$0xf]  ;;  %v861_v10 = vld [vmem:[%s251_s21 + $0x8] sm:$0x70]  ;;  %v796_v13 = vld [vmem:[%s244_s24] sm:$0xf] }
  0x11   : > { %v302_v11 = vsel %vm297_vm0, %v801_v3, 0  ;;  %v810_v12 = vor.u32 %v861_v10, %v809_v9  ;;  %v856_v14 = vld [vmem:[%s244_s24] sm:$0x70]  ;;  %v814_v17 = vld [vmem:[%s244_s24 + $0x10] sm:$0xf] }
  0x12   : > { %311 = vmatpush.bf16.xpose.msra.mxu0 %v302_v11  ;;  %v362_v15 = vsel %vm297_vm0, %v819_v7, 0  ;;  %v392_v16 = vsel %vm297_vm0, %v828_v8, 0  ;;  %v858_v18 = vld [vmem:[%s244_s24 + $0x10] sm:$0x70]  ;;  %v823_v20 = vld [vmem:[%s244_s24 + $0x18] sm:$0xf]  ;;  %v797_v24 = vor.u32 %v856_v14, %v796_v13 }
  0x13   : > { %371 = vmatpush.bf16.xpose.msra.mxu2 %v362_v15  ;;  %401 = vmatpush.bf16.xpose.msra.mxu3 %v392_v16  ;;  %v332_v19 = vsel %vm297_vm0, %v810_v12, 0  ;;  %v859_v21 = vld [vmem:[%s244_s24 + $0x18] sm:$0x70]  ;;  %v805_v22 = vld [vmem:[%s244_s24 + $0x8] sm:$0xf]  ;;  %v815_v25 = vor.u32 %v858_v18, %v814_v17 }
  0x14   : > { %341 = vmatpush.bf16.xpose.msra.mxu1 %v332_v19  ;;  %v857_v23 = vld [vmem:[%s244_s24 + $0x8] sm:$0x70]  ;;  %v824_v26 = vor.u32 %v859_v21, %v823_v20 }
  0x15   : > { %v806_v27 = vor.u32 %v857_v23, %v805_v22 }
  0x19   : > { %802 = vmatmul.msk.bf16.vlgmr.msra.gmra.mxu0 %vm297_vm0, %v797_v24 }
  0x1a   : > { %820 = vmatmul.msk.bf16.vlgmr.msra.gmra.mxu2 %vm297_vm0, %v815_v25  ;;  %829 = vmatmul.msk.bf16.vlgmr.msra.gmra.mxu3 %vm297_vm0, %v824_v26 }
  0x1b   : > { %811 = vmatmul.msk.bf16.vlgmr.msra.gmra.mxu1 %vm297_vm0, %v806_v27 }
  0x96   : > { %v313_v29 = vpop.f32.mrf.mxu0 }
  0x97   : > { %v408_v30 = vmul.f32 0.25, %v313_v29 }
  0x98   : > { %v343_v33 = vpop.f32.mrf.mxu1 }
  0x99   : > { %v420_v31 = vadd.f32 %v877_v28, %v408_v30  ;;  %v410_v53 = vmul.f32 0.25, %v343_v33 }
  0x9b   : > { %v429_v32 = vsel %vm428_vm1, %v420_v31, -inf  ;;  %v422_v57 = vadd.f32 %v877_v28, %v410_v53 }
  0x9c   : > { %430 = vmax.xlane.f32.xlu2 %v429_v32 }
  0x9d   : > { %v373_v34 = vpop.f32.mrf.mxu2  ;;  %v403_v35 = vpop.f32.mrf.mxu3  ;;  %v436_v59 = vsel %vm428_vm1, %v422_v57, -inf }
  0x9e   : > { %v412_v36 = vmul.f32 0.25, %v373_v34  ;;  %v414_v37 = vmul.f32 0.25, %v403_v35  ;;  %v315_v38 = vpop.f32.mrf.mxu0 }
  0x9f   : > { %v409_v39 = vmul.f32 0.25, %v315_v38  ;;  %v866_v38 = vld [vmem:[%s258_s30 + $0x10] sm:$0x70] }
  0xa0   : > { %v426_v40 = vadd.f32 %v877_v28, %v414_v37  ;;  %v424_v41 = vadd.f32 %v877_v28, %v412_v36  ;;  %v345_v50 = vpop.f32.mrf.mxu1  ;;  %v842_v37 = vld [vmem:[%s258_s30 + $0x10] sm:$0xf] }
  0xa1   : > { %v421_v42 = vadd.f32 %v877_v28, %v409_v39  ;;  %v411_v54 = vmul.f32 0.25, %v345_v50  ;;  %v918_v39 = vmov 65535  }
  0xa2   : > { %v448_v43 = vsel %vm428_vm1, %v426_v40, -inf  ;;  %v442_v44 = vsel %vm428_vm1, %v424_v41, -inf }
  0xa3   : > { %449 = vmax.xlane.f32.xlu1 %v448_v43  ;;  %443 = vmax.xlane.f32.xlu0 %v442_v44  ;;  %v433_v45 = vsel %vm432_vm2, %v421_v42, -inf  ;;  %v423_v58 = vadd.f32 %v877_v28, %v411_v54  ;;  %v867_v43 = vld [vmem:[%s258_s30 + $0x18] sm:$0x70] }
  0xa4   : > { %434 = vmax.xlane.f32.xlu2 %v433_v45 }
  0xa5   : > { %v375_v46 = vpop.f32.mrf.mxu2  ;;  %v405_v47 = vpop.f32.mrf.mxu3  ;;  %v439_v60 = vsel %vm432_vm2, %v423_v58, -inf }
  0xa6   : > { %v413_v48 = vmul.f32 0.25, %v375_v46  ;;  %v415_v49 = vmul.f32 0.25, %v405_v47  ;;  %v832_v46 = vld [vmem:[%s258_s30] sm:$0xf]  ;;  %v864_v47 = vld [vmem:[%s258_s30] sm:$0x70] }
  0xa8   : > { %v427_v51 = vadd.f32 %v877_v28, %v415_v49  ;;  %v425_v52 = vadd.f32 %v877_v28, %v413_v48  ;;  %v833_v49 = vor.u32 %v864_v47, %v832_v46 }
  0xaa   : > { %v451_v55 = vsel %vm432_vm2, %v427_v51, -inf  ;;  %v445_v56 = vsel %vm432_vm2, %v425_v52, -inf }
  0xab   : > { %452 = vmax.xlane.f32.xlu1 %v451_v55  ;;  %446 = vmax.xlane.f32.xlu0 %v445_v56 }
  0xb3   : > { %437 = vmax.xlane.f32.xlu0 %v436_v59  ;;  %440 = vmax.xlane.f32.xlu1 %v439_v60 }
 0x10f   : > { %v431_v61 = vpop.xlane.xlu2 %430 }
 0x110   : > { %v454_v62 = vsub.f32 %v420_v31, %v431_v61 }
 0x112   : > { %v462_v63 = vmul.f32 1.442695, %v454_v62 }
 0x114   : > { %878 = vpow2.f32 %v462_v63 }
 0x116   : > { %v450_v0 = vpop.xlane.xlu1 %449  ;;  %v444_v1 = vpop.xlane.xlu0 %443 }
 0x117   : > { %v460_v2 = vsub.f32 %v426_v40, %v450_v0  ;;  %v458_v3 = vsub.f32 %v424_v41, %v444_v1  ;;  %v435_v4 = vpop.xlane.xlu2 %434  ;;  %v549_v40 = vsel %vm547_vm3, 4294967295, %v918_v39  ;;  %v843_v41 = vor.u32 %v866_v38, %v842_v37 }
 0x118   : > { %v455_v7 = vsub.f32 %v421_v42, %v435_v4  ;;  %v847_v42 = vld [vmem:[%s258_s30 + $0x18] sm:$0xf]  ;;  %v550_v44 = vsel %vm548_vm4, %v549_v40, 0 }
 0x119   : > { %v474_v5 = vmul.f32 1.442695, %v460_v2  ;;  %v470_v6 = vmul.f32 1.442695, %v458_v3  ;;  %v848_v45 = vor.u32 %v867_v43, %v847_v42  ;;  %v612_v48 = vand.u32 %v843_v41, %v550_v44  ;;  %v671_v43 = vld [vmem:[%s1038_s7 + $0x4] sm:$0x7] }
 0x11a   : > { %v986_v8 = vpop.eup %878  ;;  %v464_v10 = vmul.f32 1.442695, %v455_v7  ;;  %v552_v53 = vand.u32 %v833_v49, %v550_v44 }
 0x11b   : > { %880 = vpow2.f32 %v474_v5  ;;  %v478_v9 = vsel %vm428_vm1, %v986_v8, 0.0  ;;  %v642_v50 = vand.u32 %v848_v45, %v550_v44  ;;  %621 = vmatpush.bf16.msrb.mxu2 %v612_v48 }
 0x11c   : > { %882 = vpow2.f32 %v470_v6  ;;  %479 = vadd.xlane.f32.xlu0 %v478_v9  ;;  %561 = vmatpush.bf16.msrb.mxu0 %v552_v53  ;;  %v683_v53 = vld [vmem:[%s1038_s7 + $0x1c] sm:$0x7] }
 0x11d   : > { %884 = vpow2.f32 %v464_v10  ;;  %651 = vmatpush.bf16.msrb.mxu3 %v642_v50  ;;  %v679_v50 = vld [vmem:[%s1038_s7 + $0x14] sm:$0x7] }
 0x11e   : > { %v453_v11 = vpop.xlane.xlu1 %452  ;;  %v447_v12 = vpop.xlane.xlu0 %446 }
 0x11f   : > { %v461_v13 = vsub.f32 %v427_v51, %v453_v11  ;;  %v459_v14 = vsub.f32 %v425_v52, %v447_v12  ;;  %v837_v51 = vld [vmem:[%s258_s30 + $0x8] sm:$0xf]  ;;  %v865_v52 = vld [vmem:[%s258_s30 + $0x8] sm:$0x70] }
 0x120   : > { %v838_v54 = vor.u32 %v865_v52, %v837_v51 }
 0x121   : > { %v990_v15 = vpop.eup %880  ;;  %v476_v16 = vmul.f32 1.442695, %v461_v13  ;;  %v472_v17 = vmul.f32 1.442695, %v459_v14 }
 0x122   : > { %v992_v18 = vpop.eup %882  ;;  %v496_v19 = vsel %vm428_vm1, %v990_v15, 0.0  ;;  %v582_v55 = vand.u32 %v838_v54, %v550_v44 }
 0x123   : > { %886 = vpow2.f32 %v476_v16  ;;  %497 = vadd.xlane.f32.xlu1 %v496_v19  ;;  %v490_v20 = vsel %vm428_vm1, %v992_v18, 0.0  ;;  %v998_v23 = vpop.eup %884 }
 0x124   : > { %888 = vpow2.f32 %v472_v17  ;;  %491 = vadd.xlane.f32.xlu2 %v490_v20  ;;  %v481_v31 = vsel %vm432_vm2, %v998_v23, 0.0  ;;  %591 = vmatpush.bf16.msrb.mxu1 %v582_v55 }
 0x126   : > { %v438_v21 = vpop.xlane.xlu0 %437  ;;  %v441_v22 = vpop.xlane.xlu1 %440 }
 0x127   : > { %v456_v24 = vsub.f32 %v422_v57, %v438_v21  ;;  %v457_v25 = vsub.f32 %v423_v58, %v441_v22 }
 0x129   : > { %v1000_v26 = vpop.eup %886  ;;  %v466_v27 = vmul.f32 1.442695, %v456_v24  ;;  %v468_v28 = vmul.f32 1.442695, %v457_v25 }
 0x12a   : > { %v1002_v29 = vpop.eup %888  ;;  %v499_v30 = vsel %vm432_vm2, %v1000_v26, 0.0 }
 0x12b   : > { %890 = vpow2.f32 %v466_v27  ;;  %v493_v32 = vsel %vm432_vm2, %v1002_v29, 0.0  ;;  %482 = vadd.xlane.f32.xlu1 %v481_v31 }
 0x12c   : > { %892 = vpow2.f32 %v468_v28  ;;  %494 = vadd.xlane.f32.xlu0 %v493_v32  ;;  %500 = vadd.xlane.f32.xlu2 %v499_v30 }
 0x131   : > { %v1010_v33 = vpop.eup %890 }
 0x132   : > { %v1012_v34 = vpop.eup %892  ;;  %v484_v35 = vsel %vm428_vm1, %v1010_v33, 0.0 }
 0x133   : > { %v487_v36 = vsel %vm432_vm2, %v1012_v34, 0.0 }
 0x134   : > { %488 = vadd.xlane.f32.xlu0 %v487_v36  ;;  %485 = vadd.xlane.f32.xlu2 %v484_v35 }
 0x18f   : > { %v480_v56 = vpop.xlane.xlu0 %479 }
 0x190   : > { %894 = vrcp.f32 %v480_v56 }
 0x196   : > { %v498_v57 = vpop.xlane.xlu1 %497  ;;  %v895_v60 = vpop.eup %894 }
 0x197   : > { %v492_v58 = vpop.xlane.xlu2 %491  ;;  %v510_v1 = vmul.f32 %v895_v60, %v986_v8 }
 0x198   : > { %896 = vrcp.f32 %v492_v58 }
 0x199   : > { %898 = vrcp.f32 %v498_v57  ;;  %v518_v6 = vpack.c.bf16 %v510_v1, %v510_v1  ;;  %v675_v57 = vld [vmem:[%s1038_s7 + $0xc] sm:$0x7] }
 0x19e   : > { %v483_v59 = vpop.xlane.xlu1 %482  ;;  %v897_v63 = vpop.eup %896 }
 0x19f   : > { %v495_v61 = vpop.xlane.xlu0 %494  ;;  %900 = vrcp.f32 %v483_v59  ;;  %v501_v62 = vpop.xlane.xlu2 %500  ;;  %v514_v2 = vmul.f32 %v897_v63, %v992_v18  ;;  %v536_v18 = vunpack.c.l.b16 %v518_v6 }
 0x1a0   : > { %902 = vrcp.f32 %v495_v61  ;;  %v899_v0 = vpop.eup %898 }
 0x1a1   : > { %904 = vrcp.f32 %v501_v62  ;;  %v516_v3 = vmul.f32 %v899_v0, %v990_v15  ;;  %v522_v10 = vpack.c.bf16 %v514_v2, %v514_v2 }
 0x1a3   : > { %v524_v14 = vpack.c.bf16 %v516_v3, %v516_v3  ;;  %v600_v20 = vunpack.c.l.b16 %v522_v10 }
 0x1a5   : > { %v901_v4 = vpop.eup %900  ;;  %v630_v22 = vunpack.c.l.b16 %v524_v14 }
 0x1a6   : > { %v903_v5 = vpop.eup %902  ;;  %v511_v7 = vmul.f32 %v901_v4, %v998_v23 }
 0x1a7   : > { %v905_v9 = vpop.eup %904  ;;  %v515_v11 = vmul.f32 %v903_v5, %v1002_v29  ;;  %v489_v12 = vpop.xlane.xlu0 %488 }
 0x1a8   : > { %v486_v13 = vpop.xlane.xlu2 %485  ;;  %v519_v16 = vpack.c.bf16 %v511_v7, %v511_v7  ;;  %v517_v17 = vmul.f32 %v905_v9, %v1000_v26  ;;  %906 = vrcp.f32 %v489_v12 }
 0x1a9   : > { %v523_v8 = vpack.c.bf16 %v515_v11, %v515_v11  ;;  %908 = vrcp.f32 %v486_v13 }
 0x1aa   : > { %v537_v15 = vunpack.c.l.b16 %v519_v16  ;;  %v525_v19 = vpack.c.bf16 %v517_v17, %v517_v17 }
 0x1ab   : > { %v601_v21 = vunpack.c.l.b16 %v523_v8 }
 0x1ac   : > { %v631_v23 = vunpack.c.l.b16 %v525_v19  ;;  %v538_v24 = vpack.c.b16 %v537_v15, %v536_v18 }
 0x1ad   : > { %v602_v25 = vpack.c.b16 %v601_v21, %v600_v20 }
 0x1ae   : > { %v907_v27 = vpop.eup %906  ;;  %834 = vmatmul.msk.bf16.vlgmr.msrb.gmra.mxu0 %vm428_vm1, %v538_v24  ;;  %v632_v28 = vpack.c.b16 %v631_v23, %v630_v22 }
 0x1af   : > { %v909_v29 = vpop.eup %908  ;;  %v513_v26 = vmul.f32 %v907_v27, %v1012_v34  ;;  %844 = vmatmul.msk.bf16.vlgmr.msrb.gmra.mxu2 %vm428_vm1, %v602_v25 }
 0x1b0   : > { %v512_v30 = vmul.f32 %v909_v29, %v1010_v33  ;;  %849 = vmatmul.msk.bf16.vlgmr.msrb.gmra.mxu3 %vm428_vm1, %v632_v28 }
 0x1b1   : > { %v521_v31 = vpack.c.bf16 %v513_v26, %v513_v26 }
 0x1b2   : > { %v520_v32 = vpack.c.bf16 %v512_v30, %v512_v30 }
 0x1b3   : > { %v571_v35 = vunpack.c.l.b16 %v521_v31 }
 0x1b4   : > { %v570_v36 = vunpack.c.l.b16 %v520_v32 }
 0x1b6   : > { %v572_v37 = vpack.c.b16 %v571_v35, %v570_v36 }
 0x1b8   : > { %839 = vmatmul.msk.bf16.vlgmr.msrb.gmra.mxu1 %vm428_vm1, %v572_v37 }
 0x22b   : > { %v563_v34 = vpop.f32.mrf.mxu0 }
 0x22c   : > { %v658_v33 = vpack.c.bf16 %v563_v34, %v563_v34 }
 0x22e   : > { %667 = vst.msk [vmem:[%s1038_s7] sm:$0xf] %vm666_vm5, %v658_v33 }
 0x232   : > { %v623_v38 = vpop.f32.mrf.mxu2 }
 0x233   : > { %v662_v39 = vpack.c.bf16 %v623_v38, %v623_v38  ;;  %v653_v40 = vpop.f32.mrf.mxu3  ;;  %v565_v41 = vpop.f32.mrf.mxu0 }
 0x234   : > { %v664_v44 = vpack.c.bf16 %v653_v40, %v653_v40  ;;  %v659_v45 = vpack.c.bf16 %v565_v41, %v565_v41 }
 0x235   : > { %678 = vst.msk [vmem:[%s1038_s7 + $0x10] sm:$0xf] %vm666_vm5, %v662_v39  ;;  %v593_v46 = vpop.f32.mrf.mxu1 }
 0x236   : > { %682 = vst.msk [vmem:[%s1038_s7 + $0x18] sm:$0xf] %vm666_vm5, %v664_v44  ;;  %v672_v47 = vsel %vm1042_vm8, %v659_v45, %v671_v43  ;;  %v660_v48 = vpack.c.bf16 %v593_v46, %v593_v46 }
 0x237   : > { %673 = vst [vmem:[%s1038_s7 + $0x4] sm:$0x7] %v672_v47 }
 0x238   : > { %674 = vst.msk [vmem:[%s1038_s7 + $0x8] sm:$0xf] %vm666_vm5, %v660_v48 }
 0x23a   : > { %v625_v49 = vpop.f32.mrf.mxu2 }
 0x23b   : > { %v663_v51 = vpack.c.bf16 %v625_v49, %v625_v49  ;;  %v655_v52 = vpop.f32.mrf.mxu3 }
 0x23c   : > { %v665_v54 = vpack.c.bf16 %v655_v52, %v655_v52 }
 0x23d   : > { %v680_v55 = vsel %vm1042_vm8, %v663_v51, %v679_v50  ;;  %v595_v56 = vpop.f32.mrf.mxu1 }
 0x23e   : > { %681 = vst [vmem:[%s1038_s7 + $0x14] sm:$0x7] %v680_v55  ;;  %v684_v58 = vsel %vm1042_vm8, %v665_v54, %v683_v53  ;;  %v661_v59 = vpack.c.bf16 %v595_v56, %v595_v56 }
 0x23f   : > { %685 = vst [vmem:[%s1038_s7 + $0x1c] sm:$0x7] %v684_v58 }
 0x240   : > { %v676_v60 = vsel %vm1042_vm8, %v661_v59, %v675_v57 }
 0x241   : > { %677 = vst [vmem:[%s1038_s7 + $0xc] sm:$0x7] %v676_v60 }
 0x242 PF: > { %s14_s15 = sadd.s32 1, %s916_s15  }
 0x243   : > { %p11_p5 = scmp.ge.s32.totalorder %s14_s15, 8  }
 0x245   :  { %13 = sbr.rel (!%p11_p5) target bundleno = 1 (0x1), region = 75 }

// kernel: beit_forward.65
= control target key start
LH: loop header
LB: loop body
LE: loop exit
PB: predicated region body
PF: predicated region fallthrough
CT: control target
= control target key end

     0   :  { %vm22_vm0 = vcmask 523264   ;;  %v348_v2 = vmov 0.0   ;;  %vm32_vm1 = vcmask 521216   ;;  %vm249_vm2 = vcmask 519168   ;;  %s501_s1 = inlined_call_operand.vmem [shape: bf16[64,64], index: 1, kind: input, shape index: {}]   ;;  %s502_s2 = inlined_call_operand.vmem [shape: f32[1,64], index: 2, kind: input, shape index: {}]   ;;  %s503_s0 = inlined_call_operand.vmem [shape: bf16[78,64], index: 0, kind: input, shape index: {}]   ;;  %s504_s3 = inlined_call_operand.vmem [shape: bf16[78,64], index: 3, kind: input, shape index: {}]   ;;  %s505_s4 = inlined_call_operand.vmem [shape: bf16[78,64], index: 4, kind: output, shape index: {}]  }
   0x1   :  { %v314_v0 = vld [vmem:[%s501_s1 + $0x18] sm:$0xff]  ;;  %v313_v1 = vld [vmem:[%s501_s1 + $0x10] sm:$0xff]  ;;  %29 = vst.msk [vmem:[#allocation2 + $0x30] sm:$0xff] %vm22_vm0, %v348_v2  ;;  %v312_v3 = vld [vmem:[%s501_s1 + $0x8] sm:$0xff]  ;;  %vm259_vm3 = vcmask 518144  }
   0x2   :  { %336 = vmatpush.bf16.msra.mxu3 %v314_v0  ;;  %335 = vmatpush.bf16.msra.mxu2 %v314_v0  ;;  %23 = vst.msk [vmem:[#allocation2] sm:$0xff] %vm22_vm0, %v348_v2  ;;  %v311_v4 = vld [vmem:[%s501_s1] sm:$0xff]  ;;  %v309_v5 = vld [vmem:[%s503_s0 + $0x18] sm:$0xff]  ;;  %v308_v6 = vld [vmem:[%s503_s0 + $0x10] sm:$0xff] }
   0x3   :  { %131 = vmatpush.bf16.msra.mxu0 %v314_v0  ;;  %334 = vmatpush.bf16.msra.mxu1 %v314_v0  ;;  %24 = vst.msk [vmem:[#allocation2 + $0x8] sm:$0xff] %vm22_vm0, %v348_v2  ;;  %v306_v7 = vld [vmem:[%s503_s0] sm:$0xff]  ;;  %v307_v8 = vld [vmem:[%s503_s0 + $0x8] sm:$0xff]  ;;  %v333_v36 = vld [vmem:[%s504_s3 + $0x18] sm:$0xff]  }
   0x4   :  { %25 = vst.msk [vmem:[#allocation2 + $0x10] sm:$0xff] %vm22_vm0, %v348_v2  ;;  %v283_v9 = vld [vmem:[%s503_s0 + $0x20] sm:$0xf]  ;;  %v310_v10 = vld [vmem:[%s503_s0 + $0x20] sm:$0x70]  ;;  %v331_v27 = vld [vmem:[%s504_s3 + $0x8] sm:$0xff]   ;;  %v329_v46 = vunpack.c.l.bf16 %v333_v36 }
   0x5   :  { %26 = vst.msk [vmem:[#allocation2 + $0x18] sm:$0xff] %vm22_vm0, %v348_v2  ;;  %v284_v11 = vor.u32 %v310_v10, %v283_v9  ;;  %v316_v23 = vld [vmem:[%s504_s3] sm:$0xff]   ;;  %v321_v35 = vunpack.c.l.bf16 %v331_v27  ;;  %v332_v41 = vld [vmem:[%s504_s3 + $0x10] sm:$0xff]   ;;  %v322_v60 = vunpack.c.h.bf16 %v331_v27 }
   0x6   :  { %339 = vmatpush.bf16.msra.mxu3 %v313_v1  ;;  %338 = vmatpush.bf16.msra.mxu2 %v313_v1  ;;  %27 = vst.msk [vmem:[#allocation2 + $0x20] sm:$0xff] %vm22_vm0, %v348_v2  ;;  %v431_v30 = vld [vmem:[%s502_s2] ss:$0 sm:$0xff]  ;;  %v317_v31 = vunpack.c.l.bf16 %v316_v23  ;;  %v325_v51 = vunpack.c.l.bf16 %v332_v41  ;;  %v318_v57 = vunpack.c.h.bf16 %v316_v23 }
   0x7   :  { %132 = vmatpush.bf16.msra.mxu0 %v313_v1  ;;  %337 = vmatpush.bf16.msra.mxu1 %v313_v1  ;;  %28 = vst.msk [vmem:[#allocation2 + $0x28] sm:$0xff] %vm22_vm0, %v348_v2 }
   0x8   :  { %30 = vst.msk [vmem:[#allocation2 + $0x38] sm:$0xff] %vm22_vm0, %v348_v2  ;;  %v50_v18 = vld [vmem:[#allocation2 + $0x30] sm:$0xff] }
   0x9   :  { %31 = vst.msk [vmem:[#allocation2 + $0x40] sm:$0xff] %vm22_vm0, %v348_v2  ;;  %v44_v12 = vld [vmem:[#allocation2] sm:$0xff] }
   0xa   :  { %342 = vmatpush.bf16.msra.mxu3 %v312_v3  ;;  %341 = vmatpush.bf16.msra.mxu2 %v312_v3  ;;  %33 = vst.msk [vmem:[#allocation2 + $0x48] sm:$0x3f] %vm32_vm1, %v348_v2  ;;  %v45_v25 = vld [vmem:[#allocation2 + $0x8] sm:$0xff] }
   0xb   :  { %133 = vmatpush.bf16.msra.mxu0 %v312_v3  ;;  %340 = vmatpush.bf16.msra.mxu1 %v312_v3  ;;  %v46_v13 = vld [vmem:[#allocation2 + $0x10] sm:$0xff] }
   0xc   :  { %v47_v26 = vld [vmem:[#allocation2 + $0x18] sm:$0xff] }
   0xd   :  { %v48_v19 = vld [vmem:[#allocation2 + $0x20] sm:$0xff] }
   0xe   :  { %345 = vmatpush.bf16.msra.mxu3 %v311_v4  ;;  %344 = vmatpush.bf16.msra.mxu2 %v311_v4  ;;  %v49_v42 = vld [vmem:[#allocation2 + $0x28] sm:$0xff] }
   0xf   :  { %134 = vmatpush.bf16.msra.mxu0 %v311_v4  ;;  %343 = vmatpush.bf16.msra.mxu1 %v311_v4  ;;  %v51_v39 = vld [vmem:[#allocation2 + $0x38] sm:$0xff] }
  0x10   :  { %v52_v0 = vld [vmem:[#allocation2 + $0x40] sm:$0xff] }
  0x11   :  { %304 = vmatmul.msk.bf16.vlgmr.msra.gmra.mxu3 %vm22_vm0, %v309_v5  ;;  %303 = vmatmul.msk.bf16.vlgmr.msra.gmra.mxu2 %vm22_vm0, %v308_v6  ;;  %v330_v6 = vunpack.c.h.bf16 %v333_v36 }
  0x12   :  { %301 = vmatmul.msk.bf16.vlgmr.msra.gmra.mxu0 %vm22_vm0, %v306_v7  ;;  %302 = vmatmul.msk.bf16.vlgmr.msra.gmra.mxu1 %vm22_vm0, %v307_v8 }
  0x21   :  { %305 = vmatmul.msk.bf16.gmra.mxu3 %vm22_vm0, %v284_v11 }
  0x8f   :  { %v136_v14 = vpop.f32.mrf.mxu0  ;;  %v141_v15 = vpop.f32.mrf.mxu1 }
  0x90   :  { %v161_v16 = vadd.f32 %v136_v14, %v44_v12  ;;  %v163_v17 = vadd.f32 %v141_v15, %v46_v13  ;;  %v326_v13 = vunpack.c.h.bf16 %v332_v41 }
  0x92   :  { %171 = vst.msk [vmem:[#allocation2] sm:$0xff] %vm22_vm0, %v161_v16 }
  0x93   :  { %173 = vst.msk [vmem:[#allocation2 + $0x10] sm:$0xff] %vm22_vm0, %v163_v17  ;;  %v217_v17 = vld [vmem:[%s504_s3 + $0x20] sm:$0xf] }
  0x94   :  { %v151_v20 = vpop.f32.mrf.mxu3  ;;  %v146_v21 = vpop.f32.mrf.mxu2 }
  0x95   :  { %v167_v22 = vadd.f32 %v151_v20, %v50_v18  ;;  %v165_v24 = vadd.f32 %v146_v21, %v48_v19  ;;  %v53_v18 = vld [vmem:[#allocation2 + $0x48] sm:$0x3f] }
  0x97   :  { %177 = vst.msk [vmem:[#allocation2 + $0x30] sm:$0xff] %vm22_vm0, %v167_v22  ;;  %v138_v28 = vpop.f32.mrf.mxu0  ;;  %v143_v29 = vpop.f32.mrf.mxu1  ;;  %v227_v22 = vunpack.c.l.bf16 %v217_v17 }
  0x98   :  { %175 = vst.msk [vmem:[#allocation2 + $0x20] sm:$0xff] %vm22_vm0, %v165_v24  ;;  %v162_v32 = vadd.f32 %v138_v28, %v45_v25  ;;  %v164_v33 = vadd.f32 %v143_v29, %v47_v26  ;;  %v218_v28 = vld [vmem:[%s504_s3 + $0x24] sm:$0x7] }
  0x99   :  { %v185_v34 = vld [vmem:[#allocation2] sm:$0xff] }
  0x9a   :  { %v199_v37 = vadd.f32 %v431_v30, %v185_v34  ;;  %v187_v38 = vld [vmem:[#allocation2 + $0x10] sm:$0xff]  ;;  %172 = vst.msk [vmem:[#allocation2 + $0x8] sm:$0xff] %vm22_vm0, %v162_v32 }
  0x9b   :  { %v201_v40 = vadd.f32 %v431_v30, %v187_v38  ;;  %174 = vst.msk [vmem:[#allocation2 + $0x18] sm:$0xff] %vm22_vm0, %v164_v33 }
  0x9c   :  { %v229_v43 = vadd.f32 %v317_v31, %v199_v37  ;;  %v153_v44 = vpop.f32.mrf.mxu3  ;;  %v148_v45 = vpop.f32.mrf.mxu2  ;;  %v228_v31 = vunpack.c.l.bf16 %v218_v28 }
  0x9d   :  { %v231_v47 = vadd.f32 %v321_v35, %v201_v40  ;;  %v168_v48 = vadd.f32 %v153_v44, %v51_v39  ;;  %v166_v52 = vadd.f32 %v148_v45, %v49_v42 }
  0x9e   :  { %v191_v49 = vld [vmem:[#allocation2 + $0x30] sm:$0xff]  ;;  %v239_v50 = vpack.c.bf16 %v229_v43, %v229_v43 }
  0x9f   :  { %v205_v53 = vadd.f32 %v431_v30, %v191_v49  ;;  %v241_v54 = vpack.c.bf16 %v231_v47, %v231_v47  ;;  %v189_v55 = vld [vmem:[#allocation2 + $0x20] sm:$0xff]  ;;  %178 = vst.msk [vmem:[#allocation2 + $0x38] sm:$0xff] %vm22_vm0, %v168_v48 }
  0xa0   :  { %250 = vst.msk [vmem:[%s505_s4] sm:$0xf] %vm249_vm2, %v239_v50  ;;  %v203_v56 = vadd.f32 %v431_v30, %v189_v55 }
  0xa1   :  { %v235_v58 = vadd.f32 %v329_v46, %v205_v53  ;;  %252 = vst.msk [vmem:[%s505_s4 + $0x8] sm:$0xf] %vm249_vm2, %v241_v54  ;;  %v186_v59 = vld [vmem:[#allocation2 + $0x8] sm:$0xff] }
  0xa2   :  { %v233_v61 = vadd.f32 %v325_v51, %v203_v56  ;;  %v200_v62 = vadd.f32 %v431_v30, %v186_v59  ;;  %v188_v63 = vld [vmem:[#allocation2 + $0x18] sm:$0xff]  ;;  %176 = vst.msk [vmem:[#allocation2 + $0x28] sm:$0xff] %vm22_vm0, %v166_v52 }
  0xa3   :  { %v245_v1 = vpack.c.bf16 %v235_v58, %v235_v58  ;;  %v202_v2 = vadd.f32 %v431_v30, %v188_v63 }
  0xa4   :  { %v243_v3 = vpack.c.bf16 %v233_v61, %v233_v61  ;;  %v230_v4 = vadd.f32 %v318_v57, %v200_v62  ;;  %v156_v5 = vpop.f32.mrf.mxu3 }
  0xa5   :  { %256 = vst.msk [vmem:[%s505_s4 + $0x18] sm:$0xf] %vm249_vm2, %v245_v1  ;;  %v232_v7 = vadd.f32 %v322_v60, %v202_v2  ;;  %v169_v8 = vadd.f32 %v156_v5, %v52_v0 }
  0xa6   :  { %254 = vst.msk [vmem:[%s505_s4 + $0x10] sm:$0xf] %vm249_vm2, %v243_v3  ;;  %v192_v9 = vld [vmem:[#allocation2 + $0x38] sm:$0xff]  ;;  %v240_v10 = vpack.c.bf16 %v230_v4, %v230_v4 }
  0xa7   :  { %v206_v11 = vadd.f32 %v431_v30, %v192_v9  ;;  %v242_v12 = vpack.c.bf16 %v232_v7, %v232_v7  ;;  %179 = vst.msk [vmem:[#allocation2 + $0x40] sm:$0xff] %vm22_vm0, %v169_v8 }
  0xa8   :  { %251 = vst.msk [vmem:[%s505_s4 + $0x4] sm:$0xf] %vm249_vm2, %v240_v10 }
  0xa9   :  { %v236_v14 = vadd.f32 %v330_v6, %v206_v11  ;;  %253 = vst.msk [vmem:[%s505_s4 + $0xc] sm:$0xf] %vm249_vm2, %v242_v12  ;;  %v190_v15 = vld [vmem:[#allocation2 + $0x28] sm:$0xff] }
  0xaa   :  { %v204_v16 = vadd.f32 %v431_v30, %v190_v15 }
  0xab   :  { %v246_v19 = vpack.c.bf16 %v236_v14, %v236_v14 }
  0xac   :  { %v234_v20 = vadd.f32 %v326_v13, %v204_v16  ;;  %v158_v21 = vpop.f32.mrf.mxu3 }
  0xad   :  { %257 = vst.msk [vmem:[%s505_s4 + $0x1c] sm:$0xf] %vm249_vm2, %v246_v19  ;;  %v170_v23 = vadd.f32 %v158_v21, %v53_v18 }
  0xae   :  { %v244_v24 = vpack.c.bf16 %v234_v20, %v234_v20  ;;  %v193_v25 = vld [vmem:[#allocation2 + $0x40] sm:$0xff] }
  0xaf   :  { %v207_v26 = vadd.f32 %v431_v30, %v193_v25  ;;  %181 = vst.msk [vmem:[#allocation2 + $0x48] sm:$0x3f] %vm32_vm1, %v170_v23 }
  0xb0   :  { %255 = vst.msk [vmem:[%s505_s4 + $0x14] sm:$0xf] %vm249_vm2, %v244_v24 }
  0xb1   :  { %v237_v27 = vadd.f32 %v227_v22, %v207_v26 }
  0xb3   :  { %v247_v29 = vpack.c.bf16 %v237_v27, %v237_v27 }
  0xb5   :  { %258 = vst.msk [vmem:[%s505_s4 + $0x20] sm:$0xf] %vm249_vm2, %v247_v29 }
  0xb6   :  { %v194_v32 = vld [vmem:[#allocation2 + $0x48] sm:$0x3f] }
  0xb7   :  { %v208_v33 = vadd.f32 %v431_v30, %v194_v32 }
  0xb9   :  { %v238_v34 = vadd.f32 %v228_v31, %v208_v33 }
  0xbb   :  { %v248_v35 = vpack.c.bf16 %v238_v34, %v238_v34 }
  0xbd   :  { %260 = vst.msk [vmem:[%s505_s4 + $0x24] sm:$0x7] %vm259_vm3, %v248_v35 }

// kernel: beit_forward.66
= control target key start
LH: loop header
LB: loop body
LE: loop exit
PB: predicated region body
PF: predicated region fallthrough
CT: control target
= control target key end

     0   :  { %vm37_vm0 = vcmask 523264   ;;  %vm47_vm1 = vcmask 521216   ;;  %v342_v11 = vmov 64.0   ;;  %v343_v52 = vmov 0.0   ;;  %s443_s0 = inlined_call_operand.vmem [shape: bf16[30,64], index: 0, kind: input, shape index: {}]   ;;  %s444_s2 = inlined_call_operand.vmem [shape: f32[1,64], index: 2, kind: input, shape index: {}]   ;;  %s445_s3 = inlined_call_operand.vmem [shape: f32[1,64], index: 3, kind: input, shape index: {}]   ;;  %s446_s4 = inlined_call_operand.vmem [shape: f32[1,128], index: 4, kind: input, shape index: {}]   ;;  %s447_s1 = inlined_call_operand.vmem [shape: bf16[64,128], index: 1, kind: input, shape index: {}]   ;;  %s448_s5 = inlined_call_operand.vmem [shape: bf16[30,128], index: 5, kind: output, shape index: {}]  }
   0x1   :  { %v31_v0 = vld [vmem:[%s443_s0 + $0x8] sm:$0xf]  ;;  %v307_v1 = vld [vmem:[%s443_s0] sm:$0xff]   ;;  %v32_v4 = vld [vmem:[%s443_s0 + $0xc] sm:$0x7]  ;;  %324 = vrcp.f32 %v342_v11 }
   0x2   :  { %v35_v2 = vunpack.c.l.bf16 %v31_v0  ;;  %v308_v3 = vunpack.c.l.bf16 %v307_v1  ;;  %v36_v7 = vunpack.c.l.bf16 %v32_v4  ;;  %v309_v8 = vunpack.c.h.bf16 %v307_v1  ;;  %v305_v38 = vld [vmem:[%s447_s1 + $0x18] sm:$0xff]  ;;  %v304_v39 = vld [vmem:[%s447_s1 + $0x10] sm:$0xff]  ;;  %v303_v40 = vld [vmem:[%s447_s1 + $0x8] sm:$0xff]  ;;  %28 = vst [vmem:[#allocation2 + $0x8] sm:$0x3f] %v343_v52 }
   0x3   :  { %198 = vmatpush.bf16.msra.mxu0 %v305_v38  ;;  %315 = vmatpush.bf16.msra.mxu1 %v305_v38  ;;  %v302_v45 = vld [vmem:[%s447_s1] sm:$0xff] }
   0x4   :  { %v44_v5 = vsel %vm37_vm0, %v35_v2, 0.0  ;;  %v38_v6 = vsel %vm37_vm0, %v308_v3, 0.0  ;;  %v48_v9 = vsel %vm47_vm1, %v36_v7, 0.0  ;;  %v41_v10 = vsel %vm37_vm0, %v309_v8, 0.0 }
   0x5   :  { %45 = vadd.xlane.f32.xlu1 %v44_v5  ;;  %39 = vadd.xlane.f32.xlu0 %v38_v6 }
   0x7   :  { %v325_v12 = vpop.eup %324  ;;  %199 = vmatpush.bf16.msra.mxu0 %v304_v39  ;;  %316 = vmatpush.bf16.msra.mxu1 %v304_v39 }
   0x8   :  { %v52_v13 = vmul.f32 64.0, %v325_v12  ;;  %vm56_vm2 = vweird.f32 %v325_v12 }
   0xa   :  { %v53_v14 = vsub.f32 1.0, %v52_v13 }
   0xb   :  { %200 = vmatpush.bf16.msra.mxu0 %v303_v40  ;;  %317 = vmatpush.bf16.msra.mxu1 %v303_v40 }
   0xc   :  { %v54_v15 = vmul.f32 %v325_v12, %v53_v14 }
   0xd   :  { %49 = vadd.xlane.f32.xlu1 %v48_v9  ;;  %42 = vadd.xlane.f32.xlu0 %v41_v10 }
   0xe   :  { %v55_v16 = vadd.f32 %v325_v12, %v54_v15 }
   0xf   :  { %201 = vmatpush.bf16.msra.mxu0 %v302_v45  ;;  %318 = vmatpush.bf16.msra.mxu1 %v302_v45 }
  0x10   :  { %v57_v17 = vsel %vm56_vm2, %v325_v12, %v55_v16  ;;  %v321_v16 = vld [vmem:[%s444_s2] ss:$0 sm:$0xff] }
  0x78   :  { %v46_v18 = vpop.xlane.xlu1 %45  ;;  %v40_v19 = vpop.xlane.xlu0 %39 }
  0x79   :  { %v60_v20 = vmul.f32 %v57_v17, %v46_v18  ;;  %v58_v21 = vmul.f32 %v57_v17, %v40_v19 }
  0x7b   :  { %v387_v22 = vsub.f32 %v35_v2, %v60_v20  ;;  %v389_v23 = vsub.f32 %v308_v3, %v58_v21 }
  0x7d   :  { %v68_v24 = vmul.f32 %v387_v22, %v387_v22  ;;  %v66_v25 = vmul.f32 %v389_v23, %v389_v23 }
  0x7f   :  { %v76_v26 = vsel %vm37_vm0, %v68_v24, 0.0  ;;  %v70_v27 = vsel %vm37_vm0, %v66_v25, 0.0 }
  0x80   :  { %v50_v28 = vpop.xlane.xlu1 %49  ;;  %77 = vadd.xlane.f32.xlu0 %v76_v26  ;;  %71 = vadd.xlane.f32.xlu2 %v70_v27  ;;  %v43_v29 = vpop.xlane.xlu0 %42 }
  0x81   :  { %v61_v30 = vmul.f32 %v57_v17, %v50_v28  ;;  %v59_v31 = vmul.f32 %v57_v17, %v43_v29 }
  0x83   :  { %v397_v32 = vsub.f32 %v36_v7, %v61_v30  ;;  %v399_v33 = vsub.f32 %v309_v8, %v59_v31 }
  0x85   :  { %v69_v34 = vmul.f32 %v397_v32, %v397_v32  ;;  %v67_v35 = vmul.f32 %v399_v33, %v399_v33 }
  0x87   :  { %v79_v36 = vsel %vm47_vm1, %v69_v34, 0.0  ;;  %v73_v37 = vsel %vm37_vm0, %v67_v35, 0.0 }
  0x88   :  { %80 = vadd.xlane.f32.xlu1 %v79_v36  ;;  %74 = vadd.xlane.f32.xlu2 %v73_v37 }
  0xf3   :  { %v72_v41 = vpop.xlane.xlu2 %71  ;;  %v78_v42 = vpop.xlane.xlu0 %77 }
  0xf4   :  { %v82_v43 = vmul.f32 %v72_v41, %v57_v17  ;;  %v84_v44 = vmul.f32 %v78_v42, %v57_v17  ;;  %v153_v42 = vld [vmem:[#allocation2 + $0x8] sm:$0x3f] }
  0xf6   :  { %v86_v46 = vadd.f32 1e-05, %v82_v43  ;;  %v88_v47 = vadd.f32 1e-05, %v84_v44 }
  0xf8   :  { %326 = vrsqrt.f32 %v86_v46  ;;  %vm96_vm3 = vweird.f32 %v86_v46  ;;  %vm116_vm6 = vweird.f32 %v88_v47 }
  0xf9   :  { %328 = vrsqrt.f32 %v88_v47 }
  0xfb   :  { %v81_v48 = vpop.xlane.xlu1 %80  ;;  %v75_v49 = vpop.xlane.xlu2 %74 }
  0xfc   :  { %v85_v50 = vmul.f32 %v81_v48, %v57_v17  ;;  %v83_v51 = vmul.f32 %v75_v49, %v57_v17 }
  0xfe   :  { %v327_v53 = vpop.eup %326  ;;  %v89_v54 = vadd.f32 1e-05, %v85_v50  ;;  %v87_v55 = vadd.f32 1e-05, %v83_v51 }
  0xff   :  { %v329_v56 = vpop.eup %328  ;;  %v91_v57 = vmul.f32 %v327_v53, %v86_v46  ;;  %vm97_vm5 = vweird.f32 %v327_v53 }
 0x100   :  { %v111_v58 = vmul.f32 %v329_v56, %v88_v47  ;;  %330 = vrsqrt.f32 %v89_v54  ;;  %vm117_vm4 = vweird.f32 %v329_v56  ;;  %vm98_vm8 = vmor %vm96_vm3, %vm97_vm5  ;;  %vm106_vm10 = vweird.f32 %v87_v55 }
 0x101   :  { %v92_v59 = vmul.f32 %v327_v53, %v91_v57  ;;  %332 = vrsqrt.f32 %v87_v55  ;;  %vm118_vm7 = vmor %vm116_vm6, %vm117_vm4  ;;  %vm126_vm12 = vweird.f32 %v89_v54 }
 0x102   :  { %v112_v60 = vmul.f32 %v329_v56, %v111_v58 }
 0x103   :  { %v93_v61 = vmul.f32 0.5, %v92_v59 }
 0x104   :  { %v113_v62 = vmul.f32 0.5, %v112_v60 }
 0x105   :  { %v94_v63 = vsub.f32 1.5, %v93_v61 }
 0x106   :  { %v331_v0 = vpop.eup %330  ;;  %v114_v1 = vsub.f32 1.5, %v113_v62 }
 0x107   :  { %v333_v2 = vpop.eup %332  ;;  %v121_v3 = vmul.f32 %v331_v0, %v89_v54  ;;  %v95_v4 = vmul.f32 %v327_v53, %v94_v63  ;;  %vm127_vm9 = vweird.f32 %v331_v0 }
 0x108   :  { %v115_v5 = vmul.f32 %v329_v56, %v114_v1  ;;  %v101_v6 = vmul.f32 %v333_v2, %v87_v55  ;;  %vm107_vm11 = vweird.f32 %v333_v2  ;;  %vm128_vm13 = vmor %vm126_vm12, %vm127_vm9 }
 0x109   :  { %v122_v7 = vmul.f32 %v331_v0, %v121_v3  ;;  %v99_v11 = vsel %vm98_vm8, %v327_v53, %v95_v4  ;;  %vm108_vm14 = vmor %vm106_vm10, %vm107_vm11 }
 0x10a   :  { %v102_v8 = vmul.f32 %v333_v2, %v101_v6  ;;  %v119_v9 = vsel %vm118_vm7, %v329_v56, %v115_v5  ;;  %v130_v17 = vmul.f32 %v99_v11, %v389_v23 }
 0x10b   :  { %v123_v10 = vmul.f32 0.5, %v122_v7  ;;  %v132_v14 = vmul.f32 %v119_v9, %v387_v22  ;;  %v322_v22 = vld [vmem:[%s445_s3] ss:$0 sm:$0xff] }
 0x10c   :  { %v103_v12 = vmul.f32 0.5, %v102_v8  ;;  %v138_v27 = vmul.f32 %v321_v16, %v130_v17 }
 0x10d   :  { %v124_v13 = vsub.f32 1.5, %v123_v10  ;;  %v140_v25 = vmul.f32 %v321_v16, %v132_v14 }
 0x10e   :  { %v104_v15 = vsub.f32 1.5, %v103_v12  ;;  %v146_v31 = vadd.f32 %v322_v22, %v138_v27 }
 0x10f   :  { %v125_v18 = vmul.f32 %v331_v0, %v124_v13  ;;  %v148_v23 = vadd.f32 %v322_v22, %v140_v25 }
 0x110   :  { %v105_v19 = vmul.f32 %v333_v2, %v104_v15 }
 0x111   :  { %v129_v20 = vsel %vm128_vm13, %v331_v0, %v125_v18 }
 0x112   :  { %v133_v21 = vmul.f32 %v129_v20, %v397_v32  ;;  %v109_v24 = vsel %vm108_vm14, %v333_v2, %v105_v19  ;;  %v323_v32 = vld [vmem:[%s446_s4] ss:$0 sm:$0xff] }
 0x113   :  { %v131_v26 = vmul.f32 %v109_v24, %v399_v33 }
 0x114   :  { %v141_v28 = vmul.f32 %v321_v16, %v133_v21 }
 0x115   :  { %v139_v29 = vmul.f32 %v321_v16, %v131_v26 }
 0x116   :  { %v149_v30 = vadd.f32 %v322_v22, %v141_v28 }
 0x117   :  { %v147_v34 = vadd.f32 %v322_v22, %v139_v29 }
 0x118   :  { %v155_v35 = vpack.c.bf16 %v149_v30, %v148_v23 }
 0x119   :  { %v154_v36 = vpack.c.bf16 %v147_v34, %v146_v31 }
 0x11a   :  { %301 = vmatmul.msk.bf16.vlgmr.msra.gmra.mxu1 %vm37_vm0, %v155_v35 }
 0x11b   :  { %300 = vmatmul.msk.bf16.vlgmr.msra.gmra.mxu0 %vm37_vm0, %v154_v36 }
 0x197   :  { %v208_v37 = vpop.f32.mrf.mxu1 }
 0x198   :  { %v203_v38 = vpop.f32.mrf.mxu0  ;;  %v234_v33 = vadd.f32 %v323_v32, %v208_v37 }
 0x199   :  { %v232_v39 = vadd.f32 %v323_v32, %v203_v38 }
 0x19a   :  { %v238_v40 = vmul.f32 %v234_v33, %v234_v33 }
 0x19b   :  { %v236_v41 = vmul.f32 %v232_v39, %v232_v39 }
 0x19c   :  { %v242_v43 = vmul.f32 %v238_v40, %v234_v33 }
 0x19d   :  { %v240_v44 = vmul.f32 %v236_v41, %v232_v39 }
 0x19e   :  { %v246_v46 = vmul.f32 0.044715, %v242_v43 }
 0x19f   :  { %v210_v45 = vpop.f32.mrf.mxu1  ;;  %v244_v49 = vmul.f32 0.044715, %v240_v44 }
 0x1a0   :  { %v205_v47 = vpop.f32.mrf.mxu0  ;;  %v216_v48 = vadd.f32 %v210_v45, %v153_v42  ;;  %v250_v50 = vadd.f32 %v246_v46, %v234_v33 }
 0x1a1   :  { %v248_v51 = vadd.f32 %v244_v49, %v232_v39  ;;  %v233_v52 = vadd.f32 %v323_v32, %v205_v47 }
 0x1a2   :  { %220 = vst [vmem:[#allocation2 + $0x8] sm:$0x3f] %v216_v48  ;;  %v254_v53 = vmul.f32 0.7978846, %v250_v50 }
 0x1a3   :  { %v252_v54 = vmul.f32 0.7978846, %v248_v51  ;;  %v237_v55 = vmul.f32 %v233_v52, %v233_v52 }
 0x1a4   :  { %334 = vtanh.f32 %v254_v53 }
 0x1a5   :  { %v241_v56 = vmul.f32 %v237_v55, %v233_v52  ;;  %336 = vtanh.f32 %v252_v54 }
 0x1a7   :  { %v245_v57 = vmul.f32 0.044715, %v241_v56 }
 0x1a9   :  { %v227_v58 = vld [vmem:[#allocation2 + $0x8] sm:$0x3f]  ;;  %v249_v60 = vadd.f32 %v245_v57, %v233_v52 }
 0x1aa   :  { %v235_v59 = vadd.f32 %v323_v32, %v227_v58  ;;  %v335_v61 = vpop.eup %334 }
 0x1ab   :  { %v262_v63 = vadd.f32 1.0, %v335_v61  ;;  %v253_v0 = vmul.f32 0.7978846, %v249_v60  ;;  %v337_v2 = vpop.eup %336 }
 0x1ac   :  { %v239_v62 = vmul.f32 %v235_v59, %v235_v59  ;;  %v260_v6 = vadd.f32 1.0, %v337_v2 }
 0x1ad   :  { %v266_v3 = vmul.f32 0.5, %v262_v63  ;;  %338 = vtanh.f32 %v253_v0 }
 0x1ae   :  { %v243_v1 = vmul.f32 %v239_v62, %v235_v59  ;;  %v264_v11 = vmul.f32 0.5, %v260_v6 }
 0x1af   :  { %v270_v5 = vmul.f32 %v266_v3, %v234_v33 }
 0x1b0   :  { %v247_v4 = vmul.f32 0.044715, %v243_v1  ;;  %v268_v14 = vmul.f32 %v264_v11, %v232_v39 }
 0x1b1   :  { %v274_v8 = vpack.c.bf16 %v270_v5, %v270_v5 }
 0x1b2   :  { %v251_v7 = vadd.f32 %v247_v4, %v235_v59 }
 0x1b3   :  { %v339_v10 = vpop.eup %338  ;;  %278 = vst [vmem:[%s448_s5 + $0x8] sm:$0xf] %v274_v8 }
 0x1b4   :  { %v255_v9 = vmul.f32 0.7978846, %v251_v7  ;;  %v261_v12 = vadd.f32 1.0, %v339_v10 }
 0x1b6   :  { %340 = vtanh.f32 %v255_v9  ;;  %v265_v13 = vmul.f32 0.5, %v261_v12 }
 0x1b8   :  { %v269_v15 = vmul.f32 %v265_v13, %v233_v52 }
 0x1ba   :  { %v313_v17 = vpack.c.bf16 %v269_v15, %v268_v14 }
 0x1bc   :  { %v341_v16 = vpop.eup %340  ;;  %314 = vst [vmem:[%s448_s5] sm:$0xff] %v313_v17  }
 0x1bd   :  { %v263_v18 = vadd.f32 1.0, %v341_v16 }
 0x1bf   :  { %v267_v19 = vmul.f32 0.5, %v263_v18 }
 0x1c1   :  { %v271_v20 = vmul.f32 %v267_v19, %v235_v59 }
 0x1c3   :  { %v275_v21 = vpack.c.bf16 %v271_v20, %v271_v20 }
 0x1c5   :  { %279 = vst [vmem:[%s448_s5 + $0xc] sm:$0x7] %v275_v21 }

// kernel: beit_forward.67
= control target key start
LH: loop header
LB: loop body
LE: loop exit
PB: predicated region body
PF: predicated region fallthrough
CT: control target
= control target key end

     0   :  { %vm21_vm0 = vcmask 523264   ;;  %v245_v2 = vmov 0.0   ;;  %vm25_vm1 = vcmask 521216   ;;  %vm171_vm2 = vcmask 519168   ;;  %s339_s1 = inlined_call_operand.vmem [shape: bf16[128,64], index: 1, kind: input, shape index: {}]   ;;  %s340_s2 = inlined_call_operand.vmem [shape: f32[1,64], index: 2, kind: input, shape index: {}]   ;;  %s341_s0 = inlined_call_operand.vmem [shape: bf16[30,128], index: 0, kind: input, shape index: {}]   ;;  %s342_s3 = inlined_call_operand.vmem [shape: bf16[30,64], index: 3, kind: input, shape index: {}]   ;;  %s343_s4 = inlined_call_operand.vmem [shape: bf16[30,64], index: 4, kind: output, shape index: {}]  }
   0x1   :  { %v230_v0 = vld [vmem:[%s339_s1 + $0x38] sm:$0xff]  ;;  %v229_v1 = vld [vmem:[%s339_s1 + $0x30] sm:$0xff]  ;;  %22 = vst.msk [vmem:[#allocation2] sm:$0xff] %vm21_vm0, %v245_v2  ;;  %v228_v3 = vld [vmem:[%s339_s1 + $0x28] sm:$0xff]  ;;  %vm175_vm3 = vcmask 518144  }
   0x2   :  { %111 = vmatpush.bf16.msra.mxu0 %v230_v0  ;;  %235 = vmatpush.bf16.msra.mxu1 %v230_v0  ;;  %23 = vst.msk [vmem:[#allocation2 + $0x8] sm:$0xff] %vm21_vm0, %v245_v2  ;;  %v227_v4 = vld [vmem:[%s339_s1 + $0x20] sm:$0xff]  ;;  %v226_v5 = vld [vmem:[%s339_s1 + $0x18] sm:$0xff]  ;;  %v225_v6 = vld [vmem:[%s339_s1 + $0x10] sm:$0xff] }
   0x3   :  { %24 = vst.msk [vmem:[#allocation2 + $0x10] sm:$0xff] %vm21_vm0, %v245_v2  ;;  %v224_v7 = vld [vmem:[%s339_s1 + $0x8] sm:$0xff]  ;;  %v223_v8 = vld [vmem:[%s339_s1] sm:$0xff] }
   0x4   :  { %v187_v9 = vld [vmem:[%s341_s0 + $0x8] sm:$0xf]  ;;  %v222_v10 = vld [vmem:[%s341_s0 + $0x8] sm:$0x70]  ;;  %v221_v11 = vld [vmem:[%s341_s0] sm:$0xff] }
   0x5   :  { %v188_v12 = vor.u32 %v222_v10, %v187_v9  ;;  %26 = vst.msk [vmem:[#allocation2 + $0x18] sm:$0x3f] %vm25_vm1, %v245_v2  ;;  %v232_v19 = vld [vmem:[%s342_s3] sm:$0xff]   ;;  %v157_v23 = vld [vmem:[%s342_s3 + $0x8] sm:$0xf] }
   0x6   :  { %112 = vmatpush.bf16.msra.mxu0 %v229_v1  ;;  %236 = vmatpush.bf16.msra.mxu1 %v229_v1  ;;  %v244_v22 = vld [vmem:[%s340_s2] ss:$0 sm:$0xff]  ;;  %v233_v26 = vunpack.c.l.bf16 %v232_v19  ;;  %v161_v30 = vunpack.c.l.bf16 %v157_v23  ;;  %v158_v37 = vld [vmem:[%s342_s3 + $0xc] sm:$0x7]  ;;  %v234_v39 = vunpack.c.h.bf16 %v232_v19 }
   0x7   :  { %v162_v41 = vunpack.c.l.bf16 %v158_v37 }
   0x8   :  { %v31_v13 = vld [vmem:[#allocation2] sm:$0xff] }
   0x9   :  { %v32_v20 = vld [vmem:[#allocation2 + $0x8] sm:$0xff] }
   0xa   :  { %113 = vmatpush.bf16.msra.mxu0 %v228_v3  ;;  %237 = vmatpush.bf16.msra.mxu1 %v228_v3  ;;  %v33_v14 = vld [vmem:[#allocation2 + $0x10] sm:$0xff] }
   0xc   :  { %v34_v21 = vld [vmem:[#allocation2 + $0x18] sm:$0x3f] }
   0xe   :  { %114 = vmatpush.bf16.msra.mxu0 %v227_v4  ;;  %238 = vmatpush.bf16.msra.mxu1 %v227_v4 }
  0x12   :  { %115 = vmatpush.bf16.msra.mxu0 %v226_v5  ;;  %239 = vmatpush.bf16.msra.mxu1 %v226_v5 }
  0x16   :  { %116 = vmatpush.bf16.msra.mxu0 %v225_v6  ;;  %240 = vmatpush.bf16.msra.mxu1 %v225_v6 }
  0x1a   :  { %117 = vmatpush.bf16.msra.mxu0 %v224_v7  ;;  %241 = vmatpush.bf16.msra.mxu1 %v224_v7 }
  0x1e   :  { %118 = vmatpush.bf16.msra.mxu0 %v223_v8  ;;  %242 = vmatpush.bf16.msra.mxu1 %v223_v8 }
  0x21   :  { %119 = vmatmul.bf16.vlgmr.msra.gmra.mxu0 %v221_v11  ;;  %124 = vmatmul.bf16.vlgmr.msra.gmra.mxu1 %v188_v12 }
  0x9e   :  { %v120_v15 = vpop.f32.mrf.mxu0  ;;  %v125_v16 = vpop.f32.mrf.mxu1 }
  0x9f   :  { %v130_v17 = vadd.f32 %v120_v15, %v31_v13  ;;  %v132_v18 = vadd.f32 %v125_v16, %v33_v14 }
  0xa1   :  { %135 = vst.msk [vmem:[#allocation2] sm:$0xff] %vm21_vm0, %v130_v17 }
  0xa2   :  { %137 = vst.msk [vmem:[#allocation2 + $0x10] sm:$0xff] %vm21_vm0, %v132_v18 }
  0xa6   :  { %v122_v24 = vpop.f32.mrf.mxu0  ;;  %v127_v25 = vpop.f32.mrf.mxu1 }
  0xa7   :  { %v131_v27 = vadd.f32 %v122_v24, %v32_v20  ;;  %v133_v28 = vadd.f32 %v127_v25, %v34_v21 }
  0xa8   :  { %v143_v29 = vld [vmem:[#allocation2] sm:$0xff] }
  0xa9   :  { %v151_v31 = vadd.f32 %v244_v22, %v143_v29  ;;  %v145_v32 = vld [vmem:[#allocation2 + $0x10] sm:$0xff]  ;;  %136 = vst.msk [vmem:[#allocation2 + $0x8] sm:$0xff] %vm21_vm0, %v131_v27 }
  0xaa   :  { %v153_v33 = vadd.f32 %v244_v22, %v145_v32  ;;  %139 = vst.msk [vmem:[#allocation2 + $0x18] sm:$0x3f] %vm25_vm1, %v133_v28 }
  0xab   :  { %v163_v34 = vadd.f32 %v233_v26, %v151_v31 }
  0xac   :  { %v165_v35 = vadd.f32 %v161_v30, %v153_v33 }
  0xad   :  { %v167_v36 = vpack.c.bf16 %v163_v34, %v163_v34 }
  0xae   :  { %v169_v38 = vpack.c.bf16 %v165_v35, %v165_v35 }
  0xaf   :  { %172 = vst.msk [vmem:[%s343_s4] sm:$0xf] %vm171_vm2, %v167_v36 }
  0xb0   :  { %174 = vst.msk [vmem:[%s343_s4 + $0x8] sm:$0xf] %vm171_vm2, %v169_v38  ;;  %v144_v40 = vld [vmem:[#allocation2 + $0x8] sm:$0xff] }
  0xb1   :  { %v152_v42 = vadd.f32 %v244_v22, %v144_v40  ;;  %v146_v43 = vld [vmem:[#allocation2 + $0x18] sm:$0x3f] }
  0xb2   :  { %v154_v44 = vadd.f32 %v244_v22, %v146_v43 }
  0xb3   :  { %v164_v45 = vadd.f32 %v234_v39, %v152_v42 }
  0xb4   :  { %v166_v46 = vadd.f32 %v162_v41, %v154_v44 }
  0xb5   :  { %v168_v47 = vpack.c.bf16 %v164_v45, %v164_v45 }
  0xb6   :  { %v170_v48 = vpack.c.bf16 %v166_v46, %v166_v46 }
  0xb7   :  { %173 = vst.msk [vmem:[%s343_s4 + $0x4] sm:$0xf] %vm171_vm2, %v168_v47 }
  0xb8   :  { %176 = vst.msk [vmem:[%s343_s4 + $0xc] sm:$0x7] %vm175_vm3, %v170_v48 }

// kernel: beit_forward.69
= control target key start
LH: loop header
LB: loop body
LE: loop exit
PB: predicated region body
PF: predicated region fallthrough
CT: control target
= control target key end

     0   :  { %vm21_vm0 = vcmask 523264   ;;  %v300_v2 = vmov 0.0   ;;  %vm202_vm1 = vcmask 519168   ;;  %s407_s1 = inlined_call_operand.vmem [shape: bf16[128,64], index: 1, kind: input, shape index: {}]   ;;  %s408_s2 = inlined_call_operand.vmem [shape: f32[1,64], index: 2, kind: input, shape index: {}]   ;;  %s409_s0 = inlined_call_operand.vmem [shape: bf16[48,128], index: 0, kind: input, shape index: {}]   ;;  %s410_s3 = inlined_call_operand.vmem [shape: bf16[48,64], index: 3, kind: input, shape index: {}]   ;;  %s411_s4 = inlined_call_operand.vmem [shape: bf16[48,64], index: 4, kind: output, shape index: {}]  }
   0x1   :  { %v267_v0 = vld [vmem:[%s407_s1 + $0x38] sm:$0xff]  ;;  %v266_v1 = vld [vmem:[%s407_s1 + $0x30] sm:$0xff]  ;;  %22 = vst.msk [vmem:[#allocation2] sm:$0xff] %vm21_vm0, %v300_v2  ;;  %v265_v3 = vld [vmem:[%s407_s1 + $0x28] sm:$0xff] }
   0x2   :  { %122 = vmatpush.bf16.msra.mxu0 %v267_v0  ;;  %282 = vmatpush.bf16.msra.mxu1 %v267_v0  ;;  %23 = vst.msk [vmem:[#allocation2 + $0x8] sm:$0xff] %vm21_vm0, %v300_v2  ;;  %v264_v4 = vld [vmem:[%s407_s1 + $0x20] sm:$0xff]  ;;  %v263_v5 = vld [vmem:[%s407_s1 + $0x18] sm:$0xff]  ;;  %v262_v6 = vld [vmem:[%s407_s1 + $0x10] sm:$0xff] }
   0x3   :  { %283 = vmatpush.bf16.msra.mxu2 %v267_v0  ;;  %24 = vst.msk [vmem:[#allocation2 + $0x10] sm:$0xff] %vm21_vm0, %v300_v2  ;;  %v261_v7 = vld [vmem:[%s407_s1 + $0x8] sm:$0xff]  ;;  %v260_v8 = vld [vmem:[%s407_s1] sm:$0xff]  ;;  %v259_v11 = vld [vmem:[%s409_s0 + $0x10] sm:$0xff] }
   0x4   :  { %25 = vst.msk [vmem:[#allocation2 + $0x18] sm:$0xff] %vm21_vm0, %v300_v2  ;;  %v257_v9 = vld [vmem:[%s409_s0] sm:$0xff]  ;;  %v258_v10 = vld [vmem:[%s409_s0 + $0x8] sm:$0xff]  ;;  %v281_v37 = vld [vmem:[%s410_s3 + $0x10] sm:$0xff]  }
   0x5   :  { %26 = vst.msk [vmem:[#allocation2 + $0x20] sm:$0xff] %vm21_vm0, %v300_v2  ;;  %v269_v19 = vld [vmem:[%s410_s3] sm:$0xff]   ;;  %v280_v23 = vld [vmem:[%s410_s3 + $0x8] sm:$0xff]   ;;  %v278_v43 = vunpack.c.l.bf16 %v281_v37  ;;  %v279_v59 = vunpack.c.h.bf16 %v281_v37 }
   0x6   :  { %123 = vmatpush.bf16.msra.mxu0 %v266_v1  ;;  %284 = vmatpush.bf16.msra.mxu1 %v266_v1  ;;  %27 = vst.msk [vmem:[#allocation2 + $0x28] sm:$0xff] %vm21_vm0, %v300_v2  ;;  %v299_v22 = vld [vmem:[%s408_s2] ss:$0 sm:$0xff]  ;;  %v270_v28 = vunpack.c.l.bf16 %v269_v19  ;;  %v274_v32 = vunpack.c.l.bf16 %v280_v23  ;;  %v271_v46 = vunpack.c.h.bf16 %v269_v19  ;;  %v275_v49 = vunpack.c.h.bf16 %v280_v23 }
   0x7   :  { %285 = vmatpush.bf16.msra.mxu2 %v266_v1 }
   0x8   :  { %v34_v12 = vld [vmem:[#allocation2] sm:$0xff] }
   0x9   :  { %v35_v20 = vld [vmem:[#allocation2 + $0x8] sm:$0xff] }
   0xa   :  { %124 = vmatpush.bf16.msra.mxu0 %v265_v3  ;;  %286 = vmatpush.bf16.msra.mxu1 %v265_v3  ;;  %v36_v13 = vld [vmem:[#allocation2 + $0x10] sm:$0xff] }
   0xb   :  { %287 = vmatpush.bf16.msra.mxu2 %v265_v3  ;;  %v37_v21 = vld [vmem:[#allocation2 + $0x18] sm:$0xff] }
   0xc   :  { %v38_v18 = vld [vmem:[#allocation2 + $0x20] sm:$0xff] }
   0xd   :  { %v39_v38 = vld [vmem:[#allocation2 + $0x28] sm:$0xff] }
   0xe   :  { %125 = vmatpush.bf16.msra.mxu0 %v264_v4  ;;  %288 = vmatpush.bf16.msra.mxu1 %v264_v4 }
   0xf   :  { %289 = vmatpush.bf16.msra.mxu2 %v264_v4 }
  0x12   :  { %126 = vmatpush.bf16.msra.mxu0 %v263_v5  ;;  %290 = vmatpush.bf16.msra.mxu1 %v263_v5 }
  0x13   :  { %291 = vmatpush.bf16.msra.mxu2 %v263_v5 }
  0x16   :  { %127 = vmatpush.bf16.msra.mxu0 %v262_v6  ;;  %292 = vmatpush.bf16.msra.mxu1 %v262_v6 }
  0x17   :  { %293 = vmatpush.bf16.msra.mxu2 %v262_v6 }
  0x1a   :  { %128 = vmatpush.bf16.msra.mxu0 %v261_v7  ;;  %294 = vmatpush.bf16.msra.mxu1 %v261_v7 }
  0x1b   :  { %295 = vmatpush.bf16.msra.mxu2 %v261_v7 }
  0x1e   :  { %129 = vmatpush.bf16.msra.mxu0 %v260_v8  ;;  %296 = vmatpush.bf16.msra.mxu1 %v260_v8 }
  0x1f   :  { %297 = vmatpush.bf16.msra.mxu2 %v260_v8 }
  0x21   :  { %130 = vmatmul.bf16.vlgmr.msra.gmra.mxu0 %v257_v9  ;;  %135 = vmatmul.bf16.vlgmr.msra.gmra.mxu1 %v258_v10 }
  0x22   :  { %140 = vmatmul.bf16.vlgmr.msra.gmra.mxu2 %v259_v11 }
  0x9e   :  { %v131_v14 = vpop.f32.mrf.mxu0  ;;  %v136_v15 = vpop.f32.mrf.mxu1 }
  0x9f   :  { %v146_v16 = vadd.f32 %v131_v14, %v34_v12  ;;  %v148_v17 = vadd.f32 %v136_v15, %v36_v13 }
  0xa1   :  { %153 = vst.msk [vmem:[#allocation2] sm:$0xff] %vm21_vm0, %v146_v16 }
  0xa2   :  { %155 = vst.msk [vmem:[#allocation2 + $0x10] sm:$0xff] %vm21_vm0, %v148_v17 }
  0xa5   :  { %v141_v24 = vpop.f32.mrf.mxu2 }
  0xa6   :  { %v150_v25 = vadd.f32 %v141_v24, %v38_v18  ;;  %v133_v26 = vpop.f32.mrf.mxu0  ;;  %v138_v27 = vpop.f32.mrf.mxu1 }
  0xa7   :  { %v147_v29 = vadd.f32 %v133_v26, %v35_v20  ;;  %v149_v30 = vadd.f32 %v138_v27, %v37_v21 }
  0xa8   :  { %v162_v31 = vld [vmem:[#allocation2] sm:$0xff]  ;;  %157 = vst.msk [vmem:[#allocation2 + $0x20] sm:$0xff] %vm21_vm0, %v150_v25 }
  0xa9   :  { %v172_v33 = vadd.f32 %v299_v22, %v162_v31  ;;  %v164_v34 = vld [vmem:[#allocation2 + $0x10] sm:$0xff]  ;;  %154 = vst.msk [vmem:[#allocation2 + $0x8] sm:$0xff] %vm21_vm0, %v147_v29 }
  0xaa   :  { %v174_v35 = vadd.f32 %v299_v22, %v164_v34  ;;  %156 = vst.msk [vmem:[#allocation2 + $0x18] sm:$0xff] %vm21_vm0, %v149_v30 }
  0xab   :  { %v190_v36 = vadd.f32 %v270_v28, %v172_v33 }
  0xac   :  { %v192_v39 = vadd.f32 %v274_v32, %v174_v35 }
  0xad   :  { %v196_v40 = vpack.c.bf16 %v190_v36, %v190_v36  ;;  %v143_v41 = vpop.f32.mrf.mxu2 }
  0xae   :  { %v198_v42 = vpack.c.bf16 %v192_v39, %v192_v39  ;;  %v151_v44 = vadd.f32 %v143_v41, %v39_v38 }
  0xaf   :  { %203 = vst.msk [vmem:[%s411_s4] sm:$0xf] %vm202_vm1, %v196_v40  ;;  %v166_v45 = vld [vmem:[#allocation2 + $0x20] sm:$0xff] }
  0xb0   :  { %205 = vst.msk [vmem:[%s411_s4 + $0x8] sm:$0xf] %vm202_vm1, %v198_v42  ;;  %v176_v47 = vadd.f32 %v299_v22, %v166_v45  ;;  %v163_v48 = vld [vmem:[#allocation2 + $0x8] sm:$0xff] }
  0xb1   :  { %v173_v50 = vadd.f32 %v299_v22, %v163_v48  ;;  %v165_v51 = vld [vmem:[#allocation2 + $0x18] sm:$0xff]  ;;  %158 = vst.msk [vmem:[#allocation2 + $0x28] sm:$0xff] %vm21_vm0, %v151_v44 }
  0xb2   :  { %v194_v52 = vadd.f32 %v278_v43, %v176_v47  ;;  %v175_v53 = vadd.f32 %v299_v22, %v165_v51 }
  0xb3   :  { %v191_v54 = vadd.f32 %v271_v46, %v173_v50 }
  0xb4   :  { %v200_v55 = vpack.c.bf16 %v194_v52, %v194_v52  ;;  %v193_v56 = vadd.f32 %v275_v49, %v175_v53 }
  0xb5   :  { %v197_v57 = vpack.c.bf16 %v191_v54, %v191_v54 }
  0xb6   :  { %207 = vst.msk [vmem:[%s411_s4 + $0x10] sm:$0xf] %vm202_vm1, %v200_v55  ;;  %v199_v58 = vpack.c.bf16 %v193_v56, %v193_v56 }
  0xb7   :  { %204 = vst.msk [vmem:[%s411_s4 + $0x4] sm:$0xf] %vm202_vm1, %v197_v57 }
  0xb8   :  { %206 = vst.msk [vmem:[%s411_s4 + $0xc] sm:$0xf] %vm202_vm1, %v199_v58  ;;  %v167_v60 = vld [vmem:[#allocation2 + $0x28] sm:$0xff] }
  0xb9   :  { %v177_v61 = vadd.f32 %v299_v22, %v167_v60 }
  0xbb   :  { %v195_v62 = vadd.f32 %v279_v59, %v177_v61 }
  0xbd   :  { %v201_v63 = vpack.c.bf16 %v195_v62, %v195_v62 }
  0xbf   :  { %208 = vst.msk [vmem:[%s411_s4 + $0x14] sm:$0xf] %vm202_vm1, %v201_v63 }

// kernel: beit_forward.68
= control target key start
LH: loop header
LB: loop body
LE: loop exit
PB: predicated region body
PF: predicated region fallthrough
CT: control target
= control target key end

     0   :  { %vm43_vm0 = vcmask 523264   ;;  %v470_v15 = vmov 64.0   ;;  %s627_s0 = inlined_call_operand.vmem [shape: bf16[48,64], index: 0, kind: input, shape index: {}]   ;;  %s628_s2 = inlined_call_operand.vmem [shape: f32[1,64], index: 2, kind: input, shape index: {}]   ;;  %s629_s3 = inlined_call_operand.vmem [shape: f32[1,64], index: 3, kind: input, shape index: {}]   ;;  %s630_s4 = inlined_call_operand.vmem [shape: f32[1,128], index: 4, kind: input, shape index: {}]   ;;  %s631_s1 = inlined_call_operand.vmem [shape: bf16[64,128], index: 1, kind: input, shape index: {}]   ;;  %s632_s5 = inlined_call_operand.vmem [shape: bf16[48,128], index: 5, kind: output, shape index: {}]  }
   0x1   :  { %v429_v0 = vld [vmem:[%s627_s0 + $0x10] sm:$0xff]   ;;  %v428_v1 = vld [vmem:[%s627_s0 + $0x8] sm:$0xff]   ;;  %v402_v2 = vld [vmem:[%s627_s0] sm:$0xff]   ;;  %444 = vrcp.f32 %v470_v15 }
   0x2   :  { %v411_v3 = vunpack.c.l.bf16 %v429_v0  ;;  %v407_v4 = vunpack.c.l.bf16 %v428_v1  ;;  %v403_v5 = vunpack.c.l.bf16 %v402_v2  ;;  %v412_v9 = vunpack.c.h.bf16 %v429_v0  ;;  %v400_v52 = vld [vmem:[%s631_s1 + $0x18] sm:$0xff]  ;;  %v399_v53 = vld [vmem:[%s631_s1 + $0x10] sm:$0xff]  ;;  %v398_v55 = vld [vmem:[%s631_s1 + $0x8] sm:$0xff] }
   0x3   :  { %v408_v10 = vunpack.c.h.bf16 %v428_v1  ;;  %v404_v11 = vunpack.c.h.bf16 %v402_v2  ;;  %257 = vmatpush.bf16.msra.mxu0 %v400_v52  ;;  %433 = vmatpush.bf16.msra.mxu2 %v400_v52  ;;  %v397_v61 = vld [vmem:[%s631_s1] sm:$0xff] }
   0x4   :  { %v56_v6 = vsel %vm43_vm0, %v411_v3, 0.0  ;;  %v50_v7 = vsel %vm43_vm0, %v407_v4, 0.0  ;;  %v44_v8 = vsel %vm43_vm0, %v403_v5, 0.0  ;;  %v59_v12 = vsel %vm43_vm0, %v412_v9, 0.0  ;;  %432 = vmatpush.bf16.msra.mxu1 %v400_v52 }
   0x5   :  { %57 = vadd.xlane.f32.xlu0 %v56_v6  ;;  %51 = vadd.xlane.f32.xlu2 %v50_v7  ;;  %v53_v13 = vsel %vm43_vm0, %v408_v10, 0.0  ;;  %v47_v14 = vsel %vm43_vm0, %v404_v11, 0.0 }
   0x6   :  { %45 = vadd.xlane.f32.xlu1 %v44_v8 }
   0x7   :  { %v445_v16 = vpop.eup %444  ;;  %258 = vmatpush.bf16.msra.mxu0 %v399_v53  ;;  %435 = vmatpush.bf16.msra.mxu2 %v399_v53 }
   0x8   :  { %v63_v17 = vmul.f32 64.0, %v445_v16  ;;  %vm67_vm1 = vweird.f32 %v445_v16  ;;  %434 = vmatpush.bf16.msra.mxu1 %v399_v53 }
   0xa   :  { %v64_v18 = vsub.f32 1.0, %v63_v17 }
   0xb   :  { %259 = vmatpush.bf16.msra.mxu0 %v398_v55  ;;  %437 = vmatpush.bf16.msra.mxu2 %v398_v55 }
   0xc   :  { %v65_v19 = vmul.f32 %v445_v16, %v64_v18  ;;  %436 = vmatpush.bf16.msra.mxu1 %v398_v55 }
   0xd   :  { %60 = vadd.xlane.f32.xlu0 %v59_v12  ;;  %54 = vadd.xlane.f32.xlu2 %v53_v13 }
   0xe   :  { %48 = vadd.xlane.f32.xlu1 %v47_v14  ;;  %v66_v20 = vadd.f32 %v445_v16, %v65_v19 }
   0xf   :  { %260 = vmatpush.bf16.msra.mxu0 %v397_v61  ;;  %439 = vmatpush.bf16.msra.mxu2 %v397_v61 }
  0x10   :  { %v516_v21 = vsel %vm67_vm1, %v445_v16, %v66_v20  ;;  %438 = vmatpush.bf16.msra.mxu1 %v397_v61 }
  0x78   :  { %v58_v22 = vpop.xlane.xlu0 %57  ;;  %v52_v23 = vpop.xlane.xlu2 %51 }
  0x79   :  { %v73_v24 = vmul.f32 %v516_v21, %v58_v22  ;;  %v46_v25 = vpop.xlane.xlu1 %45  ;;  %v71_v39 = vmul.f32 %v516_v21, %v52_v23 }
  0x7a   :  { %v69_v26 = vmul.f32 %v516_v21, %v46_v25 }
  0x7b   :  { %v520_v27 = vsub.f32 %v411_v3, %v73_v24  ;;  %v546_v46 = vsub.f32 %v407_v4, %v71_v39 }
  0x7c   :  { %v522_v28 = vsub.f32 %v403_v5, %v69_v26 }
  0x7d   :  { %v85_v29 = vmul.f32 %v520_v27, %v520_v27  ;;  %v83_v50 = vmul.f32 %v546_v46, %v546_v46 }
  0x7e   :  { %v81_v30 = vmul.f32 %v522_v28, %v522_v28 }
  0x7f   :  { %v99_v31 = vsel %vm43_vm0, %v85_v29, 0.0  ;;  %v93_v51 = vsel %vm43_vm0, %v83_v50, 0.0 }
  0x80   :  { %100 = vadd.xlane.f32.xlu0 %v99_v31  ;;  %v61_v32 = vpop.xlane.xlu0 %60  ;;  %v55_v33 = vpop.xlane.xlu2 %54  ;;  %v87_v34 = vsel %vm43_vm0, %v81_v30, 0.0 }
  0x81   :  { %v74_v35 = vmul.f32 %v516_v21, %v61_v32  ;;  %v72_v36 = vmul.f32 %v516_v21, %v55_v33  ;;  %88 = vadd.xlane.f32.xlu2 %v87_v34  ;;  %v49_v37 = vpop.xlane.xlu1 %48 }
  0x82   :  { %v70_v38 = vmul.f32 %v516_v21, %v49_v37 }
  0x83   :  { %v534_v40 = vsub.f32 %v412_v9, %v74_v35  ;;  %v536_v41 = vsub.f32 %v408_v10, %v72_v36 }
  0x84   :  { %v538_v42 = vsub.f32 %v404_v11, %v70_v38 }
  0x85   :  { %v86_v43 = vmul.f32 %v534_v40, %v534_v40  ;;  %v84_v44 = vmul.f32 %v536_v41, %v536_v41 }
  0x86   :  { %v82_v45 = vmul.f32 %v538_v42, %v538_v42 }
  0x87   :  { %v102_v47 = vsel %vm43_vm0, %v86_v43, 0.0  ;;  %v96_v48 = vsel %vm43_vm0, %v84_v44, 0.0 }
  0x88   :  { %103 = vadd.xlane.f32.xlu1 %v102_v47  ;;  %v90_v49 = vsel %vm43_vm0, %v82_v45, 0.0  ;;  %v441_v47 = vld [vmem:[%s628_s2] ss:$0 sm:$0xff] }
  0x89   :  { %97 = vadd.xlane.f32.xlu2 %v96_v48  ;;  %91 = vadd.xlane.f32.xlu0 %v90_v49 }
  0x90   :  { %94 = vadd.xlane.f32.xlu1 %v93_v51 }
  0xf3   :  { %v101_v54 = vpop.xlane.xlu0 %100 }
  0xf4   :  { %v109_v56 = vmul.f32 %v101_v54, %v516_v21  ;;  %v89_v57 = vpop.xlane.xlu2 %88 }
  0xf5   :  { %v105_v58 = vmul.f32 %v89_v57, %v516_v21  ;;  %v442_v57 = vld [vmem:[%s629_s3] ss:$0 sm:$0xff] }
  0xf6   :  { %v115_v59 = vadd.f32 1e-05, %v109_v56 }
  0xf7   :  { %v111_v60 = vadd.f32 1e-05, %v105_v58 }
  0xf8   :  { %446 = vrsqrt.f32 %v115_v59  ;;  %vm163_vm3 = vweird.f32 %v115_v59 }
  0xf9   :  { %448 = vrsqrt.f32 %v111_v60  ;;  %vm123_vm4 = vweird.f32 %v111_v60 }
  0xfb   :  { %v104_v62 = vpop.xlane.xlu1 %103 }
  0xfc   :  { %v98_v63 = vpop.xlane.xlu2 %97  ;;  %v92_v0 = vpop.xlane.xlu0 %91  ;;  %v110_v1 = vmul.f32 %v104_v62, %v516_v21 }
  0xfd   :  { %v108_v2 = vmul.f32 %v98_v63, %v516_v21  ;;  %v106_v3 = vmul.f32 %v92_v0, %v516_v21 }
  0xfe   :  { %v447_v4 = vpop.eup %446  ;;  %v116_v5 = vadd.f32 1e-05, %v110_v1 }
  0xff   :  { %v449_v6 = vpop.eup %448  ;;  %v158_v7 = vmul.f32 %v447_v4, %v115_v59  ;;  %v114_v8 = vadd.f32 1e-05, %v108_v2  ;;  %v112_v9 = vadd.f32 1e-05, %v106_v3  ;;  %vm164_vm2 = vweird.f32 %v447_v4 }
 0x100   :  { %v118_v10 = vmul.f32 %v449_v6, %v111_v60  ;;  %450 = vrsqrt.f32 %v116_v5  ;;  %vm124_vm5 = vweird.f32 %v449_v6  ;;  %vm165_vm6 = vmor %vm163_vm3, %vm164_vm2  ;;  %vm173_vm9 = vweird.f32 %v116_v5 }
 0x101   :  { %v159_v11 = vmul.f32 %v447_v4, %v158_v7  ;;  %452 = vrsqrt.f32 %v114_v8  ;;  %vm572_vm7 = vmor %vm123_vm4, %vm124_vm5  ;;  %vm153_vm8 = vweird.f32 %v114_v8  ;;  %vm133_vm12 = vweird.f32 %v112_v9 }
 0x102   :  { %v119_v12 = vmul.f32 %v449_v6, %v118_v10  ;;  %454 = vrsqrt.f32 %v112_v9 }
 0x103   :  { %v160_v13 = vmul.f32 0.5, %v159_v11  ;;  %v95_v14 = vpop.xlane.xlu1 %94 }
 0x104   :  { %v120_v15 = vmul.f32 0.5, %v119_v12  ;;  %v107_v16 = vmul.f32 %v95_v14, %v516_v21  ;;  %v443_v14 = vld [vmem:[%s630_s4] ss:$0 sm:$0xff] }
 0x105   :  { %v161_v17 = vsub.f32 1.5, %v160_v13 }
 0x106   :  { %v451_v18 = vpop.eup %450  ;;  %v121_v19 = vsub.f32 1.5, %v120_v15  ;;  %v113_v20 = vadd.f32 1e-05, %v107_v16 }
 0x107   :  { %v453_v22 = vpop.eup %452  ;;  %v162_v23 = vmul.f32 %v447_v4, %v161_v17  ;;  %v168_v24 = vmul.f32 %v451_v18, %v116_v5  ;;  %vm174_vm10 = vweird.f32 %v451_v18 }
 0x108   :  { %v455_v25 = vpop.eup %454  ;;  %v148_v26 = vmul.f32 %v453_v22, %v114_v8  ;;  %456 = vrsqrt.f32 %v113_v20  ;;  %v122_v29 = vmul.f32 %v449_v6, %v121_v19  ;;  %vm154_vm11 = vweird.f32 %v453_v22  ;;  %vm175_vm14 = vmor %vm173_vm9, %vm174_vm10 }
 0x109   :  { %v128_v30 = vmul.f32 %v455_v25, %v112_v9  ;;  %v169_v31 = vmul.f32 %v451_v18, %v168_v24  ;;  %v166_v21 = vsel %vm165_vm6, %v447_v4, %v162_v23  ;;  %vm134_vm13 = vweird.f32 %v455_v25  ;;  %vm585_vm15 = vmor %vm153_vm8, %vm154_vm11 }
 0x10a   :  { %v149_v32 = vmul.f32 %v453_v22, %v148_v26  ;;  %v126_v37 = vsel %vm572_vm7, %v449_v6, %v122_v29  ;;  %v181_v44 = vmul.f32 %v166_v21, %v520_v27  ;;  %vm135_vm1 = vmor %vm133_vm12, %vm134_vm13  ;;  %vm143_vm3 = vweird.f32 %v113_v20 }
 0x10b   :  { %v129_v33 = vmul.f32 %v455_v25, %v128_v30  ;;  %v170_v34 = vmul.f32 0.5, %v169_v31  ;;  %v177_v51 = vmul.f32 %v126_v37, %v522_v28 }
 0x10c   :  { %v150_v36 = vmul.f32 0.5, %v149_v32  ;;  %v191_v58 = vmul.f32 %v441_v47, %v181_v44 }
 0x10d   :  { %v130_v38 = vmul.f32 0.5, %v129_v33  ;;  %v171_v39 = vsub.f32 1.5, %v170_v34  ;;  %v187_v62 = vmul.f32 %v441_v47, %v177_v51 }
 0x10e   :  { %v457_v43 = vpop.eup %456  ;;  %v151_v45 = vsub.f32 1.5, %v150_v36 }
 0x10f   :  { %v131_v48 = vsub.f32 1.5, %v130_v38  ;;  %v172_v49 = vmul.f32 %v451_v18, %v171_v39  ;;  %v138_v50 = vmul.f32 %v457_v43, %v113_v20  ;;  %vm144_vm2 = vweird.f32 %v457_v43 }
 0x110   :  { %v152_v52 = vmul.f32 %v453_v22, %v151_v45  ;;  %vm145_vm4 = vmor %vm143_vm3, %vm144_vm2  ;;  %v197_v5 = vadd.f32 %v442_v57, %v187_v62 }
 0x111   :  { %v132_v27 = vmul.f32 %v455_v25, %v131_v48  ;;  %v176_v54 = vsel %vm175_vm14, %v451_v18, %v172_v49  ;;  %v139_v55 = vmul.f32 %v457_v43, %v138_v50 }
 0x112   :  { %v182_v56 = vmul.f32 %v176_v54, %v534_v40  ;;  %v156_v28 = vsel %vm585_vm15, %v453_v22, %v152_v52  ;;  %v201_v40 = vadd.f32 %v442_v57, %v191_v58 }
 0x113   :  { %v136_v59 = vsel %vm135_vm1, %v455_v25, %v132_v27  ;;  %v140_v60 = vmul.f32 0.5, %v139_v55  ;;  %v180_v1 = vmul.f32 %v156_v28, %v536_v41 }
 0x114   :  { %v178_v61 = vmul.f32 %v136_v59, %v538_v42  ;;  %v192_v63 = vmul.f32 %v441_v47, %v182_v56 }
 0x115   :  { %v141_v0 = vsub.f32 1.5, %v140_v60  ;;  %v190_v42 = vmul.f32 %v441_v47, %v180_v1 }
 0x116   :  { %v188_v2 = vmul.f32 %v441_v47, %v178_v61  ;;  %v202_v3 = vadd.f32 %v442_v57, %v192_v63 }
 0x117   :  { %v142_v4 = vmul.f32 %v457_v43, %v141_v0  ;;  %v200_v12 = vadd.f32 %v442_v57, %v190_v42 }
 0x118   :  { %v198_v6 = vadd.f32 %v442_v57, %v188_v2  ;;  %v211_v7 = vpack.c.bf16 %v202_v3, %v201_v40 }
 0x119   :  { %v146_v8 = vsel %vm145_vm4, %v457_v43, %v142_v4 }
 0x11a   :  { %v179_v9 = vmul.f32 %v146_v8, %v546_v46  ;;  %v209_v10 = vpack.c.bf16 %v198_v6, %v197_v5  ;;  %396 = vmatmul.msk.bf16.vlgmr.msra.gmra.mxu2 %vm43_vm0, %v211_v7 }
 0x11c   :  { %394 = vmatmul.msk.bf16.vlgmr.msra.gmra.mxu0 %vm43_vm0, %v209_v10  ;;  %v189_v11 = vmul.f32 %v441_v47, %v179_v9 }
 0x11e   :  { %v199_v41 = vadd.f32 %v442_v57, %v189_v11 }
 0x120   :  { %v210_v13 = vpack.c.bf16 %v200_v12, %v199_v41 }
 0x122   :  { %395 = vmatmul.msk.bf16.vlgmr.msra.gmra.mxu1 %vm43_vm0, %v210_v13 }
 0x199   :  { %v262_v15 = vpop.f32.mrf.mxu0 }
 0x19a   :  { %v302_v16 = vadd.f32 %v443_v14, %v262_v15 }
 0x19c   :  { %v308_v17 = vmul.f32 %v302_v16, %v302_v16 }
 0x19d   :  { %v272_v46 = vpop.f32.mrf.mxu2 }
 0x19e   :  { %v314_v18 = vmul.f32 %v308_v17, %v302_v16  ;;  %v604_v19 = vadd.f32 %v443_v14, %v272_v46 }
 0x19f   :  { %v267_v20 = vpop.f32.mrf.mxu1 }
 0x1a0   :  { %v320_v22 = vmul.f32 0.044715, %v314_v18  ;;  %v312_v23 = vmul.f32 %v604_v19, %v604_v19  ;;  %v608_v24 = vadd.f32 %v443_v14, %v267_v20 }
 0x1a1   :  { %v264_v25 = vpop.f32.mrf.mxu0 }
 0x1a2   :  { %v326_v26 = vadd.f32 %v320_v22, %v302_v16  ;;  %v318_v29 = vmul.f32 %v312_v23, %v604_v19  ;;  %v303_v30 = vadd.f32 %v443_v14, %v264_v25  ;;  %v310_v31 = vmul.f32 %v608_v24, %v608_v24 }
 0x1a4   :  { %v332_v32 = vmul.f32 0.7978846, %v326_v26  ;;  %v324_v21 = vmul.f32 0.044715, %v318_v29  ;;  %v309_v33 = vmul.f32 %v303_v30, %v303_v30  ;;  %v316_v34 = vmul.f32 %v310_v31, %v608_v24 }
 0x1a5   :  { %v274_v35 = vpop.f32.mrf.mxu2 }
 0x1a6   :  { %v330_v36 = vadd.f32 %v324_v21, %v604_v19  ;;  %v315_v37 = vmul.f32 %v309_v33, %v303_v30  ;;  %v322_v38 = vmul.f32 0.044715, %v316_v34  ;;  %458 = vtanh.f32 %v332_v32 }
 0x1a7   :  { %v307_v39 = vadd.f32 %v443_v14, %v274_v35  ;;  %v269_v43 = vpop.f32.mrf.mxu1 }
 0x1a8   :  { %v336_v44 = vmul.f32 0.7978846, %v330_v36  ;;  %v321_v45 = vmul.f32 0.044715, %v315_v37  ;;  %v328_v47 = vadd.f32 %v322_v38, %v608_v24  ;;  %v305_v48 = vadd.f32 %v443_v14, %v269_v43 }
 0x1a9   :  { %v313_v49 = vmul.f32 %v307_v39, %v307_v39 }
 0x1aa   :  { %v327_v50 = vadd.f32 %v321_v45, %v303_v30  ;;  %v334_v51 = vmul.f32 0.7978846, %v328_v47  ;;  %v311_v52 = vmul.f32 %v305_v48, %v305_v48  ;;  %460 = vtanh.f32 %v336_v44 }
 0x1ab   :  { %v319_v53 = vmul.f32 %v313_v49, %v307_v39 }
 0x1ac   :  { %v333_v27 = vmul.f32 0.7978846, %v327_v50  ;;  %v317_v54 = vmul.f32 %v311_v52, %v305_v48  ;;  %v459_v55 = vpop.eup %458  ;;  %462 = vtanh.f32 %v334_v51 }
 0x1ad   :  { %v325_v56 = vmul.f32 0.044715, %v319_v53  ;;  %v344_v59 = vadd.f32 1.0, %v459_v55 }
 0x1ae   :  { %464 = vtanh.f32 %v333_v27  ;;  %v323_v57 = vmul.f32 0.044715, %v317_v54 }
 0x1af   :  { %v331_v58 = vadd.f32 %v325_v56, %v307_v39  ;;  %v350_v1 = vmul.f32 0.5, %v344_v59 }
 0x1b0   :  { %v329_v28 = vadd.f32 %v323_v57, %v305_v48  ;;  %v461_v61 = vpop.eup %460 }
 0x1b1   :  { %v337_v60 = vmul.f32 0.7978846, %v331_v58  ;;  %v348_v40 = vadd.f32 1.0, %v461_v61  ;;  %v356_v6 = vmul.f32 %v350_v1, %v302_v16 }
 0x1b2   :  { %v335_v62 = vmul.f32 0.7978846, %v329_v28  ;;  %v463_v63 = vpop.eup %462 }
 0x1b3   :  { %466 = vtanh.f32 %v337_v60  ;;  %v346_v4 = vadd.f32 1.0, %v463_v63  ;;  %v354_v9 = vmul.f32 0.5, %v348_v40 }
 0x1b4   :  { %v465_v0 = vpop.eup %464  ;;  %468 = vtanh.f32 %v335_v62 }
 0x1b5   :  { %v345_v2 = vadd.f32 1.0, %v465_v0  ;;  %v352_v11 = vmul.f32 0.5, %v346_v4  ;;  %v360_v14 = vmul.f32 %v354_v9, %v604_v19 }
 0x1b7   :  { %v351_v3 = vmul.f32 0.5, %v345_v2  ;;  %v358_v17 = vmul.f32 %v352_v11, %v608_v24 }
 0x1b9   :  { %v467_v5 = vpop.eup %466  ;;  %v357_v7 = vmul.f32 %v351_v3, %v303_v30 }
 0x1ba   :  { %v469_v8 = vpop.eup %468  ;;  %v349_v10 = vadd.f32 1.0, %v467_v5 }
 0x1bb   :  { %v416_v42 = vpack.c.bf16 %v357_v7, %v356_v6  ;;  %v347_v41 = vadd.f32 1.0, %v469_v8 }
 0x1bc   :  { %v355_v12 = vmul.f32 0.5, %v349_v10 }
 0x1bd   :  { %417 = vst [vmem:[%s632_s5] sm:$0xff] %v416_v42   ;;  %v353_v13 = vmul.f32 0.5, %v347_v41 }
 0x1be   :  { %v361_v15 = vmul.f32 %v355_v12, %v307_v39 }
 0x1bf   :  { %v359_v46 = vmul.f32 %v353_v13, %v305_v48 }
 0x1c0   :  { %v426_v16 = vpack.c.bf16 %v361_v15, %v360_v14 }
 0x1c1   :  { %v421_v18 = vpack.c.bf16 %v359_v46, %v358_v17 }
 0x1c2   :  { %431 = vst [vmem:[%s632_s5 + $0x10] sm:$0xff] %v426_v16  }
 0x1c3   :  { %430 = vst [vmem:[%s632_s5 + $0x8] sm:$0xff] %v421_v18  }

// kernel: beit_forward.74
= control target key start
LH: loop header
LB: loop body
LE: loop exit
PB: predicated region body
PF: predicated region fallthrough
CT: control target
= control target key end

     0   :  { %vm21_vm0 = vcmask 523264   ;;  %v396_v6 = vmov 0.0   ;;  %vm31_vm1 = vcmask 521216   ;;  %vm270_vm2 = vcmask 519168   ;;  %s556_s1 = inlined_call_operand.vmem [shape: bf16[128,64], index: 1, kind: input, shape index: {}]   ;;  %s557_s2 = inlined_call_operand.vmem [shape: f32[1,64], index: 2, kind: input, shape index: {}]   ;;  %s558_s0 = inlined_call_operand.vmem [shape: bf16[78,128], index: 0, kind: input, shape index: {}]   ;;  %s559_s3 = inlined_call_operand.vmem [shape: bf16[78,64], index: 3, kind: input, shape index: {}]   ;;  %s560_s4 = inlined_call_operand.vmem [shape: bf16[78,64], index: 4, kind: output, shape index: {}]  }
   0x1   :  { %v350_v0 = vld [vmem:[%s556_s1 + $0x38] sm:$0xff]  ;;  %v349_v1 = vld [vmem:[%s556_s1 + $0x30] sm:$0xff]  ;;  %v348_v2 = vld [vmem:[%s556_s1 + $0x28] sm:$0xff]  ;;  %28 = vst.msk [vmem:[#allocation2 + $0x30] sm:$0xff] %vm21_vm0, %v396_v6  ;;  %vm280_vm3 = vcmask 518144  }
   0x2   :  { %372 = vmatpush.bf16.msra.mxu3 %v350_v0  ;;  %371 = vmatpush.bf16.msra.mxu2 %v350_v0  ;;  %v347_v3 = vld [vmem:[%s556_s1 + $0x20] sm:$0xff]  ;;  %v346_v4 = vld [vmem:[%s556_s1 + $0x18] sm:$0xff]  ;;  %v345_v5 = vld [vmem:[%s556_s1 + $0x10] sm:$0xff]  ;;  %22 = vst.msk [vmem:[#allocation2] sm:$0xff] %vm21_vm0, %v396_v6 }
   0x3   :  { %147 = vmatpush.bf16.msra.mxu0 %v350_v0  ;;  %370 = vmatpush.bf16.msra.mxu1 %v350_v0  ;;  %23 = vst.msk [vmem:[#allocation2 + $0x8] sm:$0xff] %vm21_vm0, %v396_v6  ;;  %v344_v7 = vld [vmem:[%s556_s1 + $0x8] sm:$0xff]  ;;  %v343_v8 = vld [vmem:[%s556_s1] sm:$0xff]  ;;  %v341_v9 = vld [vmem:[%s558_s0 + $0x18] sm:$0xff] }
   0x4   :  { %24 = vst.msk [vmem:[#allocation2 + $0x10] sm:$0xff] %vm21_vm0, %v396_v6  ;;  %v340_v10 = vld [vmem:[%s558_s0 + $0x10] sm:$0xff]  ;;  %v338_v11 = vld [vmem:[%s558_s0] sm:$0xff]  ;;  %v339_v12 = vld [vmem:[%s558_s0 + $0x8] sm:$0xff] }
   0x5   :  { %25 = vst.msk [vmem:[#allocation2 + $0x18] sm:$0xff] %vm21_vm0, %v396_v6  ;;  %v304_v13 = vld [vmem:[%s558_s0 + $0x20] sm:$0xf]  ;;  %v342_v14 = vld [vmem:[%s558_s0 + $0x20] sm:$0x70]  ;;  %v367_v31 = vld [vmem:[%s559_s3 + $0x8] sm:$0xff]  }
   0x6   :  { %375 = vmatpush.bf16.msra.mxu3 %v349_v1  ;;  %374 = vmatpush.bf16.msra.mxu2 %v349_v1  ;;  %26 = vst.msk [vmem:[#allocation2 + $0x20] sm:$0xff] %vm21_vm0, %v396_v6  ;;  %v305_v15 = vor.u32 %v342_v14, %v304_v13  ;;  %v352_v27 = vld [vmem:[%s559_s3] sm:$0xff]   ;;  %v357_v39 = vunpack.c.l.bf16 %v367_v31  ;;  %v369_v40 = vld [vmem:[%s559_s3 + $0x18] sm:$0xff]   ;;  %v368_v45 = vld [vmem:[%s559_s3 + $0x10] sm:$0xff]   ;;  %v358_v0 = vunpack.c.h.bf16 %v367_v31 }
   0x7   :  { %148 = vmatpush.bf16.msra.mxu0 %v349_v1  ;;  %373 = vmatpush.bf16.msra.mxu1 %v349_v1  ;;  %27 = vst.msk [vmem:[#allocation2 + $0x28] sm:$0xff] %vm21_vm0, %v396_v6  ;;  %v486_v34 = vld [vmem:[%s557_s2] ss:$0 sm:$0xff]  ;;  %v353_v35 = vunpack.c.l.bf16 %v352_v27  ;;  %v365_v50 = vunpack.c.l.bf16 %v369_v40  ;;  %v361_v55 = vunpack.c.l.bf16 %v368_v45  ;;  %v354_v61 = vunpack.c.h.bf16 %v352_v27 }
   0x8   :  { %29 = vst.msk [vmem:[#allocation2 + $0x38] sm:$0xff] %vm21_vm0, %v396_v6  ;;  %v49_v22 = vld [vmem:[#allocation2 + $0x30] sm:$0xff] }
   0x9   :  { %30 = vst.msk [vmem:[#allocation2 + $0x40] sm:$0xff] %vm21_vm0, %v396_v6  ;;  %v43_v16 = vld [vmem:[#allocation2] sm:$0xff] }
   0xa   :  { %378 = vmatpush.bf16.msra.mxu3 %v348_v2  ;;  %377 = vmatpush.bf16.msra.mxu2 %v348_v2  ;;  %32 = vst.msk [vmem:[#allocation2 + $0x48] sm:$0x3f] %vm31_vm1, %v396_v6  ;;  %v44_v29 = vld [vmem:[#allocation2 + $0x8] sm:$0xff] }
   0xb   :  { %149 = vmatpush.bf16.msra.mxu0 %v348_v2  ;;  %376 = vmatpush.bf16.msra.mxu1 %v348_v2  ;;  %v45_v17 = vld [vmem:[#allocation2 + $0x10] sm:$0xff] }
   0xc   :  { %v46_v30 = vld [vmem:[#allocation2 + $0x18] sm:$0xff] }
   0xd   :  { %v47_v23 = vld [vmem:[#allocation2 + $0x20] sm:$0xff] }
   0xe   :  { %381 = vmatpush.bf16.msra.mxu3 %v347_v3  ;;  %380 = vmatpush.bf16.msra.mxu2 %v347_v3  ;;  %v48_v46 = vld [vmem:[#allocation2 + $0x28] sm:$0xff] }
   0xf   :  { %150 = vmatpush.bf16.msra.mxu0 %v347_v3  ;;  %379 = vmatpush.bf16.msra.mxu1 %v347_v3  ;;  %v50_v43 = vld [vmem:[#allocation2 + $0x38] sm:$0xff] }
  0x12   :  { %384 = vmatpush.bf16.msra.mxu3 %v346_v4  ;;  %383 = vmatpush.bf16.msra.mxu2 %v346_v4 }
  0x13   :  { %151 = vmatpush.bf16.msra.mxu0 %v346_v4  ;;  %382 = vmatpush.bf16.msra.mxu1 %v346_v4  ;;  %v51_v4 = vld [vmem:[#allocation2 + $0x40] sm:$0xff] }
  0x16   :  { %387 = vmatpush.bf16.msra.mxu3 %v345_v5  ;;  %386 = vmatpush.bf16.msra.mxu2 %v345_v5 }
  0x17   :  { %152 = vmatpush.bf16.msra.mxu0 %v345_v5  ;;  %385 = vmatpush.bf16.msra.mxu1 %v345_v5 }
  0x1a   :  { %390 = vmatpush.bf16.msra.mxu3 %v344_v7  ;;  %389 = vmatpush.bf16.msra.mxu2 %v344_v7 }
  0x1b   :  { %153 = vmatpush.bf16.msra.mxu0 %v344_v7  ;;  %388 = vmatpush.bf16.msra.mxu1 %v344_v7 }
  0x1e   :  { %393 = vmatpush.bf16.msra.mxu3 %v343_v8  ;;  %392 = vmatpush.bf16.msra.mxu2 %v343_v8 }
  0x1f   :  { %154 = vmatpush.bf16.msra.mxu0 %v343_v8  ;;  %391 = vmatpush.bf16.msra.mxu1 %v343_v8 }
  0x21   :  { %170 = vmatmul.bf16.vlgmr.msra.gmra.mxu3 %v341_v9  ;;  %165 = vmatmul.bf16.vlgmr.msra.gmra.mxu2 %v340_v10  ;;  %v366_v10 = vunpack.c.h.bf16 %v369_v40 }
  0x22   :  { %155 = vmatmul.bf16.vlgmr.msra.gmra.mxu0 %v338_v11  ;;  %160 = vmatmul.bf16.vlgmr.msra.gmra.mxu1 %v339_v12 }
  0x31   :  { %175 = vmatmul.bf16.gmra.mxu3 %v305_v15 }
  0x9f   :  { %v156_v18 = vpop.f32.mrf.mxu0  ;;  %v161_v19 = vpop.f32.mrf.mxu1 }
  0xa0   :  { %v181_v20 = vadd.f32 %v156_v18, %v43_v16  ;;  %v183_v21 = vadd.f32 %v161_v19, %v45_v17  ;;  %v362_v17 = vunpack.c.h.bf16 %v368_v45 }
  0xa2   :  { %192 = vst.msk [vmem:[#allocation2] sm:$0xff] %vm21_vm0, %v181_v20 }
  0xa3   :  { %194 = vst.msk [vmem:[#allocation2 + $0x10] sm:$0xff] %vm21_vm0, %v183_v21  ;;  %v238_v21 = vld [vmem:[%s559_s3 + $0x20] sm:$0xf] }
  0xa4   :  { %v171_v24 = vpop.f32.mrf.mxu3  ;;  %v166_v25 = vpop.f32.mrf.mxu2 }
  0xa5   :  { %v187_v26 = vadd.f32 %v171_v24, %v49_v22  ;;  %v185_v28 = vadd.f32 %v166_v25, %v47_v23  ;;  %v52_v22 = vld [vmem:[#allocation2 + $0x48] sm:$0x3f] }
  0xa7   :  { %198 = vst.msk [vmem:[#allocation2 + $0x30] sm:$0xff] %vm21_vm0, %v187_v26  ;;  %v158_v32 = vpop.f32.mrf.mxu0  ;;  %v163_v33 = vpop.f32.mrf.mxu1  ;;  %v248_v26 = vunpack.c.l.bf16 %v238_v21 }
  0xa8   :  { %196 = vst.msk [vmem:[#allocation2 + $0x20] sm:$0xff] %vm21_vm0, %v185_v28  ;;  %v182_v36 = vadd.f32 %v158_v32, %v44_v29  ;;  %v184_v37 = vadd.f32 %v163_v33, %v46_v30  ;;  %v239_v32 = vld [vmem:[%s559_s3 + $0x24] sm:$0x7] }
  0xa9   :  { %v206_v38 = vld [vmem:[#allocation2] sm:$0xff] }
  0xaa   :  { %v220_v41 = vadd.f32 %v486_v34, %v206_v38  ;;  %v208_v42 = vld [vmem:[#allocation2 + $0x10] sm:$0xff]  ;;  %193 = vst.msk [vmem:[#allocation2 + $0x8] sm:$0xff] %vm21_vm0, %v182_v36 }
  0xab   :  { %v222_v44 = vadd.f32 %v486_v34, %v208_v42  ;;  %195 = vst.msk [vmem:[#allocation2 + $0x18] sm:$0xff] %vm21_vm0, %v184_v37 }
  0xac   :  { %v250_v47 = vadd.f32 %v353_v35, %v220_v41  ;;  %v173_v48 = vpop.f32.mrf.mxu3  ;;  %v168_v49 = vpop.f32.mrf.mxu2  ;;  %v249_v35 = vunpack.c.l.bf16 %v239_v32 }
  0xad   :  { %v252_v51 = vadd.f32 %v357_v39, %v222_v44  ;;  %v188_v52 = vadd.f32 %v173_v48, %v50_v43  ;;  %v186_v56 = vadd.f32 %v168_v49, %v48_v46 }
  0xae   :  { %v212_v53 = vld [vmem:[#allocation2 + $0x30] sm:$0xff]  ;;  %v260_v54 = vpack.c.bf16 %v250_v47, %v250_v47 }
  0xaf   :  { %v226_v57 = vadd.f32 %v486_v34, %v212_v53  ;;  %v262_v58 = vpack.c.bf16 %v252_v51, %v252_v51  ;;  %v210_v59 = vld [vmem:[#allocation2 + $0x20] sm:$0xff]  ;;  %199 = vst.msk [vmem:[#allocation2 + $0x38] sm:$0xff] %vm21_vm0, %v188_v52 }
  0xb0   :  { %271 = vst.msk [vmem:[%s560_s4] sm:$0xf] %vm270_vm2, %v260_v54  ;;  %v224_v60 = vadd.f32 %v486_v34, %v210_v59 }
  0xb1   :  { %v256_v62 = vadd.f32 %v365_v50, %v226_v57  ;;  %273 = vst.msk [vmem:[%s560_s4 + $0x8] sm:$0xf] %vm270_vm2, %v262_v58  ;;  %v207_v63 = vld [vmem:[#allocation2 + $0x8] sm:$0xff] }
  0xb2   :  { %v254_v1 = vadd.f32 %v361_v55, %v224_v60  ;;  %v221_v2 = vadd.f32 %v486_v34, %v207_v63  ;;  %v209_v3 = vld [vmem:[#allocation2 + $0x18] sm:$0xff]  ;;  %197 = vst.msk [vmem:[#allocation2 + $0x28] sm:$0xff] %vm21_vm0, %v186_v56 }
  0xb3   :  { %v266_v5 = vpack.c.bf16 %v256_v62, %v256_v62  ;;  %v223_v6 = vadd.f32 %v486_v34, %v209_v3 }
  0xb4   :  { %v264_v7 = vpack.c.bf16 %v254_v1, %v254_v1  ;;  %v251_v8 = vadd.f32 %v354_v61, %v221_v2  ;;  %v176_v9 = vpop.f32.mrf.mxu3 }
  0xb5   :  { %277 = vst.msk [vmem:[%s560_s4 + $0x18] sm:$0xf] %vm270_vm2, %v266_v5  ;;  %v253_v11 = vadd.f32 %v358_v0, %v223_v6  ;;  %v189_v12 = vadd.f32 %v176_v9, %v51_v4 }
  0xb6   :  { %275 = vst.msk [vmem:[%s560_s4 + $0x10] sm:$0xf] %vm270_vm2, %v264_v7  ;;  %v213_v13 = vld [vmem:[#allocation2 + $0x38] sm:$0xff]  ;;  %v261_v14 = vpack.c.bf16 %v251_v8, %v251_v8 }
  0xb7   :  { %v227_v15 = vadd.f32 %v486_v34, %v213_v13  ;;  %v263_v16 = vpack.c.bf16 %v253_v11, %v253_v11  ;;  %200 = vst.msk [vmem:[#allocation2 + $0x40] sm:$0xff] %vm21_vm0, %v189_v12 }
  0xb8   :  { %272 = vst.msk [vmem:[%s560_s4 + $0x4] sm:$0xf] %vm270_vm2, %v261_v14 }
  0xb9   :  { %v257_v18 = vadd.f32 %v366_v10, %v227_v15  ;;  %274 = vst.msk [vmem:[%s560_s4 + $0xc] sm:$0xf] %vm270_vm2, %v263_v16  ;;  %v211_v19 = vld [vmem:[#allocation2 + $0x28] sm:$0xff] }
  0xba   :  { %v225_v20 = vadd.f32 %v486_v34, %v211_v19 }
  0xbb   :  { %v267_v23 = vpack.c.bf16 %v257_v18, %v257_v18 }
  0xbc   :  { %v255_v24 = vadd.f32 %v362_v17, %v225_v20  ;;  %v178_v25 = vpop.f32.mrf.mxu3 }
  0xbd   :  { %278 = vst.msk [vmem:[%s560_s4 + $0x1c] sm:$0xf] %vm270_vm2, %v267_v23  ;;  %v190_v27 = vadd.f32 %v178_v25, %v52_v22 }
  0xbe   :  { %v265_v28 = vpack.c.bf16 %v255_v24, %v255_v24  ;;  %v214_v29 = vld [vmem:[#allocation2 + $0x40] sm:$0xff] }
  0xbf   :  { %v228_v30 = vadd.f32 %v486_v34, %v214_v29  ;;  %202 = vst.msk [vmem:[#allocation2 + $0x48] sm:$0x3f] %vm31_vm1, %v190_v27 }
  0xc0   :  { %276 = vst.msk [vmem:[%s560_s4 + $0x14] sm:$0xf] %vm270_vm2, %v265_v28 }
  0xc1   :  { %v258_v31 = vadd.f32 %v248_v26, %v228_v30 }
  0xc3   :  { %v268_v33 = vpack.c.bf16 %v258_v31, %v258_v31 }
  0xc5   :  { %279 = vst.msk [vmem:[%s560_s4 + $0x20] sm:$0xf] %vm270_vm2, %v268_v33 }
  0xc6   :  { %v215_v36 = vld [vmem:[#allocation2 + $0x48] sm:$0x3f] }
  0xc7   :  { %v229_v37 = vadd.f32 %v486_v34, %v215_v36 }
  0xc9   :  { %v259_v38 = vadd.f32 %v249_v35, %v229_v37 }
  0xcb   :  { %v269_v39 = vpack.c.bf16 %v259_v38, %v259_v38 }
  0xcd   :  { %281 = vst.msk [vmem:[%s560_s4 + $0x24] sm:$0x7] %vm280_vm3, %v269_v39 }

// kernel: beit_forward.73
= control target key start
LH: loop header
LB: loop body
LE: loop exit
PB: predicated region body
PF: predicated region fallthrough
CT: control target
= control target key end

     0   :  { %vm55_vm0 = vcmask 523264   ;;  %vm83_vm1 = vcmask 521216   ;;  %v695_v26 = vmov 64.0   ;;  %s1135_s0 = inlined_call_operand.vmem [shape: bf16[78,64], index: 0, kind: input, shape index: {}]   ;;  %s1136_s2 = inlined_call_operand.vmem [shape: f32[1,64], index: 2, kind: input, shape index: {}]   ;;  %s1137_s3 = inlined_call_operand.vmem [shape: f32[1,64], index: 3, kind: input, shape index: {}]   ;;  %s1138_s4 = inlined_call_operand.vmem [shape: f32[1,128], index: 4, kind: input, shape index: {}]   ;;  %s1139_s1 = inlined_call_operand.vmem [shape: bf16[64,128], index: 1, kind: input, shape index: {}]   ;;  %s1140_s5 = inlined_call_operand.vmem [shape: bf16[78,128], index: 5, kind: output, shape index: {}]  }
   0x1   :  { %v730_v0 = vld [vmem:[%s1135_s0 + $0x20] sm:$0xf]  ;;  %v735_v1 = vld [vmem:[%s1135_s0 + $0x18] sm:$0xff]   ;;  %v740_v2 = vld [vmem:[%s1135_s0 + $0x10] sm:$0xff]   ;;  %653 = vrcp.f32 %v695_v26 }
   0x2   :  { %v53_v3 = vunpack.c.l.bf16 %v730_v0  ;;  %v608_v4 = vunpack.c.l.bf16 %v735_v1  ;;  %v604_v5 = vunpack.c.l.bf16 %v740_v2  ;;  %v44_v6 = vld [vmem:[%s1135_s0 + $0x24] sm:$0x7]  ;;  %v609_v11 = vunpack.c.h.bf16 %v735_v1  ;;  %v761_v16 = vld [vmem:[%s1135_s0 + $0x8] sm:$0xff]  }
   0x3   :  { %v54_v10 = vunpack.c.l.bf16 %v44_v6  ;;  %v605_v12 = vunpack.c.h.bf16 %v740_v2  ;;  %v766_v17 = vld [vmem:[%s1135_s0] sm:$0xff]   ;;  %v600_v18 = vunpack.c.l.bf16 %v761_v16  ;;  %v601_v24 = vunpack.c.h.bf16 %v761_v16 }
   0x4   :  { %v80_v7 = vsel %vm55_vm0, %v53_v3, 0.0  ;;  %v74_v8 = vsel %vm55_vm0, %v608_v4, 0.0  ;;  %v68_v9 = vsel %vm55_vm0, %v604_v5, 0.0  ;;  %v77_v14 = vsel %vm55_vm0, %v609_v11, 0.0 }
   0x5   :  { %81 = vadd.xlane.f32.xlu2 %v80_v7  ;;  %75 = vadd.xlane.f32.xlu0 %v74_v8  ;;  %v84_v13 = vsel %vm83_vm1, %v54_v10, 0.0  ;;  %v71_v15 = vsel %vm55_vm0, %v605_v12, 0.0  ;;  %v596_v19 = vunpack.c.l.bf16 %v766_v17  ;;  %v597_v20 = vunpack.c.h.bf16 %v766_v17 }
   0x6   :  { %69 = vadd.xlane.f32.xlu1 %v68_v9  ;;  %v62_v21 = vsel %vm55_vm0, %v600_v18, 0.0  ;;  %v65_v25 = vsel %vm55_vm0, %v601_v24, 0.0 }
   0x7   :  { %v56_v22 = vsel %vm55_vm0, %v596_v19, 0.0  ;;  %v59_v23 = vsel %vm55_vm0, %v597_v20, 0.0  ;;  %v654_v27 = vpop.eup %653 }
   0x8   :  { %v88_v28 = vmul.f32 64.0, %v654_v27  ;;  %vm92_vm2 = vweird.f32 %v654_v27 }
   0xa   :  { %v89_v29 = vsub.f32 1.0, %v88_v28 }
   0xc   :  { %v90_v30 = vmul.f32 %v654_v27, %v89_v29  ;;  %v590_v29 = vld [vmem:[%s1139_s1] sm:$0xff] }
   0xd   :  { %85 = vadd.xlane.f32.xlu2 %v84_v13  ;;  %78 = vadd.xlane.f32.xlu0 %v77_v14 }
   0xe   :  { %72 = vadd.xlane.f32.xlu1 %v71_v15  ;;  %v91_v31 = vadd.f32 %v654_v27, %v90_v30 }
  0x10   :  { %v778_v32 = vsel %vm92_vm2, %v654_v27, %v91_v31  ;;  %v591_v27 = vld [vmem:[%s1139_s1 + $0x8] sm:$0xff] }
  0x15   :  { %63 = vadd.xlane.f32.xlu2 %v62_v21  ;;  %57 = vadd.xlane.f32.xlu0 %v56_v22  ;;  %v592_v21 = vld [vmem:[%s1139_s1 + $0x10] sm:$0xff] }
  0x16   :  { %60 = vadd.xlane.f32.xlu1 %v59_v23 }
  0x1d   :  { %66 = vadd.xlane.f32.xlu0 %v65_v25 }
  0x78   :  { %v82_v33 = vpop.xlane.xlu2 %81  ;;  %v76_v34 = vpop.xlane.xlu0 %75 }
  0x79   :  { %v100_v35 = vmul.f32 %v778_v32, %v76_v34  ;;  %v70_v36 = vpop.xlane.xlu1 %69  ;;  %v102_v46 = vmul.f32 %v778_v32, %v82_v33 }
  0x7a   :  { %v98_v37 = vmul.f32 %v778_v32, %v70_v36 }
  0x7b   :  { %v782_v38 = vsub.f32 %v608_v4, %v100_v35  ;;  %v804_v54 = vsub.f32 %v53_v3, %v102_v46 }
  0x7c   :  { %v784_v39 = vsub.f32 %v604_v5, %v98_v37 }
  0x7d   :  { %v120_v40 = vmul.f32 %v782_v38, %v782_v38  ;;  %v122_v1 = vmul.f32 %v804_v54, %v804_v54 }
  0x7e   :  { %v118_v41 = vmul.f32 %v784_v39, %v784_v39 }
  0x7f   :  { %v142_v42 = vsel %vm55_vm0, %v120_v40, 0.0  ;;  %v148_v6 = vsel %vm55_vm0, %v122_v1, 0.0 }
  0x80   :  { %v86_v43 = vpop.xlane.xlu2 %85  ;;  %v79_v44 = vpop.xlane.xlu0 %78  ;;  %143 = vadd.xlane.f32.xlu1 %v142_v42  ;;  %v136_v45 = vsel %vm55_vm0, %v118_v41, 0.0 }
  0x81   :  { %v103_v47 = vmul.f32 %v778_v32, %v86_v43  ;;  %v101_v48 = vmul.f32 %v778_v32, %v79_v44  ;;  %v73_v49 = vpop.xlane.xlu1 %72  ;;  %137 = vadd.xlane.f32.xlu0 %v136_v45 }
  0x82   :  { %v99_v50 = vmul.f32 %v778_v32, %v73_v49 }
  0x83   :  { %v796_v51 = vsub.f32 %v54_v10, %v103_v47  ;;  %v798_v52 = vsub.f32 %v609_v11, %v101_v48 }
  0x84   :  { %v800_v53 = vsub.f32 %v605_v12, %v99_v50 }
  0x85   :  { %v121_v55 = vmul.f32 %v798_v52, %v798_v52  ;;  %v123_v56 = vmul.f32 %v796_v51, %v796_v51 }
  0x86   :  { %v119_v57 = vmul.f32 %v800_v53, %v800_v53 }
  0x87   :  { %v145_v58 = vsel %vm55_vm0, %v121_v55, 0.0  ;;  %v151_v59 = vsel %vm83_vm1, %v123_v56, 0.0 }
  0x88   :  { %146 = vadd.xlane.f32.xlu2 %v145_v58  ;;  %v64_v60 = vpop.xlane.xlu2 %63  ;;  %v139_v61 = vsel %vm55_vm0, %v119_v57, 0.0  ;;  %v58_v62 = vpop.xlane.xlu0 %57 }
  0x89   :  { %v96_v63 = vmul.f32 %v778_v32, %v64_v60  ;;  %140 = vadd.xlane.f32.xlu1 %v139_v61  ;;  %152 = vadd.xlane.f32.xlu0 %v151_v59  ;;  %v94_v0 = vmul.f32 %v778_v32, %v58_v62  ;;  %v61_v2 = vpop.xlane.xlu1 %60 }
  0x8a   :  { %v95_v3 = vmul.f32 %v778_v32, %v61_v2 }
  0x8b   :  { %v820_v4 = vsub.f32 %v600_v18, %v96_v63  ;;  %v822_v5 = vsub.f32 %v596_v19, %v94_v0 }
  0x8c   :  { %v825_v7 = vsub.f32 %v597_v20, %v95_v3  ;;  %v593_v20 = vld [vmem:[%s1139_s1 + $0x18] sm:$0xff] }
  0x8d   :  { %v116_v8 = vmul.f32 %v820_v4, %v820_v4  ;;  %v114_v9 = vmul.f32 %v822_v5, %v822_v5  ;;  %637 = vmatpush.bf16.msra.mxu2 %v593_v20  ;;  %638 = vmatpush.bf16.msra.mxu3 %v593_v20 }
  0x8e   :  { %v115_v14 = vmul.f32 %v825_v7, %v825_v7  ;;  %378 = vmatpush.bf16.msra.mxu0 %v593_v20  ;;  %636 = vmatpush.bf16.msra.mxu1 %v593_v20 }
  0x8f   :  { %v130_v10 = vsel %vm55_vm0, %v116_v8, 0.0  ;;  %v124_v11 = vsel %vm55_vm0, %v114_v9, 0.0 }
  0x90   :  { %149 = vadd.xlane.f32.xlu2 %v148_v6  ;;  %v67_v12 = vpop.xlane.xlu0 %66  ;;  %v127_v17 = vsel %vm55_vm0, %v115_v14, 0.0 }
  0x91   :  { %131 = vadd.xlane.f32.xlu0 %v130_v10  ;;  %125 = vadd.xlane.f32.xlu1 %v124_v11  ;;  %v97_v13 = vmul.f32 %v778_v32, %v67_v12 }
  0x92   :  { %640 = vmatpush.bf16.msra.mxu2 %v592_v21  ;;  %641 = vmatpush.bf16.msra.mxu3 %v592_v21 }
  0x93   :  { %v838_v15 = vsub.f32 %v601_v24, %v97_v13  ;;  %379 = vmatpush.bf16.msra.mxu0 %v592_v21  ;;  %639 = vmatpush.bf16.msra.mxu1 %v592_v21 }
  0x95   :  { %v117_v18 = vmul.f32 %v838_v15, %v838_v15 }
  0x96   :  { %643 = vmatpush.bf16.msra.mxu2 %v591_v27  ;;  %644 = vmatpush.bf16.msra.mxu3 %v591_v27 }
  0x97   :  { %v133_v19 = vsel %vm55_vm0, %v117_v18, 0.0  ;;  %380 = vmatpush.bf16.msra.mxu0 %v591_v27  ;;  %642 = vmatpush.bf16.msra.mxu1 %v591_v27 }
  0x98   :  { %128 = vadd.xlane.f32.xlu2 %v127_v17 }
  0x99   :  { %134 = vadd.xlane.f32.xlu1 %v133_v19 }
  0x9a   :  { %646 = vmatpush.bf16.msra.mxu2 %v590_v29  ;;  %647 = vmatpush.bf16.msra.mxu3 %v590_v29 }
  0x9b   :  { %381 = vmatpush.bf16.msra.mxu0 %v590_v29  ;;  %645 = vmatpush.bf16.msra.mxu1 %v590_v29 }
  0xf3   :  { %v144_v16 = vpop.xlane.xlu1 %143 }
  0xf4   :  { %v160_v22 = vmul.f32 %v144_v16, %v778_v32  ;;  %v138_v23 = vpop.xlane.xlu0 %137 }
  0xf5   :  { %v158_v24 = vmul.f32 %v138_v23, %v778_v32 }
  0xf6   :  { %v852_v25 = vadd.f32 1e-05, %v160_v22 }
  0xf7   :  { %v168_v26 = vadd.f32 1e-05, %v158_v24 }
  0xf8   :  { %655 = vrsqrt.f32 %v852_v25  ;;  %vm240_vm7 = vweird.f32 %v852_v25 }
  0xf9   :  { %657 = vrsqrt.f32 %v168_v26  ;;  %vm220_vm3 = vweird.f32 %v168_v26 }
  0xfb   :  { %v147_v28 = vpop.xlane.xlu2 %146 }
  0xfc   :  { %v161_v30 = vmul.f32 %v147_v28, %v778_v32  ;;  %v141_v31 = vpop.xlane.xlu1 %140  ;;  %v153_v33 = vpop.xlane.xlu0 %152 }
  0xfd   :  { %v159_v34 = vmul.f32 %v141_v31, %v778_v32  ;;  %v163_v35 = vmul.f32 %v153_v33, %v778_v32 }
  0xfe   :  { %v864_v36 = vpop.eup %655  ;;  %v866_v37 = vadd.f32 1e-05, %v161_v30 }
  0xff   :  { %v658_v40 = vpop.eup %657  ;;  %v235_v41 = vmul.f32 %v864_v36, %v852_v25  ;;  %v169_v42 = vadd.f32 1e-05, %v159_v34  ;;  %v870_v43 = vadd.f32 1e-05, %v163_v35  ;;  %vm241_vm5 = vweird.f32 %v864_v36  ;;  %v928_v34 = vld [vmem:[%s1136_s2] ss:$0 sm:$0xff] }
 0x100   :  { %v215_v44 = vmul.f32 %v658_v40, %v168_v26  ;;  %659 = vrsqrt.f32 %v866_v37  ;;  %vm221_vm4 = vweird.f32 %v658_v40  ;;  %vm897_vm10 = vmor %vm240_vm7, %vm241_vm5  ;;  %vm250_vm12 = vweird.f32 %v866_v37 }
 0x101   :  { %v236_v45 = vmul.f32 %v864_v36, %v235_v41  ;;  %661 = vrsqrt.f32 %v169_v42  ;;  %vm888_vm6 = vmor %vm220_vm3, %vm221_vm4  ;;  %vm230_vm8 = vweird.f32 %v169_v42  ;;  %vm270_vm15 = vweird.f32 %v870_v43 }
 0x102   :  { %v216_v46 = vmul.f32 %v658_v40, %v215_v44  ;;  %663 = vrsqrt.f32 %v870_v43 }
 0x103   :  { %v237_v47 = vmul.f32 0.5, %v236_v45  ;;  %v150_v48 = vpop.xlane.xlu2 %149 }
 0x104   :  { %v217_v49 = vmul.f32 0.5, %v216_v46  ;;  %v162_v50 = vmul.f32 %v150_v48, %v778_v32  ;;  %v126_v55 = vpop.xlane.xlu1 %125  ;;  %v132_v58 = vpop.xlane.xlu0 %131 }
 0x105   :  { %v238_v56 = vsub.f32 1.5, %v237_v47  ;;  %v154_v57 = vmul.f32 %v126_v55, %v778_v32  ;;  %v156_v6 = vmul.f32 %v132_v58, %v778_v32 }
 0x106   :  { %v660_v59 = vpop.eup %659  ;;  %v218_v60 = vsub.f32 1.5, %v217_v49  ;;  %v877_v61 = vadd.f32 1e-05, %v162_v50 }
 0x107   :  { %v662_v62 = vpop.eup %661  ;;  %v245_v63 = vmul.f32 %v660_v59, %v866_v37  ;;  %v880_v0 = vadd.f32 1e-05, %v154_v57  ;;  %v239_v8 = vmul.f32 %v864_v36, %v238_v56  ;;  %v903_v16 = vadd.f32 1e-05, %v156_v6 }
 0x108   :  { %v882_v1 = vpop.eup %663  ;;  %v219_v2 = vmul.f32 %v658_v40, %v218_v60  ;;  %v225_v3 = vmul.f32 %v662_v62, %v169_v42  ;;  %665 = vrsqrt.f32 %v877_v61  ;;  %vm231_vm9 = vweird.f32 %v662_v62 }
 0x109   :  { %v246_v10 = vmul.f32 %v660_v59, %v245_v63  ;;  %v265_v11 = vmul.f32 %v882_v1, %v870_v43  ;;  %667 = vrsqrt.f32 %v880_v0  ;;  %v243_v23 = vsel %vm897_vm10, %v864_v36, %v239_v8  ;;  %vm919_vm13 = vmor %vm230_vm8, %vm231_vm9 }
 0x10a   :  { %v226_v12 = vmul.f32 %v662_v62, %v225_v3  ;;  %v223_v19 = vsel %vm888_vm6, %v658_v40, %v219_v2  ;;  %vm251_vm11 = vweird.f32 %v660_v59  ;;  %669 = vrsqrt.f32 %v903_v16 }
 0x10b   :  { %v247_v13 = vmul.f32 0.5, %v246_v10  ;;  %v266_v14 = vmul.f32 %v882_v1, %v265_v11  ;;  %v129_v17 = vpop.xlane.xlu2 %128  ;;  %v278_v30 = vmul.f32 %v223_v19, %v784_v39  ;;  %vm252_vm14 = vmor %vm250_vm12, %vm251_vm11  ;;  %v280_v37 = vmul.f32 %v243_v23, %v782_v38 }
 0x10c   :  { %v227_v20 = vmul.f32 0.5, %v226_v12  ;;  %v155_v21 = vmul.f32 %v129_v17, %v778_v32  ;;  %v135_v22 = vpop.xlane.xlu1 %134  ;;  %vm271_vm1 = vweird.f32 %v882_v1  ;;  %vm260_vm2 = vweird.f32 %v877_v61 }
 0x10d   :  { %v248_v24 = vsub.f32 1.5, %v247_v13  ;;  %v157_v25 = vmul.f32 %v135_v22, %v778_v32  ;;  %v267_v28 = vmul.f32 0.5, %v266_v14  ;;  %v292_v38 = vmul.f32 %v928_v34, %v278_v30  ;;  %vm979_vm9 = vmor %vm270_vm15, %vm271_vm1 }
 0x10e   :  { %v910_v26 = vpop.eup %665  ;;  %v228_v27 = vsub.f32 1.5, %v227_v20  ;;  %v913_v29 = vadd.f32 1e-05, %v155_v21  ;;  %vm180_vm4 = vweird.f32 %v880_v0  ;;  %vm200_vm5 = vweird.f32 %v903_v16 }
 0x10f   :  { %v249_v31 = vmul.f32 %v660_v59, %v248_v24  ;;  %v255_v32 = vmul.f32 %v910_v26, %v877_v61  ;;  %v932_v39 = vadd.f32 1e-05, %v157_v25  ;;  %v934_v36 = vpop.eup %667  ;;  %v268_v45 = vsub.f32 1.5, %v267_v28 }
 0x110   :  { %v229_v35 = vmul.f32 %v662_v62, %v228_v27  ;;  %671 = vrsqrt.f32 %v913_v29  ;;  %v175_v46 = vmul.f32 %v934_v36, %v880_v0  ;;  %v670_v49 = vpop.eup %669  ;;  %vm261_vm3 = vweird.f32 %v910_v26 }
 0x111   :  { %v253_v40 = vsel %vm252_vm14, %v660_v59, %v249_v31  ;;  %v256_v41 = vmul.f32 %v910_v26, %v255_v32  ;;  %673 = vrsqrt.f32 %v932_v39  ;;  %v195_v55 = vmul.f32 %v670_v49, %v903_v16  ;;  %vm990_vm12 = vmor %vm260_vm2, %vm261_vm3 }
 0x112   :  { %v281_v42 = vmul.f32 %v253_v40, %v798_v52  ;;  %v233_v44 = vsel %vm919_vm13, %v662_v62, %v229_v35  ;;  %v951_v52 = vld [vmem:[%s1137_s3] ss:$0 sm:$0xff]  ;;  %v176_v50 = vmul.f32 %v934_v36, %v175_v46  ;;  %v294_v57 = vmul.f32 %v928_v34, %v280_v37 }
 0x113   :  { %v279_v47 = vmul.f32 %v233_v44, %v800_v53  ;;  %v257_v48 = vmul.f32 0.5, %v256_v41  ;;  %v269_v59 = vmul.f32 %v882_v1, %v268_v45  ;;  %vm181_vm6 = vweird.f32 %v934_v36 }
 0x114   :  { %v177_v60 = vmul.f32 0.5, %v176_v50  ;;  %v295_v62 = vmul.f32 %v928_v34, %v281_v42  ;;  %v196_v63 = vmul.f32 %v670_v49, %v195_v55  ;;  %vm201_vm7 = vweird.f32 %v670_v49  ;;  %vm970_vm8 = vmor %vm180_vm4, %vm181_vm6 }
 0x115   :  { %v258_v53 = vsub.f32 1.5, %v257_v48  ;;  %v293_v56 = vmul.f32 %v928_v34, %v279_v47  ;;  %v306_v3 = vadd.f32 %v951_v52, %v292_v38  ;;  %v308_v17 = vadd.f32 %v951_v52, %v294_v57  ;;  %vm1003_vm13 = vmor %vm200_vm5, %vm201_vm7 }
 0x116   :  { %v672_v58 = vpop.eup %671  ;;  %v178_v8 = vsub.f32 1.5, %v177_v60  ;;  %v309_v10 = vadd.f32 %v951_v52, %v295_v62  ;;  %v197_v13 = vmul.f32 0.5, %v196_v63  ;;  %vm190_vm10 = vweird.f32 %v913_v29 }
 0x117   :  { %v185_v2 = vmul.f32 %v672_v58, %v913_v29  ;;  %v259_v6 = vmul.f32 %v910_v26, %v258_v53  ;;  %v307_v9 = vadd.f32 %v951_v52, %v293_v56  ;;  %v674_v11 = vpop.eup %673  ;;  %vm191_vm11 = vweird.f32 %v672_v58 }
 0x118   :  { %v179_v19 = vmul.f32 %v934_v36, %v178_v8  ;;  %v205_v0 = vmul.f32 %v674_v11, %v932_v39  ;;  %v696_v20 = vmov 0.0   ;;  %v198_v43 = vsub.f32 1.5, %v197_v13  ;;  %vm192_vm14 = vmor %vm190_vm10, %vm191_vm11 }
 0x119   :  { %v186_v14 = vmul.f32 %v672_v58, %v185_v2  ;;  %34 = vst [vmem:[#allocation2 + $0x38] sm:$0x3f] %v696_v20  ;;  %v324_v23 = vpack.c.bf16 %v307_v9, %v306_v3  ;;  %v325_v24 = vpack.c.bf16 %v309_v10, %v308_v17  ;;  %v263_v25 = vsel %vm990_vm12, %v910_v26, %v259_v6 }
 0x11a   :  { %v183_v27 = vsel %vm970_vm8, %v934_v36, %v179_v19  ;;  %v206_v28 = vmul.f32 %v674_v11, %v205_v0  ;;  %v273_v30 = vsel %vm979_vm9, %v882_v1, %v269_v59  ;;  %v199_v31 = vmul.f32 %v670_v49, %v198_v43 }
 0x11b   :  { %v187_v22 = vmul.f32 0.5, %v186_v14  ;;  %587 = vmatmul.msk.bf16.vlgmr.msra.gmra.mxu2 %vm55_vm0, %v324_v23  ;;  %588 = vmatmul.msk.bf16.vlgmr.msra.gmra.mxu3 %vm55_vm0, %v325_v24  ;;  %v274_v26 = vmul.f32 %v183_v27, %v822_v5  ;;  %vm210_vm15 = vweird.f32 %v932_v39  ;;  %vm211_vm1 = vweird.f32 %v674_v11 }
 0x11c   :  { %v207_v16 = vmul.f32 0.5, %v206_v28  ;;  %v282_v32 = vmul.f32 %v263_v25, %v804_v54  ;;  %v203_v1 = vsel %vm1003_vm13, %v670_v49, %v199_v31  ;;  %v283_v37 = vmul.f32 %v273_v30, %v796_v51  ;;  %vm212_vm2 = vmor %vm210_vm15, %vm211_vm1 }
 0x11d   :  { %v188_v33 = vsub.f32 1.5, %v187_v22  ;;  %v276_v40 = vmul.f32 %v203_v1, %v820_v4  ;;  %v288_v42 = vmul.f32 %v928_v34, %v274_v26 }
 0x11e   :  { %v208_v36 = vsub.f32 1.5, %v207_v16  ;;  %v296_v39 = vmul.f32 %v928_v34, %v282_v32  ;;  %v297_v51 = vmul.f32 %v928_v34, %v283_v37 }
 0x11f   :  { %v189_v35 = vmul.f32 %v672_v58, %v188_v33  ;;  %v290_v46 = vmul.f32 %v928_v34, %v276_v40  ;;  %v302_v4 = vadd.f32 %v951_v52, %v288_v42 }
 0x120   :  { %v209_v41 = vmul.f32 %v674_v11, %v208_v36  ;;  %v310_v48 = vadd.f32 %v951_v52, %v296_v39  ;;  %v311_v53 = vadd.f32 %v951_v52, %v297_v51 }
 0x121   :  { %v193_v5 = vsel %vm192_vm14, %v672_v58, %v189_v35  ;;  %v304_v49 = vadd.f32 %v951_v52, %v290_v46 }
 0x122   :  { %v275_v29 = vmul.f32 %v193_v5, %v825_v7  ;;  %v213_v44 = vsel %vm212_vm2, %v674_v11, %v209_v41  ;;  %v326_v55 = vpack.c.bf16 %v311_v53, %v310_v48 }
 0x123   :  { %v277_v45 = vmul.f32 %v213_v44, %v838_v15 }
 0x124   :  { %v289_v54 = vmul.f32 %v928_v34, %v275_v29 }
 0x125   :  { %v291_v7 = vmul.f32 %v928_v34, %v277_v45  ;;  %v1042_v34 = vld [vmem:[%s1138_s4] ss:$0 sm:$0xff]  ;;  %v321_v45 = vld [vmem:[#allocation2 + $0x38] sm:$0x3f] }
 0x126   :  { %v303_v47 = vadd.f32 %v951_v52, %v289_v54 }
 0x127   :  { %v305_v50 = vadd.f32 %v951_v52, %v291_v7 }
 0x128   :  { %v322_v38 = vpack.c.bf16 %v303_v47, %v302_v4 }
 0x129   :  { %v323_v15 = vpack.c.bf16 %v305_v50, %v304_v49 }
 0x12a   :  { %585 = vmatmul.msk.bf16.vlgmr.msra.gmra.mxu0 %vm55_vm0, %v322_v38 }
 0x12b   :  { %586 = vmatmul.msk.bf16.vlgmr.msra.gmra.mxu1 %vm55_vm0, %v323_v15  ;;  %589 = vmatmul.msk.bf16.gmra.mxu3 %vm55_vm0, %v326_v55 }
 0x19e   :  { %v393_v56 = vpop.f32.mrf.mxu2  ;;  %v398_v57 = vpop.f32.mrf.mxu3 }
 0x19f   :  { %v1045_v58 = vadd.f32 %v1042_v34, %v393_v56  ;;  %v1048_v52 = vadd.f32 %v1042_v34, %v398_v57 }
 0x1a1   :  { %v459_v59 = vmul.f32 %v1045_v58, %v1045_v58  ;;  %v461_v60 = vmul.f32 %v1048_v52, %v1048_v52 }
 0x1a3   :  { %v469_v62 = vmul.f32 %v459_v59, %v1045_v58  ;;  %v471_v63 = vmul.f32 %v461_v60, %v1048_v52 }
 0x1a5   :  { %v479_v8 = vmul.f32 0.044715, %v469_v62  ;;  %v481_v9 = vmul.f32 0.044715, %v471_v63 }
 0x1a6   :  { %v395_v3 = vpop.f32.mrf.mxu2  ;;  %v400_v6 = vpop.f32.mrf.mxu3 }
 0x1a7   :  { %v383_v2 = vpop.f32.mrf.mxu0  ;;  %v489_v12 = vadd.f32 %v479_v8, %v1045_v58  ;;  %v491_v13 = vadd.f32 %v481_v9, %v1048_v52  ;;  %v1062_v14 = vadd.f32 %v1042_v34, %v395_v3  ;;  %v1065_v17 = vadd.f32 %v1042_v34, %v400_v6 }
 0x1a8   :  { %v1057_v10 = vadd.f32 %v1042_v34, %v383_v2  ;;  %v388_v11 = vpop.f32.mrf.mxu1 }
 0x1a9   :  { %v499_v19 = vmul.f32 0.7978846, %v489_v12  ;;  %v460_v0 = vmul.f32 %v1062_v14, %v1062_v14  ;;  %v462_v20 = vmul.f32 %v1065_v17, %v1065_v17  ;;  %v501_v21 = vmul.f32 0.7978846, %v491_v13 }
 0x1aa   :  { %v455_v18 = vmul.f32 %v1057_v10, %v1057_v10  ;;  %v1075_v22 = vadd.f32 %v1042_v34, %v388_v11 }
 0x1ab   :  { %v470_v23 = vmul.f32 %v460_v0, %v1062_v14  ;;  %v472_v24 = vmul.f32 %v462_v20, %v1065_v17  ;;  %675 = vtanh.f32 %v499_v19 }
 0x1ac   :  { %v465_v43 = vmul.f32 %v455_v18, %v1057_v10  ;;  %v457_v61 = vmul.f32 %v1075_v22, %v1075_v22  ;;  %677 = vtanh.f32 %v501_v21 }
 0x1ad   :  { %v480_v30 = vmul.f32 0.044715, %v470_v23  ;;  %v482_v31 = vmul.f32 0.044715, %v472_v24 }
 0x1ae   :  { %v475_v27 = vmul.f32 0.044715, %v465_v43  ;;  %v403_v28 = vpop.f32.mrf.mxu3  ;;  %v467_v26 = vmul.f32 %v457_v61, %v1075_v22 }
 0x1af   :  { %v385_v25 = vpop.f32.mrf.mxu0  ;;  %v490_v1 = vadd.f32 %v480_v30, %v1062_v14  ;;  %v492_v35 = vadd.f32 %v482_v31, %v1065_v17  ;;  %v1089_v36 = vadd.f32 %v1042_v34, %v403_v28 }
 0x1b0   :  { %v485_v33 = vadd.f32 %v475_v27, %v1057_v10  ;;  %v1084_v16 = vadd.f32 %v1042_v34, %v385_v25  ;;  %v390_v32 = vpop.f32.mrf.mxu1  ;;  %v477_v40 = vmul.f32 0.044715, %v467_v26 }
 0x1b1   :  { %v500_v29 = vmul.f32 0.7978846, %v490_v1  ;;  %v502_v41 = vmul.f32 0.7978846, %v492_v35  ;;  %v463_v42 = vmul.f32 %v1089_v36, %v1089_v36  ;;  %v1096_v39 = vadd.f32 %v1042_v34, %v390_v32  ;;  %v676_v46 = vpop.eup %675 }
 0x1b2   :  { %v495_v37 = vmul.f32 0.7978846, %v485_v33  ;;  %v456_v5 = vmul.f32 %v1084_v16, %v1084_v16  ;;  %v487_v44 = vadd.f32 %v477_v40, %v1075_v22  ;;  %v678_v47 = vpop.eup %677  ;;  %v519_v15 = vadd.f32 1.0, %v676_v46 }
 0x1b3   :  { %v473_v51 = vmul.f32 %v463_v42, %v1089_v36  ;;  %v458_v4 = vmul.f32 %v1096_v39, %v1096_v39  ;;  %v521_v56 = vadd.f32 1.0, %v678_v47 }
 0x1b4   :  { %679 = vtanh.f32 %v495_v37  ;;  %v466_v54 = vmul.f32 %v456_v5, %v1084_v16  ;;  %v497_v7 = vmul.f32 0.7978846, %v487_v44  ;;  %v529_v8 = vmul.f32 0.5, %v519_v15 }
 0x1b5   :  { %681 = vtanh.f32 %v500_v29  ;;  %v483_v49 = vmul.f32 0.044715, %v473_v51  ;;  %v468_v50 = vmul.f32 %v458_v4, %v1096_v39  ;;  %v531_v11 = vmul.f32 0.5, %v521_v56 }
 0x1b6   :  { %683 = vtanh.f32 %v502_v41  ;;  %v476_v48 = vmul.f32 0.044715, %v466_v54  ;;  %v405_v38 = vpop.f32.mrf.mxu3  ;;  %v539_v21 = vmul.f32 %v529_v8, %v1045_v58 }
 0x1b7   :  { %v417_v53 = vadd.f32 %v405_v38, %v321_v45  ;;  %685 = vtanh.f32 %v497_v7  ;;  %v493_v57 = vadd.f32 %v483_v49, %v1089_v36  ;;  %v478_v59 = vmul.f32 0.044715, %v468_v50 }
 0x1b8   :  { %v486_v55 = vadd.f32 %v476_v48, %v1084_v16  ;;  %v541_v24 = vmul.f32 %v531_v11, %v1048_v52 }
 0x1b9   :  { %427 = vst [vmem:[#allocation2 + $0x38] sm:$0x3f] %v417_v53  ;;  %v503_v2 = vmul.f32 0.7978846, %v493_v57  ;;  %v488_v3 = vadd.f32 %v478_v59, %v1096_v39 }
 0x1ba   :  { %v680_v60 = vpop.eup %679  ;;  %v496_v62 = vmul.f32 0.7978846, %v486_v55 }
 0x1bb   :  { %v682_v63 = vpop.eup %681  ;;  %v498_v13 = vmul.f32 0.7978846, %v488_v3  ;;  %v515_v20 = vadd.f32 1.0, %v680_v60 }
 0x1bc   :  { %v684_v6 = vpop.eup %683  ;;  %v520_v9 = vadd.f32 1.0, %v682_v63  ;;  %687 = vtanh.f32 %v496_v62 }
 0x1bd   :  { %v522_v12 = vadd.f32 1.0, %v684_v6  ;;  %689 = vtanh.f32 %v503_v2  ;;  %v686_v19 = vpop.eup %685  ;;  %v525_v26 = vmul.f32 0.5, %v515_v20 }
 0x1be   :  { %v530_v18 = vmul.f32 0.5, %v520_v9  ;;  %691 = vtanh.f32 %v498_v13  ;;  %v517_v30 = vadd.f32 1.0, %v686_v19 }
 0x1bf   :  { %v532_v0 = vmul.f32 0.5, %v522_v12  ;;  %v535_v40 = vmul.f32 %v525_v26, %v1057_v10 }
 0x1c0   :  { %v540_v43 = vmul.f32 %v530_v18, %v1062_v14  ;;  %v440_v23 = vld [vmem:[#allocation2 + $0x38] sm:$0x3f] }
 0x1c1   :  { %v542_v25 = vmul.f32 %v532_v0, %v1065_v17  ;;  %v454_v27 = vadd.f32 %v1042_v34, %v440_v23  ;;  %v527_v17 = vmul.f32 0.5, %v517_v30 }
 0x1c2   :  { %v688_v61 = vpop.eup %687  ;;  %v623_v28 = vpack.c.bf16 %v540_v43, %v539_v21 }
 0x1c3   :  { %v690_v31 = vpop.eup %689  ;;  %v628_v33 = vpack.c.bf16 %v542_v25, %v541_v24  ;;  %v516_v32 = vadd.f32 1.0, %v688_v61  ;;  %v464_v1 = vmul.f32 %v454_v27, %v454_v27  ;;  %v537_v45 = vmul.f32 %v527_v17, %v1075_v22 }
 0x1c4   :  { %634 = vst [vmem:[%s1140_s5 + $0x10] sm:$0xff] %v623_v28   ;;  %v523_v58 = vadd.f32 1.0, %v690_v31  ;;  %v692_v14 = vpop.eup %691 }
 0x1c5   :  { %635 = vst [vmem:[%s1140_s5 + $0x18] sm:$0xff] %v628_v33   ;;  %v526_v52 = vmul.f32 0.5, %v516_v32  ;;  %v474_v34 = vmul.f32 %v464_v1, %v454_v27  ;;  %v518_v37 = vadd.f32 1.0, %v692_v14 }
 0x1c6   :  { %v533_v35 = vmul.f32 0.5, %v523_v58 }
 0x1c7   :  { %v536_v5 = vmul.f32 %v526_v52, %v1084_v16  ;;  %v484_v29 = vmul.f32 0.044715, %v474_v34  ;;  %v528_v42 = vmul.f32 0.5, %v518_v37 }
 0x1c8   :  { %v543_v41 = vmul.f32 %v533_v35, %v1089_v36 }
 0x1c9   :  { %v613_v44 = vpack.c.bf16 %v536_v5, %v535_v40  ;;  %v494_v54 = vadd.f32 %v484_v29, %v454_v27  ;;  %v538_v51 = vmul.f32 %v528_v42, %v1096_v39 }
 0x1ca   :  { %v553_v46 = vpack.c.bf16 %v543_v41, %v543_v41 }
 0x1cb   :  { %614 = vst [vmem:[%s1140_s5] sm:$0xff] %v613_v44   ;;  %v504_v4 = vmul.f32 0.7978846, %v494_v54  ;;  %v618_v10 = vpack.c.bf16 %v538_v51, %v537_v45 }
 0x1cc   :  { %563 = vst [vmem:[%s1140_s5 + $0x20] sm:$0xf] %v553_v46 }
 0x1cd   :  { %693 = vtanh.f32 %v504_v4  ;;  %633 = vst [vmem:[%s1140_s5 + $0x8] sm:$0xff] %v618_v10  }
 0x1d3   :  { %v694_v16 = vpop.eup %693 }
 0x1d4   :  { %v524_v22 = vadd.f32 1.0, %v694_v16 }
 0x1d6   :  { %v534_v36 = vmul.f32 0.5, %v524_v22 }
 0x1d8   :  { %v544_v47 = vmul.f32 %v534_v36, %v454_v27 }
 0x1da   :  { %v554_v39 = vpack.c.bf16 %v544_v47, %v544_v47 }
 0x1dc   :  { %564 = vst [vmem:[%s1140_s5 + $0x24] sm:$0x7] %v554_v39 }

// kernel: beit_forward.75
= control target key start
LH: loop header
LB: loop body
LE: loop exit
PB: predicated region body
PF: predicated region fallthrough
CT: control target
= control target key end

     0   :  { %vm29_vm0 = vcmask 521216   ;;  %v167_v3 = vmov 64.0   ;;  %vm25_vm2 = vcmask 13312   ;;  %v168_v20 = vmov 0.0   ;;  %s231_s0 = inlined_call_operand.vmem [shape: bf16[6,64], index: 0, kind: input, shape index: {}]   ;;  %s232_s2 = inlined_call_operand.vmem [shape: f32[1,64], index: 2, kind: input, shape index: {}]   ;;  %s233_s3 = inlined_call_operand.vmem [shape: f32[1,64], index: 3, kind: input, shape index: {}]   ;;  %s234_s4 = inlined_call_operand.vmem [shape: f32[1,2], index: 4, kind: input, shape index: {}]   ;;  %s235_s1 = inlined_call_operand.vmem [shape: bf16[64,2], index: 1, kind: input, shape index: {}]   ;;  %s236_s5 = inlined_call_operand.vmem [shape: f32[6,2], index: 5, kind: output, shape index: {}]  }
   0x1   :  { %v27_v0 = vld [vmem:[%s231_s0] sm:$0x7]  ;;  %163 = vrcp.f32 %v167_v3  ;;  %v157_v15 = vld [vmem:[%s235_s1 + $0x18] sm:$0xff]  ;;  %v156_v16 = vld [vmem:[%s235_s1 + $0x10] sm:$0xff]  ;;  %26 = vst.msk [vmem:[#allocation2] sm:$0x3f] %vm25_vm2, %v168_v20 }
   0x2   :  { %v28_v1 = vunpack.c.l.bf16 %v27_v0  ;;  %111 = vmatpush.bf16.msra.mxu0 %v157_v15  ;;  %v155_v17 = vld [vmem:[%s235_s1 + $0x8] sm:$0xff]  ;;  %v154_v18 = vld [vmem:[%s235_s1] sm:$0xff]  ;;  %vm103_vm6 = vcmask 523264  }
   0x3   :  { %v160_v29 = vld [vmem:[%s232_s2] ss:$0 sm:$0xff] }
   0x4   :  { %v30_v2 = vsel %vm29_vm0, %v28_v1, 0.0  ;;  %v161_v32 = vld [vmem:[%s233_s3] ss:$0 sm:$0xff] }
   0x5   :  { %31 = vadd.xlane.f32.xlu0 %v30_v2  ;;  %v162_v39 = vld [vmem:[%s234_s4] ss:$0 sm:$0xff] }
   0x6   :  { %112 = vmatpush.bf16.msra.mxu0 %v156_v16 }
   0x7   :  { %v164_v4 = vpop.eup %163 }
   0x8   :  { %v34_v5 = vmul.f32 64.0, %v164_v4  ;;  %vm38_vm1 = vweird.f32 %v164_v4  ;;  %v69_v36 = vld [vmem:[#allocation2] sm:$0x3f] }
   0xa   :  { %v35_v6 = vsub.f32 1.0, %v34_v5  ;;  %113 = vmatpush.bf16.msra.mxu0 %v155_v17 }
   0xc   :  { %v36_v7 = vmul.f32 %v164_v4, %v35_v6 }
   0xe   :  { %v37_v8 = vadd.f32 %v164_v4, %v36_v7  ;;  %114 = vmatpush.bf16.msra.mxu0 %v154_v18 }
  0x10   :  { %v39_v9 = vsel %vm38_vm1, %v164_v4, %v37_v8 }
  0x78   :  { %v32_v10 = vpop.xlane.xlu0 %31 }
  0x79   :  { %v40_v11 = vmul.f32 %v39_v9, %v32_v10 }
  0x7b   :  { %v41_v12 = vsub.f32 %v28_v1, %v40_v11 }
  0x7d   :  { %v42_v13 = vmul.f32 %v41_v12, %v41_v12 }
  0x7f   :  { %v43_v14 = vsel %vm29_vm0, %v42_v13, 0.0 }
  0x80   :  { %44 = vadd.xlane.f32.xlu0 %v43_v14 }
  0xf3   :  { %v45_v19 = vpop.xlane.xlu0 %44 }
  0xf4   :  { %v46_v21 = vmul.f32 %v45_v19, %v39_v9 }
  0xf6   :  { %v47_v22 = vadd.f32 1e-05, %v46_v21 }
  0xf8   :  { %165 = vrsqrt.f32 %v47_v22  ;;  %vm54_vm4 = vweird.f32 %v47_v22 }
  0xfe   :  { %v166_v23 = vpop.eup %165 }
  0xff   :  { %v49_v24 = vmul.f32 %v166_v23, %v47_v22  ;;  %vm55_vm3 = vweird.f32 %v166_v23 }
 0x100   :  { %vm56_vm5 = vmor %vm54_vm4, %vm55_vm3 }
 0x101   :  { %v50_v25 = vmul.f32 %v166_v23, %v49_v24 }
 0x103   :  { %v51_v26 = vmul.f32 0.5, %v50_v25 }
 0x105   :  { %v52_v27 = vsub.f32 1.5, %v51_v26 }
 0x107   :  { %v53_v28 = vmul.f32 %v166_v23, %v52_v27 }
 0x109   :  { %v57_v30 = vsel %vm56_vm5, %v166_v23, %v53_v28 }
 0x10a   :  { %v58_v31 = vmul.f32 %v57_v30, %v41_v12 }
 0x10c   :  { %v63_v33 = vmul.f32 %v160_v29, %v58_v31 }
 0x10e   :  { %v68_v34 = vadd.f32 %v161_v32, %v63_v33 }
 0x110   :  { %v70_v35 = vpack.c.bf16 %v68_v34, %v68_v34 }
 0x112   :  { %153 = vmatmul.msk.bf16.vlgmr.msra.gmra.mxu0 %vm103_vm6, %v70_v35 }
 0x18f   :  { %v116_v37 = vpop.f32.mrf.mxu0 }
 0x190   :  { %v120_v38 = vadd.f32 %v116_v37, %v69_v36 }
 0x192   :  { %122 = vst.msk [vmem:[#allocation2] sm:$0x3f] %vm25_vm2, %v120_v38 }
 0x197   :  { %v118_v40 = vpop.f32.mrf.mxu0 }
 0x199   :  { %v126_v41 = vld [vmem:[#allocation2] sm:$0x3f] }
 0x19a   :  { %v131_v42 = vadd.f32 %v162_v39, %v126_v41 }
 0x19c   :  { %132 = vst.msk [vmem:[%s236_s5] sm:$0x3f] %vm25_vm2, %v131_v42 }

</bundles_post_ra>
